<compile_context>
chip_gen: v7x
topology: tpu7x:2x2x1
jax: 0.10.0
libtpu: 0.0.40
codegen_flags: <defaults>
</compile_context>

<pallas_src>
import jax
import jax.numpy as jnp
from jax.experimental import pallas as pl
from jax.experimental.pallas import tpu as pltpu


# ---------------------------------------------------------------------------
# Fused kernel
# ---------------------------------------------------------------------------
def _fused_forward_kernel(x_ref, p1_ref, w1_ref, w1s_ref, b1_ref,
                          w2_ref, b2_ref, wl_ref, bl_ref,
                          g_ref, be_ref, mask_ref, o_ref, h1_ref):
    f32 = jnp.float32
    n = o_ref.shape[0]                                   # batch

    # ---- BatchNorm2d(1): batch statistics (training mode, biased variance) ----
    x = x_ref[...]                                       # (n*28, 28) raw input, f32
    cnt = float(x.shape[0] * x.shape[1])
    mean = jnp.sum(jnp.sum(x, axis=1, keepdims=True), axis=0, keepdims=True) / cnt
    d = x - mean
    var = jnp.sum(jnp.sum(d * d, axis=1, keepdims=True), axis=0, keepdims=True) / cnt
    a = g_ref[...] * jax.lax.rsqrt(var + 1e-5)           # (1,1) BN scale
    c = be_ref[...] - mean * a                           # (1,1) BN shift
    # conv1(a*x + c) = a*(P @ W1) + c*colsum(W1) + b1   (BN folded into conv1)
    beff = c * w1s_ref[...] + b1_ref[...]                # (1,32)

    # ---- conv1 (5x5, 1->32) as im2col matmul + ReLU + 2x2 maxpool -------------
    # p1 rows are ordered (d1, ph, pw, ih, jh, n): the leading 2x2 index d1 is the
    # pool-window member, so pooling = elementwise max over 4 contiguous row blocks.
    w1 = w1_ref[...]                                     # (25,32) bf16
    blk_rows = 4 * 6 * 6 * n                             # 288 for n=2
    h = None
    for d1 in range(4):
        lhs = p1_ref[pl.ds(d1 * blk_rows, blk_rows), :]  # (288,25) bf16
        z = jnp.dot(lhs, w1, preferred_element_type=f32)
        z = jnp.maximum(a * z + beff, 0.0)               # BN-folded affine + ReLU
        h = z if h is None else jnp.maximum(h, z)        # running 2x2 max
    # Pooled (N,12,12,32) activation laid out in VMEM scratch as
    # (group = (ph*2+pw)*6 + ih,  jh*n + n_idx,  c) so that every conv2 window is
    # one contiguous (4, 4n, 32) block read.
    grp = 6 * n                                          # 12
    for g in range(24):
        h1_ref[g] = h[g * grp:(g + 1) * grp, :]

    # ---- conv2 (5x5, 32->16) + ReLU + 2x2 maxpool (all in VMEM) ---------------
    accs = []
    for d2i in range(2):
        for d2j in range(2):
            acc = jnp.zeros((16 * n, 16), f32)           # rows = (io, jo, n)
            for ki in range(5):
                for kj in range(5):
                    sh, sw = d2i + ki, d2j + kj
                    p = (sh & 1) * 2 + (sw & 1)          # parity group
                    oh, ow = sh >> 1, sw >> 1            # half-index offsets
                    win = h1_ref[p * 6 + oh:p * 6 + oh + 4,
                                 ow * n:(ow + 4) * n, :]  # (4, 4n, 32)
                    lhs = win.reshape(16 * n, 32).astype(jnp.bfloat16)
                    acc = acc + jnp.dot(lhs, w2_ref[ki * 5 + kj],
                                        preferred_element_type=f32)
            accs.append(acc)
    y2 = jnp.maximum(jnp.maximum(accs[0], accs[1]),
                     jnp.maximum(accs[2], accs[3]))       # 2x2 maxpool
    h2 = jnp.maximum(y2 + b2_ref[...], 0.0)               # (16n,16), rows (io,jo,n)

    # ---- dropout (precomputed pre-scaled mask) + Linear(256, 10) --------------
    hd = (h2 * mask_ref[...]).astype(jnp.bfloat16)
    logits = jnp.zeros((n, 10), f32)
    for s in range(16):                                   # one block per pooled pixel
        logits = logits + jnp.dot(hd[s * n:(s + 1) * n, :], wl_ref[s],
                                  preferred_element_type=f32)
    z = logits + bl_ref[...]                              # (n,10)

    # ---- LogSoftmax(dim=1) -----------------------------------------------------
    m = jnp.max(z, axis=-1, keepdims=True)
    e = jnp.exp(z - m)
    o_ref[...] = (z - m - jnp.log(jnp.sum(e, axis=-1, keepdims=True))
                  ).astype(o_ref.dtype)


# ---------------------------------------------------------------------------
# Wrapper / parameter prep
# ---------------------------------------------------------------------------
def _full_block_spec(shape):
    return pl.BlockSpec(shape, lambda i, _r=len(shape): (0,) * _r)


def prepare_params(raw):
    """One-time re-layout of PyTorch-shaped parameters into kernel layouts."""
    w1 = jnp.transpose(raw["conv1_w"], (2, 3, 1, 0)).reshape(25, 32)      # (k, o)
    w2 = jnp.transpose(raw["conv2_w"], (2, 3, 1, 0)).reshape(25, 32, 16)  # (k, ci, o)
    # torch flattens NCHW -> features (c, h, w); our pooled rows are (h, w, n)
    # with c on lanes, so pre-permute the linear weight to (h*4+w, c, o).
    wl = raw["lin_w"].reshape(10, 16, 4, 4).transpose(2, 3, 1, 0).reshape(16, 16, 10)
    return {
        "w1": w1.astype(jnp.bfloat16),
        "w1s": jnp.sum(w1, axis=0, keepdims=True).astype(jnp.float32),    # (1,32)
        "b1": raw["conv1_b"].reshape(1, 32).astype(jnp.float32),
        "w2": w2.astype(jnp.bfloat16),
        "b2": raw["conv2_b"].reshape(1, 16).astype(jnp.float32),
        "wl": wl.astype(jnp.bfloat16),
        "bl": raw["lin_b"].reshape(1, 10).astype(jnp.float32),
        "gamma": raw["bn_gamma"].reshape(1, 1).astype(jnp.float32),
        "beta": raw["bn_beta"].reshape(1, 1).astype(jnp.float32),
    }


def basic_conv_model_forward(x_nchw, prep, dropout_key):
    x = x_nchw.astype(jnp.float32)[:, 0]                  # (N,28,28), C_in == 1
    N = x.shape[0]

    # conv1 patches gathered once from the RAW input (BN is affine and folded
    # inside the kernel).  Row order (d1i,d1j, ph,pw, ih, jh, n) makes the
    # in-kernel 2x2 pool and conv2 window reads contiguous-block operations.
    # TODO(synk): this patch gather stays as wrapper-side XLA data movement;
    # with C_in == 1 there is no lane-friendly in-kernel unfold for it.
    wins = jnp.stack([x[:, ki:ki + 24, kj:kj + 24]
                      for ki in range(5) for kj in range(5)], axis=0)  # (25,N,24,24)
    wins = wins.reshape(25, N, 6, 2, 2, 6, 2, 2)          # (k,n,ih,ph,d1i,jh,pw,d1j)
    p1 = jnp.transpose(wins, (4, 7, 3, 6, 2, 5, 1, 0)).reshape(16 * 36 * N, 25)
    p1 = p1.astype(jnp.bfloat16)

    x2 = x.reshape(N * 28, 28)                            # raw input for BN stats

    # F.dropout(p=0.1), training-mode; pre-scaled keep mask, rows (io, jo, n).
    # TODO(synk): RNG stream differs from PyTorch; mask is passed as an operand.
    keep = 0.9
    mask = (jax.random.bernoulli(dropout_key, keep, (16 * N, 16))
            .astype(jnp.float32) / keep)

    operands = (x2, p1, prep["w1"], prep["w1s"], prep["b1"],
                prep["w2"], prep["b2"], prep["wl"], prep["bl"],
                prep["gamma"], prep["beta"], mask)

    return pl.pallas_call(
        _fused_forward_kernel,
        out_shape=jax.ShapeDtypeStruct((N, 10), jnp.float32),
        grid=(1,),
        in_specs=[_full_block_spec(op.shape) for op in operands],
        out_specs=_full_block_spec((N, 10)),
        scratch_shapes=[pltpu.VMEM((24, 6 * N, 32), jnp.float32)],
        compiler_params=pltpu.CompilerParams(dimension_semantics=("arbitrary",)),
    )(*operands)


# ---------------------------------------------------------------------------
# Deterministic parameter init (shapes follow the PyTorch module __init__)
# ---------------------------------------------------------------------------
def init_params(key):
    ks = jax.random.split(key, 6)
    return {
        "bn_gamma": jnp.ones((1,), jnp.float32),
        "bn_beta": jnp.zeros((1,), jnp.float32),
        "conv1_w": 0.1 * jax.random.normal(ks[0], (32, 1, 5, 5), jnp.float32),
        "conv1_b": 0.1 * jax.random.normal(ks[1], (32,), jnp.float32),
        "conv2_w": 0.05 * jax.random.normal(ks[2], (16, 32, 5, 5), jnp.float32),
        "conv2_b": 0.1 * jax.random.normal(ks[3], (16,), jnp.float32),
        "lin_w": 0.05 * jax.random.normal(ks[4], (10, 256), jnp.float32),
        "lin_b": 0.1 * jax.random.normal(ks[5], (10,), jnp.float32),
    }


if __name__ == "__main__":
    root = jax.random.PRNGKey(0)
    k_x, k_p, k_drop = jax.random.split(root, 3)

    # input_shape=(1, 28, 28) per the module; batch=2
    x = jax.random.normal(k_x, (2, 1, 28, 28), jnp.float32)
    prep = prepare_params(init_params(k_p))

    fwd = jax.jit(lambda xx: basic_conv_model_forward(xx, prep, k_drop))
    out = fwd(x)
    jax.block_until_ready(out)

    assert out.shape == (2, 10)
    assert bool(jnp.all(jnp.isfinite(out)))
    # rows of log-softmax must exp-sum to 1
    assert bool(jnp.allclose(jnp.exp(out).sum(axis=1), 1.0, atol=1e-4))
    print("KERNEL_OK")
</pallas_src>

<mosaic_0001>
module attributes {stable_mosaic.version = 11 : i64} {
  func.func @_fused_forward_kernel(%arg0: i32, %arg1: memref<56x28xf32, #tpu.memory_space<vmem>>, %arg2: memref<1152x25xbf16, #tpu.memory_space<vmem>>, %arg3: memref<25x32xbf16, #tpu.memory_space<vmem>>, %arg4: memref<1x32xf32, #tpu.memory_space<vmem>>, %arg5: memref<1x32xf32, #tpu.memory_space<vmem>>, %arg6: memref<25x32x16xbf16, #tpu.memory_space<vmem>>, %arg7: memref<1x16xf32, #tpu.memory_space<vmem>>, %arg8: memref<16x16x10xbf16, #tpu.memory_space<vmem>>, %arg9: memref<1x10xf32, #tpu.memory_space<vmem>>, %arg10: memref<1x1xf32, #tpu.memory_space<vmem>>, %arg11: memref<1x1xf32, #tpu.memory_space<vmem>>, %arg12: memref<32x16xf32, #tpu.memory_space<vmem>>, %arg13: memref<2x10xf32, #tpu.memory_space<vmem>>, %arg14: memref<24x12x32xf32, #tpu.memory_space<vmem>>) attributes {dimension_semantics = [#tpu.dimension_semantics<arbitrary>], iteration_bounds = array<i64: 1>, scalar_prefetch = 0 : i64, scratch_operands = 1 : i64, tpu.core_type = #tpu.core_type<tc>, window_params = [{pipeline_mode = #tpu.pipeline_mode<synchronous>, transform_indices = @transform_0, window_bounds = array<i64: 56, 28>}, {pipeline_mode = #tpu.pipeline_mode<synchronous>, transform_indices = @transform_1, window_bounds = array<i64: 1152, 25>}, {pipeline_mode = #tpu.pipeline_mode<synchronous>, transform_indices = @transform_2, window_bounds = array<i64: 25, 32>}, {pipeline_mode = #tpu.pipeline_mode<synchronous>, transform_indices = @transform_3, window_bounds = array<i64: 1, 32>}, {pipeline_mode = #tpu.pipeline_mode<synchronous>, transform_indices = @transform_4, window_bounds = array<i64: 1, 32>}, {pipeline_mode = #tpu.pipeline_mode<synchronous>, transform_indices = @transform_5, window_bounds = array<i64: 25, 32, 16>}, {pipeline_mode = #tpu.pipeline_mode<synchronous>, transform_indices = @transform_6, window_bounds = array<i64: 1, 16>}, {pipeline_mode = #tpu.pipeline_mode<synchronous>, transform_indices = @transform_7, window_bounds = array<i64: 16, 16, 10>}, {pipeline_mode = #tpu.pipeline_mode<synchronous>, transform_indices = @transform_8, window_bounds = array<i64: 1, 10>}, {pipeline_mode = #tpu.pipeline_mode<synchronous>, transform_indices = @transform_9, window_bounds = array<i64: 1, 1>}, {pipeline_mode = #tpu.pipeline_mode<synchronous>, transform_indices = @transform_10, window_bounds = array<i64: 1, 1>}, {pipeline_mode = #tpu.pipeline_mode<synchronous>, transform_indices = @transform_11, window_bounds = array<i64: 32, 16>}, {pipeline_mode = #tpu.pipeline_mode<synchronous>, transform_indices = @transform_12, window_bounds = array<i64: 2, 10>}]} {
    %c0 = arith.constant 0 : index
    %c0_0 = arith.constant 0 : index
    %0 = vector.load %arg1[%c0, %c0_0] : memref<56x28xf32, #tpu.memory_space<vmem>>, vector<56x28xf32>
    %cst = arith.constant dense<0.000000e+00> : vector<56xf32>
    %1 = vector.multi_reduction <add>, %0, %cst [1] : vector<56x28xf32> to vector<56xf32>
    %2 = vector.shape_cast %1 : vector<56xf32> to vector<56x1xf32>
    %cst_1 = arith.constant dense<0.000000e+00> : vector<1xf32>
    %3 = vector.multi_reduction <add>, %2, %cst_1 [0] : vector<56x1xf32> to vector<1xf32>
    %4 = vector.shape_cast %3 : vector<1xf32> to vector<1x1xf32>
    %cst_2 = arith.constant 1.568000e+03 : f32
    %5 = vector.broadcast %cst_2 : f32 to vector<1x1xf32>
    %6 = arith.divf %4, %5 : vector<1x1xf32>
    %7 = vector.broadcast %6 : vector<1x1xf32> to vector<56x28xf32>
    %8 = arith.subf %0, %7 : vector<56x28xf32>
    %9 = arith.mulf %8, %8 : vector<56x28xf32>
    %cst_3 = arith.constant dense<0.000000e+00> : vector<56xf32>
    %10 = vector.multi_reduction <add>, %9, %cst_3 [1] : vector<56x28xf32> to vector<56xf32>
    %11 = vector.shape_cast %10 : vector<56xf32> to vector<56x1xf32>
    %cst_4 = arith.constant dense<0.000000e+00> : vector<1xf32>
    %12 = vector.multi_reduction <add>, %11, %cst_4 [0] : vector<56x1xf32> to vector<1xf32>
    %13 = vector.shape_cast %12 : vector<1xf32> to vector<1x1xf32>
    %cst_5 = arith.constant 1.568000e+03 : f32
    %14 = vector.broadcast %cst_5 : f32 to vector<1x1xf32>
    %15 = arith.divf %13, %14 : vector<1x1xf32>
    %c0_6 = arith.constant 0 : index
    %c0_7 = arith.constant 0 : index
    %16 = vector.load %arg10[%c0_6, %c0_7] : memref<1x1xf32, #tpu.memory_space<vmem>>, vector<1x1xf32>
    %cst_8 = arith.constant 9.99999974E-6 : f32
    %17 = vector.broadcast %cst_8 : f32 to vector<1x1xf32>
    %18 = arith.addf %15, %17 : vector<1x1xf32>
    %19 = math.rsqrt %18 : vector<1x1xf32>
    %20 = arith.mulf %16, %19 : vector<1x1xf32>
    %c0_9 = arith.constant 0 : index
    %c0_10 = arith.constant 0 : index
    %21 = vector.load %arg11[%c0_9, %c0_10] : memref<1x1xf32, #tpu.memory_space<vmem>>, vector<1x1xf32>
    %22 = arith.mulf %6, %20 : vector<1x1xf32>
    %23 = arith.subf %21, %22 : vector<1x1xf32>
    %c0_11 = arith.constant 0 : index
    %c0_12 = arith.constant 0 : index
    %24 = vector.load %arg4[%c0_11, %c0_12] : memref<1x32xf32, #tpu.memory_space<vmem>>, vector<1x32xf32>
    %25 = vector.broadcast %23 : vector<1x1xf32> to vector<1x32xf32>
    %26 = arith.mulf %25, %24 : vector<1x32xf32>
    %c0_13 = arith.constant 0 : index
    %c0_14 = arith.constant 0 : index
    %27 = vector.load %arg5[%c0_13, %c0_14] : memref<1x32xf32, #tpu.memory_space<vmem>>, vector<1x32xf32>
    %28 = arith.addf %26, %27 : vector<1x32xf32>
    %c0_15 = arith.constant 0 : index
    %c0_16 = arith.constant 0 : index
    %29 = vector.load %arg3[%c0_15, %c0_16] : memref<25x32xbf16, #tpu.memory_space<vmem>>, vector<25x32xbf16>
    %c0_17 = arith.constant 0 : index
    %c0_18 = arith.constant 0 : index
    %30 = vector.load %arg2[%c0_17, %c0_18] : memref<1152x25xbf16, #tpu.memory_space<vmem>>, vector<288x25xbf16>
    %cst_19 = arith.constant dense<0.000000e+00> : vector<288x32xf32>
    %31 = tpu.matmul %30, %29, %cst_19 {dimension_numbers = #tpu.dot_dimension_numbers<[1], [0], [0], [1], [0, 0, 1, 1], [], []>} : vector<288x25xbf16>, vector<25x32xbf16>, vector<288x32xf32> -> vector<288x32xf32>
    %32 = vector.broadcast %20 : vector<1x1xf32> to vector<288x32xf32>
    %33 = arith.mulf %32, %31 : vector<288x32xf32>
    %34 = vector.broadcast %28 : vector<1x32xf32> to vector<288x32xf32>
    %35 = arith.addf %33, %34 : vector<288x32xf32>
    %cst_20 = arith.constant 0.000000e+00 : f32
    %36 = vector.broadcast %cst_20 : f32 to vector<288x32xf32>
    %37 = arith.maximumf %35, %36 : vector<288x32xf32>
    %c288 = arith.constant 288 : index
    %c0_21 = arith.constant 0 : index
    %38 = vector.load %arg2[%c288, %c0_21] : memref<1152x25xbf16, #tpu.memory_space<vmem>>, vector<288x25xbf16>
    %cst_22 = arith.constant dense<0.000000e+00> : vector<288x32xf32>
    %39 = tpu.matmul %38, %29, %cst_22 {dimension_numbers = #tpu.dot_dimension_numbers<[1], [0], [0], [1], [0, 0, 1, 1], [], []>} : vector<288x25xbf16>, vector<25x32xbf16>, vector<288x32xf32> -> vector<288x32xf32>
    %40 = vector.broadcast %20 : vector<1x1xf32> to vector<288x32xf32>
    %41 = arith.mulf %40, %39 : vector<288x32xf32>
    %42 = vector.broadcast %28 : vector<1x32xf32> to vector<288x32xf32>
    %43 = arith.addf %41, %42 : vector<288x32xf32>
    %cst_23 = arith.constant 0.000000e+00 : f32
    %44 = vector.broadcast %cst_23 : f32 to vector<288x32xf32>
    %45 = arith.maximumf %43, %44 : vector<288x32xf32>
    %46 = arith.maximumf %37, %45 : vector<288x32xf32>
    %c576 = arith.constant 576 : index
    %c0_24 = arith.constant 0 : index
    %47 = vector.load %arg2[%c576, %c0_24] : memref<1152x25xbf16, #tpu.memory_space<vmem>>, vector<288x25xbf16>
    %cst_25 = arith.constant dense<0.000000e+00> : vector<288x32xf32>
    %48 = tpu.matmul %47, %29, %cst_25 {dimension_numbers = #tpu.dot_dimension_numbers<[1], [0], [0], [1], [0, 0, 1, 1], [], []>} : vector<288x25xbf16>, vector<25x32xbf16>, vector<288x32xf32> -> vector<288x32xf32>
    %49 = vector.broadcast %20 : vector<1x1xf32> to vector<288x32xf32>
    %50 = arith.mulf %49, %48 : vector<288x32xf32>
    %51 = vector.broadcast %28 : vector<1x32xf32> to vector<288x32xf32>
    %52 = arith.addf %50, %51 : vector<288x32xf32>
    %cst_26 = arith.constant 0.000000e+00 : f32
    %53 = vector.broadcast %cst_26 : f32 to vector<288x32xf32>
    %54 = arith.maximumf %52, %53 : vector<288x32xf32>
    %55 = arith.maximumf %46, %54 : vector<288x32xf32>
    %c864 = arith.constant 864 : index
    %c0_27 = arith.constant 0 : index
    %56 = vector.load %arg2[%c864, %c0_27] : memref<1152x25xbf16, #tpu.memory_space<vmem>>, vector<288x25xbf16>
    %cst_28 = arith.constant dense<0.000000e+00> : vector<288x32xf32>
    %57 = tpu.matmul %56, %29, %cst_28 {dimension_numbers = #tpu.dot_dimension_numbers<[1], [0], [0], [1], [0, 0, 1, 1], [], []>} : vector<288x25xbf16>, vector<25x32xbf16>, vector<288x32xf32> -> vector<288x32xf32>
    %58 = vector.broadcast %20 : vector<1x1xf32> to vector<288x32xf32>
    %59 = arith.mulf %58, %57 : vector<288x32xf32>
    %60 = vector.broadcast %28 : vector<1x32xf32> to vector<288x32xf32>
    %61 = arith.addf %59, %60 : vector<288x32xf32>
    %cst_29 = arith.constant 0.000000e+00 : f32
    %62 = vector.broadcast %cst_29 : f32 to vector<288x32xf32>
    %63 = arith.maximumf %61, %62 : vector<288x32xf32>
    %64 = arith.maximumf %55, %63 : vector<288x32xf32>
    %65 = vector.extract_strided_slice %64 {offsets = [0, 0], sizes = [12, 32], strides = [1, 1]} : vector<288x32xf32> to vector<12x32xf32>
    %c0_30 = arith.constant 0 : index
    %c0_31 = arith.constant 0 : index
    %c0_32 = arith.constant 0 : index
    %66 = vector.load %arg14[%c0_30, %c0_31, %c0_32] : memref<24x12x32xf32, #tpu.memory_space<vmem>>, vector<1x12x32xf32>
    %67 = vector.shape_cast %66 : vector<1x12x32xf32> to vector<12x32xf32>
    %68 = vector.shape_cast %65 : vector<12x32xf32> to vector<1x12x32xf32>
    tpu.vector_store %arg14[%c0_30, %c0_31, %c0_32], %68 {strides = array<i32>} : memref<24x12x32xf32, #tpu.memory_space<vmem>>, vector<1x12x32xf32>,
    %69 = vector.extract_strided_slice %64 {offsets = [12, 0], sizes = [12, 32], strides = [1, 1]} : vector<288x32xf32> to vector<12x32xf32>
    %c1 = arith.constant 1 : index
    %c0_33 = arith.constant 0 : index
    %c0_34 = arith.constant 0 : index
    %70 = vector.load %arg14[%c1, %c0_33, %c0_34] : memref<24x12x32xf32, #tpu.memory_space<vmem>>, vector<1x12x32xf32>
    %71 = vector.shape_cast %70 : vector<1x12x32xf32> to vector<12x32xf32>
    %72 = vector.shape_cast %69 : vector<12x32xf32> to vector<1x12x32xf32>
    tpu.vector_store %arg14[%c1, %c0_33, %c0_34], %72 {strides = array<i32>} : memref<24x12x32xf32, #tpu.memory_space<vmem>>, vector<1x12x32xf32>,
    %73 = vector.extract_strided_slice %64 {offsets = [24, 0], sizes = [12, 32], strides = [1, 1]} : vector<288x32xf32> to vector<12x32xf32>
    %c2 = arith.constant 2 : index
    %c0_35 = arith.constant 0 : index
    %c0_36 = arith.constant 0 : index
    %74 = vector.load %arg14[%c2, %c0_35, %c0_36] : memref<24x12x32xf32, #tpu.memory_space<vmem>>, vector<1x12x32xf32>
    %75 = vector.shape_cast %74 : vector<1x12x32xf32> to vector<12x32xf32>
    %76 = vector.shape_cast %73 : vector<12x32xf32> to vector<1x12x32xf32>
    tpu.vector_store %arg14[%c2, %c0_35, %c0_36], %76 {strides = array<i32>} : memref<24x12x32xf32, #tpu.memory_space<vmem>>, vector<1x12x32xf32>,
    %77 = vector.extract_strided_slice %64 {offsets = [36, 0], sizes = [12, 32], strides = [1, 1]} : vector<288x32xf32> to vector<12x32xf32>
    %c3 = arith.constant 3 : index
    %c0_37 = arith.constant 0 : index
    %c0_38 = arith.constant 0 : index
    %78 = vector.load %arg14[%c3, %c0_37, %c0_38] : memref<24x12x32xf32, #tpu.memory_space<vmem>>, vector<1x12x32xf32>
    %79 = vector.shape_cast %78 : vector<1x12x32xf32> to vector<12x32xf32>
    %80 = vector.shape_cast %77 : vector<12x32xf32> to vector<1x12x32xf32>
    tpu.vector_store %arg14[%c3, %c0_37, %c0_38], %80 {strides = array<i32>} : memref<24x12x32xf32, #tpu.memory_space<vmem>>, vector<1x12x32xf32>,
    %81 = vector.extract_strided_slice %64 {offsets = [48, 0], sizes = [12, 32], strides = [1, 1]} : vector<288x32xf32> to vector<12x32xf32>
    %c4 = arith.constant 4 : index
    %c0_39 = arith.constant 0 : index
    %c0_40 = arith.constant 0 : index
    %82 = vector.load %arg14[%c4, %c0_39, %c0_40] : memref<24x12x32xf32, #tpu.memory_space<vmem>>, vector<1x12x32xf32>
    %83 = vector.shape_cast %82 : vector<1x12x32xf32> to vector<12x32xf32>
    %84 = vector.shape_cast %81 : vector<12x32xf32> to vector<1x12x32xf32>
    tpu.vector_store %arg14[%c4, %c0_39, %c0_40], %84 {strides = array<i32>} : memref<24x12x32xf32, #tpu.memory_space<vmem>>, vector<1x12x32xf32>,
    %85 = vector.extract_strided_slice %64 {offsets = [60, 0], sizes = [12, 32], strides = [1, 1]} : vector<288x32xf32> to vector<12x32xf32>
    %c5 = arith.constant 5 : index
    %c0_41 = arith.constant 0 : index
    %c0_42 = arith.constant 0 : index
    %86 = vector.load %arg14[%c5, %c0_41, %c0_42] : memref<24x12x32xf32, #tpu.memory_space<vmem>>, vector<1x12x32xf32>
    %87 = vector.shape_cast %86 : vector<1x12x32xf32> to vector<12x32xf32>
    %88 = vector.shape_cast %85 : vector<12x32xf32> to vector<1x12x32xf32>
    tpu.vector_store %arg14[%c5, %c0_41, %c0_42], %88 {strides = array<i32>} : memref<24x12x32xf32, #tpu.memory_space<vmem>>, vector<1x12x32xf32>,
    %89 = vector.extract_strided_slice %64 {offsets = [72, 0], sizes = [12, 32], strides = [1, 1]} : vector<288x32xf32> to vector<12x32xf32>
    %c6 = arith.constant 6 : index
    %c0_43 = arith.constant 0 : index
    %c0_44 = arith.constant 0 : index
    %90 = vector.load %arg14[%c6, %c0_43, %c0_44] : memref<24x12x32xf32, #tpu.memory_space<vmem>>, vector<1x12x32xf32>
    %91 = vector.shape_cast %90 : vector<1x12x32xf32> to vector<12x32xf32>
    %92 = vector.shape_cast %89 : vector<12x32xf32> to vector<1x12x32xf32>
    tpu.vector_store %arg14[%c6, %c0_43, %c0_44], %92 {strides = array<i32>} : memref<24x12x32xf32, #tpu.memory_space<vmem>>, vector<1x12x32xf32>,
    %93 = vector.extract_strided_slice %64 {offsets = [84, 0], sizes = [12, 32], strides = [1, 1]} : vector<288x32xf32> to vector<12x32xf32>
    %c7 = arith.constant 7 : index
    %c0_45 = arith.constant 0 : index
    %c0_46 = arith.constant 0 : index
    %94 = vector.load %arg14[%c7, %c0_45, %c0_46] : memref<24x12x32xf32, #tpu.memory_space<vmem>>, vector<1x12x32xf32>
    %95 = vector.shape_cast %94 : vector<1x12x32xf32> to vector<12x32xf32>
    %96 = vector.shape_cast %93 : vector<12x32xf32> to vector<1x12x32xf32>
    tpu.vector_store %arg14[%c7, %c0_45, %c0_46], %96 {strides = array<i32>} : memref<24x12x32xf32, #tpu.memory_space<vmem>>, vector<1x12x32xf32>,
    %97 = vector.extract_strided_slice %64 {offsets = [96, 0], sizes = [12, 32], strides = [1, 1]} : vector<288x32xf32> to vector<12x32xf32>
    %c8 = arith.constant 8 : index
    %c0_47 = arith.constant 0 : index
    %c0_48 = arith.constant 0 : index
    %98 = vector.load %arg14[%c8, %c0_47, %c0_48] : memref<24x12x32xf32, #tpu.memory_space<vmem>>, vector<1x12x32xf32>
    %99 = vector.shape_cast %98 : vector<1x12x32xf32> to vector<12x32xf32>
    %100 = vector.shape_cast %97 : vector<12x32xf32> to vector<1x12x32xf32>
    tpu.vector_store %arg14[%c8, %c0_47, %c0_48], %100 {strides = array<i32>} : memref<24x12x32xf32, #tpu.memory_space<vmem>>, vector<1x12x32xf32>,
    %101 = vector.extract_strided_slice %64 {offsets = [108, 0], sizes = [12, 32], strides = [1, 1]} : vector<288x32xf32> to vector<12x32xf32>
    %c9 = arith.constant 9 : index
    %c0_49 = arith.constant 0 : index
    %c0_50 = arith.constant 0 : index
    %102 = vector.load %arg14[%c9, %c0_49, %c0_50] : memref<24x12x32xf32, #tpu.memory_space<vmem>>, vector<1x12x32xf32>
    %103 = vector.shape_cast %102 : vector<1x12x32xf32> to vector<12x32xf32>
    %104 = vector.shape_cast %101 : vector<12x32xf32> to vector<1x12x32xf32>
    tpu.vector_store %arg14[%c9, %c0_49, %c0_50], %104 {strides = array<i32>} : memref<24x12x32xf32, #tpu.memory_space<vmem>>, vector<1x12x32xf32>,
    %105 = vector.extract_strided_slice %64 {offsets = [120, 0], sizes = [12, 32], strides = [1, 1]} : vector<288x32xf32> to vector<12x32xf32>
    %c10 = arith.constant 10 : index
    %c0_51 = arith.constant 0 : index
    %c0_52 = arith.constant 0 : index
    %106 = vector.load %arg14[%c10, %c0_51, %c0_52] : memref<24x12x32xf32, #tpu.memory_space<vmem>>, vector<1x12x32xf32>
    %107 = vector.shape_cast %106 : vector<1x12x32xf32> to vector<12x32xf32>
    %108 = vector.shape_cast %105 : vector<12x32xf32> to vector<1x12x32xf32>
    tpu.vector_store %arg14[%c10, %c0_51, %c0_52], %108 {strides = array<i32>} : memref<24x12x32xf32, #tpu.memory_space<vmem>>, vector<1x12x32xf32>,
    %109 = vector.extract_strided_slice %64 {offsets = [132, 0], sizes = [12, 32], strides = [1, 1]} : vector<288x32xf32> to vector<12x32xf32>
    %c11 = arith.constant 11 : index
    %c0_53 = arith.constant 0 : index
    %c0_54 = arith.constant 0 : index
    %110 = vector.load %arg14[%c11, %c0_53, %c0_54] : memref<24x12x32xf32, #tpu.memory_space<vmem>>, vector<1x12x32xf32>
    %111 = vector.shape_cast %110 : vector<1x12x32xf32> to vector<12x32xf32>
    %112 = vector.shape_cast %109 : vector<12x32xf32> to vector<1x12x32xf32>
    tpu.vector_store %arg14[%c11, %c0_53, %c0_54], %112 {strides = array<i32>} : memref<24x12x32xf32, #tpu.memory_space<vmem>>, vector<1x12x32xf32>,
    %113 = vector.extract_strided_slice %64 {offsets = [144, 0], sizes = [12, 32], strides = [1, 1]} : vector<288x32xf32> to vector<12x32xf32>
    %c12 = arith.constant 12 : index
    %c0_55 = arith.constant 0 : index
    %c0_56 = arith.constant 0 : index
    %114 = vector.load %arg14[%c12, %c0_55, %c0_56] : memref<24x12x32xf32, #tpu.memory_space<vmem>>, vector<1x12x32xf32>
    %115 = vector.shape_cast %114 : vector<1x12x32xf32> to vector<12x32xf32>
    %116 = vector.shape_cast %113 : vector<12x32xf32> to vector<1x12x32xf32>
    tpu.vector_store %arg14[%c12, %c0_55, %c0_56], %116 {strides = array<i32>} : memref<24x12x32xf32, #tpu.memory_space<vmem>>, vector<1x12x32xf32>,
    %117 = vector.extract_strided_slice %64 {offsets = [156, 0], sizes = [12, 32], strides = [1, 1]} : vector<288x32xf32> to vector<12x32xf32>
    %c13 = arith.constant 13 : index
    %c0_57 = arith.constant 0 : index
    %c0_58 = arith.constant 0 : index
    %118 = vector.load %arg14[%c13, %c0_57, %c0_58] : memref<24x12x32xf32, #tpu.memory_space<vmem>>, vector<1x12x32xf32>
    %119 = vector.shape_cast %118 : vector<1x12x32xf32> to vector<12x32xf32>
    %120 = vector.shape_cast %117 : vector<12x32xf32> to vector<1x12x32xf32>
    tpu.vector_store %arg14[%c13, %c0_57, %c0_58], %120 {strides = array<i32>} : memref<24x12x32xf32, #tpu.memory_space<vmem>>, vector<1x12x32xf32>,
    %121 = vector.extract_strided_slice %64 {offsets = [168, 0], sizes = [12, 32], strides = [1, 1]} : vector<288x32xf32> to vector<12x32xf32>
    %c14 = arith.constant 14 : index
    %c0_59 = arith.constant 0 : index
    %c0_60 = arith.constant 0 : index
    %122 = vector.load %arg14[%c14, %c0_59, %c0_60] : memref<24x12x32xf32, #tpu.memory_space<vmem>>, vector<1x12x32xf32>
    %123 = vector.shape_cast %122 : vector<1x12x32xf32> to vector<12x32xf32>
    %124 = vector.shape_cast %121 : vector<12x32xf32> to vector<1x12x32xf32>
    tpu.vector_store %arg14[%c14, %c0_59, %c0_60], %124 {strides = array<i32>} : memref<24x12x32xf32, #tpu.memory_space<vmem>>, vector<1x12x32xf32>,
    %125 = vector.extract_strided_slice %64 {offsets = [180, 0], sizes = [12, 32], strides = [1, 1]} : vector<288x32xf32> to vector<12x32xf32>
    %c15 = arith.constant 15 : index
    %c0_61 = arith.constant 0 : index
    %c0_62 = arith.constant 0 : index
    %126 = vector.load %arg14[%c15, %c0_61, %c0_62] : memref<24x12x32xf32, #tpu.memory_space<vmem>>, vector<1x12x32xf32>
    %127 = vector.shape_cast %126 : vector<1x12x32xf32> to vector<12x32xf32>
    %128 = vector.shape_cast %125 : vector<12x32xf32> to vector<1x12x32xf32>
    tpu.vector_store %arg14[%c15, %c0_61, %c0_62], %128 {strides = array<i32>} : memref<24x12x32xf32, #tpu.memory_space<vmem>>, vector<1x12x32xf32>,
    %129 = vector.extract_strided_slice %64 {offsets = [192, 0], sizes = [12, 32], strides = [1, 1]} : vector<288x32xf32> to vector<12x32xf32>
    %c16 = arith.constant 16 : index
    %c0_63 = arith.constant 0 : index
    %c0_64 = arith.constant 0 : index
    %130 = vector.load %arg14[%c16, %c0_63, %c0_64] : memref<24x12x32xf32, #tpu.memory_space<vmem>>, vector<1x12x32xf32>
    %131 = vector.shape_cast %130 : vector<1x12x32xf32> to vector<12x32xf32>
    %132 = vector.shape_cast %129 : vector<12x32xf32> to vector<1x12x32xf32>
    tpu.vector_store %arg14[%c16, %c0_63, %c0_64], %132 {strides = array<i32>} : memref<24x12x32xf32, #tpu.memory_space<vmem>>, vector<1x12x32xf32>,
    %133 = vector.extract_strided_slice %64 {offsets = [204, 0], sizes = [12, 32], strides = [1, 1]} : vector<288x32xf32> to vector<12x32xf32>
    %c17 = arith.constant 17 : index
    %c0_65 = arith.constant 0 : index
    %c0_66 = arith.constant 0 : index
    %134 = vector.load %arg14[%c17, %c0_65, %c0_66] : memref<24x12x32xf32, #tpu.memory_space<vmem>>, vector<1x12x32xf32>
    %135 = vector.shape_cast %134 : vector<1x12x32xf32> to vector<12x32xf32>
    %136 = vector.shape_cast %133 : vector<12x32xf32> to vector<1x12x32xf32>
    tpu.vector_store %arg14[%c17, %c0_65, %c0_66], %136 {strides = array<i32>} : memref<24x12x32xf32, #tpu.memory_space<vmem>>, vector<1x12x32xf32>,
    %137 = vector.extract_strided_slice %64 {offsets = [216, 0], sizes = [12, 32], strides = [1, 1]} : vector<288x32xf32> to vector<12x32xf32>
    %c18 = arith.constant 18 : index
    %c0_67 = arith.constant 0 : index
    %c0_68 = arith.constant 0 : index
    %138 = vector.load %arg14[%c18, %c0_67, %c0_68] : memref<24x12x32xf32, #tpu.memory_space<vmem>>, vector<1x12x32xf32>
    %139 = vector.shape_cast %138 : vector<1x12x32xf32> to vector<12x32xf32>
    %140 = vector.shape_cast %137 : vector<12x32xf32> to vector<1x12x32xf32>
    tpu.vector_store %arg14[%c18, %c0_67, %c0_68], %140 {strides = array<i32>} : memref<24x12x32xf32, #tpu.memory_space<vmem>>, vector<1x12x32xf32>,
    %141 = vector.extract_strided_slice %64 {offsets = [228, 0], sizes = [12, 32], strides = [1, 1]} : vector<288x32xf32> to vector<12x32xf32>
    %c19 = arith.constant 19 : index
    %c0_69 = arith.constant 0 : index
    %c0_70 = arith.constant 0 : index
    %142 = vector.load %arg14[%c19, %c0_69, %c0_70] : memref<24x12x32xf32, #tpu.memory_space<vmem>>, vector<1x12x32xf32>
    %143 = vector.shape_cast %142 : vector<1x12x32xf32> to vector<12x32xf32>
    %144 = vector.shape_cast %141 : vector<12x32xf32> to vector<1x12x32xf32>
    tpu.vector_store %arg14[%c19, %c0_69, %c0_70], %144 {strides = array<i32>} : memref<24x12x32xf32, #tpu.memory_space<vmem>>, vector<1x12x32xf32>,
    %145 = vector.extract_strided_slice %64 {offsets = [240, 0], sizes = [12, 32], strides = [1, 1]} : vector<288x32xf32> to vector<12x32xf32>
    %c20 = arith.constant 20 : index
    %c0_71 = arith.constant 0 : index
    %c0_72 = arith.constant 0 : index
    %146 = vector.load %arg14[%c20, %c0_71, %c0_72] : memref<24x12x32xf32, #tpu.memory_space<vmem>>, vector<1x12x32xf32>
    %147 = vector.shape_cast %146 : vector<1x12x32xf32> to vector<12x32xf32>
    %148 = vector.shape_cast %145 : vector<12x32xf32> to vector<1x12x32xf32>
    tpu.vector_store %arg14[%c20, %c0_71, %c0_72], %148 {strides = array<i32>} : memref<24x12x32xf32, #tpu.memory_space<vmem>>, vector<1x12x32xf32>,
    %149 = vector.extract_strided_slice %64 {offsets = [252, 0], sizes = [12, 32], strides = [1, 1]} : vector<288x32xf32> to vector<12x32xf32>
    %c21 = arith.constant 21 : index
    %c0_73 = arith.constant 0 : index
    %c0_74 = arith.constant 0 : index
    %150 = vector.load %arg14[%c21, %c0_73, %c0_74] : memref<24x12x32xf32, #tpu.memory_space<vmem>>, vector<1x12x32xf32>
    %151 = vector.shape_cast %150 : vector<1x12x32xf32> to vector<12x32xf32>
    %152 = vector.shape_cast %149 : vector<12x32xf32> to vector<1x12x32xf32>
    tpu.vector_store %arg14[%c21, %c0_73, %c0_74], %152 {strides = array<i32>} : memref<24x12x32xf32, #tpu.memory_space<vmem>>, vector<1x12x32xf32>,
    %153 = vector.extract_strided_slice %64 {offsets = [264, 0], sizes = [12, 32], strides = [1, 1]} : vector<288x32xf32> to vector<12x32xf32>
    %c22 = arith.constant 22 : index
    %c0_75 = arith.constant 0 : index
    %c0_76 = arith.constant 0 : index
    %154 = vector.load %arg14[%c22, %c0_75, %c0_76] : memref<24x12x32xf32, #tpu.memory_space<vmem>>, vector<1x12x32xf32>
    %155 = vector.shape_cast %154 : vector<1x12x32xf32> to vector<12x32xf32>
    %156 = vector.shape_cast %153 : vector<12x32xf32> to vector<1x12x32xf32>
    tpu.vector_store %arg14[%c22, %c0_75, %c0_76], %156 {strides = array<i32>} : memref<24x12x32xf32, #tpu.memory_space<vmem>>, vector<1x12x32xf32>,
    %157 = vector.extract_strided_slice %64 {offsets = [276, 0], sizes = [12, 32], strides = [1, 1]} : vector<288x32xf32> to vector<12x32xf32>
    %c23 = arith.constant 23 : index
    %c0_77 = arith.constant 0 : index
    %c0_78 = arith.constant 0 : index
    %158 = vector.load %arg14[%c23, %c0_77, %c0_78] : memref<24x12x32xf32, #tpu.memory_space<vmem>>, vector<1x12x32xf32>
    %159 = vector.shape_cast %158 : vector<1x12x32xf32> to vector<12x32xf32>
    %160 = vector.shape_cast %157 : vector<12x32xf32> to vector<1x12x32xf32>
    tpu.vector_store %arg14[%c23, %c0_77, %c0_78], %160 {strides = array<i32>} : memref<24x12x32xf32, #tpu.memory_space<vmem>>, vector<1x12x32xf32>,
    %cst_79 = arith.constant 0.000000e+00 : f32
    %161 = vector.broadcast %cst_79 : f32 to vector<32x16xf32>
    %c0_80 = arith.constant 0 : index
    %c0_81 = arith.constant 0 : index
    %c0_82 = arith.constant 0 : index
    %162 = vector.load %arg14[%c0_80, %c0_81, %c0_82] : memref<24x12x32xf32, #tpu.memory_space<vmem>>, vector<4x8x32xf32>
    %163 = vector.shape_cast %162 : vector<4x8x32xf32> to vector<32x32xf32>
    %164 = arith.truncf %163 : vector<32x32xf32> to vector<32x32xbf16>
    %c0_83 = arith.constant 0 : index
    %c0_84 = arith.constant 0 : index
    %c0_85 = arith.constant 0 : index
    %165 = vector.load %arg6[%c0_83, %c0_84, %c0_85] : memref<25x32x16xbf16, #tpu.memory_space<vmem>>, vector<1x32x16xbf16>
    %166 = vector.shape_cast %165 : vector<1x32x16xbf16> to vector<32x16xbf16>
    %cst_86 = arith.constant dense<0.000000e+00> : vector<32x16xf32>
    %167 = tpu.matmul %164, %166, %cst_86 {dimension_numbers = #tpu.dot_dimension_numbers<[1], [0], [0], [1], [0, 0, 1, 1], [], []>} : vector<32x32xbf16>, vector<32x16xbf16>, vector<32x16xf32> -> vector<32x16xf32>
    %168 = arith.addf %161, %167 : vector<32x16xf32>
    %c6_87 = arith.constant 6 : index
    %c0_88 = arith.constant 0 : index
    %c0_89 = arith.constant 0 : index
    %169 = vector.load %arg14[%c6_87, %c0_88, %c0_89] : memref<24x12x32xf32, #tpu.memory_space<vmem>>, vector<4x8x32xf32>
    %170 = vector.shape_cast %169 : vector<4x8x32xf32> to vector<32x32xf32>
    %171 = arith.truncf %170 : vector<32x32xf32> to vector<32x32xbf16>
    %c1_90 = arith.constant 1 : index
    %c0_91 = arith.constant 0 : index
    %c0_92 = arith.constant 0 : index
    %172 = vector.load %arg6[%c1_90, %c0_91, %c0_92] : memref<25x32x16xbf16, #tpu.memory_space<vmem>>, vector<1x32x16xbf16>
    %173 = vector.shape_cast %172 : vector<1x32x16xbf16> to vector<32x16xbf16>
    %cst_93 = arith.constant dense<0.000000e+00> : vector<32x16xf32>
    %174 = tpu.matmul %171, %173, %cst_93 {dimension_numbers = #tpu.dot_dimension_numbers<[1], [0], [0], [1], [0, 0, 1, 1], [], []>} : vector<32x32xbf16>, vector<32x16xbf16>, vector<32x16xf32> -> vector<32x16xf32>
    %175 = arith.addf %168, %174 : vector<32x16xf32>
    %c0_94 = arith.constant 0 : index
    %c2_95 = arith.constant 2 : index
    %c0_96 = arith.constant 0 : index
    %176 = vector.load %arg14[%c0_94, %c2_95, %c0_96] : memref<24x12x32xf32, #tpu.memory_space<vmem>>, vector<4x8x32xf32>
    %177 = vector.shape_cast %176 : vector<4x8x32xf32> to vector<32x32xf32>
    %178 = arith.truncf %177 : vector<32x32xf32> to vector<32x32xbf16>
    %c2_97 = arith.constant 2 : index
    %c0_98 = arith.constant 0 : index
    %c0_99 = arith.constant 0 : index
    %179 = vector.load %arg6[%c2_97, %c0_98, %c0_99] : memref<25x32x16xbf16, #tpu.memory_space<vmem>>, vector<1x32x16xbf16>
    %180 = vector.shape_cast %179 : vector<1x32x16xbf16> to vector<32x16xbf16>
    %cst_100 = arith.constant dense<0.000000e+00> : vector<32x16xf32>
    %181 = tpu.matmul %178, %180, %cst_100 {dimension_numbers = #tpu.dot_dimension_numbers<[1], [0], [0], [1], [0, 0, 1, 1], [], []>} : vector<32x32xbf16>, vector<32x16xbf16>, vector<32x16xf32> -> vector<32x16xf32>
    %182 = arith.addf %175, %181 : vector<32x16xf32>
    %c6_101 = arith.constant 6 : index
    %c2_102 = arith.constant 2 : index
    %c0_103 = arith.constant 0 : index
    %183 = vector.load %arg14[%c6_101, %c2_102, %c0_103] : memref<24x12x32xf32, #tpu.memory_space<vmem>>, vector<4x8x32xf32>
    %184 = vector.shape_cast %183 : vector<4x8x32xf32> to vector<32x32xf32>
    %185 = arith.truncf %184 : vector<32x32xf32> to vector<32x32xbf16>
    %c3_104 = arith.constant 3 : index
    %c0_105 = arith.constant 0 : index
    %c0_106 = arith.constant 0 : index
    %186 = vector.load %arg6[%c3_104, %c0_105, %c0_106] : memref<25x32x16xbf16, #tpu.memory_space<vmem>>, vector<1x32x16xbf16>
    %187 = vector.shape_cast %186 : vector<1x32x16xbf16> to vector<32x16xbf16>
    %cst_107 = arith.constant dense<0.000000e+00> : vector<32x16xf32>
    %188 = tpu.matmul %185, %187, %cst_107 {dimension_numbers = #tpu.dot_dimension_numbers<[1], [0], [0], [1], [0, 0, 1, 1], [], []>} : vector<32x32xbf16>, vector<32x16xbf16>, vector<32x16xf32> -> vector<32x16xf32>
    %189 = arith.addf %182, %188 : vector<32x16xf32>
    %c0_108 = arith.constant 0 : index
    %c4_109 = arith.constant 4 : index
    %c0_110 = arith.constant 0 : index
    %190 = vector.load %arg14[%c0_108, %c4_109, %c0_110] : memref<24x12x32xf32, #tpu.memory_space<vmem>>, vector<4x8x32xf32>
    %191 = vector.shape_cast %190 : vector<4x8x32xf32> to vector<32x32xf32>
    %192 = arith.truncf %191 : vector<32x32xf32> to vector<32x32xbf16>
    %c4_111 = arith.constant 4 : index
    %c0_112 = arith.constant 0 : index
    %c0_113 = arith.constant 0 : index
    %193 = vector.load %arg6[%c4_111, %c0_112, %c0_113] : memref<25x32x16xbf16, #tpu.memory_space<vmem>>, vector<1x32x16xbf16>
    %194 = vector.shape_cast %193 : vector<1x32x16xbf16> to vector<32x16xbf16>
    %cst_114 = arith.constant dense<0.000000e+00> : vector<32x16xf32>
    %195 = tpu.matmul %192, %194, %cst_114 {dimension_numbers = #tpu.dot_dimension_numbers<[1], [0], [0], [1], [0, 0, 1, 1], [], []>} : vector<32x32xbf16>, vector<32x16xbf16>, vector<32x16xf32> -> vector<32x16xf32>
    %196 = arith.addf %189, %195 : vector<32x16xf32>
    %c12_115 = arith.constant 12 : index
    %c0_116 = arith.constant 0 : index
    %c0_117 = arith.constant 0 : index
    %197 = vector.load %arg14[%c12_115, %c0_116, %c0_117] : memref<24x12x32xf32, #tpu.memory_space<vmem>>, vector<4x8x32xf32>
    %198 = vector.shape_cast %197 : vector<4x8x32xf32> to vector<32x32xf32>
    %199 = arith.truncf %198 : vector<32x32xf32> to vector<32x32xbf16>
    %c5_118 = arith.constant 5 : index
    %c0_119 = arith.constant 0 : index
    %c0_120 = arith.constant 0 : index
    %200 = vector.load %arg6[%c5_118, %c0_119, %c0_120] : memref<25x32x16xbf16, #tpu.memory_space<vmem>>, vector<1x32x16xbf16>
    %201 = vector.shape_cast %200 : vector<1x32x16xbf16> to vector<32x16xbf16>
    %cst_121 = arith.constant dense<0.000000e+00> : vector<32x16xf32>
    %202 = tpu.matmul %199, %201, %cst_121 {dimension_numbers = #tpu.dot_dimension_numbers<[1], [0], [0], [1], [0, 0, 1, 1], [], []>} : vector<32x32xbf16>, vector<32x16xbf16>, vector<32x16xf32> -> vector<32x16xf32>
    %203 = arith.addf %196, %202 : vector<32x16xf32>
    %c18_122 = arith.constant 18 : index
    %c0_123 = arith.constant 0 : index
    %c0_124 = arith.constant 0 : index
    %204 = vector.load %arg14[%c18_122, %c0_123, %c0_124] : memref<24x12x32xf32, #tpu.memory_space<vmem>>, vector<4x8x32xf32>
    %205 = vector.shape_cast %204 : vector<4x8x32xf32> to vector<32x32xf32>
    %206 = arith.truncf %205 : vector<32x32xf32> to vector<32x32xbf16>
    %c6_125 = arith.constant 6 : index
    %c0_126 = arith.constant 0 : index
    %c0_127 = arith.constant 0 : index
    %207 = vector.load %arg6[%c6_125, %c0_126, %c0_127] : memref<25x32x16xbf16, #tpu.memory_space<vmem>>, vector<1x32x16xbf16>
    %208 = vector.shape_cast %207 : vector<1x32x16xbf16> to vector<32x16xbf16>
    %cst_128 = arith.constant dense<0.000000e+00> : vector<32x16xf32>
    %209 = tpu.matmul %206, %208, %cst_128 {dimension_numbers = #tpu.dot_dimension_numbers<[1], [0], [0], [1], [0, 0, 1, 1], [], []>} : vector<32x32xbf16>, vector<32x16xbf16>, vector<32x16xf32> -> vector<32x16xf32>
    %210 = arith.addf %203, %209 : vector<32x16xf32>
    %c12_129 = arith.constant 12 : index
    %c2_130 = arith.constant 2 : index
    %c0_131 = arith.constant 0 : index
    %211 = vector.load %arg14[%c12_129, %c2_130, %c0_131] : memref<24x12x32xf32, #tpu.memory_space<vmem>>, vector<4x8x32xf32>
    %212 = vector.shape_cast %211 : vector<4x8x32xf32> to vector<32x32xf32>
    %213 = arith.truncf %212 : vector<32x32xf32> to vector<32x32xbf16>
    %c7_132 = arith.constant 7 : index
    %c0_133 = arith.constant 0 : index
    %c0_134 = arith.constant 0 : index
    %214 = vector.load %arg6[%c7_132, %c0_133, %c0_134] : memref<25x32x16xbf16, #tpu.memory_space<vmem>>, vector<1x32x16xbf16>
    %215 = vector.shape_cast %214 : vector<1x32x16xbf16> to vector<32x16xbf16>
    %cst_135 = arith.constant dense<0.000000e+00> : vector<32x16xf32>
    %216 = tpu.matmul %213, %215, %cst_135 {dimension_numbers = #tpu.dot_dimension_numbers<[1], [0], [0], [1], [0, 0, 1, 1], [], []>} : vector<32x32xbf16>, vector<32x16xbf16>, vector<32x16xf32> -> vector<32x16xf32>
    %217 = arith.addf %210, %216 : vector<32x16xf32>
    %c18_136 = arith.constant 18 : index
    %c2_137 = arith.constant 2 : index
    %c0_138 = arith.constant 0 : index
    %218 = vector.load %arg14[%c18_136, %c2_137, %c0_138] : memref<24x12x32xf32, #tpu.memory_space<vmem>>, vector<4x8x32xf32>
    %219 = vector.shape_cast %218 : vector<4x8x32xf32> to vector<32x32xf32>
    %220 = arith.truncf %219 : vector<32x32xf32> to vector<32x32xbf16>
    %c8_139 = arith.constant 8 : index
    %c0_140 = arith.constant 0 : index
    %c0_141 = arith.constant 0 : index
    %221 = vector.load %arg6[%c8_139, %c0_140, %c0_141] : memref<25x32x16xbf16, #tpu.memory_space<vmem>>, vector<1x32x16xbf16>
    %222 = vector.shape_cast %221 : vector<1x32x16xbf16> to vector<32x16xbf16>
    %cst_142 = arith.constant dense<0.000000e+00> : vector<32x16xf32>
    %223 = tpu.matmul %220, %222, %cst_142 {dimension_numbers = #tpu.dot_dimension_numbers<[1], [0], [0], [1], [0, 0, 1, 1], [], []>} : vector<32x32xbf16>, vector<32x16xbf16>, vector<32x16xf32> -> vector<32x16xf32>
    %224 = arith.addf %217, %223 : vector<32x16xf32>
    %c12_143 = arith.constant 12 : index
    %c4_144 = arith.constant 4 : index
    %c0_145 = arith.constant 0 : index
    %225 = vector.load %arg14[%c12_143, %c4_144, %c0_145] : memref<24x12x32xf32, #tpu.memory_space<vmem>>, vector<4x8x32xf32>
    %226 = vector.shape_cast %225 : vector<4x8x32xf32> to vector<32x32xf32>
    %227 = arith.truncf %226 : vector<32x32xf32> to vector<32x32xbf16>
    %c9_146 = arith.constant 9 : index
    %c0_147 = arith.constant 0 : index
    %c0_148 = arith.constant 0 : index
    %228 = vector.load %arg6[%c9_146, %c0_147, %c0_148] : memref<25x32x16xbf16, #tpu.memory_space<vmem>>, vector<1x32x16xbf16>
    %229 = vector.shape_cast %228 : vector<1x32x16xbf16> to vector<32x16xbf16>
    %cst_149 = arith.constant dense<0.000000e+00> : vector<32x16xf32>
    %230 = tpu.matmul %227, %229, %cst_149 {dimension_numbers = #tpu.dot_dimension_numbers<[1], [0], [0], [1], [0, 0, 1, 1], [], []>} : vector<32x32xbf16>, vector<32x16xbf16>, vector<32x16xf32> -> vector<32x16xf32>
    %231 = arith.addf %224, %230 : vector<32x16xf32>
    %c1_150 = arith.constant 1 : index
    %c0_151 = arith.constant 0 : index
    %c0_152 = arith.constant 0 : index
    %232 = vector.load %arg14[%c1_150, %c0_151, %c0_152] : memref<24x12x32xf32, #tpu.memory_space<vmem>>, vector<4x8x32xf32>
    %233 = vector.shape_cast %232 : vector<4x8x32xf32> to vector<32x32xf32>
    %234 = arith.truncf %233 : vector<32x32xf32> to vector<32x32xbf16>
    %c10_153 = arith.constant 10 : index
    %c0_154 = arith.constant 0 : index
    %c0_155 = arith.constant 0 : index
    %235 = vector.load %arg6[%c10_153, %c0_154, %c0_155] : memref<25x32x16xbf16, #tpu.memory_space<vmem>>, vector<1x32x16xbf16>
    %236 = vector.shape_cast %235 : vector<1x32x16xbf16> to vector<32x16xbf16>
    %cst_156 = arith.constant dense<0.000000e+00> : vector<32x16xf32>
    %237 = tpu.matmul %234, %236, %cst_156 {dimension_numbers = #tpu.dot_dimension_numbers<[1], [0], [0], [1], [0, 0, 1, 1], [], []>} : vector<32x32xbf16>, vector<32x16xbf16>, vector<32x16xf32> -> vector<32x16xf32>
    %238 = arith.addf %231, %237 : vector<32x16xf32>
    %c7_157 = arith.constant 7 : index
    %c0_158 = arith.constant 0 : index
    %c0_159 = arith.constant 0 : index
    %239 = vector.load %arg14[%c7_157, %c0_158, %c0_159] : memref<24x12x32xf32, #tpu.memory_space<vmem>>, vector<4x8x32xf32>
    %240 = vector.shape_cast %239 : vector<4x8x32xf32> to vector<32x32xf32>
    %241 = arith.truncf %240 : vector<32x32xf32> to vector<32x32xbf16>
    %c11_160 = arith.constant 11 : index
    %c0_161 = arith.constant 0 : index
    %c0_162 = arith.constant 0 : index
    %242 = vector.load %arg6[%c11_160, %c0_161, %c0_162] : memref<25x32x16xbf16, #tpu.memory_space<vmem>>, vector<1x32x16xbf16>
    %243 = vector.shape_cast %242 : vector<1x32x16xbf16> to vector<32x16xbf16>
    %cst_163 = arith.constant dense<0.000000e+00> : vector<32x16xf32>
    %244 = tpu.matmul %241, %243, %cst_163 {dimension_numbers = #tpu.dot_dimension_numbers<[1], [0], [0], [1], [0, 0, 1, 1], [], []>} : vector<32x32xbf16>, vector<32x16xbf16>, vector<32x16xf32> -> vector<32x16xf32>
    %245 = arith.addf %238, %244 : vector<32x16xf32>
    %c1_164 = arith.constant 1 : index
    %c2_165 = arith.constant 2 : index
    %c0_166 = arith.constant 0 : index
    %246 = vector.load %arg14[%c1_164, %c2_165, %c0_166] : memref<24x12x32xf32, #tpu.memory_space<vmem>>, vector<4x8x32xf32>
    %247 = vector.shape_cast %246 : vector<4x8x32xf32> to vector<32x32xf32>
    %248 = arith.truncf %247 : vector<32x32xf32> to vector<32x32xbf16>
    %c12_167 = arith.constant 12 : index
    %c0_168 = arith.constant 0 : index
    %c0_169 = arith.constant 0 : index
    %249 = vector.load %arg6[%c12_167, %c0_168, %c0_169] : memref<25x32x16xbf16, #tpu.memory_space<vmem>>, vector<1x32x16xbf16>
    %250 = vector.shape_cast %249 : vector<1x32x16xbf16> to vector<32x16xbf16>
    %cst_170 = arith.constant dense<0.000000e+00> : vector<32x16xf32>
    %251 = tpu.matmul %248, %250, %cst_170 {dimension_numbers = #tpu.dot_dimension_numbers<[1], [0], [0], [1], [0, 0, 1, 1], [], []>} : vector<32x32xbf16>, vector<32x16xbf16>, vector<32x16xf32> -> vector<32x16xf32>
    %252 = arith.addf %245, %251 : vector<32x16xf32>
    %c7_171 = arith.constant 7 : index
    %c2_172 = arith.constant 2 : index
    %c0_173 = arith.constant 0 : index
    %253 = vector.load %arg14[%c7_171, %c2_172, %c0_173] : memref<24x12x32xf32, #tpu.memory_space<vmem>>, vector<4x8x32xf32>
    %254 = vector.shape_cast %253 : vector<4x8x32xf32> to vector<32x32xf32>
    %255 = arith.truncf %254 : vector<32x32xf32> to vector<32x32xbf16>
    %c13_174 = arith.constant 13 : index
    %c0_175 = arith.constant 0 : index
    %c0_176 = arith.constant 0 : index
    %256 = vector.load %arg6[%c13_174, %c0_175, %c0_176] : memref<25x32x16xbf16, #tpu.memory_space<vmem>>, vector<1x32x16xbf16>
    %257 = vector.shape_cast %256 : vector<1x32x16xbf16> to vector<32x16xbf16>
    %cst_177 = arith.constant dense<0.000000e+00> : vector<32x16xf32>
    %258 = tpu.matmul %255, %257, %cst_177 {dimension_numbers = #tpu.dot_dimension_numbers<[1], [0], [0], [1], [0, 0, 1, 1], [], []>} : vector<32x32xbf16>, vector<32x16xbf16>, vector<32x16xf32> -> vector<32x16xf32>
    %259 = arith.addf %252, %258 : vector<32x16xf32>
    %c1_178 = arith.constant 1 : index
    %c4_179 = arith.constant 4 : index
    %c0_180 = arith.constant 0 : index
    %260 = vector.load %arg14[%c1_178, %c4_179, %c0_180] : memref<24x12x32xf32, #tpu.memory_space<vmem>>, vector<4x8x32xf32>
    %261 = vector.shape_cast %260 : vector<4x8x32xf32> to vector<32x32xf32>
    %262 = arith.truncf %261 : vector<32x32xf32> to vector<32x32xbf16>
    %c14_181 = arith.constant 14 : index
    %c0_182 = arith.constant 0 : index
    %c0_183 = arith.constant 0 : index
    %263 = vector.load %arg6[%c14_181, %c0_182, %c0_183] : memref<25x32x16xbf16, #tpu.memory_space<vmem>>, vector<1x32x16xbf16>
    %264 = vector.shape_cast %263 : vector<1x32x16xbf16> to vector<32x16xbf16>
    %cst_184 = arith.constant dense<0.000000e+00> : vector<32x16xf32>
    %265 = tpu.matmul %262, %264, %cst_184 {dimension_numbers = #tpu.dot_dimension_numbers<[1], [0], [0], [1], [0, 0, 1, 1], [], []>} : vector<32x32xbf16>, vector<32x16xbf16>, vector<32x16xf32> -> vector<32x16xf32>
    %266 = arith.addf %259, %265 : vector<32x16xf32>
    %c13_185 = arith.constant 13 : index
    %c0_186 = arith.constant 0 : index
    %c0_187 = arith.constant 0 : index
    %267 = vector.load %arg14[%c13_185, %c0_186, %c0_187] : memref<24x12x32xf32, #tpu.memory_space<vmem>>, vector<4x8x32xf32>
    %268 = vector.shape_cast %267 : vector<4x8x32xf32> to vector<32x32xf32>
    %269 = arith.truncf %268 : vector<32x32xf32> to vector<32x32xbf16>
    %c15_188 = arith.constant 15 : index
    %c0_189 = arith.constant 0 : index
    %c0_190 = arith.constant 0 : index
    %270 = vector.load %arg6[%c15_188, %c0_189, %c0_190] : memref<25x32x16xbf16, #tpu.memory_space<vmem>>, vector<1x32x16xbf16>
    %271 = vector.shape_cast %270 : vector<1x32x16xbf16> to vector<32x16xbf16>
    %cst_191 = arith.constant dense<0.000000e+00> : vector<32x16xf32>
    %272 = tpu.matmul %269, %271, %cst_191 {dimension_numbers = #tpu.dot_dimension_numbers<[1], [0], [0], [1], [0, 0, 1, 1], [], []>} : vector<32x32xbf16>, vector<32x16xbf16>, vector<32x16xf32> -> vector<32x16xf32>
    %273 = arith.addf %266, %272 : vector<32x16xf32>
    %c19_192 = arith.constant 19 : index
    %c0_193 = arith.constant 0 : index
    %c0_194 = arith.constant 0 : index
    %274 = vector.load %arg14[%c19_192, %c0_193, %c0_194] : memref<24x12x32xf32, #tpu.memory_space<vmem>>, vector<4x8x32xf32>
    %275 = vector.shape_cast %274 : vector<4x8x32xf32> to vector<32x32xf32>
    %276 = arith.truncf %275 : vector<32x32xf32> to vector<32x32xbf16>
    %c16_195 = arith.constant 16 : index
    %c0_196 = arith.constant 0 : index
    %c0_197 = arith.constant 0 : index
    %277 = vector.load %arg6[%c16_195, %c0_196, %c0_197] : memref<25x32x16xbf16, #tpu.memory_space<vmem>>, vector<1x32x16xbf16>
    %278 = vector.shape_cast %277 : vector<1x32x16xbf16> to vector<32x16xbf16>
    %cst_198 = arith.constant dense<0.000000e+00> : vector<32x16xf32>
    %279 = tpu.matmul %276, %278, %cst_198 {dimension_numbers = #tpu.dot_dimension_numbers<[1], [0], [0], [1], [0, 0, 1, 1], [], []>} : vector<32x32xbf16>, vector<32x16xbf16>, vector<32x16xf32> -> vector<32x16xf32>
    %280 = arith.addf %273, %279 : vector<32x16xf32>
    %c13_199 = arith.constant 13 : index
    %c2_200 = arith.constant 2 : index
    %c0_201 = arith.constant 0 : index
    %281 = vector.load %arg14[%c13_199, %c2_200, %c0_201] : memref<24x12x32xf32, #tpu.memory_space<vmem>>, vector<4x8x32xf32>
    %282 = vector.shape_cast %281 : vector<4x8x32xf32> to vector<32x32xf32>
    %283 = arith.truncf %282 : vector<32x32xf32> to vector<32x32xbf16>
    %c17_202 = arith.constant 17 : index
    %c0_203 = arith.constant 0 : index
    %c0_204 = arith.constant 0 : index
    %284 = vector.load %arg6[%c17_202, %c0_203, %c0_204] : memref<25x32x16xbf16, #tpu.memory_space<vmem>>, vector<1x32x16xbf16>
    %285 = vector.shape_cast %284 : vector<1x32x16xbf16> to vector<32x16xbf16>
    %cst_205 = arith.constant dense<0.000000e+00> : vector<32x16xf32>
    %286 = tpu.matmul %283, %285, %cst_205 {dimension_numbers = #tpu.dot_dimension_numbers<[1], [0], [0], [1], [0, 0, 1, 1], [], []>} : vector<32x32xbf16>, vector<32x16xbf16>, vector<32x16xf32> -> vector<32x16xf32>
    %287 = arith.addf %280, %286 : vector<32x16xf32>
    %c19_206 = arith.constant 19 : index
    %c2_207 = arith.constant 2 : index
    %c0_208 = arith.constant 0 : index
    %288 = vector.load %arg14[%c19_206, %c2_207, %c0_208] : memref<24x12x32xf32, #tpu.memory_space<vmem>>, vector<4x8x32xf32>
    %289 = vector.shape_cast %288 : vector<4x8x32xf32> to vector<32x32xf32>
    %290 = arith.truncf %289 : vector<32x32xf32> to vector<32x32xbf16>
    %c18_209 = arith.constant 18 : index
    %c0_210 = arith.constant 0 : index
    %c0_211 = arith.constant 0 : index
    %291 = vector.load %arg6[%c18_209, %c0_210, %c0_211] : memref<25x32x16xbf16, #tpu.memory_space<vmem>>, vector<1x32x16xbf16>
    %292 = vector.shape_cast %291 : vector<1x32x16xbf16> to vector<32x16xbf16>
    %cst_212 = arith.constant dense<0.000000e+00> : vector<32x16xf32>
    %293 = tpu.matmul %290, %292, %cst_212 {dimension_numbers = #tpu.dot_dimension_numbers<[1], [0], [0], [1], [0, 0, 1, 1], [], []>} : vector<32x32xbf16>, vector<32x16xbf16>, vector<32x16xf32> -> vector<32x16xf32>
    %294 = arith.addf %287, %293 : vector<32x16xf32>
    %c13_213 = arith.constant 13 : index
    %c4_214 = arith.constant 4 : index
    %c0_215 = arith.constant 0 : index
    %295 = vector.load %arg14[%c13_213, %c4_214, %c0_215] : memref<24x12x32xf32, #tpu.memory_space<vmem>>, vector<4x8x32xf32>
    %296 = vector.shape_cast %295 : vector<4x8x32xf32> to vector<32x32xf32>
    %297 = arith.truncf %296 : vector<32x32xf32> to vector<32x32xbf16>
    %c19_216 = arith.constant 19 : index
    %c0_217 = arith.constant 0 : index
    %c0_218 = arith.constant 0 : index
    %298 = vector.load %arg6[%c19_216, %c0_217, %c0_218] : memref<25x32x16xbf16, #tpu.memory_space<vmem>>, vector<1x32x16xbf16>
    %299 = vector.shape_cast %298 : vector<1x32x16xbf16> to vector<32x16xbf16>
    %cst_219 = arith.constant dense<0.000000e+00> : vector<32x16xf32>
    %300 = tpu.matmul %297, %299, %cst_219 {dimension_numbers = #tpu.dot_dimension_numbers<[1], [0], [0], [1], [0, 0, 1, 1], [], []>} : vector<32x32xbf16>, vector<32x16xbf16>, vector<32x16xf32> -> vector<32x16xf32>
    %301 = arith.addf %294, %300 : vector<32x16xf32>
    %c2_220 = arith.constant 2 : index
    %c0_221 = arith.constant 0 : index
    %c0_222 = arith.constant 0 : index
    %302 = vector.load %arg14[%c2_220, %c0_221, %c0_222] : memref<24x12x32xf32, #tpu.memory_space<vmem>>, vector<4x8x32xf32>
    %303 = vector.shape_cast %302 : vector<4x8x32xf32> to vector<32x32xf32>
    %304 = arith.truncf %303 : vector<32x32xf32> to vector<32x32xbf16>
    %c20_223 = arith.constant 20 : index
    %c0_224 = arith.constant 0 : index
    %c0_225 = arith.constant 0 : index
    %305 = vector.load %arg6[%c20_223, %c0_224, %c0_225] : memref<25x32x16xbf16, #tpu.memory_space<vmem>>, vector<1x32x16xbf16>
    %306 = vector.shape_cast %305 : vector<1x32x16xbf16> to vector<32x16xbf16>
    %cst_226 = arith.constant dense<0.000000e+00> : vector<32x16xf32>
    %307 = tpu.matmul %304, %306, %cst_226 {dimension_numbers = #tpu.dot_dimension_numbers<[1], [0], [0], [1], [0, 0, 1, 1], [], []>} : vector<32x32xbf16>, vector<32x16xbf16>, vector<32x16xf32> -> vector<32x16xf32>
    %308 = arith.addf %301, %307 : vector<32x16xf32>
    %c8_227 = arith.constant 8 : index
    %c0_228 = arith.constant 0 : index
    %c0_229 = arith.constant 0 : index
    %309 = vector.load %arg14[%c8_227, %c0_228, %c0_229] : memref<24x12x32xf32, #tpu.memory_space<vmem>>, vector<4x8x32xf32>
    %310 = vector.shape_cast %309 : vector<4x8x32xf32> to vector<32x32xf32>
    %311 = arith.truncf %310 : vector<32x32xf32> to vector<32x32xbf16>
    %c21_230 = arith.constant 21 : index
    %c0_231 = arith.constant 0 : index
    %c0_232 = arith.constant 0 : index
    %312 = vector.load %arg6[%c21_230, %c0_231, %c0_232] : memref<25x32x16xbf16, #tpu.memory_space<vmem>>, vector<1x32x16xbf16>
    %313 = vector.shape_cast %312 : vector<1x32x16xbf16> to vector<32x16xbf16>
    %cst_233 = arith.constant dense<0.000000e+00> : vector<32x16xf32>
    %314 = tpu.matmul %311, %313, %cst_233 {dimension_numbers = #tpu.dot_dimension_numbers<[1], [0], [0], [1], [0, 0, 1, 1], [], []>} : vector<32x32xbf16>, vector<32x16xbf16>, vector<32x16xf32> -> vector<32x16xf32>
    %315 = arith.addf %308, %314 : vector<32x16xf32>
    %c2_234 = arith.constant 2 : index
    %c2_235 = arith.constant 2 : index
    %c0_236 = arith.constant 0 : index
    %316 = vector.load %arg14[%c2_234, %c2_235, %c0_236] : memref<24x12x32xf32, #tpu.memory_space<vmem>>, vector<4x8x32xf32>
    %317 = vector.shape_cast %316 : vector<4x8x32xf32> to vector<32x32xf32>
    %318 = arith.truncf %317 : vector<32x32xf32> to vector<32x32xbf16>
    %c22_237 = arith.constant 22 : index
    %c0_238 = arith.constant 0 : index
    %c0_239 = arith.constant 0 : index
    %319 = vector.load %arg6[%c22_237, %c0_238, %c0_239] : memref<25x32x16xbf16, #tpu.memory_space<vmem>>, vector<1x32x16xbf16>
    %320 = vector.shape_cast %319 : vector<1x32x16xbf16> to vector<32x16xbf16>
    %cst_240 = arith.constant dense<0.000000e+00> : vector<32x16xf32>
    %321 = tpu.matmul %318, %320, %cst_240 {dimension_numbers = #tpu.dot_dimension_numbers<[1], [0], [0], [1], [0, 0, 1, 1], [], []>} : vector<32x32xbf16>, vector<32x16xbf16>, vector<32x16xf32> -> vector<32x16xf32>
    %322 = arith.addf %315, %321 : vector<32x16xf32>
    %c8_241 = arith.constant 8 : index
    %c2_242 = arith.constant 2 : index
    %c0_243 = arith.constant 0 : index
    %323 = vector.load %arg14[%c8_241, %c2_242, %c0_243] : memref<24x12x32xf32, #tpu.memory_space<vmem>>, vector<4x8x32xf32>
    %324 = vector.shape_cast %323 : vector<4x8x32xf32> to vector<32x32xf32>
    %325 = arith.truncf %324 : vector<32x32xf32> to vector<32x32xbf16>
    %c23_244 = arith.constant 23 : index
    %c0_245 = arith.constant 0 : index
    %c0_246 = arith.constant 0 : index
    %326 = vector.load %arg6[%c23_244, %c0_245, %c0_246] : memref<25x32x16xbf16, #tpu.memory_space<vmem>>, vector<1x32x16xbf16>
    %327 = vector.shape_cast %326 : vector<1x32x16xbf16> to vector<32x16xbf16>
    %cst_247 = arith.constant dense<0.000000e+00> : vector<32x16xf32>
    %328 = tpu.matmul %325, %327, %cst_247 {dimension_numbers = #tpu.dot_dimension_numbers<[1], [0], [0], [1], [0, 0, 1, 1], [], []>} : vector<32x32xbf16>, vector<32x16xbf16>, vector<32x16xf32> -> vector<32x16xf32>
    %329 = arith.addf %322, %328 : vector<32x16xf32>
    %c2_248 = arith.constant 2 : index
    %c4_249 = arith.constant 4 : index
    %c0_250 = arith.constant 0 : index
    %330 = vector.load %arg14[%c2_248, %c4_249, %c0_250] : memref<24x12x32xf32, #tpu.memory_space<vmem>>, vector<4x8x32xf32>
    %331 = vector.shape_cast %330 : vector<4x8x32xf32> to vector<32x32xf32>
    %332 = arith.truncf %331 : vector<32x32xf32> to vector<32x32xbf16>
    %c24 = arith.constant 24 : index
    %c0_251 = arith.constant 0 : index
    %c0_252 = arith.constant 0 : index
    %333 = vector.load %arg6[%c24, %c0_251, %c0_252] : memref<25x32x16xbf16, #tpu.memory_space<vmem>>, vector<1x32x16xbf16>
    %334 = vector.shape_cast %333 : vector<1x32x16xbf16> to vector<32x16xbf16>
    %cst_253 = arith.constant dense<0.000000e+00> : vector<32x16xf32>
    %335 = tpu.matmul %332, %334, %cst_253 {dimension_numbers = #tpu.dot_dimension_numbers<[1], [0], [0], [1], [0, 0, 1, 1], [], []>} : vector<32x32xbf16>, vector<32x16xbf16>, vector<32x16xf32> -> vector<32x16xf32>
    %336 = arith.addf %329, %335 : vector<32x16xf32>
    %cst_254 = arith.constant 0.000000e+00 : f32
    %337 = vector.broadcast %cst_254 : f32 to vector<32x16xf32>
    %c6_255 = arith.constant 6 : index
    %c0_256 = arith.constant 0 : index
    %c0_257 = arith.constant 0 : index
    %338 = vector.load %arg14[%c6_255, %c0_256, %c0_257] : memref<24x12x32xf32, #tpu.memory_space<vmem>>, vector<4x8x32xf32>
    %339 = vector.shape_cast %338 : vector<4x8x32xf32> to vector<32x32xf32>
    %340 = arith.truncf %339 : vector<32x32xf32> to vector<32x32xbf16>
    %c0_258 = arith.constant 0 : index
    %c0_259 = arith.constant 0 : index
    %c0_260 = arith.constant 0 : index
    %341 = vector.load %arg6[%c0_258, %c0_259, %c0_260] : memref<25x32x16xbf16, #tpu.memory_space<vmem>>, vector<1x32x16xbf16>
    %342 = vector.shape_cast %341 : vector<1x32x16xbf16> to vector<32x16xbf16>
    %cst_261 = arith.constant dense<0.000000e+00> : vector<32x16xf32>
    %343 = tpu.matmul %340, %342, %cst_261 {dimension_numbers = #tpu.dot_dimension_numbers<[1], [0], [0], [1], [0, 0, 1, 1], [], []>} : vector<32x32xbf16>, vector<32x16xbf16>, vector<32x16xf32> -> vector<32x16xf32>
    %344 = arith.addf %337, %343 : vector<32x16xf32>
    %c0_262 = arith.constant 0 : index
    %c2_263 = arith.constant 2 : index
    %c0_264 = arith.constant 0 : index
    %345 = vector.load %arg14[%c0_262, %c2_263, %c0_264] : memref<24x12x32xf32, #tpu.memory_space<vmem>>, vector<4x8x32xf32>
    %346 = vector.shape_cast %345 : vector<4x8x32xf32> to vector<32x32xf32>
    %347 = arith.truncf %346 : vector<32x32xf32> to vector<32x32xbf16>
    %c1_265 = arith.constant 1 : index
    %c0_266 = arith.constant 0 : index
    %c0_267 = arith.constant 0 : index
    %348 = vector.load %arg6[%c1_265, %c0_266, %c0_267] : memref<25x32x16xbf16, #tpu.memory_space<vmem>>, vector<1x32x16xbf16>
    %349 = vector.shape_cast %348 : vector<1x32x16xbf16> to vector<32x16xbf16>
    %cst_268 = arith.constant dense<0.000000e+00> : vector<32x16xf32>
    %350 = tpu.matmul %347, %349, %cst_268 {dimension_numbers = #tpu.dot_dimension_numbers<[1], [0], [0], [1], [0, 0, 1, 1], [], []>} : vector<32x32xbf16>, vector<32x16xbf16>, vector<32x16xf32> -> vector<32x16xf32>
    %351 = arith.addf %344, %350 : vector<32x16xf32>
    %c6_269 = arith.constant 6 : index
    %c2_270 = arith.constant 2 : index
    %c0_271 = arith.constant 0 : index
    %352 = vector.load %arg14[%c6_269, %c2_270, %c0_271] : memref<24x12x32xf32, #tpu.memory_space<vmem>>, vector<4x8x32xf32>
    %353 = vector.shape_cast %352 : vector<4x8x32xf32> to vector<32x32xf32>
    %354 = arith.truncf %353 : vector<32x32xf32> to vector<32x32xbf16>
    %c2_272 = arith.constant 2 : index
    %c0_273 = arith.constant 0 : index
    %c0_274 = arith.constant 0 : index
    %355 = vector.load %arg6[%c2_272, %c0_273, %c0_274] : memref<25x32x16xbf16, #tpu.memory_space<vmem>>, vector<1x32x16xbf16>
    %356 = vector.shape_cast %355 : vector<1x32x16xbf16> to vector<32x16xbf16>
    %cst_275 = arith.constant dense<0.000000e+00> : vector<32x16xf32>
    %357 = tpu.matmul %354, %356, %cst_275 {dimension_numbers = #tpu.dot_dimension_numbers<[1], [0], [0], [1], [0, 0, 1, 1], [], []>} : vector<32x32xbf16>, vector<32x16xbf16>, vector<32x16xf32> -> vector<32x16xf32>
    %358 = arith.addf %351, %357 : vector<32x16xf32>
    %c0_276 = arith.constant 0 : index
    %c4_277 = arith.constant 4 : index
    %c0_278 = arith.constant 0 : index
    %359 = vector.load %arg14[%c0_276, %c4_277, %c0_278] : memref<24x12x32xf32, #tpu.memory_space<vmem>>, vector<4x8x32xf32>
    %360 = vector.shape_cast %359 : vector<4x8x32xf32> to vector<32x32xf32>
    %361 = arith.truncf %360 : vector<32x32xf32> to vector<32x32xbf16>
    %c3_279 = arith.constant 3 : index
    %c0_280 = arith.constant 0 : index
    %c0_281 = arith.constant 0 : index
    %362 = vector.load %arg6[%c3_279, %c0_280, %c0_281] : memref<25x32x16xbf16, #tpu.memory_space<vmem>>, vector<1x32x16xbf16>
    %363 = vector.shape_cast %362 : vector<1x32x16xbf16> to vector<32x16xbf16>
    %cst_282 = arith.constant dense<0.000000e+00> : vector<32x16xf32>
    %364 = tpu.matmul %361, %363, %cst_282 {dimension_numbers = #tpu.dot_dimension_numbers<[1], [0], [0], [1], [0, 0, 1, 1], [], []>} : vector<32x32xbf16>, vector<32x16xbf16>, vector<32x16xf32> -> vector<32x16xf32>
    %365 = arith.addf %358, %364 : vector<32x16xf32>
    %c6_283 = arith.constant 6 : index
    %c4_284 = arith.constant 4 : index
    %c0_285 = arith.constant 0 : index
    %366 = vector.load %arg14[%c6_283, %c4_284, %c0_285] : memref<24x12x32xf32, #tpu.memory_space<vmem>>, vector<4x8x32xf32>
    %367 = vector.shape_cast %366 : vector<4x8x32xf32> to vector<32x32xf32>
    %368 = arith.truncf %367 : vector<32x32xf32> to vector<32x32xbf16>
    %c4_286 = arith.constant 4 : index
    %c0_287 = arith.constant 0 : index
    %c0_288 = arith.constant 0 : index
    %369 = vector.load %arg6[%c4_286, %c0_287, %c0_288] : memref<25x32x16xbf16, #tpu.memory_space<vmem>>, vector<1x32x16xbf16>
    %370 = vector.shape_cast %369 : vector<1x32x16xbf16> to vector<32x16xbf16>
    %cst_289 = arith.constant dense<0.000000e+00> : vector<32x16xf32>
    %371 = tpu.matmul %368, %370, %cst_289 {dimension_numbers = #tpu.dot_dimension_numbers<[1], [0], [0], [1], [0, 0, 1, 1], [], []>} : vector<32x32xbf16>, vector<32x16xbf16>, vector<32x16xf32> -> vector<32x16xf32>
    %372 = arith.addf %365, %371 : vector<32x16xf32>
    %c18_290 = arith.constant 18 : index
    %c0_291 = arith.constant 0 : index
    %c0_292 = arith.constant 0 : index
    %373 = vector.load %arg14[%c18_290, %c0_291, %c0_292] : memref<24x12x32xf32, #tpu.memory_space<vmem>>, vector<4x8x32xf32>
    %374 = vector.shape_cast %373 : vector<4x8x32xf32> to vector<32x32xf32>
    %375 = arith.truncf %374 : vector<32x32xf32> to vector<32x32xbf16>
    %c5_293 = arith.constant 5 : index
    %c0_294 = arith.constant 0 : index
    %c0_295 = arith.constant 0 : index
    %376 = vector.load %arg6[%c5_293, %c0_294, %c0_295] : memref<25x32x16xbf16, #tpu.memory_space<vmem>>, vector<1x32x16xbf16>
    %377 = vector.shape_cast %376 : vector<1x32x16xbf16> to vector<32x16xbf16>
    %cst_296 = arith.constant dense<0.000000e+00> : vector<32x16xf32>
    %378 = tpu.matmul %375, %377, %cst_296 {dimension_numbers = #tpu.dot_dimension_numbers<[1], [0], [0], [1], [0, 0, 1, 1], [], []>} : vector<32x32xbf16>, vector<32x16xbf16>, vector<32x16xf32> -> vector<32x16xf32>
    %379 = arith.addf %372, %378 : vector<32x16xf32>
    %c12_297 = arith.constant 12 : index
    %c2_298 = arith.constant 2 : index
    %c0_299 = arith.constant 0 : index
    %380 = vector.load %arg14[%c12_297, %c2_298, %c0_299] : memref<24x12x32xf32, #tpu.memory_space<vmem>>, vector<4x8x32xf32>
    %381 = vector.shape_cast %380 : vector<4x8x32xf32> to vector<32x32xf32>
    %382 = arith.truncf %381 : vector<32x32xf32> to vector<32x32xbf16>
    %c6_300 = arith.constant 6 : index
    %c0_301 = arith.constant 0 : index
    %c0_302 = arith.constant 0 : index
    %383 = vector.load %arg6[%c6_300, %c0_301, %c0_302] : memref<25x32x16xbf16, #tpu.memory_space<vmem>>, vector<1x32x16xbf16>
    %384 = vector.shape_cast %383 : vector<1x32x16xbf16> to vector<32x16xbf16>
    %cst_303 = arith.constant dense<0.000000e+00> : vector<32x16xf32>
    %385 = tpu.matmul %382, %384, %cst_303 {dimension_numbers = #tpu.dot_dimension_numbers<[1], [0], [0], [1], [0, 0, 1, 1], [], []>} : vector<32x32xbf16>, vector<32x16xbf16>, vector<32x16xf32> -> vector<32x16xf32>
    %386 = arith.addf %379, %385 : vector<32x16xf32>
    %c18_304 = arith.constant 18 : index
    %c2_305 = arith.constant 2 : index
    %c0_306 = arith.constant 0 : index
    %387 = vector.load %arg14[%c18_304, %c2_305, %c0_306] : memref<24x12x32xf32, #tpu.memory_space<vmem>>, vector<4x8x32xf32>
    %388 = vector.shape_cast %387 : vector<4x8x32xf32> to vector<32x32xf32>
    %389 = arith.truncf %388 : vector<32x32xf32> to vector<32x32xbf16>
    %c7_307 = arith.constant 7 : index
    %c0_308 = arith.constant 0 : index
    %c0_309 = arith.constant 0 : index
    %390 = vector.load %arg6[%c7_307, %c0_308, %c0_309] : memref<25x32x16xbf16, #tpu.memory_space<vmem>>, vector<1x32x16xbf16>
    %391 = vector.shape_cast %390 : vector<1x32x16xbf16> to vector<32x16xbf16>
    %cst_310 = arith.constant dense<0.000000e+00> : vector<32x16xf32>
    %392 = tpu.matmul %389, %391, %cst_310 {dimension_numbers = #tpu.dot_dimension_numbers<[1], [0], [0], [1], [0, 0, 1, 1], [], []>} : vector<32x32xbf16>, vector<32x16xbf16>, vector<32x16xf32> -> vector<32x16xf32>
    %393 = arith.addf %386, %392 : vector<32x16xf32>
    %c12_311 = arith.constant 12 : index
    %c4_312 = arith.constant 4 : index
    %c0_313 = arith.constant 0 : index
    %394 = vector.load %arg14[%c12_311, %c4_312, %c0_313] : memref<24x12x32xf32, #tpu.memory_space<vmem>>, vector<4x8x32xf32>
    %395 = vector.shape_cast %394 : vector<4x8x32xf32> to vector<32x32xf32>
    %396 = arith.truncf %395 : vector<32x32xf32> to vector<32x32xbf16>
    %c8_314 = arith.constant 8 : index
    %c0_315 = arith.constant 0 : index
    %c0_316 = arith.constant 0 : index
    %397 = vector.load %arg6[%c8_314, %c0_315, %c0_316] : memref<25x32x16xbf16, #tpu.memory_space<vmem>>, vector<1x32x16xbf16>
    %398 = vector.shape_cast %397 : vector<1x32x16xbf16> to vector<32x16xbf16>
    %cst_317 = arith.constant dense<0.000000e+00> : vector<32x16xf32>
    %399 = tpu.matmul %396, %398, %cst_317 {dimension_numbers = #tpu.dot_dimension_numbers<[1], [0], [0], [1], [0, 0, 1, 1], [], []>} : vector<32x32xbf16>, vector<32x16xbf16>, vector<32x16xf32> -> vector<32x16xf32>
    %400 = arith.addf %393, %399 : vector<32x16xf32>
    %c18_318 = arith.constant 18 : index
    %c4_319 = arith.constant 4 : index
    %c0_320 = arith.constant 0 : index
    %401 = vector.load %arg14[%c18_318, %c4_319, %c0_320] : memref<24x12x32xf32, #tpu.memory_space<vmem>>, vector<4x8x32xf32>
    %402 = vector.shape_cast %401 : vector<4x8x32xf32> to vector<32x32xf32>
    %403 = arith.truncf %402 : vector<32x32xf32> to vector<32x32xbf16>
    %c9_321 = arith.constant 9 : index
    %c0_322 = arith.constant 0 : index
    %c0_323 = arith.constant 0 : index
    %404 = vector.load %arg6[%c9_321, %c0_322, %c0_323] : memref<25x32x16xbf16, #tpu.memory_space<vmem>>, vector<1x32x16xbf16>
    %405 = vector.shape_cast %404 : vector<1x32x16xbf16> to vector<32x16xbf16>
    %cst_324 = arith.constant dense<0.000000e+00> : vector<32x16xf32>
    %406 = tpu.matmul %403, %405, %cst_324 {dimension_numbers = #tpu.dot_dimension_numbers<[1], [0], [0], [1], [0, 0, 1, 1], [], []>} : vector<32x32xbf16>, vector<32x16xbf16>, vector<32x16xf32> -> vector<32x16xf32>
    %407 = arith.addf %400, %406 : vector<32x16xf32>
    %c7_325 = arith.constant 7 : index
    %c0_326 = arith.constant 0 : index
    %c0_327 = arith.constant 0 : index
    %408 = vector.load %arg14[%c7_325, %c0_326, %c0_327] : memref<24x12x32xf32, #tpu.memory_space<vmem>>, vector<4x8x32xf32>
    %409 = vector.shape_cast %408 : vector<4x8x32xf32> to vector<32x32xf32>
    %410 = arith.truncf %409 : vector<32x32xf32> to vector<32x32xbf16>
    %c10_328 = arith.constant 10 : index
    %c0_329 = arith.constant 0 : index
    %c0_330 = arith.constant 0 : index
    %411 = vector.load %arg6[%c10_328, %c0_329, %c0_330] : memref<25x32x16xbf16, #tpu.memory_space<vmem>>, vector<1x32x16xbf16>
    %412 = vector.shape_cast %411 : vector<1x32x16xbf16> to vector<32x16xbf16>
    %cst_331 = arith.constant dense<0.000000e+00> : vector<32x16xf32>
    %413 = tpu.matmul %410, %412, %cst_331 {dimension_numbers = #tpu.dot_dimension_numbers<[1], [0], [0], [1], [0, 0, 1, 1], [], []>} : vector<32x32xbf16>, vector<32x16xbf16>, vector<32x16xf32> -> vector<32x16xf32>
    %414 = arith.addf %407, %413 : vector<32x16xf32>
    %c1_332 = arith.constant 1 : index
    %c2_333 = arith.constant 2 : index
    %c0_334 = arith.constant 0 : index
    %415 = vector.load %arg14[%c1_332, %c2_333, %c0_334] : memref<24x12x32xf32, #tpu.memory_space<vmem>>, vector<4x8x32xf32>
    %416 = vector.shape_cast %415 : vector<4x8x32xf32> to vector<32x32xf32>
    %417 = arith.truncf %416 : vector<32x32xf32> to vector<32x32xbf16>
    %c11_335 = arith.constant 11 : index
    %c0_336 = arith.constant 0 : index
    %c0_337 = arith.constant 0 : index
    %418 = vector.load %arg6[%c11_335, %c0_336, %c0_337] : memref<25x32x16xbf16, #tpu.memory_space<vmem>>, vector<1x32x16xbf16>
    %419 = vector.shape_cast %418 : vector<1x32x16xbf16> to vector<32x16xbf16>
    %cst_338 = arith.constant dense<0.000000e+00> : vector<32x16xf32>
    %420 = tpu.matmul %417, %419, %cst_338 {dimension_numbers = #tpu.dot_dimension_numbers<[1], [0], [0], [1], [0, 0, 1, 1], [], []>} : vector<32x32xbf16>, vector<32x16xbf16>, vector<32x16xf32> -> vector<32x16xf32>
    %421 = arith.addf %414, %420 : vector<32x16xf32>
    %c7_339 = arith.constant 7 : index
    %c2_340 = arith.constant 2 : index
    %c0_341 = arith.constant 0 : index
    %422 = vector.load %arg14[%c7_339, %c2_340, %c0_341] : memref<24x12x32xf32, #tpu.memory_space<vmem>>, vector<4x8x32xf32>
    %423 = vector.shape_cast %422 : vector<4x8x32xf32> to vector<32x32xf32>
    %424 = arith.truncf %423 : vector<32x32xf32> to vector<32x32xbf16>
    %c12_342 = arith.constant 12 : index
    %c0_343 = arith.constant 0 : index
    %c0_344 = arith.constant 0 : index
    %425 = vector.load %arg6[%c12_342, %c0_343, %c0_344] : memref<25x32x16xbf16, #tpu.memory_space<vmem>>, vector<1x32x16xbf16>
    %426 = vector.shape_cast %425 : vector<1x32x16xbf16> to vector<32x16xbf16>
    %cst_345 = arith.constant dense<0.000000e+00> : vector<32x16xf32>
    %427 = tpu.matmul %424, %426, %cst_345 {dimension_numbers = #tpu.dot_dimension_numbers<[1], [0], [0], [1], [0, 0, 1, 1], [], []>} : vector<32x32xbf16>, vector<32x16xbf16>, vector<32x16xf32> -> vector<32x16xf32>
    %428 = arith.addf %421, %427 : vector<32x16xf32>
    %c1_346 = arith.constant 1 : index
    %c4_347 = arith.constant 4 : index
    %c0_348 = arith.constant 0 : index
    %429 = vector.load %arg14[%c1_346, %c4_347, %c0_348] : memref<24x12x32xf32, #tpu.memory_space<vmem>>, vector<4x8x32xf32>
    %430 = vector.shape_cast %429 : vector<4x8x32xf32> to vector<32x32xf32>
    %431 = arith.truncf %430 : vector<32x32xf32> to vector<32x32xbf16>
    %c13_349 = arith.constant 13 : index
    %c0_350 = arith.constant 0 : index
    %c0_351 = arith.constant 0 : index
    %432 = vector.load %arg6[%c13_349, %c0_350, %c0_351] : memref<25x32x16xbf16, #tpu.memory_space<vmem>>, vector<1x32x16xbf16>
    %433 = vector.shape_cast %432 : vector<1x32x16xbf16> to vector<32x16xbf16>
    %cst_352 = arith.constant dense<0.000000e+00> : vector<32x16xf32>
    %434 = tpu.matmul %431, %433, %cst_352 {dimension_numbers = #tpu.dot_dimension_numbers<[1], [0], [0], [1], [0, 0, 1, 1], [], []>} : vector<32x32xbf16>, vector<32x16xbf16>, vector<32x16xf32> -> vector<32x16xf32>
    %435 = arith.addf %428, %434 : vector<32x16xf32>
    %c7_353 = arith.constant 7 : index
    %c4_354 = arith.constant 4 : index
    %c0_355 = arith.constant 0 : index
    %436 = vector.load %arg14[%c7_353, %c4_354, %c0_355] : memref<24x12x32xf32, #tpu.memory_space<vmem>>, vector<4x8x32xf32>
    %437 = vector.shape_cast %436 : vector<4x8x32xf32> to vector<32x32xf32>
    %438 = arith.truncf %437 : vector<32x32xf32> to vector<32x32xbf16>
    %c14_356 = arith.constant 14 : index
    %c0_357 = arith.constant 0 : index
    %c0_358 = arith.constant 0 : index
    %439 = vector.load %arg6[%c14_356, %c0_357, %c0_358] : memref<25x32x16xbf16, #tpu.memory_space<vmem>>, vector<1x32x16xbf16>
    %440 = vector.shape_cast %439 : vector<1x32x16xbf16> to vector<32x16xbf16>
    %cst_359 = arith.constant dense<0.000000e+00> : vector<32x16xf32>
    %441 = tpu.matmul %438, %440, %cst_359 {dimension_numbers = #tpu.dot_dimension_numbers<[1], [0], [0], [1], [0, 0, 1, 1], [], []>} : vector<32x32xbf16>, vector<32x16xbf16>, vector<32x16xf32> -> vector<32x16xf32>
    %442 = arith.addf %435, %441 : vector<32x16xf32>
    %c19_360 = arith.constant 19 : index
    %c0_361 = arith.constant 0 : index
    %c0_362 = arith.constant 0 : index
    %443 = vector.load %arg14[%c19_360, %c0_361, %c0_362] : memref<24x12x32xf32, #tpu.memory_space<vmem>>, vector<4x8x32xf32>
    %444 = vector.shape_cast %443 : vector<4x8x32xf32> to vector<32x32xf32>
    %445 = arith.truncf %444 : vector<32x32xf32> to vector<32x32xbf16>
    %c15_363 = arith.constant 15 : index
    %c0_364 = arith.constant 0 : index
    %c0_365 = arith.constant 0 : index
    %446 = vector.load %arg6[%c15_363, %c0_364, %c0_365] : memref<25x32x16xbf16, #tpu.memory_space<vmem>>, vector<1x32x16xbf16>
    %447 = vector.shape_cast %446 : vector<1x32x16xbf16> to vector<32x16xbf16>
    %cst_366 = arith.constant dense<0.000000e+00> : vector<32x16xf32>
    %448 = tpu.matmul %445, %447, %cst_366 {dimension_numbers = #tpu.dot_dimension_numbers<[1], [0], [0], [1], [0, 0, 1, 1], [], []>} : vector<32x32xbf16>, vector<32x16xbf16>, vector<32x16xf32> -> vector<32x16xf32>
    %449 = arith.addf %442, %448 : vector<32x16xf32>
    %c13_367 = arith.constant 13 : index
    %c2_368 = arith.constant 2 : index
    %c0_369 = arith.constant 0 : index
    %450 = vector.load %arg14[%c13_367, %c2_368, %c0_369] : memref<24x12x32xf32, #tpu.memory_space<vmem>>, vector<4x8x32xf32>
    %451 = vector.shape_cast %450 : vector<4x8x32xf32> to vector<32x32xf32>
    %452 = arith.truncf %451 : vector<32x32xf32> to vector<32x32xbf16>
    %c16_370 = arith.constant 16 : index
    %c0_371 = arith.constant 0 : index
    %c0_372 = arith.constant 0 : index
    %453 = vector.load %arg6[%c16_370, %c0_371, %c0_372] : memref<25x32x16xbf16, #tpu.memory_space<vmem>>, vector<1x32x16xbf16>
    %454 = vector.shape_cast %453 : vector<1x32x16xbf16> to vector<32x16xbf16>
    %cst_373 = arith.constant dense<0.000000e+00> : vector<32x16xf32>
    %455 = tpu.matmul %452, %454, %cst_373 {dimension_numbers = #tpu.dot_dimension_numbers<[1], [0], [0], [1], [0, 0, 1, 1], [], []>} : vector<32x32xbf16>, vector<32x16xbf16>, vector<32x16xf32> -> vector<32x16xf32>
    %456 = arith.addf %449, %455 : vector<32x16xf32>
    %c19_374 = arith.constant 19 : index
    %c2_375 = arith.constant 2 : index
    %c0_376 = arith.constant 0 : index
    %457 = vector.load %arg14[%c19_374, %c2_375, %c0_376] : memref<24x12x32xf32, #tpu.memory_space<vmem>>, vector<4x8x32xf32>
    %458 = vector.shape_cast %457 : vector<4x8x32xf32> to vector<32x32xf32>
    %459 = arith.truncf %458 : vector<32x32xf32> to vector<32x32xbf16>
    %c17_377 = arith.constant 17 : index
    %c0_378 = arith.constant 0 : index
    %c0_379 = arith.constant 0 : index
    %460 = vector.load %arg6[%c17_377, %c0_378, %c0_379] : memref<25x32x16xbf16, #tpu.memory_space<vmem>>, vector<1x32x16xbf16>
    %461 = vector.shape_cast %460 : vector<1x32x16xbf16> to vector<32x16xbf16>
    %cst_380 = arith.constant dense<0.000000e+00> : vector<32x16xf32>
    %462 = tpu.matmul %459, %461, %cst_380 {dimension_numbers = #tpu.dot_dimension_numbers<[1], [0], [0], [1], [0, 0, 1, 1], [], []>} : vector<32x32xbf16>, vector<32x16xbf16>, vector<32x16xf32> -> vector<32x16xf32>
    %463 = arith.addf %456, %462 : vector<32x16xf32>
    %c13_381 = arith.constant 13 : index
    %c4_382 = arith.constant 4 : index
    %c0_383 = arith.constant 0 : index
    %464 = vector.load %arg14[%c13_381, %c4_382, %c0_383] : memref<24x12x32xf32, #tpu.memory_space<vmem>>, vector<4x8x32xf32>
    %465 = vector.shape_cast %464 : vector<4x8x32xf32> to vector<32x32xf32>
    %466 = arith.truncf %465 : vector<32x32xf32> to vector<32x32xbf16>
    %c18_384 = arith.constant 18 : index
    %c0_385 = arith.constant 0 : index
    %c0_386 = arith.constant 0 : index
    %467 = vector.load %arg6[%c18_384, %c0_385, %c0_386] : memref<25x32x16xbf16, #tpu.memory_space<vmem>>, vector<1x32x16xbf16>
    %468 = vector.shape_cast %467 : vector<1x32x16xbf16> to vector<32x16xbf16>
    %cst_387 = arith.constant dense<0.000000e+00> : vector<32x16xf32>
    %469 = tpu.matmul %466, %468, %cst_387 {dimension_numbers = #tpu.dot_dimension_numbers<[1], [0], [0], [1], [0, 0, 1, 1], [], []>} : vector<32x32xbf16>, vector<32x16xbf16>, vector<32x16xf32> -> vector<32x16xf32>
    %470 = arith.addf %463, %469 : vector<32x16xf32>
    %c19_388 = arith.constant 19 : index
    %c4_389 = arith.constant 4 : index
    %c0_390 = arith.constant 0 : index
    %471 = vector.load %arg14[%c19_388, %c4_389, %c0_390] : memref<24x12x32xf32, #tpu.memory_space<vmem>>, vector<4x8x32xf32>
    %472 = vector.shape_cast %471 : vector<4x8x32xf32> to vector<32x32xf32>
    %473 = arith.truncf %472 : vector<32x32xf32> to vector<32x32xbf16>
    %c19_391 = arith.constant 19 : index
    %c0_392 = arith.constant 0 : index
    %c0_393 = arith.constant 0 : index
    %474 = vector.load %arg6[%c19_391, %c0_392, %c0_393] : memref<25x32x16xbf16, #tpu.memory_space<vmem>>, vector<1x32x16xbf16>
    %475 = vector.shape_cast %474 : vector<1x32x16xbf16> to vector<32x16xbf16>
    %cst_394 = arith.constant dense<0.000000e+00> : vector<32x16xf32>
    %476 = tpu.matmul %473, %475, %cst_394 {dimension_numbers = #tpu.dot_dimension_numbers<[1], [0], [0], [1], [0, 0, 1, 1], [], []>} : vector<32x32xbf16>, vector<32x16xbf16>, vector<32x16xf32> -> vector<32x16xf32>
    %477 = arith.addf %470, %476 : vector<32x16xf32>
    %c8_395 = arith.constant 8 : index
    %c0_396 = arith.constant 0 : index
    %c0_397 = arith.constant 0 : index
    %478 = vector.load %arg14[%c8_395, %c0_396, %c0_397] : memref<24x12x32xf32, #tpu.memory_space<vmem>>, vector<4x8x32xf32>
    %479 = vector.shape_cast %478 : vector<4x8x32xf32> to vector<32x32xf32>
    %480 = arith.truncf %479 : vector<32x32xf32> to vector<32x32xbf16>
    %c20_398 = arith.constant 20 : index
    %c0_399 = arith.constant 0 : index
    %c0_400 = arith.constant 0 : index
    %481 = vector.load %arg6[%c20_398, %c0_399, %c0_400] : memref<25x32x16xbf16, #tpu.memory_space<vmem>>, vector<1x32x16xbf16>
    %482 = vector.shape_cast %481 : vector<1x32x16xbf16> to vector<32x16xbf16>
    %cst_401 = arith.constant dense<0.000000e+00> : vector<32x16xf32>
    %483 = tpu.matmul %480, %482, %cst_401 {dimension_numbers = #tpu.dot_dimension_numbers<[1], [0], [0], [1], [0, 0, 1, 1], [], []>} : vector<32x32xbf16>, vector<32x16xbf16>, vector<32x16xf32> -> vector<32x16xf32>
    %484 = arith.addf %477, %483 : vector<32x16xf32>
    %c2_402 = arith.constant 2 : index
    %c2_403 = arith.constant 2 : index
    %c0_404 = arith.constant 0 : index
    %485 = vector.load %arg14[%c2_402, %c2_403, %c0_404] : memref<24x12x32xf32, #tpu.memory_space<vmem>>, vector<4x8x32xf32>
    %486 = vector.shape_cast %485 : vector<4x8x32xf32> to vector<32x32xf32>
    %487 = arith.truncf %486 : vector<32x32xf32> to vector<32x32xbf16>
    %c21_405 = arith.constant 21 : index
    %c0_406 = arith.constant 0 : index
    %c0_407 = arith.constant 0 : index
    %488 = vector.load %arg6[%c21_405, %c0_406, %c0_407] : memref<25x32x16xbf16, #tpu.memory_space<vmem>>, vector<1x32x16xbf16>
    %489 = vector.shape_cast %488 : vector<1x32x16xbf16> to vector<32x16xbf16>
    %cst_408 = arith.constant dense<0.000000e+00> : vector<32x16xf32>
    %490 = tpu.matmul %487, %489, %cst_408 {dimension_numbers = #tpu.dot_dimension_numbers<[1], [0], [0], [1], [0, 0, 1, 1], [], []>} : vector<32x32xbf16>, vector<32x16xbf16>, vector<32x16xf32> -> vector<32x16xf32>
    %491 = arith.addf %484, %490 : vector<32x16xf32>
    %c8_409 = arith.constant 8 : index
    %c2_410 = arith.constant 2 : index
    %c0_411 = arith.constant 0 : index
    %492 = vector.load %arg14[%c8_409, %c2_410, %c0_411] : memref<24x12x32xf32, #tpu.memory_space<vmem>>, vector<4x8x32xf32>
    %493 = vector.shape_cast %492 : vector<4x8x32xf32> to vector<32x32xf32>
    %494 = arith.truncf %493 : vector<32x32xf32> to vector<32x32xbf16>
    %c22_412 = arith.constant 22 : index
    %c0_413 = arith.constant 0 : index
    %c0_414 = arith.constant 0 : index
    %495 = vector.load %arg6[%c22_412, %c0_413, %c0_414] : memref<25x32x16xbf16, #tpu.memory_space<vmem>>, vector<1x32x16xbf16>
    %496 = vector.shape_cast %495 : vector<1x32x16xbf16> to vector<32x16xbf16>
    %cst_415 = arith.constant dense<0.000000e+00> : vector<32x16xf32>
    %497 = tpu.matmul %494, %496, %cst_415 {dimension_numbers = #tpu.dot_dimension_numbers<[1], [0], [0], [1], [0, 0, 1, 1], [], []>} : vector<32x32xbf16>, vector<32x16xbf16>, vector<32x16xf32> -> vector<32x16xf32>
    %498 = arith.addf %491, %497 : vector<32x16xf32>
    %c2_416 = arith.constant 2 : index
    %c4_417 = arith.constant 4 : index
    %c0_418 = arith.constant 0 : index
    %499 = vector.load %arg14[%c2_416, %c4_417, %c0_418] : memref<24x12x32xf32, #tpu.memory_space<vmem>>, vector<4x8x32xf32>
    %500 = vector.shape_cast %499 : vector<4x8x32xf32> to vector<32x32xf32>
    %501 = arith.truncf %500 : vector<32x32xf32> to vector<32x32xbf16>
    %c23_419 = arith.constant 23 : index
    %c0_420 = arith.constant 0 : index
    %c0_421 = arith.constant 0 : index
    %502 = vector.load %arg6[%c23_419, %c0_420, %c0_421] : memref<25x32x16xbf16, #tpu.memory_space<vmem>>, vector<1x32x16xbf16>
    %503 = vector.shape_cast %502 : vector<1x32x16xbf16> to vector<32x16xbf16>
    %cst_422 = arith.constant dense<0.000000e+00> : vector<32x16xf32>
    %504 = tpu.matmul %501, %503, %cst_422 {dimension_numbers = #tpu.dot_dimension_numbers<[1], [0], [0], [1], [0, 0, 1, 1], [], []>} : vector<32x32xbf16>, vector<32x16xbf16>, vector<32x16xf32> -> vector<32x16xf32>
    %505 = arith.addf %498, %504 : vector<32x16xf32>
    %c8_423 = arith.constant 8 : index
    %c4_424 = arith.constant 4 : index
    %c0_425 = arith.constant 0 : index
    %506 = vector.load %arg14[%c8_423, %c4_424, %c0_425] : memref<24x12x32xf32, #tpu.memory_space<vmem>>, vector<4x8x32xf32>
    %507 = vector.shape_cast %506 : vector<4x8x32xf32> to vector<32x32xf32>
    %508 = arith.truncf %507 : vector<32x32xf32> to vector<32x32xbf16>
    %c24_426 = arith.constant 24 : index
    %c0_427 = arith.constant 0 : index
    %c0_428 = arith.constant 0 : index
    %509 = vector.load %arg6[%c24_426, %c0_427, %c0_428] : memref<25x32x16xbf16, #tpu.memory_space<vmem>>, vector<1x32x16xbf16>
    %510 = vector.shape_cast %509 : vector<1x32x16xbf16> to vector<32x16xbf16>
    %cst_429 = arith.constant dense<0.000000e+00> : vector<32x16xf32>
    %511 = tpu.matmul %508, %510, %cst_429 {dimension_numbers = #tpu.dot_dimension_numbers<[1], [0], [0], [1], [0, 0, 1, 1], [], []>} : vector<32x32xbf16>, vector<32x16xbf16>, vector<32x16xf32> -> vector<32x16xf32>
    %512 = arith.addf %505, %511 : vector<32x16xf32>
    %cst_430 = arith.constant 0.000000e+00 : f32
    %513 = vector.broadcast %cst_430 : f32 to vector<32x16xf32>
    %c12_431 = arith.constant 12 : index
    %c0_432 = arith.constant 0 : index
    %c0_433 = arith.constant 0 : index
    %514 = vector.load %arg14[%c12_431, %c0_432, %c0_433] : memref<24x12x32xf32, #tpu.memory_space<vmem>>, vector<4x8x32xf32>
    %515 = vector.shape_cast %514 : vector<4x8x32xf32> to vector<32x32xf32>
    %516 = arith.truncf %515 : vector<32x32xf32> to vector<32x32xbf16>
    %c0_434 = arith.constant 0 : index
    %c0_435 = arith.constant 0 : index
    %c0_436 = arith.constant 0 : index
    %517 = vector.load %arg6[%c0_434, %c0_435, %c0_436] : memref<25x32x16xbf16, #tpu.memory_space<vmem>>, vector<1x32x16xbf16>
    %518 = vector.shape_cast %517 : vector<1x32x16xbf16> to vector<32x16xbf16>
    %cst_437 = arith.constant dense<0.000000e+00> : vector<32x16xf32>
    %519 = tpu.matmul %516, %518, %cst_437 {dimension_numbers = #tpu.dot_dimension_numbers<[1], [0], [0], [1], [0, 0, 1, 1], [], []>} : vector<32x32xbf16>, vector<32x16xbf16>, vector<32x16xf32> -> vector<32x16xf32>
    %520 = arith.addf %513, %519 : vector<32x16xf32>
    %c18_438 = arith.constant 18 : index
    %c0_439 = arith.constant 0 : index
    %c0_440 = arith.constant 0 : index
    %521 = vector.load %arg14[%c18_438, %c0_439, %c0_440] : memref<24x12x32xf32, #tpu.memory_space<vmem>>, vector<4x8x32xf32>
    %522 = vector.shape_cast %521 : vector<4x8x32xf32> to vector<32x32xf32>
    %523 = arith.truncf %522 : vector<32x32xf32> to vector<32x32xbf16>
    %c1_441 = arith.constant 1 : index
    %c0_442 = arith.constant 0 : index
    %c0_443 = arith.constant 0 : index
    %524 = vector.load %arg6[%c1_441, %c0_442, %c0_443] : memref<25x32x16xbf16, #tpu.memory_space<vmem>>, vector<1x32x16xbf16>
    %525 = vector.shape_cast %524 : vector<1x32x16xbf16> to vector<32x16xbf16>
    %cst_444 = arith.constant dense<0.000000e+00> : vector<32x16xf32>
    %526 = tpu.matmul %523, %525, %cst_444 {dimension_numbers = #tpu.dot_dimension_numbers<[1], [0], [0], [1], [0, 0, 1, 1], [], []>} : vector<32x32xbf16>, vector<32x16xbf16>, vector<32x16xf32> -> vector<32x16xf32>
    %527 = arith.addf %520, %526 : vector<32x16xf32>
    %c12_445 = arith.constant 12 : index
    %c2_446 = arith.constant 2 : index
    %c0_447 = arith.constant 0 : index
    %528 = vector.load %arg14[%c12_445, %c2_446, %c0_447] : memref<24x12x32xf32, #tpu.memory_space<vmem>>, vector<4x8x32xf32>
    %529 = vector.shape_cast %528 : vector<4x8x32xf32> to vector<32x32xf32>
    %530 = arith.truncf %529 : vector<32x32xf32> to vector<32x32xbf16>
    %c2_448 = arith.constant 2 : index
    %c0_449 = arith.constant 0 : index
    %c0_450 = arith.constant 0 : index
    %531 = vector.load %arg6[%c2_448, %c0_449, %c0_450] : memref<25x32x16xbf16, #tpu.memory_space<vmem>>, vector<1x32x16xbf16>
    %532 = vector.shape_cast %531 : vector<1x32x16xbf16> to vector<32x16xbf16>
    %cst_451 = arith.constant dense<0.000000e+00> : vector<32x16xf32>
    %533 = tpu.matmul %530, %532, %cst_451 {dimension_numbers = #tpu.dot_dimension_numbers<[1], [0], [0], [1], [0, 0, 1, 1], [], []>} : vector<32x32xbf16>, vector<32x16xbf16>, vector<32x16xf32> -> vector<32x16xf32>
    %534 = arith.addf %527, %533 : vector<32x16xf32>
    %c18_452 = arith.constant 18 : index
    %c2_453 = arith.constant 2 : index
    %c0_454 = arith.constant 0 : index
    %535 = vector.load %arg14[%c18_452, %c2_453, %c0_454] : memref<24x12x32xf32, #tpu.memory_space<vmem>>, vector<4x8x32xf32>
    %536 = vector.shape_cast %535 : vector<4x8x32xf32> to vector<32x32xf32>
    %537 = arith.truncf %536 : vector<32x32xf32> to vector<32x32xbf16>
    %c3_455 = arith.constant 3 : index
    %c0_456 = arith.constant 0 : index
    %c0_457 = arith.constant 0 : index
    %538 = vector.load %arg6[%c3_455, %c0_456, %c0_457] : memref<25x32x16xbf16, #tpu.memory_space<vmem>>, vector<1x32x16xbf16>
    %539 = vector.shape_cast %538 : vector<1x32x16xbf16> to vector<32x16xbf16>
    %cst_458 = arith.constant dense<0.000000e+00> : vector<32x16xf32>
    %540 = tpu.matmul %537, %539, %cst_458 {dimension_numbers = #tpu.dot_dimension_numbers<[1], [0], [0], [1], [0, 0, 1, 1], [], []>} : vector<32x32xbf16>, vector<32x16xbf16>, vector<32x16xf32> -> vector<32x16xf32>
    %541 = arith.addf %534, %540 : vector<32x16xf32>
    %c12_459 = arith.constant 12 : index
    %c4_460 = arith.constant 4 : index
    %c0_461 = arith.constant 0 : index
    %542 = vector.load %arg14[%c12_459, %c4_460, %c0_461] : memref<24x12x32xf32, #tpu.memory_space<vmem>>, vector<4x8x32xf32>
    %543 = vector.shape_cast %542 : vector<4x8x32xf32> to vector<32x32xf32>
    %544 = arith.truncf %543 : vector<32x32xf32> to vector<32x32xbf16>
    %c4_462 = arith.constant 4 : index
    %c0_463 = arith.constant 0 : index
    %c0_464 = arith.constant 0 : index
    %545 = vector.load %arg6[%c4_462, %c0_463, %c0_464] : memref<25x32x16xbf16, #tpu.memory_space<vmem>>, vector<1x32x16xbf16>
    %546 = vector.shape_cast %545 : vector<1x32x16xbf16> to vector<32x16xbf16>
    %cst_465 = arith.constant dense<0.000000e+00> : vector<32x16xf32>
    %547 = tpu.matmul %544, %546, %cst_465 {dimension_numbers = #tpu.dot_dimension_numbers<[1], [0], [0], [1], [0, 0, 1, 1], [], []>} : vector<32x32xbf16>, vector<32x16xbf16>, vector<32x16xf32> -> vector<32x16xf32>
    %548 = arith.addf %541, %547 : vector<32x16xf32>
    %c1_466 = arith.constant 1 : index
    %c0_467 = arith.constant 0 : index
    %c0_468 = arith.constant 0 : index
    %549 = vector.load %arg14[%c1_466, %c0_467, %c0_468] : memref<24x12x32xf32, #tpu.memory_space<vmem>>, vector<4x8x32xf32>
    %550 = vector.shape_cast %549 : vector<4x8x32xf32> to vector<32x32xf32>
    %551 = arith.truncf %550 : vector<32x32xf32> to vector<32x32xbf16>
    %c5_469 = arith.constant 5 : index
    %c0_470 = arith.constant 0 : index
    %c0_471 = arith.constant 0 : index
    %552 = vector.load %arg6[%c5_469, %c0_470, %c0_471] : memref<25x32x16xbf16, #tpu.memory_space<vmem>>, vector<1x32x16xbf16>
    %553 = vector.shape_cast %552 : vector<1x32x16xbf16> to vector<32x16xbf16>
    %cst_472 = arith.constant dense<0.000000e+00> : vector<32x16xf32>
    %554 = tpu.matmul %551, %553, %cst_472 {dimension_numbers = #tpu.dot_dimension_numbers<[1], [0], [0], [1], [0, 0, 1, 1], [], []>} : vector<32x32xbf16>, vector<32x16xbf16>, vector<32x16xf32> -> vector<32x16xf32>
    %555 = arith.addf %548, %554 : vector<32x16xf32>
    %c7_473 = arith.constant 7 : index
    %c0_474 = arith.constant 0 : index
    %c0_475 = arith.constant 0 : index
    %556 = vector.load %arg14[%c7_473, %c0_474, %c0_475] : memref<24x12x32xf32, #tpu.memory_space<vmem>>, vector<4x8x32xf32>
    %557 = vector.shape_cast %556 : vector<4x8x32xf32> to vector<32x32xf32>
    %558 = arith.truncf %557 : vector<32x32xf32> to vector<32x32xbf16>
    %c6_476 = arith.constant 6 : index
    %c0_477 = arith.constant 0 : index
    %c0_478 = arith.constant 0 : index
    %559 = vector.load %arg6[%c6_476, %c0_477, %c0_478] : memref<25x32x16xbf16, #tpu.memory_space<vmem>>, vector<1x32x16xbf16>
    %560 = vector.shape_cast %559 : vector<1x32x16xbf16> to vector<32x16xbf16>
    %cst_479 = arith.constant dense<0.000000e+00> : vector<32x16xf32>
    %561 = tpu.matmul %558, %560, %cst_479 {dimension_numbers = #tpu.dot_dimension_numbers<[1], [0], [0], [1], [0, 0, 1, 1], [], []>} : vector<32x32xbf16>, vector<32x16xbf16>, vector<32x16xf32> -> vector<32x16xf32>
    %562 = arith.addf %555, %561 : vector<32x16xf32>
    %c1_480 = arith.constant 1 : index
    %c2_481 = arith.constant 2 : index
    %c0_482 = arith.constant 0 : index
    %563 = vector.load %arg14[%c1_480, %c2_481, %c0_482] : memref<24x12x32xf32, #tpu.memory_space<vmem>>, vector<4x8x32xf32>
    %564 = vector.shape_cast %563 : vector<4x8x32xf32> to vector<32x32xf32>
    %565 = arith.truncf %564 : vector<32x32xf32> to vector<32x32xbf16>
    %c7_483 = arith.constant 7 : index
    %c0_484 = arith.constant 0 : index
    %c0_485 = arith.constant 0 : index
    %566 = vector.load %arg6[%c7_483, %c0_484, %c0_485] : memref<25x32x16xbf16, #tpu.memory_space<vmem>>, vector<1x32x16xbf16>
    %567 = vector.shape_cast %566 : vector<1x32x16xbf16> to vector<32x16xbf16>
    %cst_486 = arith.constant dense<0.000000e+00> : vector<32x16xf32>
    %568 = tpu.matmul %565, %567, %cst_486 {dimension_numbers = #tpu.dot_dimension_numbers<[1], [0], [0], [1], [0, 0, 1, 1], [], []>} : vector<32x32xbf16>, vector<32x16xbf16>, vector<32x16xf32> -> vector<32x16xf32>
    %569 = arith.addf %562, %568 : vector<32x16xf32>
    %c7_487 = arith.constant 7 : index
    %c2_488 = arith.constant 2 : index
    %c0_489 = arith.constant 0 : index
    %570 = vector.load %arg14[%c7_487, %c2_488, %c0_489] : memref<24x12x32xf32, #tpu.memory_space<vmem>>, vector<4x8x32xf32>
    %571 = vector.shape_cast %570 : vector<4x8x32xf32> to vector<32x32xf32>
    %572 = arith.truncf %571 : vector<32x32xf32> to vector<32x32xbf16>
    %c8_490 = arith.constant 8 : index
    %c0_491 = arith.constant 0 : index
    %c0_492 = arith.constant 0 : index
    %573 = vector.load %arg6[%c8_490, %c0_491, %c0_492] : memref<25x32x16xbf16, #tpu.memory_space<vmem>>, vector<1x32x16xbf16>
    %574 = vector.shape_cast %573 : vector<1x32x16xbf16> to vector<32x16xbf16>
    %cst_493 = arith.constant dense<0.000000e+00> : vector<32x16xf32>
    %575 = tpu.matmul %572, %574, %cst_493 {dimension_numbers = #tpu.dot_dimension_numbers<[1], [0], [0], [1], [0, 0, 1, 1], [], []>} : vector<32x32xbf16>, vector<32x16xbf16>, vector<32x16xf32> -> vector<32x16xf32>
    %576 = arith.addf %569, %575 : vector<32x16xf32>
    %c1_494 = arith.constant 1 : index
    %c4_495 = arith.constant 4 : index
    %c0_496 = arith.constant 0 : index
    %577 = vector.load %arg14[%c1_494, %c4_495, %c0_496] : memref<24x12x32xf32, #tpu.memory_space<vmem>>, vector<4x8x32xf32>
    %578 = vector.shape_cast %577 : vector<4x8x32xf32> to vector<32x32xf32>
    %579 = arith.truncf %578 : vector<32x32xf32> to vector<32x32xbf16>
    %c9_497 = arith.constant 9 : index
    %c0_498 = arith.constant 0 : index
    %c0_499 = arith.constant 0 : index
    %580 = vector.load %arg6[%c9_497, %c0_498, %c0_499] : memref<25x32x16xbf16, #tpu.memory_space<vmem>>, vector<1x32x16xbf16>
    %581 = vector.shape_cast %580 : vector<1x32x16xbf16> to vector<32x16xbf16>
    %cst_500 = arith.constant dense<0.000000e+00> : vector<32x16xf32>
    %582 = tpu.matmul %579, %581, %cst_500 {dimension_numbers = #tpu.dot_dimension_numbers<[1], [0], [0], [1], [0, 0, 1, 1], [], []>} : vector<32x32xbf16>, vector<32x16xbf16>, vector<32x16xf32> -> vector<32x16xf32>
    %583 = arith.addf %576, %582 : vector<32x16xf32>
    %c13_501 = arith.constant 13 : index
    %c0_502 = arith.constant 0 : index
    %c0_503 = arith.constant 0 : index
    %584 = vector.load %arg14[%c13_501, %c0_502, %c0_503] : memref<24x12x32xf32, #tpu.memory_space<vmem>>, vector<4x8x32xf32>
    %585 = vector.shape_cast %584 : vector<4x8x32xf32> to vector<32x32xf32>
    %586 = arith.truncf %585 : vector<32x32xf32> to vector<32x32xbf16>
    %c10_504 = arith.constant 10 : index
    %c0_505 = arith.constant 0 : index
    %c0_506 = arith.constant 0 : index
    %587 = vector.load %arg6[%c10_504, %c0_505, %c0_506] : memref<25x32x16xbf16, #tpu.memory_space<vmem>>, vector<1x32x16xbf16>
    %588 = vector.shape_cast %587 : vector<1x32x16xbf16> to vector<32x16xbf16>
    %cst_507 = arith.constant dense<0.000000e+00> : vector<32x16xf32>
    %589 = tpu.matmul %586, %588, %cst_507 {dimension_numbers = #tpu.dot_dimension_numbers<[1], [0], [0], [1], [0, 0, 1, 1], [], []>} : vector<32x32xbf16>, vector<32x16xbf16>, vector<32x16xf32> -> vector<32x16xf32>
    %590 = arith.addf %583, %589 : vector<32x16xf32>
    %c19_508 = arith.constant 19 : index
    %c0_509 = arith.constant 0 : index
    %c0_510 = arith.constant 0 : index
    %591 = vector.load %arg14[%c19_508, %c0_509, %c0_510] : memref<24x12x32xf32, #tpu.memory_space<vmem>>, vector<4x8x32xf32>
    %592 = vector.shape_cast %591 : vector<4x8x32xf32> to vector<32x32xf32>
    %593 = arith.truncf %592 : vector<32x32xf32> to vector<32x32xbf16>
    %c11_511 = arith.constant 11 : index
    %c0_512 = arith.constant 0 : index
    %c0_513 = arith.constant 0 : index
    %594 = vector.load %arg6[%c11_511, %c0_512, %c0_513] : memref<25x32x16xbf16, #tpu.memory_space<vmem>>, vector<1x32x16xbf16>
    %595 = vector.shape_cast %594 : vector<1x32x16xbf16> to vector<32x16xbf16>
    %cst_514 = arith.constant dense<0.000000e+00> : vector<32x16xf32>
    %596 = tpu.matmul %593, %595, %cst_514 {dimension_numbers = #tpu.dot_dimension_numbers<[1], [0], [0], [1], [0, 0, 1, 1], [], []>} : vector<32x32xbf16>, vector<32x16xbf16>, vector<32x16xf32> -> vector<32x16xf32>
    %597 = arith.addf %590, %596 : vector<32x16xf32>
    %c13_515 = arith.constant 13 : index
    %c2_516 = arith.constant 2 : index
    %c0_517 = arith.constant 0 : index
    %598 = vector.load %arg14[%c13_515, %c2_516, %c0_517] : memref<24x12x32xf32, #tpu.memory_space<vmem>>, vector<4x8x32xf32>
    %599 = vector.shape_cast %598 : vector<4x8x32xf32> to vector<32x32xf32>
    %600 = arith.truncf %599 : vector<32x32xf32> to vector<32x32xbf16>
    %c12_518 = arith.constant 12 : index
    %c0_519 = arith.constant 0 : index
    %c0_520 = arith.constant 0 : index
    %601 = vector.load %arg6[%c12_518, %c0_519, %c0_520] : memref<25x32x16xbf16, #tpu.memory_space<vmem>>, vector<1x32x16xbf16>
    %602 = vector.shape_cast %601 : vector<1x32x16xbf16> to vector<32x16xbf16>
    %cst_521 = arith.constant dense<0.000000e+00> : vector<32x16xf32>
    %603 = tpu.matmul %600, %602, %cst_521 {dimension_numbers = #tpu.dot_dimension_numbers<[1], [0], [0], [1], [0, 0, 1, 1], [], []>} : vector<32x32xbf16>, vector<32x16xbf16>, vector<32x16xf32> -> vector<32x16xf32>
    %604 = arith.addf %597, %603 : vector<32x16xf32>
    %c19_522 = arith.constant 19 : index
    %c2_523 = arith.constant 2 : index
    %c0_524 = arith.constant 0 : index
    %605 = vector.load %arg14[%c19_522, %c2_523, %c0_524] : memref<24x12x32xf32, #tpu.memory_space<vmem>>, vector<4x8x32xf32>
    %606 = vector.shape_cast %605 : vector<4x8x32xf32> to vector<32x32xf32>
    %607 = arith.truncf %606 : vector<32x32xf32> to vector<32x32xbf16>
    %c13_525 = arith.constant 13 : index
    %c0_526 = arith.constant 0 : index
    %c0_527 = arith.constant 0 : index
    %608 = vector.load %arg6[%c13_525, %c0_526, %c0_527] : memref<25x32x16xbf16, #tpu.memory_space<vmem>>, vector<1x32x16xbf16>
    %609 = vector.shape_cast %608 : vector<1x32x16xbf16> to vector<32x16xbf16>
    %cst_528 = arith.constant dense<0.000000e+00> : vector<32x16xf32>
    %610 = tpu.matmul %607, %609, %cst_528 {dimension_numbers = #tpu.dot_dimension_numbers<[1], [0], [0], [1], [0, 0, 1, 1], [], []>} : vector<32x32xbf16>, vector<32x16xbf16>, vector<32x16xf32> -> vector<32x16xf32>
    %611 = arith.addf %604, %610 : vector<32x16xf32>
    %c13_529 = arith.constant 13 : index
    %c4_530 = arith.constant 4 : index
    %c0_531 = arith.constant 0 : index
    %612 = vector.load %arg14[%c13_529, %c4_530, %c0_531] : memref<24x12x32xf32, #tpu.memory_space<vmem>>, vector<4x8x32xf32>
    %613 = vector.shape_cast %612 : vector<4x8x32xf32> to vector<32x32xf32>
    %614 = arith.truncf %613 : vector<32x32xf32> to vector<32x32xbf16>
    %c14_532 = arith.constant 14 : index
    %c0_533 = arith.constant 0 : index
    %c0_534 = arith.constant 0 : index
    %615 = vector.load %arg6[%c14_532, %c0_533, %c0_534] : memref<25x32x16xbf16, #tpu.memory_space<vmem>>, vector<1x32x16xbf16>
    %616 = vector.shape_cast %615 : vector<1x32x16xbf16> to vector<32x16xbf16>
    %cst_535 = arith.constant dense<0.000000e+00> : vector<32x16xf32>
    %617 = tpu.matmul %614, %616, %cst_535 {dimension_numbers = #tpu.dot_dimension_numbers<[1], [0], [0], [1], [0, 0, 1, 1], [], []>} : vector<32x32xbf16>, vector<32x16xbf16>, vector<32x16xf32> -> vector<32x16xf32>
    %618 = arith.addf %611, %617 : vector<32x16xf32>
    %c2_536 = arith.constant 2 : index
    %c0_537 = arith.constant 0 : index
    %c0_538 = arith.constant 0 : index
    %619 = vector.load %arg14[%c2_536, %c0_537, %c0_538] : memref<24x12x32xf32, #tpu.memory_space<vmem>>, vector<4x8x32xf32>
    %620 = vector.shape_cast %619 : vector<4x8x32xf32> to vector<32x32xf32>
    %621 = arith.truncf %620 : vector<32x32xf32> to vector<32x32xbf16>
    %c15_539 = arith.constant 15 : index
    %c0_540 = arith.constant 0 : index
    %c0_541 = arith.constant 0 : index
    %622 = vector.load %arg6[%c15_539, %c0_540, %c0_541] : memref<25x32x16xbf16, #tpu.memory_space<vmem>>, vector<1x32x16xbf16>
    %623 = vector.shape_cast %622 : vector<1x32x16xbf16> to vector<32x16xbf16>
    %cst_542 = arith.constant dense<0.000000e+00> : vector<32x16xf32>
    %624 = tpu.matmul %621, %623, %cst_542 {dimension_numbers = #tpu.dot_dimension_numbers<[1], [0], [0], [1], [0, 0, 1, 1], [], []>} : vector<32x32xbf16>, vector<32x16xbf16>, vector<32x16xf32> -> vector<32x16xf32>
    %625 = arith.addf %618, %624 : vector<32x16xf32>
    %c8_543 = arith.constant 8 : index
    %c0_544 = arith.constant 0 : index
    %c0_545 = arith.constant 0 : index
    %626 = vector.load %arg14[%c8_543, %c0_544, %c0_545] : memref<24x12x32xf32, #tpu.memory_space<vmem>>, vector<4x8x32xf32>
    %627 = vector.shape_cast %626 : vector<4x8x32xf32> to vector<32x32xf32>
    %628 = arith.truncf %627 : vector<32x32xf32> to vector<32x32xbf16>
    %c16_546 = arith.constant 16 : index
    %c0_547 = arith.constant 0 : index
    %c0_548 = arith.constant 0 : index
    %629 = vector.load %arg6[%c16_546, %c0_547, %c0_548] : memref<25x32x16xbf16, #tpu.memory_space<vmem>>, vector<1x32x16xbf16>
    %630 = vector.shape_cast %629 : vector<1x32x16xbf16> to vector<32x16xbf16>
    %cst_549 = arith.constant dense<0.000000e+00> : vector<32x16xf32>
    %631 = tpu.matmul %628, %630, %cst_549 {dimension_numbers = #tpu.dot_dimension_numbers<[1], [0], [0], [1], [0, 0, 1, 1], [], []>} : vector<32x32xbf16>, vector<32x16xbf16>, vector<32x16xf32> -> vector<32x16xf32>
    %632 = arith.addf %625, %631 : vector<32x16xf32>
    %c2_550 = arith.constant 2 : index
    %c2_551 = arith.constant 2 : index
    %c0_552 = arith.constant 0 : index
    %633 = vector.load %arg14[%c2_550, %c2_551, %c0_552] : memref<24x12x32xf32, #tpu.memory_space<vmem>>, vector<4x8x32xf32>
    %634 = vector.shape_cast %633 : vector<4x8x32xf32> to vector<32x32xf32>
    %635 = arith.truncf %634 : vector<32x32xf32> to vector<32x32xbf16>
    %c17_553 = arith.constant 17 : index
    %c0_554 = arith.constant 0 : index
    %c0_555 = arith.constant 0 : index
    %636 = vector.load %arg6[%c17_553, %c0_554, %c0_555] : memref<25x32x16xbf16, #tpu.memory_space<vmem>>, vector<1x32x16xbf16>
    %637 = vector.shape_cast %636 : vector<1x32x16xbf16> to vector<32x16xbf16>
    %cst_556 = arith.constant dense<0.000000e+00> : vector<32x16xf32>
    %638 = tpu.matmul %635, %637, %cst_556 {dimension_numbers = #tpu.dot_dimension_numbers<[1], [0], [0], [1], [0, 0, 1, 1], [], []>} : vector<32x32xbf16>, vector<32x16xbf16>, vector<32x16xf32> -> vector<32x16xf32>
    %639 = arith.addf %632, %638 : vector<32x16xf32>
    %c8_557 = arith.constant 8 : index
    %c2_558 = arith.constant 2 : index
    %c0_559 = arith.constant 0 : index
    %640 = vector.load %arg14[%c8_557, %c2_558, %c0_559] : memref<24x12x32xf32, #tpu.memory_space<vmem>>, vector<4x8x32xf32>
    %641 = vector.shape_cast %640 : vector<4x8x32xf32> to vector<32x32xf32>
    %642 = arith.truncf %641 : vector<32x32xf32> to vector<32x32xbf16>
    %c18_560 = arith.constant 18 : index
    %c0_561 = arith.constant 0 : index
    %c0_562 = arith.constant 0 : index
    %643 = vector.load %arg6[%c18_560, %c0_561, %c0_562] : memref<25x32x16xbf16, #tpu.memory_space<vmem>>, vector<1x32x16xbf16>
    %644 = vector.shape_cast %643 : vector<1x32x16xbf16> to vector<32x16xbf16>
    %cst_563 = arith.constant dense<0.000000e+00> : vector<32x16xf32>
    %645 = tpu.matmul %642, %644, %cst_563 {dimension_numbers = #tpu.dot_dimension_numbers<[1], [0], [0], [1], [0, 0, 1, 1], [], []>} : vector<32x32xbf16>, vector<32x16xbf16>, vector<32x16xf32> -> vector<32x16xf32>
    %646 = arith.addf %639, %645 : vector<32x16xf32>
    %c2_564 = arith.constant 2 : index
    %c4_565 = arith.constant 4 : index
    %c0_566 = arith.constant 0 : index
    %647 = vector.load %arg14[%c2_564, %c4_565, %c0_566] : memref<24x12x32xf32, #tpu.memory_space<vmem>>, vector<4x8x32xf32>
    %648 = vector.shape_cast %647 : vector<4x8x32xf32> to vector<32x32xf32>
    %649 = arith.truncf %648 : vector<32x32xf32> to vector<32x32xbf16>
    %c19_567 = arith.constant 19 : index
    %c0_568 = arith.constant 0 : index
    %c0_569 = arith.constant 0 : index
    %650 = vector.load %arg6[%c19_567, %c0_568, %c0_569] : memref<25x32x16xbf16, #tpu.memory_space<vmem>>, vector<1x32x16xbf16>
    %651 = vector.shape_cast %650 : vector<1x32x16xbf16> to vector<32x16xbf16>
    %cst_570 = arith.constant dense<0.000000e+00> : vector<32x16xf32>
    %652 = tpu.matmul %649, %651, %cst_570 {dimension_numbers = #tpu.dot_dimension_numbers<[1], [0], [0], [1], [0, 0, 1, 1], [], []>} : vector<32x32xbf16>, vector<32x16xbf16>, vector<32x16xf32> -> vector<32x16xf32>
    %653 = arith.addf %646, %652 : vector<32x16xf32>
    %c14_571 = arith.constant 14 : index
    %c0_572 = arith.constant 0 : index
    %c0_573 = arith.constant 0 : index
    %654 = vector.load %arg14[%c14_571, %c0_572, %c0_573] : memref<24x12x32xf32, #tpu.memory_space<vmem>>, vector<4x8x32xf32>
    %655 = vector.shape_cast %654 : vector<4x8x32xf32> to vector<32x32xf32>
    %656 = arith.truncf %655 : vector<32x32xf32> to vector<32x32xbf16>
    %c20_574 = arith.constant 20 : index
    %c0_575 = arith.constant 0 : index
    %c0_576 = arith.constant 0 : index
    %657 = vector.load %arg6[%c20_574, %c0_575, %c0_576] : memref<25x32x16xbf16, #tpu.memory_space<vmem>>, vector<1x32x16xbf16>
    %658 = vector.shape_cast %657 : vector<1x32x16xbf16> to vector<32x16xbf16>
    %cst_577 = arith.constant dense<0.000000e+00> : vector<32x16xf32>
    %659 = tpu.matmul %656, %658, %cst_577 {dimension_numbers = #tpu.dot_dimension_numbers<[1], [0], [0], [1], [0, 0, 1, 1], [], []>} : vector<32x32xbf16>, vector<32x16xbf16>, vector<32x16xf32> -> vector<32x16xf32>
    %660 = arith.addf %653, %659 : vector<32x16xf32>
    %c20_578 = arith.constant 20 : index
    %c0_579 = arith.constant 0 : index
    %c0_580 = arith.constant 0 : index
    %661 = vector.load %arg14[%c20_578, %c0_579, %c0_580] : memref<24x12x32xf32, #tpu.memory_space<vmem>>, vector<4x8x32xf32>
    %662 = vector.shape_cast %661 : vector<4x8x32xf32> to vector<32x32xf32>
    %663 = arith.truncf %662 : vector<32x32xf32> to vector<32x32xbf16>
    %c21_581 = arith.constant 21 : index
    %c0_582 = arith.constant 0 : index
    %c0_583 = arith.constant 0 : index
    %664 = vector.load %arg6[%c21_581, %c0_582, %c0_583] : memref<25x32x16xbf16, #tpu.memory_space<vmem>>, vector<1x32x16xbf16>
    %665 = vector.shape_cast %664 : vector<1x32x16xbf16> to vector<32x16xbf16>
    %cst_584 = arith.constant dense<0.000000e+00> : vector<32x16xf32>
    %666 = tpu.matmul %663, %665, %cst_584 {dimension_numbers = #tpu.dot_dimension_numbers<[1], [0], [0], [1], [0, 0, 1, 1], [], []>} : vector<32x32xbf16>, vector<32x16xbf16>, vector<32x16xf32> -> vector<32x16xf32>
    %667 = arith.addf %660, %666 : vector<32x16xf32>
    %c14_585 = arith.constant 14 : index
    %c2_586 = arith.constant 2 : index
    %c0_587 = arith.constant 0 : index
    %668 = vector.load %arg14[%c14_585, %c2_586, %c0_587] : memref<24x12x32xf32, #tpu.memory_space<vmem>>, vector<4x8x32xf32>
    %669 = vector.shape_cast %668 : vector<4x8x32xf32> to vector<32x32xf32>
    %670 = arith.truncf %669 : vector<32x32xf32> to vector<32x32xbf16>
    %c22_588 = arith.constant 22 : index
    %c0_589 = arith.constant 0 : index
    %c0_590 = arith.constant 0 : index
    %671 = vector.load %arg6[%c22_588, %c0_589, %c0_590] : memref<25x32x16xbf16, #tpu.memory_space<vmem>>, vector<1x32x16xbf16>
    %672 = vector.shape_cast %671 : vector<1x32x16xbf16> to vector<32x16xbf16>
    %cst_591 = arith.constant dense<0.000000e+00> : vector<32x16xf32>
    %673 = tpu.matmul %670, %672, %cst_591 {dimension_numbers = #tpu.dot_dimension_numbers<[1], [0], [0], [1], [0, 0, 1, 1], [], []>} : vector<32x32xbf16>, vector<32x16xbf16>, vector<32x16xf32> -> vector<32x16xf32>
    %674 = arith.addf %667, %673 : vector<32x16xf32>
    %c20_592 = arith.constant 20 : index
    %c2_593 = arith.constant 2 : index
    %c0_594 = arith.constant 0 : index
    %675 = vector.load %arg14[%c20_592, %c2_593, %c0_594] : memref<24x12x32xf32, #tpu.memory_space<vmem>>, vector<4x8x32xf32>
    %676 = vector.shape_cast %675 : vector<4x8x32xf32> to vector<32x32xf32>
    %677 = arith.truncf %676 : vector<32x32xf32> to vector<32x32xbf16>
    %c23_595 = arith.constant 23 : index
    %c0_596 = arith.constant 0 : index
    %c0_597 = arith.constant 0 : index
    %678 = vector.load %arg6[%c23_595, %c0_596, %c0_597] : memref<25x32x16xbf16, #tpu.memory_space<vmem>>, vector<1x32x16xbf16>
    %679 = vector.shape_cast %678 : vector<1x32x16xbf16> to vector<32x16xbf16>
    %cst_598 = arith.constant dense<0.000000e+00> : vector<32x16xf32>
    %680 = tpu.matmul %677, %679, %cst_598 {dimension_numbers = #tpu.dot_dimension_numbers<[1], [0], [0], [1], [0, 0, 1, 1], [], []>} : vector<32x32xbf16>, vector<32x16xbf16>, vector<32x16xf32> -> vector<32x16xf32>
    %681 = arith.addf %674, %680 : vector<32x16xf32>
    %c14_599 = arith.constant 14 : index
    %c4_600 = arith.constant 4 : index
    %c0_601 = arith.constant 0 : index
    %682 = vector.load %arg14[%c14_599, %c4_600, %c0_601] : memref<24x12x32xf32, #tpu.memory_space<vmem>>, vector<4x8x32xf32>
    %683 = vector.shape_cast %682 : vector<4x8x32xf32> to vector<32x32xf32>
    %684 = arith.truncf %683 : vector<32x32xf32> to vector<32x32xbf16>
    %c24_602 = arith.constant 24 : index
    %c0_603 = arith.constant 0 : index
    %c0_604 = arith.constant 0 : index
    %685 = vector.load %arg6[%c24_602, %c0_603, %c0_604] : memref<25x32x16xbf16, #tpu.memory_space<vmem>>, vector<1x32x16xbf16>
    %686 = vector.shape_cast %685 : vector<1x32x16xbf16> to vector<32x16xbf16>
    %cst_605 = arith.constant dense<0.000000e+00> : vector<32x16xf32>
    %687 = tpu.matmul %684, %686, %cst_605 {dimension_numbers = #tpu.dot_dimension_numbers<[1], [0], [0], [1], [0, 0, 1, 1], [], []>} : vector<32x32xbf16>, vector<32x16xbf16>, vector<32x16xf32> -> vector<32x16xf32>
    %688 = arith.addf %681, %687 : vector<32x16xf32>
    %cst_606 = arith.constant 0.000000e+00 : f32
    %689 = vector.broadcast %cst_606 : f32 to vector<32x16xf32>
    %c18_607 = arith.constant 18 : index
    %c0_608 = arith.constant 0 : index
    %c0_609 = arith.constant 0 : index
    %690 = vector.load %arg14[%c18_607, %c0_608, %c0_609] : memref<24x12x32xf32, #tpu.memory_space<vmem>>, vector<4x8x32xf32>
    %691 = vector.shape_cast %690 : vector<4x8x32xf32> to vector<32x32xf32>
    %692 = arith.truncf %691 : vector<32x32xf32> to vector<32x32xbf16>
    %c0_610 = arith.constant 0 : index
    %c0_611 = arith.constant 0 : index
    %c0_612 = arith.constant 0 : index
    %693 = vector.load %arg6[%c0_610, %c0_611, %c0_612] : memref<25x32x16xbf16, #tpu.memory_space<vmem>>, vector<1x32x16xbf16>
    %694 = vector.shape_cast %693 : vector<1x32x16xbf16> to vector<32x16xbf16>
    %cst_613 = arith.constant dense<0.000000e+00> : vector<32x16xf32>
    %695 = tpu.matmul %692, %694, %cst_613 {dimension_numbers = #tpu.dot_dimension_numbers<[1], [0], [0], [1], [0, 0, 1, 1], [], []>} : vector<32x32xbf16>, vector<32x16xbf16>, vector<32x16xf32> -> vector<32x16xf32>
    %696 = arith.addf %689, %695 : vector<32x16xf32>
    %c12_614 = arith.constant 12 : index
    %c2_615 = arith.constant 2 : index
    %c0_616 = arith.constant 0 : index
    %697 = vector.load %arg14[%c12_614, %c2_615, %c0_616] : memref<24x12x32xf32, #tpu.memory_space<vmem>>, vector<4x8x32xf32>
    %698 = vector.shape_cast %697 : vector<4x8x32xf32> to vector<32x32xf32>
    %699 = arith.truncf %698 : vector<32x32xf32> to vector<32x32xbf16>
    %c1_617 = arith.constant 1 : index
    %c0_618 = arith.constant 0 : index
    %c0_619 = arith.constant 0 : index
    %700 = vector.load %arg6[%c1_617, %c0_618, %c0_619] : memref<25x32x16xbf16, #tpu.memory_space<vmem>>, vector<1x32x16xbf16>
    %701 = vector.shape_cast %700 : vector<1x32x16xbf16> to vector<32x16xbf16>
    %cst_620 = arith.constant dense<0.000000e+00> : vector<32x16xf32>
    %702 = tpu.matmul %699, %701, %cst_620 {dimension_numbers = #tpu.dot_dimension_numbers<[1], [0], [0], [1], [0, 0, 1, 1], [], []>} : vector<32x32xbf16>, vector<32x16xbf16>, vector<32x16xf32> -> vector<32x16xf32>
    %703 = arith.addf %696, %702 : vector<32x16xf32>
    %c18_621 = arith.constant 18 : index
    %c2_622 = arith.constant 2 : index
    %c0_623 = arith.constant 0 : index
    %704 = vector.load %arg14[%c18_621, %c2_622, %c0_623] : memref<24x12x32xf32, #tpu.memory_space<vmem>>, vector<4x8x32xf32>
    %705 = vector.shape_cast %704 : vector<4x8x32xf32> to vector<32x32xf32>
    %706 = arith.truncf %705 : vector<32x32xf32> to vector<32x32xbf16>
    %c2_624 = arith.constant 2 : index
    %c0_625 = arith.constant 0 : index
    %c0_626 = arith.constant 0 : index
    %707 = vector.load %arg6[%c2_624, %c0_625, %c0_626] : memref<25x32x16xbf16, #tpu.memory_space<vmem>>, vector<1x32x16xbf16>
    %708 = vector.shape_cast %707 : vector<1x32x16xbf16> to vector<32x16xbf16>
    %cst_627 = arith.constant dense<0.000000e+00> : vector<32x16xf32>
    %709 = tpu.matmul %706, %708, %cst_627 {dimension_numbers = #tpu.dot_dimension_numbers<[1], [0], [0], [1], [0, 0, 1, 1], [], []>} : vector<32x32xbf16>, vector<32x16xbf16>, vector<32x16xf32> -> vector<32x16xf32>
    %710 = arith.addf %703, %709 : vector<32x16xf32>
    %c12_628 = arith.constant 12 : index
    %c4_629 = arith.constant 4 : index
    %c0_630 = arith.constant 0 : index
    %711 = vector.load %arg14[%c12_628, %c4_629, %c0_630] : memref<24x12x32xf32, #tpu.memory_space<vmem>>, vector<4x8x32xf32>
    %712 = vector.shape_cast %711 : vector<4x8x32xf32> to vector<32x32xf32>
    %713 = arith.truncf %712 : vector<32x32xf32> to vector<32x32xbf16>
    %c3_631 = arith.constant 3 : index
    %c0_632 = arith.constant 0 : index
    %c0_633 = arith.constant 0 : index
    %714 = vector.load %arg6[%c3_631, %c0_632, %c0_633] : memref<25x32x16xbf16, #tpu.memory_space<vmem>>, vector<1x32x16xbf16>
    %715 = vector.shape_cast %714 : vector<1x32x16xbf16> to vector<32x16xbf16>
    %cst_634 = arith.constant dense<0.000000e+00> : vector<32x16xf32>
    %716 = tpu.matmul %713, %715, %cst_634 {dimension_numbers = #tpu.dot_dimension_numbers<[1], [0], [0], [1], [0, 0, 1, 1], [], []>} : vector<32x32xbf16>, vector<32x16xbf16>, vector<32x16xf32> -> vector<32x16xf32>
    %717 = arith.addf %710, %716 : vector<32x16xf32>
    %c18_635 = arith.constant 18 : index
    %c4_636 = arith.constant 4 : index
    %c0_637 = arith.constant 0 : index
    %718 = vector.load %arg14[%c18_635, %c4_636, %c0_637] : memref<24x12x32xf32, #tpu.memory_space<vmem>>, vector<4x8x32xf32>
    %719 = vector.shape_cast %718 : vector<4x8x32xf32> to vector<32x32xf32>
    %720 = arith.truncf %719 : vector<32x32xf32> to vector<32x32xbf16>
    %c4_638 = arith.constant 4 : index
    %c0_639 = arith.constant 0 : index
    %c0_640 = arith.constant 0 : index
    %721 = vector.load %arg6[%c4_638, %c0_639, %c0_640] : memref<25x32x16xbf16, #tpu.memory_space<vmem>>, vector<1x32x16xbf16>
    %722 = vector.shape_cast %721 : vector<1x32x16xbf16> to vector<32x16xbf16>
    %cst_641 = arith.constant dense<0.000000e+00> : vector<32x16xf32>
    %723 = tpu.matmul %720, %722, %cst_641 {dimension_numbers = #tpu.dot_dimension_numbers<[1], [0], [0], [1], [0, 0, 1, 1], [], []>} : vector<32x32xbf16>, vector<32x16xbf16>, vector<32x16xf32> -> vector<32x16xf32>
    %724 = arith.addf %717, %723 : vector<32x16xf32>
    %c7_642 = arith.constant 7 : index
    %c0_643 = arith.constant 0 : index
    %c0_644 = arith.constant 0 : index
    %725 = vector.load %arg14[%c7_642, %c0_643, %c0_644] : memref<24x12x32xf32, #tpu.memory_space<vmem>>, vector<4x8x32xf32>
    %726 = vector.shape_cast %725 : vector<4x8x32xf32> to vector<32x32xf32>
    %727 = arith.truncf %726 : vector<32x32xf32> to vector<32x32xbf16>
    %c5_645 = arith.constant 5 : index
    %c0_646 = arith.constant 0 : index
    %c0_647 = arith.constant 0 : index
    %728 = vector.load %arg6[%c5_645, %c0_646, %c0_647] : memref<25x32x16xbf16, #tpu.memory_space<vmem>>, vector<1x32x16xbf16>
    %729 = vector.shape_cast %728 : vector<1x32x16xbf16> to vector<32x16xbf16>
    %cst_648 = arith.constant dense<0.000000e+00> : vector<32x16xf32>
    %730 = tpu.matmul %727, %729, %cst_648 {dimension_numbers = #tpu.dot_dimension_numbers<[1], [0], [0], [1], [0, 0, 1, 1], [], []>} : vector<32x32xbf16>, vector<32x16xbf16>, vector<32x16xf32> -> vector<32x16xf32>
    %731 = arith.addf %724, %730 : vector<32x16xf32>
    %c1_649 = arith.constant 1 : index
    %c2_650 = arith.constant 2 : index
    %c0_651 = arith.constant 0 : index
    %732 = vector.load %arg14[%c1_649, %c2_650, %c0_651] : memref<24x12x32xf32, #tpu.memory_space<vmem>>, vector<4x8x32xf32>
    %733 = vector.shape_cast %732 : vector<4x8x32xf32> to vector<32x32xf32>
    %734 = arith.truncf %733 : vector<32x32xf32> to vector<32x32xbf16>
    %c6_652 = arith.constant 6 : index
    %c0_653 = arith.constant 0 : index
    %c0_654 = arith.constant 0 : index
    %735 = vector.load %arg6[%c6_652, %c0_653, %c0_654] : memref<25x32x16xbf16, #tpu.memory_space<vmem>>, vector<1x32x16xbf16>
    %736 = vector.shape_cast %735 : vector<1x32x16xbf16> to vector<32x16xbf16>
    %cst_655 = arith.constant dense<0.000000e+00> : vector<32x16xf32>
    %737 = tpu.matmul %734, %736, %cst_655 {dimension_numbers = #tpu.dot_dimension_numbers<[1], [0], [0], [1], [0, 0, 1, 1], [], []>} : vector<32x32xbf16>, vector<32x16xbf16>, vector<32x16xf32> -> vector<32x16xf32>
    %738 = arith.addf %731, %737 : vector<32x16xf32>
    %c7_656 = arith.constant 7 : index
    %c2_657 = arith.constant 2 : index
    %c0_658 = arith.constant 0 : index
    %739 = vector.load %arg14[%c7_656, %c2_657, %c0_658] : memref<24x12x32xf32, #tpu.memory_space<vmem>>, vector<4x8x32xf32>
    %740 = vector.shape_cast %739 : vector<4x8x32xf32> to vector<32x32xf32>
    %741 = arith.truncf %740 : vector<32x32xf32> to vector<32x32xbf16>
    %c7_659 = arith.constant 7 : index
    %c0_660 = arith.constant 0 : index
    %c0_661 = arith.constant 0 : index
    %742 = vector.load %arg6[%c7_659, %c0_660, %c0_661] : memref<25x32x16xbf16, #tpu.memory_space<vmem>>, vector<1x32x16xbf16>
    %743 = vector.shape_cast %742 : vector<1x32x16xbf16> to vector<32x16xbf16>
    %cst_662 = arith.constant dense<0.000000e+00> : vector<32x16xf32>
    %744 = tpu.matmul %741, %743, %cst_662 {dimension_numbers = #tpu.dot_dimension_numbers<[1], [0], [0], [1], [0, 0, 1, 1], [], []>} : vector<32x32xbf16>, vector<32x16xbf16>, vector<32x16xf32> -> vector<32x16xf32>
    %745 = arith.addf %738, %744 : vector<32x16xf32>
    %c1_663 = arith.constant 1 : index
    %c4_664 = arith.constant 4 : index
    %c0_665 = arith.constant 0 : index
    %746 = vector.load %arg14[%c1_663, %c4_664, %c0_665] : memref<24x12x32xf32, #tpu.memory_space<vmem>>, vector<4x8x32xf32>
    %747 = vector.shape_cast %746 : vector<4x8x32xf32> to vector<32x32xf32>
    %748 = arith.truncf %747 : vector<32x32xf32> to vector<32x32xbf16>
    %c8_666 = arith.constant 8 : index
    %c0_667 = arith.constant 0 : index
    %c0_668 = arith.constant 0 : index
    %749 = vector.load %arg6[%c8_666, %c0_667, %c0_668] : memref<25x32x16xbf16, #tpu.memory_space<vmem>>, vector<1x32x16xbf16>
    %750 = vector.shape_cast %749 : vector<1x32x16xbf16> to vector<32x16xbf16>
    %cst_669 = arith.constant dense<0.000000e+00> : vector<32x16xf32>
    %751 = tpu.matmul %748, %750, %cst_669 {dimension_numbers = #tpu.dot_dimension_numbers<[1], [0], [0], [1], [0, 0, 1, 1], [], []>} : vector<32x32xbf16>, vector<32x16xbf16>, vector<32x16xf32> -> vector<32x16xf32>
    %752 = arith.addf %745, %751 : vector<32x16xf32>
    %c7_670 = arith.constant 7 : index
    %c4_671 = arith.constant 4 : index
    %c0_672 = arith.constant 0 : index
    %753 = vector.load %arg14[%c7_670, %c4_671, %c0_672] : memref<24x12x32xf32, #tpu.memory_space<vmem>>, vector<4x8x32xf32>
    %754 = vector.shape_cast %753 : vector<4x8x32xf32> to vector<32x32xf32>
    %755 = arith.truncf %754 : vector<32x32xf32> to vector<32x32xbf16>
    %c9_673 = arith.constant 9 : index
    %c0_674 = arith.constant 0 : index
    %c0_675 = arith.constant 0 : index
    %756 = vector.load %arg6[%c9_673, %c0_674, %c0_675] : memref<25x32x16xbf16, #tpu.memory_space<vmem>>, vector<1x32x16xbf16>
    %757 = vector.shape_cast %756 : vector<1x32x16xbf16> to vector<32x16xbf16>
    %cst_676 = arith.constant dense<0.000000e+00> : vector<32x16xf32>
    %758 = tpu.matmul %755, %757, %cst_676 {dimension_numbers = #tpu.dot_dimension_numbers<[1], [0], [0], [1], [0, 0, 1, 1], [], []>} : vector<32x32xbf16>, vector<32x16xbf16>, vector<32x16xf32> -> vector<32x16xf32>
    %759 = arith.addf %752, %758 : vector<32x16xf32>
    %c19_677 = arith.constant 19 : index
    %c0_678 = arith.constant 0 : index
    %c0_679 = arith.constant 0 : index
    %760 = vector.load %arg14[%c19_677, %c0_678, %c0_679] : memref<24x12x32xf32, #tpu.memory_space<vmem>>, vector<4x8x32xf32>
    %761 = vector.shape_cast %760 : vector<4x8x32xf32> to vector<32x32xf32>
    %762 = arith.truncf %761 : vector<32x32xf32> to vector<32x32xbf16>
    %c10_680 = arith.constant 10 : index
    %c0_681 = arith.constant 0 : index
    %c0_682 = arith.constant 0 : index
    %763 = vector.load %arg6[%c10_680, %c0_681, %c0_682] : memref<25x32x16xbf16, #tpu.memory_space<vmem>>, vector<1x32x16xbf16>
    %764 = vector.shape_cast %763 : vector<1x32x16xbf16> to vector<32x16xbf16>
    %cst_683 = arith.constant dense<0.000000e+00> : vector<32x16xf32>
    %765 = tpu.matmul %762, %764, %cst_683 {dimension_numbers = #tpu.dot_dimension_numbers<[1], [0], [0], [1], [0, 0, 1, 1], [], []>} : vector<32x32xbf16>, vector<32x16xbf16>, vector<32x16xf32> -> vector<32x16xf32>
    %766 = arith.addf %759, %765 : vector<32x16xf32>
    %c13_684 = arith.constant 13 : index
    %c2_685 = arith.constant 2 : index
    %c0_686 = arith.constant 0 : index
    %767 = vector.load %arg14[%c13_684, %c2_685, %c0_686] : memref<24x12x32xf32, #tpu.memory_space<vmem>>, vector<4x8x32xf32>
    %768 = vector.shape_cast %767 : vector<4x8x32xf32> to vector<32x32xf32>
    %769 = arith.truncf %768 : vector<32x32xf32> to vector<32x32xbf16>
    %c11_687 = arith.constant 11 : index
    %c0_688 = arith.constant 0 : index
    %c0_689 = arith.constant 0 : index
    %770 = vector.load %arg6[%c11_687, %c0_688, %c0_689] : memref<25x32x16xbf16, #tpu.memory_space<vmem>>, vector<1x32x16xbf16>
    %771 = vector.shape_cast %770 : vector<1x32x16xbf16> to vector<32x16xbf16>
    %cst_690 = arith.constant dense<0.000000e+00> : vector<32x16xf32>
    %772 = tpu.matmul %769, %771, %cst_690 {dimension_numbers = #tpu.dot_dimension_numbers<[1], [0], [0], [1], [0, 0, 1, 1], [], []>} : vector<32x32xbf16>, vector<32x16xbf16>, vector<32x16xf32> -> vector<32x16xf32>
    %773 = arith.addf %766, %772 : vector<32x16xf32>
    %c19_691 = arith.constant 19 : index
    %c2_692 = arith.constant 2 : index
    %c0_693 = arith.constant 0 : index
    %774 = vector.load %arg14[%c19_691, %c2_692, %c0_693] : memref<24x12x32xf32, #tpu.memory_space<vmem>>, vector<4x8x32xf32>
    %775 = vector.shape_cast %774 : vector<4x8x32xf32> to vector<32x32xf32>
    %776 = arith.truncf %775 : vector<32x32xf32> to vector<32x32xbf16>
    %c12_694 = arith.constant 12 : index
    %c0_695 = arith.constant 0 : index
    %c0_696 = arith.constant 0 : index
    %777 = vector.load %arg6[%c12_694, %c0_695, %c0_696] : memref<25x32x16xbf16, #tpu.memory_space<vmem>>, vector<1x32x16xbf16>
    %778 = vector.shape_cast %777 : vector<1x32x16xbf16> to vector<32x16xbf16>
    %cst_697 = arith.constant dense<0.000000e+00> : vector<32x16xf32>
    %779 = tpu.matmul %776, %778, %cst_697 {dimension_numbers = #tpu.dot_dimension_numbers<[1], [0], [0], [1], [0, 0, 1, 1], [], []>} : vector<32x32xbf16>, vector<32x16xbf16>, vector<32x16xf32> -> vector<32x16xf32>
    %780 = arith.addf %773, %779 : vector<32x16xf32>
    %c13_698 = arith.constant 13 : index
    %c4_699 = arith.constant 4 : index
    %c0_700 = arith.constant 0 : index
    %781 = vector.load %arg14[%c13_698, %c4_699, %c0_700] : memref<24x12x32xf32, #tpu.memory_space<vmem>>, vector<4x8x32xf32>
    %782 = vector.shape_cast %781 : vector<4x8x32xf32> to vector<32x32xf32>
    %783 = arith.truncf %782 : vector<32x32xf32> to vector<32x32xbf16>
    %c13_701 = arith.constant 13 : index
    %c0_702 = arith.constant 0 : index
    %c0_703 = arith.constant 0 : index
    %784 = vector.load %arg6[%c13_701, %c0_702, %c0_703] : memref<25x32x16xbf16, #tpu.memory_space<vmem>>, vector<1x32x16xbf16>
    %785 = vector.shape_cast %784 : vector<1x32x16xbf16> to vector<32x16xbf16>
    %cst_704 = arith.constant dense<0.000000e+00> : vector<32x16xf32>
    %786 = tpu.matmul %783, %785, %cst_704 {dimension_numbers = #tpu.dot_dimension_numbers<[1], [0], [0], [1], [0, 0, 1, 1], [], []>} : vector<32x32xbf16>, vector<32x16xbf16>, vector<32x16xf32> -> vector<32x16xf32>
    %787 = arith.addf %780, %786 : vector<32x16xf32>
    %c19_705 = arith.constant 19 : index
    %c4_706 = arith.constant 4 : index
    %c0_707 = arith.constant 0 : index
    %788 = vector.load %arg14[%c19_705, %c4_706, %c0_707] : memref<24x12x32xf32, #tpu.memory_space<vmem>>, vector<4x8x32xf32>
    %789 = vector.shape_cast %788 : vector<4x8x32xf32> to vector<32x32xf32>
    %790 = arith.truncf %789 : vector<32x32xf32> to vector<32x32xbf16>
    %c14_708 = arith.constant 14 : index
    %c0_709 = arith.constant 0 : index
    %c0_710 = arith.constant 0 : index
    %791 = vector.load %arg6[%c14_708, %c0_709, %c0_710] : memref<25x32x16xbf16, #tpu.memory_space<vmem>>, vector<1x32x16xbf16>
    %792 = vector.shape_cast %791 : vector<1x32x16xbf16> to vector<32x16xbf16>
    %cst_711 = arith.constant dense<0.000000e+00> : vector<32x16xf32>
    %793 = tpu.matmul %790, %792, %cst_711 {dimension_numbers = #tpu.dot_dimension_numbers<[1], [0], [0], [1], [0, 0, 1, 1], [], []>} : vector<32x32xbf16>, vector<32x16xbf16>, vector<32x16xf32> -> vector<32x16xf32>
    %794 = arith.addf %787, %793 : vector<32x16xf32>
    %c8_712 = arith.constant 8 : index
    %c0_713 = arith.constant 0 : index
    %c0_714 = arith.constant 0 : index
    %795 = vector.load %arg14[%c8_712, %c0_713, %c0_714] : memref<24x12x32xf32, #tpu.memory_space<vmem>>, vector<4x8x32xf32>
    %796 = vector.shape_cast %795 : vector<4x8x32xf32> to vector<32x32xf32>
    %797 = arith.truncf %796 : vector<32x32xf32> to vector<32x32xbf16>
    %c15_715 = arith.constant 15 : index
    %c0_716 = arith.constant 0 : index
    %c0_717 = arith.constant 0 : index
    %798 = vector.load %arg6[%c15_715, %c0_716, %c0_717] : memref<25x32x16xbf16, #tpu.memory_space<vmem>>, vector<1x32x16xbf16>
    %799 = vector.shape_cast %798 : vector<1x32x16xbf16> to vector<32x16xbf16>
    %cst_718 = arith.constant dense<0.000000e+00> : vector<32x16xf32>
    %800 = tpu.matmul %797, %799, %cst_718 {dimension_numbers = #tpu.dot_dimension_numbers<[1], [0], [0], [1], [0, 0, 1, 1], [], []>} : vector<32x32xbf16>, vector<32x16xbf16>, vector<32x16xf32> -> vector<32x16xf32>
    %801 = arith.addf %794, %800 : vector<32x16xf32>
    %c2_719 = arith.constant 2 : index
    %c2_720 = arith.constant 2 : index
    %c0_721 = arith.constant 0 : index
    %802 = vector.load %arg14[%c2_719, %c2_720, %c0_721] : memref<24x12x32xf32, #tpu.memory_space<vmem>>, vector<4x8x32xf32>
    %803 = vector.shape_cast %802 : vector<4x8x32xf32> to vector<32x32xf32>
    %804 = arith.truncf %803 : vector<32x32xf32> to vector<32x32xbf16>
    %c16_722 = arith.constant 16 : index
    %c0_723 = arith.constant 0 : index
    %c0_724 = arith.constant 0 : index
    %805 = vector.load %arg6[%c16_722, %c0_723, %c0_724] : memref<25x32x16xbf16, #tpu.memory_space<vmem>>, vector<1x32x16xbf16>
    %806 = vector.shape_cast %805 : vector<1x32x16xbf16> to vector<32x16xbf16>
    %cst_725 = arith.constant dense<0.000000e+00> : vector<32x16xf32>
    %807 = tpu.matmul %804, %806, %cst_725 {dimension_numbers = #tpu.dot_dimension_numbers<[1], [0], [0], [1], [0, 0, 1, 1], [], []>} : vector<32x32xbf16>, vector<32x16xbf16>, vector<32x16xf32> -> vector<32x16xf32>
    %808 = arith.addf %801, %807 : vector<32x16xf32>
    %c8_726 = arith.constant 8 : index
    %c2_727 = arith.constant 2 : index
    %c0_728 = arith.constant 0 : index
    %809 = vector.load %arg14[%c8_726, %c2_727, %c0_728] : memref<24x12x32xf32, #tpu.memory_space<vmem>>, vector<4x8x32xf32>
    %810 = vector.shape_cast %809 : vector<4x8x32xf32> to vector<32x32xf32>
    %811 = arith.truncf %810 : vector<32x32xf32> to vector<32x32xbf16>
    %c17_729 = arith.constant 17 : index
    %c0_730 = arith.constant 0 : index
    %c0_731 = arith.constant 0 : index
    %812 = vector.load %arg6[%c17_729, %c0_730, %c0_731] : memref<25x32x16xbf16, #tpu.memory_space<vmem>>, vector<1x32x16xbf16>
    %813 = vector.shape_cast %812 : vector<1x32x16xbf16> to vector<32x16xbf16>
    %cst_732 = arith.constant dense<0.000000e+00> : vector<32x16xf32>
    %814 = tpu.matmul %811, %813, %cst_732 {dimension_numbers = #tpu.dot_dimension_numbers<[1], [0], [0], [1], [0, 0, 1, 1], [], []>} : vector<32x32xbf16>, vector<32x16xbf16>, vector<32x16xf32> -> vector<32x16xf32>
    %815 = arith.addf %808, %814 : vector<32x16xf32>
    %c2_733 = arith.constant 2 : index
    %c4_734 = arith.constant 4 : index
    %c0_735 = arith.constant 0 : index
    %816 = vector.load %arg14[%c2_733, %c4_734, %c0_735] : memref<24x12x32xf32, #tpu.memory_space<vmem>>, vector<4x8x32xf32>
    %817 = vector.shape_cast %816 : vector<4x8x32xf32> to vector<32x32xf32>
    %818 = arith.truncf %817 : vector<32x32xf32> to vector<32x32xbf16>
    %c18_736 = arith.constant 18 : index
    %c0_737 = arith.constant 0 : index
    %c0_738 = arith.constant 0 : index
    %819 = vector.load %arg6[%c18_736, %c0_737, %c0_738] : memref<25x32x16xbf16, #tpu.memory_space<vmem>>, vector<1x32x16xbf16>
    %820 = vector.shape_cast %819 : vector<1x32x16xbf16> to vector<32x16xbf16>
    %cst_739 = arith.constant dense<0.000000e+00> : vector<32x16xf32>
    %821 = tpu.matmul %818, %820, %cst_739 {dimension_numbers = #tpu.dot_dimension_numbers<[1], [0], [0], [1], [0, 0, 1, 1], [], []>} : vector<32x32xbf16>, vector<32x16xbf16>, vector<32x16xf32> -> vector<32x16xf32>
    %822 = arith.addf %815, %821 : vector<32x16xf32>
    %c8_740 = arith.constant 8 : index
    %c4_741 = arith.constant 4 : index
    %c0_742 = arith.constant 0 : index
    %823 = vector.load %arg14[%c8_740, %c4_741, %c0_742] : memref<24x12x32xf32, #tpu.memory_space<vmem>>, vector<4x8x32xf32>
    %824 = vector.shape_cast %823 : vector<4x8x32xf32> to vector<32x32xf32>
    %825 = arith.truncf %824 : vector<32x32xf32> to vector<32x32xbf16>
    %c19_743 = arith.constant 19 : index
    %c0_744 = arith.constant 0 : index
    %c0_745 = arith.constant 0 : index
    %826 = vector.load %arg6[%c19_743, %c0_744, %c0_745] : memref<25x32x16xbf16, #tpu.memory_space<vmem>>, vector<1x32x16xbf16>
    %827 = vector.shape_cast %826 : vector<1x32x16xbf16> to vector<32x16xbf16>
    %cst_746 = arith.constant dense<0.000000e+00> : vector<32x16xf32>
    %828 = tpu.matmul %825, %827, %cst_746 {dimension_numbers = #tpu.dot_dimension_numbers<[1], [0], [0], [1], [0, 0, 1, 1], [], []>} : vector<32x32xbf16>, vector<32x16xbf16>, vector<32x16xf32> -> vector<32x16xf32>
    %829 = arith.addf %822, %828 : vector<32x16xf32>
    %c20_747 = arith.constant 20 : index
    %c0_748 = arith.constant 0 : index
    %c0_749 = arith.constant 0 : index
    %830 = vector.load %arg14[%c20_747, %c0_748, %c0_749] : memref<24x12x32xf32, #tpu.memory_space<vmem>>, vector<4x8x32xf32>
    %831 = vector.shape_cast %830 : vector<4x8x32xf32> to vector<32x32xf32>
    %832 = arith.truncf %831 : vector<32x32xf32> to vector<32x32xbf16>
    %c20_750 = arith.constant 20 : index
    %c0_751 = arith.constant 0 : index
    %c0_752 = arith.constant 0 : index
    %833 = vector.load %arg6[%c20_750, %c0_751, %c0_752] : memref<25x32x16xbf16, #tpu.memory_space<vmem>>, vector<1x32x16xbf16>
    %834 = vector.shape_cast %833 : vector<1x32x16xbf16> to vector<32x16xbf16>
    %cst_753 = arith.constant dense<0.000000e+00> : vector<32x16xf32>
    %835 = tpu.matmul %832, %834, %cst_753 {dimension_numbers = #tpu.dot_dimension_numbers<[1], [0], [0], [1], [0, 0, 1, 1], [], []>} : vector<32x32xbf16>, vector<32x16xbf16>, vector<32x16xf32> -> vector<32x16xf32>
    %836 = arith.addf %829, %835 : vector<32x16xf32>
    %c14_754 = arith.constant 14 : index
    %c2_755 = arith.constant 2 : index
    %c0_756 = arith.constant 0 : index
    %837 = vector.load %arg14[%c14_754, %c2_755, %c0_756] : memref<24x12x32xf32, #tpu.memory_space<vmem>>, vector<4x8x32xf32>
    %838 = vector.shape_cast %837 : vector<4x8x32xf32> to vector<32x32xf32>
    %839 = arith.truncf %838 : vector<32x32xf32> to vector<32x32xbf16>
    %c21_757 = arith.constant 21 : index
    %c0_758 = arith.constant 0 : index
    %c0_759 = arith.constant 0 : index
    %840 = vector.load %arg6[%c21_757, %c0_758, %c0_759] : memref<25x32x16xbf16, #tpu.memory_space<vmem>>, vector<1x32x16xbf16>
    %841 = vector.shape_cast %840 : vector<1x32x16xbf16> to vector<32x16xbf16>
    %cst_760 = arith.constant dense<0.000000e+00> : vector<32x16xf32>
    %842 = tpu.matmul %839, %841, %cst_760 {dimension_numbers = #tpu.dot_dimension_numbers<[1], [0], [0], [1], [0, 0, 1, 1], [], []>} : vector<32x32xbf16>, vector<32x16xbf16>, vector<32x16xf32> -> vector<32x16xf32>
    %843 = arith.addf %836, %842 : vector<32x16xf32>
    %c20_761 = arith.constant 20 : index
    %c2_762 = arith.constant 2 : index
    %c0_763 = arith.constant 0 : index
    %844 = vector.load %arg14[%c20_761, %c2_762, %c0_763] : memref<24x12x32xf32, #tpu.memory_space<vmem>>, vector<4x8x32xf32>
    %845 = vector.shape_cast %844 : vector<4x8x32xf32> to vector<32x32xf32>
    %846 = arith.truncf %845 : vector<32x32xf32> to vector<32x32xbf16>
    %c22_764 = arith.constant 22 : index
    %c0_765 = arith.constant 0 : index
    %c0_766 = arith.constant 0 : index
    %847 = vector.load %arg6[%c22_764, %c0_765, %c0_766] : memref<25x32x16xbf16, #tpu.memory_space<vmem>>, vector<1x32x16xbf16>
    %848 = vector.shape_cast %847 : vector<1x32x16xbf16> to vector<32x16xbf16>
    %cst_767 = arith.constant dense<0.000000e+00> : vector<32x16xf32>
    %849 = tpu.matmul %846, %848, %cst_767 {dimension_numbers = #tpu.dot_dimension_numbers<[1], [0], [0], [1], [0, 0, 1, 1], [], []>} : vector<32x32xbf16>, vector<32x16xbf16>, vector<32x16xf32> -> vector<32x16xf32>
    %850 = arith.addf %843, %849 : vector<32x16xf32>
    %c14_768 = arith.constant 14 : index
    %c4_769 = arith.constant 4 : index
    %c0_770 = arith.constant 0 : index
    %851 = vector.load %arg14[%c14_768, %c4_769, %c0_770] : memref<24x12x32xf32, #tpu.memory_space<vmem>>, vector<4x8x32xf32>
    %852 = vector.shape_cast %851 : vector<4x8x32xf32> to vector<32x32xf32>
    %853 = arith.truncf %852 : vector<32x32xf32> to vector<32x32xbf16>
    %c23_771 = arith.constant 23 : index
    %c0_772 = arith.constant 0 : index
    %c0_773 = arith.constant 0 : index
    %854 = vector.load %arg6[%c23_771, %c0_772, %c0_773] : memref<25x32x16xbf16, #tpu.memory_space<vmem>>, vector<1x32x16xbf16>
    %855 = vector.shape_cast %854 : vector<1x32x16xbf16> to vector<32x16xbf16>
    %cst_774 = arith.constant dense<0.000000e+00> : vector<32x16xf32>
    %856 = tpu.matmul %853, %855, %cst_774 {dimension_numbers = #tpu.dot_dimension_numbers<[1], [0], [0], [1], [0, 0, 1, 1], [], []>} : vector<32x32xbf16>, vector<32x16xbf16>, vector<32x16xf32> -> vector<32x16xf32>
    %857 = arith.addf %850, %856 : vector<32x16xf32>
    %c20_775 = arith.constant 20 : index
    %c4_776 = arith.constant 4 : index
    %c0_777 = arith.constant 0 : index
    %858 = vector.load %arg14[%c20_775, %c4_776, %c0_777] : memref<24x12x32xf32, #tpu.memory_space<vmem>>, vector<4x8x32xf32>
    %859 = vector.shape_cast %858 : vector<4x8x32xf32> to vector<32x32xf32>
    %860 = arith.truncf %859 : vector<32x32xf32> to vector<32x32xbf16>
    %c24_778 = arith.constant 24 : index
    %c0_779 = arith.constant 0 : index
    %c0_780 = arith.constant 0 : index
    %861 = vector.load %arg6[%c24_778, %c0_779, %c0_780] : memref<25x32x16xbf16, #tpu.memory_space<vmem>>, vector<1x32x16xbf16>
    %862 = vector.shape_cast %861 : vector<1x32x16xbf16> to vector<32x16xbf16>
    %cst_781 = arith.constant dense<0.000000e+00> : vector<32x16xf32>
    %863 = tpu.matmul %860, %862, %cst_781 {dimension_numbers = #tpu.dot_dimension_numbers<[1], [0], [0], [1], [0, 0, 1, 1], [], []>} : vector<32x32xbf16>, vector<32x16xbf16>, vector<32x16xf32> -> vector<32x16xf32>
    %864 = arith.addf %857, %863 : vector<32x16xf32>
    %865 = arith.maximumf %336, %512 : vector<32x16xf32>
    %866 = arith.maximumf %688, %864 : vector<32x16xf32>
    %867 = arith.maximumf %865, %866 : vector<32x16xf32>
    %c0_782 = arith.constant 0 : index
    %c0_783 = arith.constant 0 : index
    %868 = vector.load %arg7[%c0_782, %c0_783] : memref<1x16xf32, #tpu.memory_space<vmem>>, vector<1x16xf32>
    %869 = vector.broadcast %868 : vector<1x16xf32> to vector<32x16xf32>
    %870 = arith.addf %867, %869 : vector<32x16xf32>
    %cst_784 = arith.constant 0.000000e+00 : f32
    %871 = vector.broadcast %cst_784 : f32 to vector<32x16xf32>
    %872 = arith.maximumf %870, %871 : vector<32x16xf32>
    %c0_785 = arith.constant 0 : index
    %c0_786 = arith.constant 0 : index
    %873 = vector.load %arg12[%c0_785, %c0_786] : memref<32x16xf32, #tpu.memory_space<vmem>>, vector<32x16xf32>
    %874 = arith.mulf %872, %873 : vector<32x16xf32>
    %875 = arith.truncf %874 : vector<32x16xf32> to vector<32x16xbf16>
    %cst_787 = arith.constant 0.000000e+00 : f32
    %876 = vector.broadcast %cst_787 : f32 to vector<2x10xf32>
    %877 = vector.extract_strided_slice %875 {offsets = [0, 0], sizes = [2, 16], strides = [1, 1]} : vector<32x16xbf16> to vector<2x16xbf16>
    %c0_788 = arith.constant 0 : index
    %c0_789 = arith.constant 0 : index
    %c0_790 = arith.constant 0 : index
    %878 = vector.load %arg8[%c0_788, %c0_789, %c0_790] : memref<16x16x10xbf16, #tpu.memory_space<vmem>>, vector<1x16x10xbf16>
    %879 = vector.shape_cast %878 : vector<1x16x10xbf16> to vector<16x10xbf16>
    %cst_791 = arith.constant dense<0.000000e+00> : vector<2x10xf32>
    %880 = tpu.matmul %877, %879, %cst_791 {dimension_numbers = #tpu.dot_dimension_numbers<[1], [0], [0], [1], [0, 0, 1, 1], [], []>} : vector<2x16xbf16>, vector<16x10xbf16>, vector<2x10xf32> -> vector<2x10xf32>
    %881 = arith.addf %876, %880 : vector<2x10xf32>
    %882 = vector.extract_strided_slice %875 {offsets = [2, 0], sizes = [2, 16], strides = [1, 1]} : vector<32x16xbf16> to vector<2x16xbf16>
    %c1_792 = arith.constant 1 : index
    %c0_793 = arith.constant 0 : index
    %c0_794 = arith.constant 0 : index
    %883 = vector.load %arg8[%c1_792, %c0_793, %c0_794] : memref<16x16x10xbf16, #tpu.memory_space<vmem>>, vector<1x16x10xbf16>
    %884 = vector.shape_cast %883 : vector<1x16x10xbf16> to vector<16x10xbf16>
    %cst_795 = arith.constant dense<0.000000e+00> : vector<2x10xf32>
    %885 = tpu.matmul %882, %884, %cst_795 {dimension_numbers = #tpu.dot_dimension_numbers<[1], [0], [0], [1], [0, 0, 1, 1], [], []>} : vector<2x16xbf16>, vector<16x10xbf16>, vector<2x10xf32> -> vector<2x10xf32>
    %886 = arith.addf %881, %885 : vector<2x10xf32>
    %887 = vector.extract_strided_slice %875 {offsets = [4, 0], sizes = [2, 16], strides = [1, 1]} : vector<32x16xbf16> to vector<2x16xbf16>
    %c2_796 = arith.constant 2 : index
    %c0_797 = arith.constant 0 : index
    %c0_798 = arith.constant 0 : index
    %888 = vector.load %arg8[%c2_796, %c0_797, %c0_798] : memref<16x16x10xbf16, #tpu.memory_space<vmem>>, vector<1x16x10xbf16>
    %889 = vector.shape_cast %888 : vector<1x16x10xbf16> to vector<16x10xbf16>
    %cst_799 = arith.constant dense<0.000000e+00> : vector<2x10xf32>
    %890 = tpu.matmul %887, %889, %cst_799 {dimension_numbers = #tpu.dot_dimension_numbers<[1], [0], [0], [1], [0, 0, 1, 1], [], []>} : vector<2x16xbf16>, vector<16x10xbf16>, vector<2x10xf32> -> vector<2x10xf32>
    %891 = arith.addf %886, %890 : vector<2x10xf32>
    %892 = vector.extract_strided_slice %875 {offsets = [6, 0], sizes = [2, 16], strides = [1, 1]} : vector<32x16xbf16> to vector<2x16xbf16>
    %c3_800 = arith.constant 3 : index
    %c0_801 = arith.constant 0 : index
    %c0_802 = arith.constant 0 : index
    %893 = vector.load %arg8[%c3_800, %c0_801, %c0_802] : memref<16x16x10xbf16, #tpu.memory_space<vmem>>, vector<1x16x10xbf16>
    %894 = vector.shape_cast %893 : vector<1x16x10xbf16> to vector<16x10xbf16>
    %cst_803 = arith.constant dense<0.000000e+00> : vector<2x10xf32>
    %895 = tpu.matmul %892, %894, %cst_803 {dimension_numbers = #tpu.dot_dimension_numbers<[1], [0], [0], [1], [0, 0, 1, 1], [], []>} : vector<2x16xbf16>, vector<16x10xbf16>, vector<2x10xf32> -> vector<2x10xf32>
    %896 = arith.addf %891, %895 : vector<2x10xf32>
    %897 = vector.extract_strided_slice %875 {offsets = [8, 0], sizes = [2, 16], strides = [1, 1]} : vector<32x16xbf16> to vector<2x16xbf16>
    %c4_804 = arith.constant 4 : index
    %c0_805 = arith.constant 0 : index
    %c0_806 = arith.constant 0 : index
    %898 = vector.load %arg8[%c4_804, %c0_805, %c0_806] : memref<16x16x10xbf16, #tpu.memory_space<vmem>>, vector<1x16x10xbf16>
    %899 = vector.shape_cast %898 : vector<1x16x10xbf16> to vector<16x10xbf16>
    %cst_807 = arith.constant dense<0.000000e+00> : vector<2x10xf32>
    %900 = tpu.matmul %897, %899, %cst_807 {dimension_numbers = #tpu.dot_dimension_numbers<[1], [0], [0], [1], [0, 0, 1, 1], [], []>} : vector<2x16xbf16>, vector<16x10xbf16>, vector<2x10xf32> -> vector<2x10xf32>
    %901 = arith.addf %896, %900 : vector<2x10xf32>
    %902 = vector.extract_strided_slice %875 {offsets = [10, 0], sizes = [2, 16], strides = [1, 1]} : vector<32x16xbf16> to vector<2x16xbf16>
    %c5_808 = arith.constant 5 : index
    %c0_809 = arith.constant 0 : index
    %c0_810 = arith.constant 0 : index
    %903 = vector.load %arg8[%c5_808, %c0_809, %c0_810] : memref<16x16x10xbf16, #tpu.memory_space<vmem>>, vector<1x16x10xbf16>
    %904 = vector.shape_cast %903 : vector<1x16x10xbf16> to vector<16x10xbf16>
    %cst_811 = arith.constant dense<0.000000e+00> : vector<2x10xf32>
    %905 = tpu.matmul %902, %904, %cst_811 {dimension_numbers = #tpu.dot_dimension_numbers<[1], [0], [0], [1], [0, 0, 1, 1], [], []>} : vector<2x16xbf16>, vector<16x10xbf16>, vector<2x10xf32> -> vector<2x10xf32>
    %906 = arith.addf %901, %905 : vector<2x10xf32>
    %907 = vector.extract_strided_slice %875 {offsets = [12, 0], sizes = [2, 16], strides = [1, 1]} : vector<32x16xbf16> to vector<2x16xbf16>
    %c6_812 = arith.constant 6 : index
    %c0_813 = arith.constant 0 : index
    %c0_814 = arith.constant 0 : index
    %908 = vector.load %arg8[%c6_812, %c0_813, %c0_814] : memref<16x16x10xbf16, #tpu.memory_space<vmem>>, vector<1x16x10xbf16>
    %909 = vector.shape_cast %908 : vector<1x16x10xbf16> to vector<16x10xbf16>
    %cst_815 = arith.constant dense<0.000000e+00> : vector<2x10xf32>
    %910 = tpu.matmul %907, %909, %cst_815 {dimension_numbers = #tpu.dot_dimension_numbers<[1], [0], [0], [1], [0, 0, 1, 1], [], []>} : vector<2x16xbf16>, vector<16x10xbf16>, vector<2x10xf32> -> vector<2x10xf32>
    %911 = arith.addf %906, %910 : vector<2x10xf32>
    %912 = vector.extract_strided_slice %875 {offsets = [14, 0], sizes = [2, 16], strides = [1, 1]} : vector<32x16xbf16> to vector<2x16xbf16>
    %c7_816 = arith.constant 7 : index
    %c0_817 = arith.constant 0 : index
    %c0_818 = arith.constant 0 : index
    %913 = vector.load %arg8[%c7_816, %c0_817, %c0_818] : memref<16x16x10xbf16, #tpu.memory_space<vmem>>, vector<1x16x10xbf16>
    %914 = vector.shape_cast %913 : vector<1x16x10xbf16> to vector<16x10xbf16>
    %cst_819 = arith.constant dense<0.000000e+00> : vector<2x10xf32>
    %915 = tpu.matmul %912, %914, %cst_819 {dimension_numbers = #tpu.dot_dimension_numbers<[1], [0], [0], [1], [0, 0, 1, 1], [], []>} : vector<2x16xbf16>, vector<16x10xbf16>, vector<2x10xf32> -> vector<2x10xf32>
    %916 = arith.addf %911, %915 : vector<2x10xf32>
    %917 = vector.extract_strided_slice %875 {offsets = [16, 0], sizes = [2, 16], strides = [1, 1]} : vector<32x16xbf16> to vector<2x16xbf16>
    %c8_820 = arith.constant 8 : index
    %c0_821 = arith.constant 0 : index
    %c0_822 = arith.constant 0 : index
    %918 = vector.load %arg8[%c8_820, %c0_821, %c0_822] : memref<16x16x10xbf16, #tpu.memory_space<vmem>>, vector<1x16x10xbf16>
    %919 = vector.shape_cast %918 : vector<1x16x10xbf16> to vector<16x10xbf16>
    %cst_823 = arith.constant dense<0.000000e+00> : vector<2x10xf32>
    %920 = tpu.matmul %917, %919, %cst_823 {dimension_numbers = #tpu.dot_dimension_numbers<[1], [0], [0], [1], [0, 0, 1, 1], [], []>} : vector<2x16xbf16>, vector<16x10xbf16>, vector<2x10xf32> -> vector<2x10xf32>
    %921 = arith.addf %916, %920 : vector<2x10xf32>
    %922 = vector.extract_strided_slice %875 {offsets = [18, 0], sizes = [2, 16], strides = [1, 1]} : vector<32x16xbf16> to vector<2x16xbf16>
    %c9_824 = arith.constant 9 : index
    %c0_825 = arith.constant 0 : index
    %c0_826 = arith.constant 0 : index
    %923 = vector.load %arg8[%c9_824, %c0_825, %c0_826] : memref<16x16x10xbf16, #tpu.memory_space<vmem>>, vector<1x16x10xbf16>
    %924 = vector.shape_cast %923 : vector<1x16x10xbf16> to vector<16x10xbf16>
    %cst_827 = arith.constant dense<0.000000e+00> : vector<2x10xf32>
    %925 = tpu.matmul %922, %924, %cst_827 {dimension_numbers = #tpu.dot_dimension_numbers<[1], [0], [0], [1], [0, 0, 1, 1], [], []>} : vector<2x16xbf16>, vector<16x10xbf16>, vector<2x10xf32> -> vector<2x10xf32>
    %926 = arith.addf %921, %925 : vector<2x10xf32>
    %927 = vector.extract_strided_slice %875 {offsets = [20, 0], sizes = [2, 16], strides = [1, 1]} : vector<32x16xbf16> to vector<2x16xbf16>
    %c10_828 = arith.constant 10 : index
    %c0_829 = arith.constant 0 : index
    %c0_830 = arith.constant 0 : index
    %928 = vector.load %arg8[%c10_828, %c0_829, %c0_830] : memref<16x16x10xbf16, #tpu.memory_space<vmem>>, vector<1x16x10xbf16>
    %929 = vector.shape_cast %928 : vector<1x16x10xbf16> to vector<16x10xbf16>
    %cst_831 = arith.constant dense<0.000000e+00> : vector<2x10xf32>
    %930 = tpu.matmul %927, %929, %cst_831 {dimension_numbers = #tpu.dot_dimension_numbers<[1], [0], [0], [1], [0, 0, 1, 1], [], []>} : vector<2x16xbf16>, vector<16x10xbf16>, vector<2x10xf32> -> vector<2x10xf32>
    %931 = arith.addf %926, %930 : vector<2x10xf32>
    %932 = vector.extract_strided_slice %875 {offsets = [22, 0], sizes = [2, 16], strides = [1, 1]} : vector<32x16xbf16> to vector<2x16xbf16>
    %c11_832 = arith.constant 11 : index
    %c0_833 = arith.constant 0 : index
    %c0_834 = arith.constant 0 : index
    %933 = vector.load %arg8[%c11_832, %c0_833, %c0_834] : memref<16x16x10xbf16, #tpu.memory_space<vmem>>, vector<1x16x10xbf16>
    %934 = vector.shape_cast %933 : vector<1x16x10xbf16> to vector<16x10xbf16>
    %cst_835 = arith.constant dense<0.000000e+00> : vector<2x10xf32>
    %935 = tpu.matmul %932, %934, %cst_835 {dimension_numbers = #tpu.dot_dimension_numbers<[1], [0], [0], [1], [0, 0, 1, 1], [], []>} : vector<2x16xbf16>, vector<16x10xbf16>, vector<2x10xf32> -> vector<2x10xf32>
    %936 = arith.addf %931, %935 : vector<2x10xf32>
    %937 = vector.extract_strided_slice %875 {offsets = [24, 0], sizes = [2, 16], strides = [1, 1]} : vector<32x16xbf16> to vector<2x16xbf16>
    %c12_836 = arith.constant 12 : index
    %c0_837 = arith.constant 0 : index
    %c0_838 = arith.constant 0 : index
    %938 = vector.load %arg8[%c12_836, %c0_837, %c0_838] : memref<16x16x10xbf16, #tpu.memory_space<vmem>>, vector<1x16x10xbf16>
    %939 = vector.shape_cast %938 : vector<1x16x10xbf16> to vector<16x10xbf16>
    %cst_839 = arith.constant dense<0.000000e+00> : vector<2x10xf32>
    %940 = tpu.matmul %937, %939, %cst_839 {dimension_numbers = #tpu.dot_dimension_numbers<[1], [0], [0], [1], [0, 0, 1, 1], [], []>} : vector<2x16xbf16>, vector<16x10xbf16>, vector<2x10xf32> -> vector<2x10xf32>
    %941 = arith.addf %936, %940 : vector<2x10xf32>
    %942 = vector.extract_strided_slice %875 {offsets = [26, 0], sizes = [2, 16], strides = [1, 1]} : vector<32x16xbf16> to vector<2x16xbf16>
    %c13_840 = arith.constant 13 : index
    %c0_841 = arith.constant 0 : index
    %c0_842 = arith.constant 0 : index
    %943 = vector.load %arg8[%c13_840, %c0_841, %c0_842] : memref<16x16x10xbf16, #tpu.memory_space<vmem>>, vector<1x16x10xbf16>
    %944 = vector.shape_cast %943 : vector<1x16x10xbf16> to vector<16x10xbf16>
    %cst_843 = arith.constant dense<0.000000e+00> : vector<2x10xf32>
    %945 = tpu.matmul %942, %944, %cst_843 {dimension_numbers = #tpu.dot_dimension_numbers<[1], [0], [0], [1], [0, 0, 1, 1], [], []>} : vector<2x16xbf16>, vector<16x10xbf16>, vector<2x10xf32> -> vector<2x10xf32>
    %946 = arith.addf %941, %945 : vector<2x10xf32>
    %947 = vector.extract_strided_slice %875 {offsets = [28, 0], sizes = [2, 16], strides = [1, 1]} : vector<32x16xbf16> to vector<2x16xbf16>
    %c14_844 = arith.constant 14 : index
    %c0_845 = arith.constant 0 : index
    %c0_846 = arith.constant 0 : index
    %948 = vector.load %arg8[%c14_844, %c0_845, %c0_846] : memref<16x16x10xbf16, #tpu.memory_space<vmem>>, vector<1x16x10xbf16>
    %949 = vector.shape_cast %948 : vector<1x16x10xbf16> to vector<16x10xbf16>
    %cst_847 = arith.constant dense<0.000000e+00> : vector<2x10xf32>
    %950 = tpu.matmul %947, %949, %cst_847 {dimension_numbers = #tpu.dot_dimension_numbers<[1], [0], [0], [1], [0, 0, 1, 1], [], []>} : vector<2x16xbf16>, vector<16x10xbf16>, vector<2x10xf32> -> vector<2x10xf32>
    %951 = arith.addf %946, %950 : vector<2x10xf32>
    %952 = vector.extract_strided_slice %875 {offsets = [30, 0], sizes = [2, 16], strides = [1, 1]} : vector<32x16xbf16> to vector<2x16xbf16>
    %c15_848 = arith.constant 15 : index
    %c0_849 = arith.constant 0 : index
    %c0_850 = arith.constant 0 : index
    %953 = vector.load %arg8[%c15_848, %c0_849, %c0_850] : memref<16x16x10xbf16, #tpu.memory_space<vmem>>, vector<1x16x10xbf16>
    %954 = vector.shape_cast %953 : vector<1x16x10xbf16> to vector<16x10xbf16>
    %cst_851 = arith.constant dense<0.000000e+00> : vector<2x10xf32>
    %955 = tpu.matmul %952, %954, %cst_851 {dimension_numbers = #tpu.dot_dimension_numbers<[1], [0], [0], [1], [0, 0, 1, 1], [], []>} : vector<2x16xbf16>, vector<16x10xbf16>, vector<2x10xf32> -> vector<2x10xf32>
    %956 = arith.addf %951, %955 : vector<2x10xf32>
    %c0_852 = arith.constant 0 : index
    %c0_853 = arith.constant 0 : index
    %957 = vector.load %arg9[%c0_852, %c0_853] : memref<1x10xf32, #tpu.memory_space<vmem>>, vector<1x10xf32>
    %958 = vector.broadcast %957 : vector<1x10xf32> to vector<2x10xf32>
    %959 = arith.addf %956, %958 : vector<2x10xf32>
    %cst_854 = arith.constant dense<0xFF800000> : vector<2xf32>
    %960 = vector.multi_reduction <maximumf>, %959, %cst_854 [1] : vector<2x10xf32> to vector<2xf32>
    %961 = vector.shape_cast %960 : vector<2xf32> to vector<2x1xf32>
    %962 = vector.broadcast %961 : vector<2x1xf32> to vector<2x10xf32>
    %963 = arith.subf %959, %962 : vector<2x10xf32>
    %964 = math.exp %963 : vector<2x10xf32>
    %965 = vector.broadcast %961 : vector<2x1xf32> to vector<2x10xf32>
    %966 = arith.subf %959, %965 : vector<2x10xf32>
    %cst_855 = arith.constant dense<0.000000e+00> : vector<2xf32>
    %967 = vector.multi_reduction <add>, %964, %cst_855 [1] : vector<2x10xf32> to vector<2xf32>
    %968 = vector.shape_cast %967 : vector<2xf32> to vector<2x1xf32>
    %969 = math.log %968 : vector<2x1xf32>
    %970 = vector.broadcast %969 : vector<2x1xf32> to vector<2x10xf32>
    %971 = arith.subf %966, %970 : vector<2x10xf32>
    %c0_856 = arith.constant 0 : index
    %c0_857 = arith.constant 0 : index
    %972 = vector.load %arg13[%c0_856, %c0_857] : memref<2x10xf32, #tpu.memory_space<vmem>>, vector<2x10xf32>
    tpu.vector_store %arg13[%c0_856, %c0_857], %971 {strides = array<i32>} : memref<2x10xf32, #tpu.memory_space<vmem>>, vector<2x10xf32>,
    return
  }
  func.func @transform_0(%arg0: i32) -> (i32, i32) {
    %c0_i32 = arith.constant 0 : i32
    %c0_i32_0 = arith.constant 0 : i32
    %c0_i32_1 = arith.constant 0 : i32
    return %c0_i32, %c0_i32_0 : i32, i32
  }
  func.func @transform_1(%arg0: i32) -> (i32, i32) {
    %c0_i32 = arith.constant 0 : i32
    %c0_i32_0 = arith.constant 0 : i32
    %c0_i32_1 = arith.constant 0 : i32
    return %c0_i32, %c0_i32_0 : i32, i32
  }
  func.func @transform_2(%arg0: i32) -> (i32, i32) {
    %c0_i32 = arith.constant 0 : i32
    %c0_i32_0 = arith.constant 0 : i32
    %c0_i32_1 = arith.constant 0 : i32
    return %c0_i32, %c0_i32_0 : i32, i32
  }
  func.func @transform_3(%arg0: i32) -> (i32, i32) {
    %c0_i32 = arith.constant 0 : i32
    %c0_i32_0 = arith.constant 0 : i32
    %c0_i32_1 = arith.constant 0 : i32
    return %c0_i32, %c0_i32_0 : i32, i32
  }
  func.func @transform_4(%arg0: i32) -> (i32, i32) {
    %c0_i32 = arith.constant 0 : i32
    %c0_i32_0 = arith.constant 0 : i32
    %c0_i32_1 = arith.constant 0 : i32
    return %c0_i32, %c0_i32_0 : i32, i32
  }
  func.func @transform_5(%arg0: i32) -> (i32, i32, i32) {
    %c0_i32 = arith.constant 0 : i32
    %c0_i32_0 = arith.constant 0 : i32
    %c0_i32_1 = arith.constant 0 : i32
    %c0_i32_2 = arith.constant 0 : i32
    return %c0_i32, %c0_i32_0, %c0_i32_1 : i32, i32, i32
  }
  func.func @transform_6(%arg0: i32) -> (i32, i32) {
    %c0_i32 = arith.constant 0 : i32
    %c0_i32_0 = arith.constant 0 : i32
    %c0_i32_1 = arith.constant 0 : i32
    return %c0_i32, %c0_i32_0 : i32, i32
  }
  func.func @transform_7(%arg0: i32) -> (i32, i32, i32) {
    %c0_i32 = arith.constant 0 : i32
    %c0_i32_0 = arith.constant 0 : i32
    %c0_i32_1 = arith.constant 0 : i32
    %c0_i32_2 = arith.constant 0 : i32
    return %c0_i32, %c0_i32_0, %c0_i32_1 : i32, i32, i32
  }
  func.func @transform_8(%arg0: i32) -> (i32, i32) {
    %c0_i32 = arith.constant 0 : i32
    %c0_i32_0 = arith.constant 0 : i32
    %c0_i32_1 = arith.constant 0 : i32
    return %c0_i32, %c0_i32_0 : i32, i32
  }
  func.func @transform_9(%arg0: i32) -> (i32, i32) {
    %c0_i32 = arith.constant 0 : i32
    %c0_i32_0 = arith.constant 0 : i32
    %c0_i32_1 = arith.constant 0 : i32
    return %c0_i32, %c0_i32_0 : i32, i32
  }
  func.func @transform_10(%arg0: i32) -> (i32, i32) {
    %c0_i32 = arith.constant 0 : i32
    %c0_i32_0 = arith.constant 0 : i32
    %c0_i32_1 = arith.constant 0 : i32
    return %c0_i32, %c0_i32_0 : i32, i32
  }
  func.func @transform_11(%arg0: i32) -> (i32, i32) {
    %c0_i32 = arith.constant 0 : i32
    %c0_i32_0 = arith.constant 0 : i32
    %c0_i32_1 = arith.constant 0 : i32
    return %c0_i32, %c0_i32_0 : i32, i32
  }
  func.func @transform_12(%arg0: i32) -> (i32, i32) {
    %c0_i32 = arith.constant 0 : i32
    %c0_i32_0 = arith.constant 0 : i32
    %c0_i32_1 = arith.constant 0 : i32
    return %c0_i32, %c0_i32_0 : i32, i32
  }
}

</mosaic_0001>

<bundles_post_ra>
// kernel: _lambda_.1
= control target key start
LH: loop header
LB: loop body
LE: loop exit
PB: predicated region body
PF: predicated region fallthrough
CT: control target
= control target key end

     0   :  { %s14698_s0 = inlined_call_operand.vmem [shape: f32[56,28], index: 0, kind: input, shape index: {}]   ;;  %s14699_s1 = inlined_call_operand.vmem [shape: bf16[1152,25], index: 1, kind: input, shape index: {}]   ;;  %s14700_s2 = inlined_call_operand.vmem [shape: bf16[25,32], index: 2, kind: input, shape index: {}]   ;;  %s14701_s3 = inlined_call_operand.vmem [shape: f32[1,32], index: 3, kind: input, shape index: {}]   ;;  %s14702_s4 = inlined_call_operand.vmem [shape: f32[1,32], index: 4, kind: input, shape index: {}]   ;;  %s14703_s5 = inlined_call_operand.vmem [shape: bf16[25,32,16], index: 5, kind: input, shape index: {}]   ;;  %s14704_s6 = inlined_call_operand.vmem [shape: f32[1,16], index: 6, kind: input, shape index: {}]   ;;  %s14705_s7 = inlined_call_operand.vmem [shape: bf16[16,16,10], index: 7, kind: input, shape index: {}]   ;;  %s14706_s8 = inlined_call_operand.vmem [shape: f32[1,10], index: 8, kind: input, shape index: {}]   ;;  %s14707_s9 = inlined_call_operand.<no memory space> [shape: f32[1,1], index: 9, kind: input, shape index: {}]   ;;  %s14708_s11 = inlined_call_operand.vmem [shape: f32[32,16], index: 11, kind: input, shape index: {}]   ;;  %s14709_s12 = inlined_call_operand.hbm [shape: f32[2,10], index: 12, kind: output, shape index: {}]   ;;  %s14710_s10 = inlined_call_operand.<no memory space> [shape: f32[1,1], index: 10, kind: input, shape index: {}]  }
   0x1   :  { %v17_v0 = vstv %s14707_s9  ;;  %v19_v1 = vstv %s14710_s10 }
   0x2   :  { %18 = vst [vmem:[#allocation3] sm:$0x1] %v17_v0  ;;  %20 = vst [vmem:[#allocation4] sm:$0x1] %v19_v1 }
   0x3   :  { %v12083_v2 = vld [vmem:[%s14698_s0] sm:$0xff]  ;;  %vm54_vm0 = vcmask 228352   ;;  %v12088_v3 = vld [vmem:[%s14698_s0 + $0x10] sm:$0xff]  ;;  %v12093_v4 = vld [vmem:[%s14698_s0 + $0x8] sm:$0xff]  ;;  %vm354_vm1 = vcmask 1043456   ;;  %vm355_vm2 = vcmask 1044480  }
   0x4   :  { %v55_v5 = vsel %vm54_vm0, %v12083_v2, 0.0  ;;  %v61_v6 = vsel %vm54_vm0, %v12088_v3, 0.0  ;;  %v12102_v7 = vld [vmem:[%s14698_s0 + $0x18] sm:$0xff]  ;;  %v58_v8 = vsel %vm54_vm0, %v12093_v4, 0.0  ;;  %v12109_v9 = vld [vmem:[%s14698_s0 + $0x20] sm:$0xff]  ;;  %v12114_v10 = vld [vmem:[%s14698_s0 + $0x28] sm:$0xff] }
   0x5   :  { %56 = vadd.xlane.f32.xlu0 %v55_v5  ;;  %62 = vadd.xlane.f32.xlu1 %v61_v6  ;;  %v64_v11 = vsel %vm54_vm0, %v12102_v7, 0.0  ;;  %v12121_v12 = vld [vmem:[%s14698_s0 + $0x30] sm:$0xff]  ;;  %v11812_v13 = vld [vmem:[%s14700_s2] sm:$0xff]   ;;  %v11813_v14 = vld [vmem:[%s14700_s2 + $0x8] sm:$0x1f]   ;;  %v12004_v16 = vmov 65535  }
   0x6   :  { %v11814_v15 = vld [vmem:[%s14699_s1] sm:$0xff]   ;;  %10365 = vmatprep.subr.bf16.mxu0 %v11812_v13  ;;  %10405 = vmatprep.subr.bf16.mxu1 %v11812_v13  ;;  %v356_v17 = vsel %vm354_vm1, 4294967295, %v12004_v16  ;;  %vm299_vm3 = vcmask 203776   ;;  %v11815_v19 = vld [vmem:[%s14699_s1 + $0x90] sm:$0xff]   ;;  %v67_v20 = vsel %vm54_vm0, %v12109_v9, 0.0  ;;  %v70_v21 = vsel %vm54_vm0, %v12114_v10, 0.0 }
   0x7   :  { %v357_v18 = vsel %vm355_vm2, %v356_v17, 0  ;;  %10366 = vmatpush3.bf16.msra.mxu0 %v11812_v13  ;;  %10406 = vmatpush3.bf16.msra.mxu1 %v11812_v13  ;;  %v73_v23 = vsel %vm54_vm0, %v12121_v12, 0.0  ;;  %v11816_v24 = vld [vmem:[%s14699_s1 + $0x8] sm:$0xff]   ;;  %v11817_v25 = vld [vmem:[%s14699_s1 + $0x98] sm:$0xff]   ;;  %v11818_v26 = vld [vmem:[%s14699_s1 + $0x10] sm:$0xff]  }
   0x8   :  { %v359_v22 = vand.u32 %v11813_v14, %v357_v18  ;;  %10369 = vmatprep.mubr.msk.bf16.mxu0 %vm299_vm3, %v11814_v15  ;;  %10409 = vmatprep.mubr.msk.bf16.mxu1 %vm299_vm3, %v11815_v19  ;;  %v11819_v27 = vld [vmem:[%s14699_s1 + $0xa0] sm:$0xff]   ;;  %v11820_v28 = vld [vmem:[%s14699_s1 + $0x18] sm:$0xff]   ;;  %v11821_v29 = vld [vmem:[%s14699_s1 + $0xa8] sm:$0xff]  }
   0x9   :  { %59 = vadd.xlane.f32.xlu0 %v58_v8  ;;  %65 = vadd.xlane.f32.xlu1 %v64_v11  ;;  %v11822_v30 = vld [vmem:[%s14699_s1 + $0x20] sm:$0xff]   ;;  %v11823_v31 = vld [vmem:[%s14699_s1 + $0xb0] sm:$0xff]   ;;  %v11824_v32 = vld [vmem:[%s14699_s1 + $0x28] sm:$0xff]  }
   0xa   :  { %10367 = vmatprep.subr.bf16.mxu0 %v359_v22  ;;  %10407 = vmatprep.subr.bf16.mxu1 %v359_v22  ;;  %v11825_v33 = vld [vmem:[%s14699_s1 + $0xb8] sm:$0xff]   ;;  %v11826_v34 = vld [vmem:[%s14699_s1 + $0x30] sm:$0xff]   ;;  %v11827_v35 = vld [vmem:[%s14699_s1 + $0xc0] sm:$0xff]  }
   0xb   :  { %10368 = vmatpush3.bf16.msra.mxu0 %v359_v22  ;;  %10408 = vmatpush3.bf16.msra.mxu1 %v359_v22  ;;  %v11828_v36 = vld [vmem:[%s14699_s1 + $0x38] sm:$0xff]   ;;  %v11829_v37 = vld [vmem:[%s14699_s1 + $0xc8] sm:$0xff]   ;;  %v11830_v38 = vld [vmem:[%s14699_s1 + $0x40] sm:$0xff]  }
   0xc   :  { %10445 = vmatprep.subr.bf16.mxu0 %v11812_v13  ;;  %10485 = vmatprep.subr.bf16.mxu1 %v11812_v13  ;;  %v11831_v39 = vld [vmem:[%s14699_s1 + $0xd0] sm:$0xff]   ;;  %v11832_v40 = vld [vmem:[%s14699_s1 + $0x48] sm:$0xff]   ;;  %v11833_v41 = vld [vmem:[%s14699_s1 + $0xd8] sm:$0xff]  }
   0xd   :  { %68 = vadd.xlane.f32.xlu0 %v67_v20  ;;  %71 = vadd.xlane.f32.xlu1 %v70_v21  ;;  %v11834_v42 = vld [vmem:[%s14699_s1 + $0x50] sm:$0xff]   ;;  %v11835_v43 = vld [vmem:[%s14699_s1 + $0xe0] sm:$0xff]   ;;  %v11836_v44 = vld [vmem:[%s14699_s1 + $0x58] sm:$0xff]  }
   0xe   :  { %10370 = vmatmul.mubr.msk.bf16.vlgmr.msra.gmra.mrb[0].mxu0 %vm299_vm3, %v11816_v24  ;;  %10410 = vmatmul.mubr.msk.bf16.vlgmr.msra.gmra.mrb[0].mxu1 %vm299_vm3, %v11817_v25  ;;  %v11837_v45 = vld [vmem:[%s14699_s1 + $0xe8] sm:$0xff]   ;;  %v11838_v46 = vld [vmem:[%s14699_s1 + $0x60] sm:$0xff]   ;;  %v11839_v47 = vld [vmem:[%s14699_s1 + $0xf0] sm:$0xff]  }
   0xf   :  { %10446 = vmatpush3.bf16.msra.mxu0 %v11812_v13  ;;  %10486 = vmatpush3.bf16.msra.mxu1 %v11812_v13  ;;  %v11840_v48 = vld [vmem:[%s14699_s1 + $0x68] sm:$0xff]   ;;  %v11841_v49 = vld [vmem:[%s14699_s1 + $0xf8] sm:$0xff]   ;;  %v11842_v50 = vld [vmem:[%s14699_s1 + $0x70] sm:$0xff]  }
  0x10   :  { %10447 = vmatprep.subr.bf16.mxu0 %v359_v22  ;;  %10487 = vmatprep.subr.bf16.mxu1 %v359_v22  ;;  %v11843_v51 = vld [vmem:[%s14699_s1 + $0x100] sm:$0xff]   ;;  %v11844_v52 = vld [vmem:[%s14699_s1 + $0x78] sm:$0xff]   ;;  %v11845_v53 = vld [vmem:[%s14699_s1 + $0x108] sm:$0xff]  }
  0x11   :  { %74 = vadd.xlane.f32.xlu0 %v73_v23  ;;  %10373 = vmatprep.mubr.msk.bf16.mxu0 %vm299_vm3, %v11818_v26  ;;  %v11846_v54 = vld [vmem:[%s14699_s1 + $0x80] sm:$0xff]   ;;  %v11847_v55 = vld [vmem:[%s14699_s1 + $0x110] sm:$0xff]   ;;  %v11848_v56 = vld [vmem:[%s14699_s1 + $0x88] sm:$0xff]  }
  0x12   :  { %10413 = vmatprep.mubr.msk.bf16.mxu1 %vm299_vm3, %v11819_v27  ;;  %v11849_v57 = vld [vmem:[%s14699_s1 + $0x118] sm:$0xff]   ;;  %v11850_v58 = vld [vmem:[%s14699_s1 + $0x120] sm:$0xff]   ;;  %v11851_v59 = vld [vmem:[%s14699_s1 + $0x1b0] sm:$0xff]  }
  0x13   :  { %10448 = vmatpush3.bf16.msra.mxu0 %v359_v22  ;;  %10488 = vmatpush3.bf16.msra.mxu1 %v359_v22  ;;  %v11852_v60 = vld [vmem:[%s14699_s1 + $0x128] sm:$0xff]   ;;  %v11853_v61 = vld [vmem:[%s14699_s1 + $0x1b8] sm:$0xff]   ;;  %v11854_v62 = vld [vmem:[%s14699_s1 + $0x130] sm:$0xff]  }
  0x14   :  { %v11855_v63 = vld [vmem:[%s14699_s1 + $0x1c0] sm:$0xff]   ;;  %v11856_v0 = vld [vmem:[%s14699_s1 + $0x138] sm:$0xff]   ;;  %v11857_v1 = vld [vmem:[%s14699_s1 + $0x1c8] sm:$0xff]  }
  0x15   :  { %v11858_v5 = vld [vmem:[%s14699_s1 + $0x140] sm:$0xff]   ;;  %v11859_v6 = vld [vmem:[%s14699_s1 + $0x1d0] sm:$0xff]   ;;  %v11860_v8 = vld [vmem:[%s14699_s1 + $0x148] sm:$0xff]  }
  0x16   :  { %10374 = vmatmul.mubr.msk.bf16.gmra.mrb[4].mxu0 %vm299_vm3, %v11820_v28  ;;  %10414 = vmatmul.mubr.msk.bf16.gmra.mrb[4].mxu1 %vm299_vm3, %v11821_v29  ;;  %v11861_v11 = vld [vmem:[%s14699_s1 + $0x1d8] sm:$0xff]   ;;  %v11862_v13 = vld [vmem:[%s14699_s1 + $0x150] sm:$0xff]   ;;  %v11863_v14 = vld [vmem:[%s14699_s1 + $0x1e0] sm:$0xff]  }
  0x17   :  { %10377 = vmatprep.mubr.msk.bf16.mxu0 %vm299_vm3, %v11822_v30  ;;  %10417 = vmatprep.mubr.msk.bf16.mxu1 %vm299_vm3, %v11823_v31  ;;  %v11864_v15 = vld [vmem:[%s14699_s1 + $0x158] sm:$0xff]   ;;  %v11865_v16 = vld [vmem:[%s14699_s1 + $0x1e8] sm:$0xff]   ;;  %v11866_v17 = vld [vmem:[%s14699_s1 + $0x160] sm:$0xff]  }
  0x18   :  { %v11867_v18 = vld [vmem:[%s14699_s1 + $0x1f0] sm:$0xff]   ;;  %v11868_v19 = vld [vmem:[%s14699_s1 + $0x168] sm:$0xff]   ;;  %v11869_v20 = vld [vmem:[%s14699_s1 + $0x1f8] sm:$0xff]  }
  0x19   :  { %v11870_v21 = vld [vmem:[%s14699_s1 + $0x170] sm:$0xff]   ;;  %v11871_v22 = vld [vmem:[%s14699_s1 + $0x200] sm:$0xff]  }
  0x1e   :  { %10378 = vmatmul.mubr.msk.bf16.gmra.mrb[8].mxu0 %vm299_vm3, %v11824_v32  ;;  %10418 = vmatmul.mubr.msk.bf16.gmra.mrb[8].mxu1 %vm299_vm3, %v11825_v33 }
  0x1f   :  { %10381 = vmatprep.mubr.msk.bf16.mxu0 %vm299_vm3, %v11826_v34  ;;  %10421 = vmatprep.mubr.msk.bf16.mxu1 %vm299_vm3, %v11827_v35 }
  0x26   :  { %10382 = vmatmul.mubr.msk.bf16.gmra.mrb[12].mxu0 %vm299_vm3, %v11828_v36  ;;  %10422 = vmatmul.mubr.msk.bf16.gmra.mrb[12].mxu1 %vm299_vm3, %v11829_v37 }
  0x27   :  { %10385 = vmatprep.mubr.msk.bf16.mxu0 %vm299_vm3, %v11830_v38  ;;  %10425 = vmatprep.mubr.msk.bf16.mxu1 %vm299_vm3, %v11831_v39 }
  0x2e   :  { %10386 = vmatmul.mubr.msk.bf16.gmra.mrb[16].mxu0 %vm299_vm3, %v11832_v40  ;;  %10426 = vmatmul.mubr.msk.bf16.gmra.mrb[16].mxu1 %vm299_vm3, %v11833_v41 }
  0x2f   :  { %10389 = vmatprep.mubr.msk.bf16.mxu0 %vm299_vm3, %v11834_v42  ;;  %10429 = vmatprep.mubr.msk.bf16.mxu1 %vm299_vm3, %v11835_v43 }
  0x36   :  { %10390 = vmatmul.mubr.msk.bf16.gmra.mrb[20].mxu0 %vm299_vm3, %v11836_v44  ;;  %10430 = vmatmul.mubr.msk.bf16.gmra.mrb[20].mxu1 %vm299_vm3, %v11837_v45 }
  0x37   :  { %10393 = vmatprep.mubr.msk.bf16.mxu0 %vm299_vm3, %v11838_v46  ;;  %10433 = vmatprep.mubr.msk.bf16.mxu1 %vm299_vm3, %v11839_v47 }
  0x3e   :  { %10394 = vmatmul.mubr.msk.bf16.gmra.mrb[24].mxu0 %vm299_vm3, %v11840_v48  ;;  %10434 = vmatmul.mubr.msk.bf16.gmra.mrb[24].mxu1 %vm299_vm3, %v11841_v49 }
  0x3f   :  { %10397 = vmatprep.mubr.msk.bf16.mxu0 %vm299_vm3, %v11842_v50  ;;  %10437 = vmatprep.mubr.msk.bf16.mxu1 %vm299_vm3, %v11843_v51 }
  0x46   :  { %10398 = vmatmul.mubr.msk.bf16.gmra.mrb[28].mxu0 %vm299_vm3, %v11844_v52  ;;  %10438 = vmatmul.mubr.msk.bf16.gmra.mrb[28].mxu1 %vm299_vm3, %v11845_v53 }
  0x47   :  { %10401 = vmatprep.mubr.msk.bf16.mxu0 %vm299_vm3, %v11846_v54  ;;  %10441 = vmatprep.mubr.msk.bf16.mxu1 %vm299_vm3, %v11847_v55 }
  0x4e   :  { %10402 = vmatmul.mubr.msk.bf16.gmra.mrb[32].mxu0 %vm299_vm3, %v11848_v56  ;;  %10442 = vmatmul.mubr.msk.bf16.gmra.mrb[32].mxu1 %vm299_vm3, %v11849_v57 }
  0x4f   :  { %10449 = vmatprep.mubr.msk.bf16.mxu0 %vm299_vm3, %v11850_v58  ;;  %10489 = vmatprep.mubr.msk.bf16.mxu1 %vm299_vm3, %v11851_v59 }
  0x56   :  { %10450 = vmatmul.mubr.msk.bf16.vlgmr.msra.gmra.mrb[36].mxu0 %vm299_vm3, %v11852_v60  ;;  %10490 = vmatmul.mubr.msk.bf16.vlgmr.msra.gmra.mrb[36].mxu1 %vm299_vm3, %v11853_v61 }
  0x57   :  { %10453 = vmatprep.mubr.msk.bf16.mxu0 %vm299_vm3, %v11854_v62  ;;  %10493 = vmatprep.mubr.msk.bf16.mxu1 %vm299_vm3, %v11855_v63 }
  0x5e   :  { %10454 = vmatmul.mubr.msk.bf16.gmra.mrb[40].mxu0 %vm299_vm3, %v11856_v0  ;;  %10494 = vmatmul.mubr.msk.bf16.gmra.mrb[40].mxu1 %vm299_vm3, %v11857_v1 }
  0x5f   :  { %10457 = vmatprep.mubr.msk.bf16.mxu0 %vm299_vm3, %v11858_v5  ;;  %10497 = vmatprep.mubr.msk.bf16.mxu1 %vm299_vm3, %v11859_v6 }
  0x66   :  { %10458 = vmatmul.mubr.msk.bf16.gmra.mrb[44].mxu0 %vm299_vm3, %v11860_v8  ;;  %10498 = vmatmul.mubr.msk.bf16.gmra.mrb[44].mxu1 %vm299_vm3, %v11861_v11 }
  0x67   :  { %10461 = vmatprep.mubr.msk.bf16.mxu0 %vm299_vm3, %v11862_v13  ;;  %10501 = vmatprep.mubr.msk.bf16.mxu1 %vm299_vm3, %v11863_v14 }
  0x6e   :  { %10462 = vmatmul.mubr.msk.bf16.gmra.mrb[48].mxu0 %vm299_vm3, %v11864_v15  ;;  %10502 = vmatmul.mubr.msk.bf16.gmra.mrb[48].mxu1 %vm299_vm3, %v11865_v16 }
  0x6f   :  { %10465 = vmatprep.mubr.msk.bf16.mxu0 %vm299_vm3, %v11866_v17  ;;  %10505 = vmatprep.mubr.msk.bf16.mxu1 %vm299_vm3, %v11867_v18 }
  0x76   :  { %10466 = vmatmul.mubr.msk.bf16.gmra.mrb[52].mxu0 %vm299_vm3, %v11868_v19  ;;  %10506 = vmatmul.mubr.msk.bf16.gmra.mrb[52].mxu1 %vm299_vm3, %v11869_v20 }
  0x77   :  { %10469 = vmatprep.mubr.msk.bf16.mxu0 %vm299_vm3, %v11870_v21  ;;  %10509 = vmatprep.mubr.msk.bf16.mxu1 %vm299_vm3, %v11871_v22 }
  0x78   :  { %21 = vsyncpa [#allocation6], 0  ;;  %v11872_v23 = vld [vmem:[%s14699_s1 + $0x178] sm:$0xff]   ;;  %v11873_v24 = vld [vmem:[%s14699_s1 + $0x208] sm:$0xff]   ;;  %v12005_v15 = vmov 0   ;;  %vm2164_vm4 = vcmask 261120  }
  0x79   :  { %v11874_v25 = vld [vmem:[%s14699_s1 + $0x180] sm:$0xff]   ;;  %v11875_v26 = vld [vmem:[%s14699_s1 + $0x210] sm:$0xff]   ;;  %v11876_v27 = vld [vmem:[%s14699_s1 + $0x188] sm:$0xff]   ;;  %11811 = vset.pattern.permute.xlu1 %v12005_v15  ;;  %11810 = vset.pattern.permute.xlu0 %v12005_v15  ;;  %vm2169_vm5 = vcmask 261124   ;;  %vm2166_vm6 = vcmask 257024   ;;  %vm12007_vm7 = vmmov 0  }
  0x7a   :  { %v11877_v28 = vld [vmem:[%s14699_s1 + $0x218] sm:$0xff]   ;;  %v11878_v29 = vld [vmem:[%s14699_s1 + $0x190] sm:$0xff]   ;;  %v11879_v30 = vld [vmem:[%s14699_s1 + $0x220] sm:$0xff]   ;;  %vm8412_vm8 = vcmask 130048   ;;  %vm9269_vm9 = vcmask 74752   ;;  %s12008_s15 = smov [#allocation5]  }
  0x7b   :  { %v11880_v31 = vld [vmem:[%s14699_s1 + $0x198] sm:$0xff]   ;;  %v11881_v32 = vld [vmem:[%s14699_s1 + $0x228] sm:$0xff]   ;;  %v11882_v33 = vld [vmem:[%s14699_s1 + $0x1a0] sm:$0xff]  }
  0x7c   :  { %v11883_v34 = vld [vmem:[%s14699_s1 + $0x230] sm:$0xff]   ;;  %v11884_v39 = vld [vmem:[%s14699_s1 + $0x1a8] sm:$0xff]   ;;  %v11885_v40 = vld [vmem:[%s14699_s1 + $0x238] sm:$0xff]  }
  0x7d   :  { %v11886_v17 = vld [vmem:[%s14703_s5 + $0x10] sm:$0xff]   ;;  %v11887_v18 = vld [vmem:[%s14703_s5 + $0x18] sm:$0xff]  }
  0x7e   :  { %10470 = vmatmul.mubr.msk.bf16.gmra.mrb[56].mxu0 %vm299_vm3, %v11872_v23  ;;  %10510 = vmatmul.mubr.msk.bf16.gmra.mrb[56].mxu1 %vm299_vm3, %v11873_v24 }
  0x7f   :  { %10473 = vmatprep.mubr.msk.bf16.mxu0 %vm299_vm3, %v11874_v25  ;;  %10513 = vmatprep.mubr.msk.bf16.mxu1 %vm299_vm3, %v11875_v26 }
  0x80   :  { %10525 = vmatprep.subr.bf16.mxu0 %v11886_v17  ;;  %10725 = vmatprep.subr.bf16.mxu1 %v11886_v17 }
  0x81   :  { %10526 = vmatpush3.bf16.msra.mxu0 %v11886_v17  ;;  %10726 = vmatpush3.bf16.msra.mxu1 %v11886_v17 }
  0x82   :  { %10527 = vmatprep.subr.bf16.mxu0 %v11887_v18  ;;  %10727 = vmatprep.subr.bf16.mxu1 %v11887_v18 }
  0x85   :  { %10528 = vmatpush3.bf16.msra.mxu0 %v11887_v18  ;;  %10728 = vmatpush3.bf16.msra.mxu1 %v11887_v18 }
  0x86   :  { %10474 = vmatmul.mubr.msk.bf16.gmra.mrb[60].mxu0 %vm299_vm3, %v11876_v27  ;;  %10514 = vmatmul.mubr.msk.bf16.gmra.mrb[60].mxu1 %vm299_vm3, %v11877_v28 }
  0x87   :  { %10477 = vmatprep.mubr.msk.bf16.mxu0 %vm299_vm3, %v11878_v29  ;;  %10517 = vmatprep.mubr.msk.bf16.mxu1 %vm299_vm3, %v11879_v30 }
  0x8e   :  { %10478 = vmatmul.mubr.msk.bf16.gmra.mrb[64].mxu0 %vm299_vm3, %v11880_v31  ;;  %10518 = vmatmul.mubr.msk.bf16.gmra.mrb[64].mxu1 %vm299_vm3, %v11881_v32 }
  0x8f   :  { %10481 = vmatprep.mubr.msk.bf16.mxu0 %vm299_vm3, %v11882_v33  ;;  %10521 = vmatprep.mubr.msk.bf16.mxu1 %vm299_vm3, %v11883_v34 }
  0x92   :  { %v57_v35 = vpop.xlane.xlu0 %56  ;;  %v63_v36 = vpop.xlane.xlu1 %62 }
  0x96   :  { %v60_v37 = vpop.xlane.xlu0 %59  ;;  %v66_v38 = vpop.xlane.xlu1 %65  ;;  %10482 = vmatmul.mubr.msk.bf16.gmra.mrb[68].mxu0 %vm299_vm3, %v11884_v39  ;;  %10522 = vmatmul.mubr.msk.bf16.gmra.mrb[68].mxu1 %vm299_vm3, %v11885_v40 }
  0x97   :  { %v76_v41 = vadd.f32 %v60_v37, %v57_v35 }
  0x99   :  { %v77_v42 = vadd.f32 %v76_v41, %v63_v36 }
  0x9a   :  { %v69_v43 = vpop.xlane.xlu0 %68  ;;  %v72_v45 = vpop.xlane.xlu1 %71 }
  0x9b   :  { %v78_v44 = vadd.f32 %v77_v42, %v66_v38 }
  0x9d   :  { %v79_v46 = vadd.f32 %v78_v44, %v69_v43 }
  0x9e   :  { %v75_v47 = vpop.xlane.xlu0 %74 }
  0x9f   :  { %v80_v48 = vadd.f32 %v79_v46, %v72_v45 }
  0xa1   :  { %v81_v49 = vadd.f32 %v80_v48, %v75_v47 }
  0xa3   :  { %v82_v50 = vrot.slane %v81_v49, 4 }
  0xa5   :  { %v83_v51 = vadd.f32 %v82_v50, %v81_v49 }
  0xa7   :  { %v84_v52 = vrot.slane %v83_v51, 2 }
  0xa9   :  { %v85_v53 = vadd.f32 %v84_v52, %v83_v51 }
  0xab   :  { %v86_v54 = vrot.slane %v85_v53, 1 }
  0xad   :  { %v87_v55 = vadd.f32 %v86_v54, %v85_v53 }
  0xaf   :  { %v12423_v56 = vmul.f32 0.0006377551, %v87_v55 }
  0xb1   :  { %v91_v57 = vsub.f32 %v12093_v4, %v12423_v56  ;;  %v90_v58 = vsub.f32 %v12083_v2, %v12423_v56  ;;  %v93_v59 = vsub.f32 %v12102_v7, %v12423_v56  ;;  %v92_v60 = vsub.f32 %v12088_v3, %v12423_v56 }
  0xb2   :  { %v95_v63 = vsub.f32 %v12114_v10, %v12423_v56  ;;  %v94_v0 = vsub.f32 %v12109_v9, %v12423_v56  ;;  %v96_v7 = vsub.f32 %v12121_v12, %v12423_v56 }
  0xb3   :  { %v98_v61 = vmul.f32 %v91_v57, %v91_v57  ;;  %v97_v62 = vmul.f32 %v90_v58, %v90_v58  ;;  %v100_v5 = vmul.f32 %v93_v59, %v93_v59  ;;  %v99_v2 = vmul.f32 %v92_v60, %v92_v60 }
  0xb4   :  { %v102_v8 = vmul.f32 %v95_v63, %v95_v63  ;;  %v101_v10 = vmul.f32 %v94_v0, %v94_v0  ;;  %v103_v13 = vmul.f32 %v96_v7, %v96_v7 }
  0xb5   :  { %v107_v1 = vsel %vm54_vm0, %v98_v61, 0.0  ;;  %v104_v4 = vsel %vm54_vm0, %v97_v62, 0.0  ;;  %v113_v3 = vsel %vm54_vm0, %v100_v5, 0.0  ;;  %v110_v6 = vsel %vm54_vm0, %v99_v2, 0.0 }
  0xb6   :  { %108 = vadd.xlane.f32.xlu0 %v107_v1  ;;  %105 = vadd.xlane.f32.xlu1 %v104_v4  ;;  %v119_v9 = vsel %vm54_vm0, %v102_v8, 0.0  ;;  %v116_v11 = vsel %vm54_vm0, %v101_v10, 0.0  ;;  %v122_v14 = vsel %vm54_vm0, %v103_v13, 0.0 }
  0xba   :  { %114 = vadd.xlane.f32.xlu0 %v113_v3  ;;  %111 = vadd.xlane.f32.xlu1 %v110_v6 }
  0xbe   :  { %120 = vadd.xlane.f32.xlu0 %v119_v9  ;;  %117 = vadd.xlane.f32.xlu1 %v116_v11 }
  0xc2   :  { %123 = vadd.xlane.f32.xlu1 %v122_v14 }
  0xe1   :  { %v12446_v12 = vpop.f32.mrb[0].mxu0  ;;  %v12448_v16 = vpop.f32.mrb[0].mxu1 }
  0xe2   :  { %v12456_v19 = vpop.f32.mrb[1].mxu0  ;;  %v12458_v20 = vpop.f32.mrb[1].mxu1 }
  0xe3   :  { %v12460_v21 = vpop.f32.mrb[2].mxu0  ;;  %v12462_v22 = vpop.f32.mrb[2].mxu1 }
  0xe4   :  { %v12464_v23 = vpop.f32.mrb[3].mxu0  ;;  %v12466_v24 = vpop.f32.mrb[3].mxu1 }
  0xe9   :  { %v12468_v25 = vpop.f32.mrb[4].mxu0  ;;  %v12470_v26 = vpop.f32.mrb[4].mxu1 }
  0xea   :  { %14757 = vst [vmem:[#allocation8_spill] sm:$0xff] %v12468_v25  ;;  %14758 = vst [vmem:[#allocation9_spill] sm:$0xff] %v12470_v26  ;;  %v12472_v27 = vpop.f32.mrb[5].mxu0  ;;  %v12474_v28 = vpop.f32.mrb[5].mxu1 }
  0xeb   :  { %v12476_v29 = vpop.f32.mrb[6].mxu0  ;;  %v12478_v30 = vpop.f32.mrb[6].mxu1 }
  0xec   :  { %14759 = vst [vmem:[#allocation10_spill] sm:$0xff] %v12476_v29  ;;  %14760 = vst [vmem:[#allocation11_spill] sm:$0xff] %v12478_v30  ;;  %v12480_v31 = vpop.f32.mrb[7].mxu0  ;;  %v12482_v32 = vpop.f32.mrb[7].mxu1 }
  0xf1   :  { %v12484_v33 = vpop.f32.mrb[8].mxu0  ;;  %v12486_v34 = vpop.f32.mrb[8].mxu1 }
  0xf2   :  { %v12488_v35 = vpop.f32.mrb[9].mxu0  ;;  %v12490_v36 = vpop.f32.mrb[9].mxu1 }
  0xf3   :  { %14761 = vst [vmem:[#allocation12_spill] sm:$0xff] %v12488_v35  ;;  %14762 = vst [vmem:[#allocation13_spill] sm:$0xff] %v12490_v36  ;;  %v12492_v37 = vpop.f32.mrb[10].mxu0  ;;  %v12494_v38 = vpop.f32.mrb[10].mxu1 }
  0xf4   :  { %v12496_v39 = vpop.f32.mrb[11].mxu0  ;;  %v12498_v40 = vpop.f32.mrb[11].mxu1 }
  0xf9   :  { %v12500_v41 = vpop.f32.mrb[12].mxu0  ;;  %v12502_v42 = vpop.f32.mrb[12].mxu1 }
  0xfa   :  { %v12504_v43 = vpop.f32.mrb[13].mxu0  ;;  %v12506_v44 = vpop.f32.mrb[13].mxu1 }
  0xfb   :  { %v12508_v45 = vpop.f32.mrb[14].mxu0  ;;  %v12510_v46 = vpop.f32.mrb[14].mxu1 }
  0xfc   :  { %14763 = vst [vmem:[#allocation14_spill] sm:$0xff] %v12508_v45  ;;  %14764 = vst [vmem:[#allocation15_spill] sm:$0xff] %v12510_v46  ;;  %v12512_v47 = vpop.f32.mrb[15].mxu0  ;;  %v12514_v48 = vpop.f32.mrb[15].mxu1 }
 0x101   :  { %v12516_v49 = vpop.f32.mrb[16].mxu0  ;;  %v12518_v50 = vpop.f32.mrb[16].mxu1 }
 0x102   :  { %14765 = vst [vmem:[#allocation16_spill] sm:$0xff] %v12516_v49  ;;  %14766 = vst [vmem:[#allocation17_spill] sm:$0xff] %v12518_v50  ;;  %v12520_v51 = vpop.f32.mrb[17].mxu0  ;;  %v12522_v52 = vpop.f32.mrb[17].mxu1 }
 0x103   :  { %14767 = vst [vmem:[#allocation18_spill] sm:$0xff] %v12520_v51  ;;  %14768 = vst [vmem:[#allocation19_spill] sm:$0xff] %v12522_v52  ;;  %v12524_v53 = vpop.f32.mrb[18].mxu0  ;;  %v12526_v54 = vpop.f32.mrb[18].mxu1 }
 0x104   :  { %14769 = vst [vmem:[#allocation20_spill] sm:$0xff] %v12524_v53  ;;  %14770 = vst [vmem:[#allocation21_spill] sm:$0xff] %v12526_v54  ;;  %v12528_v55 = vpop.f32.mrb[19].mxu0  ;;  %v12530_v57 = vpop.f32.mrb[19].mxu1 }
 0x105   :  { %14771 = vst [vmem:[#allocation22_spill] sm:$0xff] %v12528_v55  ;;  %14772 = vst [vmem:[#allocation23_spill] sm:$0xff] %v12530_v57 }
 0x109   :  { %v12532_v58 = vpop.f32.mrb[20].mxu0  ;;  %v12534_v59 = vpop.f32.mrb[20].mxu1 }
 0x10a   :  { %14773 = vst [vmem:[#allocation24_spill] sm:$0xff] %v12532_v58  ;;  %14774 = vst [vmem:[#allocation25_spill] sm:$0xff] %v12534_v59  ;;  %v12536_v60 = vpop.f32.mrb[21].mxu0  ;;  %v12538_v61 = vpop.f32.mrb[21].mxu1 }
 0x10b   :  { %14775 = vst [vmem:[#allocation26_spill] sm:$0xff] %v12536_v60  ;;  %14776 = vst [vmem:[#allocation27_spill] sm:$0xff] %v12538_v61  ;;  %v12540_v62 = vpop.f32.mrb[22].mxu0  ;;  %v12542_v63 = vpop.f32.mrb[22].mxu1 }
 0x10c   :  { %14777 = vst [vmem:[#allocation28_spill] sm:$0xff] %v12540_v62  ;;  %14778 = vst [vmem:[#allocation29_spill] sm:$0xff] %v12542_v63  ;;  %v12544_v0 = vpop.f32.mrb[23].mxu0  ;;  %v12546_v1 = vpop.f32.mrb[23].mxu1 }
 0x10d   :  { %14779 = vst [vmem:[#allocation30_spill] sm:$0xff] %v12544_v0  ;;  %14780 = vst [vmem:[#allocation31_spill] sm:$0xff] %v12546_v1 }
 0x111   :  { %v12548_v4 = vpop.f32.mrb[24].mxu0  ;;  %v12550_v5 = vpop.f32.mrb[24].mxu1 }
 0x112   :  { %14781 = vst [vmem:[#allocation32_spill] sm:$0xff] %v12548_v4  ;;  %14782 = vst [vmem:[#allocation33_spill] sm:$0xff] %v12550_v5  ;;  %v12552_v2 = vpop.f32.mrb[25].mxu0  ;;  %v12554_v7 = vpop.f32.mrb[25].mxu1 }
 0x113   :  { %14783 = vst [vmem:[#allocation34_spill] sm:$0xff] %v12552_v2  ;;  %14784 = vst [vmem:[#allocation35_spill] sm:$0xff] %v12554_v7  ;;  %v12556_v3 = vpop.f32.mrb[26].mxu0  ;;  %v12558_v6 = vpop.f32.mrb[26].mxu1 }
 0x114   :  { %14785 = vst [vmem:[#allocation36_spill] sm:$0xff] %v12556_v3  ;;  %14786 = vst [vmem:[#allocation37_spill] sm:$0xff] %v12558_v6  ;;  %v12560_v8 = vpop.f32.mrb[27].mxu0  ;;  %v12562_v10 = vpop.f32.mrb[27].mxu1 }
 0x115   :  { %14787 = vst [vmem:[#allocation38_spill] sm:$0xff] %v12560_v8  ;;  %14788 = vst [vmem:[#allocation39_spill] sm:$0xff] %v12562_v10 }
 0x119   :  { %v12564_v9 = vpop.f32.mrb[28].mxu0  ;;  %v12566_v11 = vpop.f32.mrb[28].mxu1 }
 0x11a   :  { %14789 = vst [vmem:[#allocation40_spill] sm:$0xff] %v12564_v9  ;;  %14790 = vst [vmem:[#allocation41_spill] sm:$0xff] %v12566_v11  ;;  %v12568_v13 = vpop.f32.mrb[29].mxu0  ;;  %v12570_v14 = vpop.f32.mrb[29].mxu1 }
 0x11b   :  { %14791 = vst [vmem:[#allocation42_spill] sm:$0xff] %v12568_v13  ;;  %14792 = vst [vmem:[#allocation43_spill] sm:$0xff] %v12570_v14  ;;  %v12572_v15 = vpop.f32.mrb[30].mxu0  ;;  %v12574_v17 = vpop.f32.mrb[30].mxu1 }
 0x11c   :  { %14793 = vst [vmem:[#allocation44_spill] sm:$0xff] %v12572_v15  ;;  %14794 = vst [vmem:[#allocation45_spill] sm:$0xff] %v12574_v17  ;;  %v12576_v18 = vpop.f32.mrb[31].mxu0  ;;  %v12578_v5 = vpop.f32.mrb[31].mxu1 }
 0x11d   :  { %14795 = vst [vmem:[#allocation46_spill] sm:$0xff] %v12576_v18  ;;  %14796 = vst [vmem:[#allocation47_spill] sm:$0xff] %v12578_v5 }
 0x121   :  { %v12580_v4 = vpop.f32.mrb[32].mxu0  ;;  %v12582_v57 = vpop.f32.mrb[32].mxu1 }
 0x122   :  { %14797 = vst [vmem:[#allocation48_spill] sm:$0xff] %v12580_v4  ;;  %14798 = vst [vmem:[#allocation49_spill] sm:$0xff] %v12582_v57  ;;  %v12584_v55 = vpop.f32.mrb[33].mxu0  ;;  %v12586_v36 = vpop.f32.mrb[33].mxu1 }
 0x123   :  { %14799 = vst [vmem:[#allocation50_spill] sm:$0xff] %v12584_v55  ;;  %14800 = vst [vmem:[#allocation51_spill] sm:$0xff] %v12586_v36  ;;  %v12588_v35 = vpop.f32.mrb[34].mxu0  ;;  %v12590_v10 = vpop.f32.mrb[34].mxu1 }
 0x124   :  { %14801 = vst [vmem:[#allocation52_spill] sm:$0xff] %v12588_v35  ;;  %14802 = vst [vmem:[#allocation53_spill] sm:$0xff] %v12590_v10  ;;  %v12592_v8 = vpop.f32.mrb[35].mxu0  ;;  %v12594_v7 = vpop.f32.mrb[35].mxu1 }
 0x125   :  { %14803 = vst [vmem:[#allocation54_spill] sm:$0xff] %v12592_v8  ;;  %14804 = vst [vmem:[#allocation55_spill] sm:$0xff] %v12594_v7 }
 0x129   :  { %v12596_v2 = vpop.f32.mrb[36].mxu0  ;;  %v12598_v52 = vpop.f32.mrb[36].mxu1 }
 0x12a   :  { %v12600_v51 = vpop.f32.mrb[37].mxu0  ;;  %v12602_v4 = vpop.f32.mrb[37].mxu1 }
 0x12b   :  { %v12604_v57 = vpop.f32.mrb[38].mxu0  ;;  %v12606_v30 = vpop.f32.mrb[38].mxu1 }
 0x12c   :  { %v12608_v29 = vpop.f32.mrb[39].mxu0  ;;  %v12610_v35 = vpop.f32.mrb[39].mxu1 }
 0x131   :  { %v12612_v10 = vpop.f32.mrb[40].mxu0  ;;  %v12614_v8 = vpop.f32.mrb[40].mxu1 }
 0x132   :  { %14805 = vst [vmem:[#allocation56_spill] sm:$0xff] %v12612_v10  ;;  %14806 = vst [vmem:[#allocation57_spill] sm:$0xff] %v12614_v8  ;;  %v12616_v7 = vpop.f32.mrb[41].mxu0  ;;  %v12618_v46 = vpop.f32.mrb[41].mxu1 }
 0x133   :  { %14807 = vst [vmem:[#allocation58_spill] sm:$0xff] %v12618_v46  ;;  %v12620_v45 = vpop.f32.mrb[42].mxu0  ;;  %v12622_v26 = vpop.f32.mrb[42].mxu1 }
 0x134   :  { %14808 = vst [vmem:[#allocation59_spill] sm:$0xff] %v12620_v45  ;;  %14809 = vst [vmem:[#allocation60_spill] sm:$0xff] %v12622_v26  ;;  %v12624_v25 = vpop.f32.mrb[43].mxu0  ;;  %v12626_v36 = vpop.f32.mrb[43].mxu1 }
 0x135   :  { %14810 = vst [vmem:[#allocation61_spill] sm:$0xff] %v12626_v36 }
 0x139   :  { %v12628_v17 = vpop.f32.mrb[44].mxu0  ;;  %v12630_v11 = vpop.f32.mrb[44].mxu1 }
 0x13a   :  { %v12632_v55 = vpop.f32.mrb[45].mxu0  ;;  %v12634_v10 = vpop.f32.mrb[45].mxu1 }
 0x13b   :  { %14811 = vst [vmem:[#allocation62_spill] sm:$0xff] %v12632_v55  ;;  %14812 = vst [vmem:[#allocation63_spill] sm:$0xff] %v12634_v10  ;;  %v12636_v8 = vpop.f32.mrb[46].mxu0  ;;  %v12638_v15 = vpop.f32.mrb[46].mxu1 }
 0x13c   :  { %v12640_v9 = vpop.f32.mrb[47].mxu0  ;;  %v12642_v45 = vpop.f32.mrb[47].mxu1 }
 0x141   :  { %v12644_v59 = vpop.f32.mrb[48].mxu0  ;;  %v12646_v1 = vpop.f32.mrb[48].mxu1 }
 0x142   :  { %v12648_v58 = vpop.f32.mrb[49].mxu0  ;;  %v12650_v55 = vpop.f32.mrb[49].mxu1 }
 0x143   :  { %v109_v26 = vpop.xlane.xlu0 %108  ;;  %v106_v63 = vpop.xlane.xlu1 %105 }
 0x144   :  { %v125_v62 = vadd.f32 %v109_v26, %v106_v63  ;;  %v12652_v14 = vpop.f32.mrb[50].mxu0  ;;  %v12654_v6 = vpop.f32.mrb[50].mxu1 }
 0x145   :  { %14813 = vst [vmem:[#allocation64_spill] sm:$0xff] %v12652_v14  ;;  %14814 = vst [vmem:[#allocation65_spill] sm:$0xff] %v12654_v6  ;;  %v12656_v18 = vpop.f32.mrb[51].mxu0  ;;  %v12658_v13 = vpop.f32.mrb[51].mxu1 }
 0x147   :  { %v115_v10 = vpop.xlane.xlu0 %114  ;;  %v112_v0 = vpop.xlane.xlu1 %111 }
 0x148   :  { %v126_v5 = vadd.f32 %v125_v62, %v112_v0 }
 0x149   :  { %v12660_v26 = vpop.f32.mrb[52].mxu0  ;;  %v12662_v63 = vpop.f32.mrb[52].mxu1 }
 0x14a   :  { %v127_v3 = vadd.f32 %v126_v5, %v115_v10  ;;  %14815 = vst [vmem:[#allocation66_spill] sm:$0xff] %v12660_v26  ;;  %14816 = vst [vmem:[#allocation67_spill] sm:$0xff] %v12662_v63  ;;  %v12664_v53 = vpop.f32.mrb[53].mxu0  ;;  %v12666_v62 = vpop.f32.mrb[53].mxu1 }
 0x14b   :  { %v118_v61 = vpop.xlane.xlu1 %117  ;;  %v121_v54 = vpop.xlane.xlu0 %120  ;;  %14817 = vst [vmem:[#allocation68_spill] sm:$0xff] %v12664_v53  ;;  %14818 = vst [vmem:[#allocation69_spill] sm:$0xff] %v12666_v62 }
 0x14c   :  { %v128_v50 = vadd.f32 %v127_v3, %v118_v61  ;;  %v12668_v14 = vpop.f32.mrb[54].mxu0  ;;  %v12670_v49 = vpop.f32.mrb[54].mxu1 }
 0x14d   :  { %14819 = vst [vmem:[#allocation70_spill] sm:$0xff] %v12668_v14  ;;  %14820 = vst [vmem:[#allocation71_spill] sm:$0xff] %v12670_v49  ;;  %v12672_v36 = vpop.f32.mrb[55].mxu0  ;;  %v12674_v5 = vpop.f32.mrb[55].mxu1 }
 0x14e   :  { %v129_v60 = vadd.f32 %v128_v50, %v121_v54  ;;  %14821 = vst [vmem:[#allocation72_spill] sm:$0xff] %v12672_v36  ;;  %14822 = vst [vmem:[#allocation73_spill] sm:$0xff] %v12674_v5 }
 0x14f   :  { %v124_v0 = vpop.xlane.xlu1 %123 }
 0x150   :  { %v130_v6 = vadd.f32 %v129_v60, %v124_v0 }
 0x151   :  { %v12676_v10 = vpop.f32.mrb[56].mxu0  ;;  %v12678_v63 = vpop.f32.mrb[56].mxu1 }
 0x152   :  { %v131_v61 = vrot.slane %v130_v6, 4  ;;  %14823 = vst [vmem:[#allocation74_spill] sm:$0xff] %v12676_v10  ;;  %14824 = vst [vmem:[#allocation75_spill] sm:$0xff] %v12678_v63  ;;  %v12680_v54 = vpop.f32.mrb[57].mxu0  ;;  %v12682_v62 = vpop.f32.mrb[57].mxu1 }
 0x153   :  { %14825 = vst [vmem:[#allocation76_spill] sm:$0xff] %v12680_v54  ;;  %14826 = vst [vmem:[#allocation77_spill] sm:$0xff] %v12682_v62  ;;  %v12684_v53 = vpop.f32.mrb[58].mxu0  ;;  %v12686_v60 = vpop.f32.mrb[58].mxu1 }
 0x154   :  { %v132_v3 = vadd.f32 %v131_v61, %v130_v6  ;;  %14827 = vst [vmem:[#allocation78_spill] sm:$0xff] %v12684_v53  ;;  %14828 = vst [vmem:[#allocation79_spill] sm:$0xff] %v12686_v60  ;;  %v12688_v49 = vpop.f32.mrb[59].mxu0  ;;  %v12690_v36 = vpop.f32.mrb[59].mxu1 }
 0x155   :  { %14829 = vst [vmem:[#allocation80_spill] sm:$0xff] %v12688_v49  ;;  %14830 = vst [vmem:[#allocation81_spill] sm:$0xff] %v12690_v36 }
 0x156   :  { %v133_v50 = vrot.slane %v132_v3, 2 }
 0x158   :  { %v134_v0 = vadd.f32 %v133_v50, %v132_v3 }
 0x159   :  { %v12692_v61 = vpop.f32.mrb[60].mxu0  ;;  %v12694_v10 = vpop.f32.mrb[60].mxu1 }
 0x15a   :  { %v135_v5 = vrot.slane %v134_v0, 1  ;;  %14831 = vst [vmem:[#allocation82_spill] sm:$0xff] %v12692_v61  ;;  %14832 = vst [vmem:[#allocation83_spill] sm:$0xff] %v12694_v10  ;;  %v12696_v14 = vpop.f32.mrb[61].mxu0  ;;  %v12698_v54 = vpop.f32.mrb[61].mxu1 }
 0x15b   :  { %14833 = vst [vmem:[#allocation84_spill] sm:$0xff] %v12696_v14  ;;  %14834 = vst [vmem:[#allocation85_spill] sm:$0xff] %v12698_v54  ;;  %v12700_v62 = vpop.f32.mrb[62].mxu0  ;;  %v12702_v53 = vpop.f32.mrb[62].mxu1 }
 0x15c   :  { %v136_v6 = vadd.f32 %v135_v5, %v134_v0  ;;  %14835 = vst [vmem:[#allocation86_spill] sm:$0xff] %v12700_v62  ;;  %14836 = vst [vmem:[#allocation87_spill] sm:$0xff] %v12702_v53  ;;  %v12704_v50 = vpop.f32.mrb[63].mxu0  ;;  %v12706_v60 = vpop.f32.mrb[63].mxu1  ;;  %v151_v5 = vlaneseq }
 0x15d   :  { %14837 = vst [vmem:[#allocation88_spill] sm:$0xff] %v12704_v50  ;;  %14838 = vst [vmem:[#allocation89_spill] sm:$0xff] %v12706_v60  ;;  %v138_v60 = vld [vmem:[#allocation3] sm:$0x1] }
 0x15e   :  { %v137_v63 = vmul.f32 0.0006377551, %v136_v6  ;;  %v152_v54 = vshrl.u32 %v151_v5, 7 }
 0x160   :  { %v139_v3 = vadd.f32 1e-05, %v137_v63 }
 0x161   :  { %v12708_v0 = vpop.f32.mrb[64].mxu0  ;;  %v12710_v61 = vpop.f32.mrb[64].mxu1 }
 0x162   :  { %11952 = vrsqrt.f32 %v139_v3  ;;  %14839 = vst [vmem:[#allocation90_spill] sm:$0xff] %v12708_v0  ;;  %14840 = vst [vmem:[#allocation91_spill] sm:$0xff] %v12710_v61  ;;  %v12712_v6 = vpop.f32.mrb[65].mxu0  ;;  %v12714_v10 = vpop.f32.mrb[65].mxu1  ;;  %v153_v3 = vsub.s32 0, %v152_v54 }
 0x163   :  { %14841 = vst [vmem:[#allocation92_spill] sm:$0xff] %v12712_v6  ;;  %14842 = vst [vmem:[#allocation93_spill] sm:$0xff] %v12714_v10  ;;  %v12716_v14 = vpop.f32.mrb[66].mxu0  ;;  %v12718_v36 = vpop.f32.mrb[66].mxu1  ;;  %v142_v6 = vld [vmem:[#allocation4] sm:$0x1] }
 0x164   :  { %14843 = vst [vmem:[#allocation94_spill] sm:$0xff] %v12716_v14  ;;  %14844 = vst [vmem:[#allocation95_spill] sm:$0xff] %v12718_v36  ;;  %v12720_v63 = vpop.f32.mrb[67].mxu0  ;;  %v12722_v50 = vpop.f32.mrb[67].mxu1 }
 0x165   :  { %14845 = vst [vmem:[#allocation96_spill] sm:$0xff] %v12720_v63  ;;  %14846 = vst [vmem:[#allocation97_spill] sm:$0xff] %v12722_v50 }
 0x169   :  { %v12724_v0 = vpop.f32.mrb[68].mxu0  ;;  %v12726_v61 = vpop.f32.mrb[68].mxu1 }
 0x16a   :  { %14847 = vst [vmem:[#allocation98_spill] sm:$0xff] %v12724_v0  ;;  %14848 = vst [vmem:[#allocation99_spill] sm:$0xff] %v12726_v61  ;;  %v12728_v62 = vpop.f32.mrb[69].mxu0  ;;  %v12730_v5 = vpop.f32.mrb[69].mxu1 }
 0x16b   :  { %14849 = vst [vmem:[#allocation100_spill] sm:$0xff] %v12728_v62  ;;  %14850 = vst [vmem:[#allocation101_spill] sm:$0xff] %v12730_v5  ;;  %v12733_v10 = vpop.f32.mrb[70].mxu0  ;;  %v12735_v63 = vpop.f32.mrb[70].mxu1 }
 0x16c   :  { %v11953_v49 = vpop.eup %11952  ;;  %14851 = vst [vmem:[#allocation102_spill] sm:$0xff] %v12733_v10  ;;  %14852 = vst [vmem:[#allocation103_spill] sm:$0xff] %v12735_v63  ;;  %v12737_v50 = vpop.f32.mrb[71].mxu0 }
 0x16d   :  { %v141_v53 = vmul.f32 %v11953_v49, %v138_v60  ;;  %14853 = vst [vmem:[#allocation104_spill] sm:$0xff] %v12737_v50  ;;  %v12739_v54 = vpop.f32.mrb[71].mxu1  ;;  %v12744_v60 = vld [vmem:[%s14703_s5] sm:$0xff]  }
 0x16e   :  { %14854 = vst [vmem:[#allocation105_spill] sm:$0xff] %v12739_v54  ;;  %14855 = vst [vmem:[#allocation106_spill] sm:$0xff] %v12744_v60  ;;  %10533 = vmatprep.subr.bf16.mxu0 %v12744_v60  ;;  %10733 = vmatprep.subr.bf16.mxu1 %v12744_v60 }
 0x16f   :  { %v542_v14 = vrot.slane %v141_v53, %v153_v3  ;;  %v143_v36 = vmul.f32 %v141_v53, %v12423_v56 }
 0x171   :  { %544 = vperm.xlu1 %11811, %v542_v14   ;;  %v144_v49 = vsub.f32 %v142_v6, %v143_v36  ;;  %v145_v6 = vld [vmem:[%s14701_s3] sm:$0x1] }
 0x173   :  { %148 = vperm.xlu0 %11810, %v144_v49  }
 0x1f0   :  { %v12748_v56 = vpop.permute.xlu1 %544 }
 0x1f1   :  { %v556_v53 = vmul.f32 %v12748_v56, %v12496_v39  ;;  %v557_v63 = vmul.f32 %v12484_v33, %v12748_v56  ;;  %v558_v36 = vmul.f32 %v12492_v37, %v12748_v56  ;;  %v1027_v14 = vmul.f32 %v12498_v40, %v12748_v56 }
 0x1f2   :  { %v149_v49 = vpop.permute.xlu0 %148  ;;  %v1028_v10 = vmul.f32 %v12486_v34, %v12748_v56  ;;  %v1029_v39 = vmul.f32 %v12494_v38, %v12748_v56  ;;  %v1528_v33 = vmul.f32 %v12640_v9, %v12748_v56  ;;  %v1529_v37 = vmul.f32 %v12628_v17, %v12748_v56  ;;  %v156_v34 = vld [vmem:[%s14702_s4] sm:$0x1] }
 0x1f3   :  { %v154_v61 = vrot.slane %v149_v49, %v153_v3  ;;  %v1530_v40 = vmul.f32 %v12636_v8, %v12748_v56  ;;  %v2029_v0 = vmul.f32 %v12642_v45, %v12748_v56  ;;  %v2030_v54 = vmul.f32 %v12630_v11, %v12748_v56 }
 0x1f4   :  { %v2031_v38 = vmul.f32 %v12638_v15, %v12748_v56  ;;  %v547_v9 = vmul.f32 %v12748_v56, %v12456_v19  ;;  %v548_v17 = vmul.f32 %v12748_v56, %v12464_v23  ;;  %v549_v8 = vmul.f32 %v12446_v12, %v12748_v56 }
 0x1f5   :  { %v155_v45 = vmul.f32 %v154_v61, %v145_v6  ;;  %v1018_v11 = vmul.f32 %v12458_v20, %v12748_v56  ;;  %v12790_v49 = vmul.f32 %v12466_v24, %v12748_v56  ;;  %v12794_v15 = vmul.f32 %v12448_v16, %v12748_v56 }
 0x1f6   :  { %v12798_v19 = vmul.f32 %v12600_v51, %v12748_v56  ;;  %v12802_v23 = vmul.f32 %v12608_v29, %v12748_v56  ;;  %v12806_v12 = vmul.f32 %v12596_v2, %v12748_v56  ;;  %v12810_v20 = vmul.f32 %v12602_v4, %v12748_v56 }
 0x1f7   :  { %v157_v24 = vadd.f32 %v156_v34, %v155_v45  ;;  %v12814_v16 = vmul.f32 %v12610_v35, %v12748_v56  ;;  %v12818_v51 = vmul.f32 %v12598_v52, %v12748_v56  ;;  %v12822_v29 = vmul.f32 %v12748_v56, %v12504_v43 }
 0x1f8   :  { %v12826_v2 = vmul.f32 %v12748_v56, %v12512_v47  ;;  %v12830_v4 = vmul.f32 %v12500_v41, %v12748_v56  ;;  %v12834_v35 = vmul.f32 %v12506_v44, %v12748_v56  ;;  %v12838_v52 = vmul.f32 %v12514_v48, %v12748_v56 }
 0x1f9   :  { %v12840_v61 = vrot.slane %v157_v24, %v153_v3  ;;  %v12844_v43 = vmul.f32 %v12502_v42, %v12748_v56  ;;  %v12848_v47 = vmul.f32 %v12648_v58, %v12748_v56  ;;  %v12852_v41 = vmul.f32 %v12656_v18, %v12748_v56 }
 0x1fa   :  { %v12856_v44 = vmul.f32 %v12644_v59, %v12748_v56  ;;  %v12860_v48 = vmul.f32 %v12650_v55, %v12748_v56  ;;  %v12864_v42 = vmul.f32 %v12658_v13, %v12748_v56  ;;  %v12868_v58 = vmul.f32 %v12646_v1, %v12748_v56 }
 0x1fb   :  { %v598_v18 = vadd.f32 %v12840_v61, %v556_v53  ;;  %v599_v3 = vadd.f32 %v12840_v61, %v557_v63  ;;  %v600_v6 = vadd.f32 %v12840_v61, %v558_v36  ;;  %v1063_v59 = vadd.f32 %v1027_v14, %v12840_v61 }
 0x1fc   :  { %v1064_v55 = vadd.f32 %v1028_v10, %v12840_v61  ;;  %v1065_v34 = vadd.f32 %v1029_v39, %v12840_v61  ;;  %v1564_v13 = vadd.f32 %v1528_v33, %v12840_v61  ;;  %v1565_v45 = vadd.f32 %v1529_v37, %v12840_v61 }
 0x1fd   :  { %v634_v1 = vmax.f32 %v598_v18, 0.0  ;;  %v635_v24 = vmax.f32 %v599_v3, 0.0  ;;  %v636_v50 = vmax.f32 %v600_v6, 0.0  ;;  %v1099_v53 = vmax.f32 %v1063_v59, 0.0 }
 0x1fe   :  { %v1100_v5 = vmax.f32 %v1064_v55, 0.0  ;;  %v1101_v63 = vmax.f32 %v1065_v34, 0.0  ;;  %v1566_v36 = vadd.f32 %v1530_v40, %v12840_v61  ;;  %v1600_v62 = vmax.f32 %v1564_v13, 0.0 }
 0x1ff   :  { %v1135_v14 = vmax.f32 %v634_v1, %v1099_v53  ;;  %v1601_v26 = vmax.f32 %v1565_v45, 0.0  ;;  %v2065_v60 = vadd.f32 %v2029_v0, %v12840_v61  ;;  %v2066_v10 = vadd.f32 %v2030_v54, %v12840_v61 }
 0x200   :  { %v1136_v39 = vmax.f32 %v635_v24, %v1100_v5  ;;  %v1137_v46 = vmax.f32 %v636_v50, %v1101_v63  ;;  %v1602_v33 = vmax.f32 %v1566_v36, 0.0  ;;  %v2067_v37 = vadd.f32 %v2031_v38, %v12840_v61 }
 0x201   :  { %v1636_v18 = vmax.f32 %v1135_v14, %v1600_v62  ;;  %v2101_v3 = vmax.f32 %v2065_v60, 0.0  ;;  %v2102_v6 = vmax.f32 %v2066_v10, 0.0  ;;  %v589_v59 = vadd.f32 %v12840_v61, %v547_v9 }
 0x202   :  { %v1637_v55 = vmax.f32 %v1136_v39, %v1601_v26  ;;  %v1638_v34 = vmax.f32 %v1137_v46, %v1602_v33  ;;  %v2103_v40 = vmax.f32 %v2067_v37, 0.0  ;;  %v590_v13 = vadd.f32 %v12840_v61, %v548_v17 }
 0x203   :  { %v2137_v45 = vmax.f32 %v1636_v18, %v2101_v3  ;;  %v591_v0 = vadd.f32 %v12840_v61, %v549_v8  ;;  %v625_v1 = vmax.f32 %v589_v59, 0.0  ;;  %v1054_v5 = vadd.f32 %v1018_v11, %v12840_v61 }
 0x204   :  { %v2138_v50 = vmax.f32 %v1637_v55, %v2102_v6  ;;  %v2139_v54 = vmax.f32 %v1638_v34, %v2103_v40  ;;  %v626_v24 = vmax.f32 %v590_v13, 0.0  ;;  %v1055_v62 = vadd.f32 %v12790_v49, %v12840_v61 }
 0x205   :  { %2185 = vst.msk [vmem:[#allocation2 + $0x60] sm:$0xff] %vm2164_vm4, %v2137_v45  ;;  %v627_v60 = vmax.f32 %v591_v0, 0.0  ;;  %v1056_v46 = vadd.f32 %v12794_v15, %v12840_v61  ;;  %v1090_v26 = vmax.f32 %v1054_v5, 0.0  ;;  %v1555_v38 = vadd.f32 %v12798_v19, %v12840_v61 }
 0x206   :  { %2188 = vst.msk [vmem:[#allocation2 + $0x6c] sm:$0xf0] %vm2169_vm5, %v2138_v50  ;;  %v1091_v9 = vmax.f32 %v1055_v62, 0.0  ;;  %v1556_v17 = vadd.f32 %v12802_v23, %v12840_v61  ;;  %v1557_v8 = vadd.f32 %v12806_v12, %v12840_v61  ;;  %v2056_v11 = vadd.f32 %v12810_v20, %v12840_v61 }
 0x207   :  { %2189 = vst.msk [vmem:[#allocation2 + $0x74] sm:$0xff] %vm2164_vm4, %v2139_v54  ;;  %v1092_v49 = vmax.f32 %v1056_v46, 0.0  ;;  %v1126_v15 = vmax.f32 %v625_v1, %v1090_v26  ;;  %v1591_v53 = vmax.f32 %v1555_v38, 0.0  ;;  %v2057_v19 = vadd.f32 %v12814_v16, %v12840_v61 }
 0x208   :  { %2186 = vst.msk [vmem:[#allocation2 + $0x68] sm:$0xf] %vm2166_vm6, %v2138_v50  ;;  %v1127_v63 = vmax.f32 %v626_v24, %v1091_v9  ;;  %v1592_v36 = vmax.f32 %v1556_v17, 0.0  ;;  %v1593_v14 = vmax.f32 %v1557_v8, 0.0  ;;  %v2058_v23 = vadd.f32 %v12818_v51, %v12840_v61 }
 0x209   :  { %v1128_v10 = vmax.f32 %v627_v60, %v1092_v49  ;;  %v1627_v39 = vmax.f32 %v1126_v15, %v1591_v53  ;;  %v2092_v12 = vmax.f32 %v2056_v11, 0.0  ;;  %v2093_v33 = vmax.f32 %v2057_v19, 0.0 }
 0x20a   :  { %v1628_v37 = vmax.f32 %v1127_v63, %v1592_v36  ;;  %v2094_v20 = vmax.f32 %v2058_v23, 0.0  ;;  %v601_v18 = vadd.f32 %v12840_v61, %v12822_v29  ;;  %v602_v3 = vadd.f32 %v12840_v61, %v12826_v2 }
 0x20b   :  { %v1629_v6 = vmax.f32 %v1128_v10, %v1593_v14  ;;  %v2128_v16 = vmax.f32 %v1627_v39, %v2092_v12  ;;  %v603_v59 = vadd.f32 %v12840_v61, %v12830_v4  ;;  %v1066_v51 = vadd.f32 %v12834_v35, %v12840_v61 }
 0x20c   :  { %v2248_v55 = vld [vmem:[#allocation2 + $0x60] sm:$0xff]  ;;  %v2129_v34 = vmax.f32 %v1628_v37, %v2093_v33  ;;  %v637_v40 = vmax.f32 %v601_v18, 0.0  ;;  %v638_v13 = vmax.f32 %v602_v3, 0.0  ;;  %v1067_v45 = vadd.f32 %v12838_v52, %v12840_v61 }
 0x20d   :  { %v2130_v29 = vmax.f32 %v1629_v6, %v2094_v20  ;;  %2165 = vst.msk [vmem:[#allocation2] sm:$0xff] %vm2164_vm4, %v2128_v16  ;;  %v639_v2 = vmax.f32 %v603_v59, 0.0  ;;  %v1068_v1 = vadd.f32 %v12844_v43, %v12840_v61  ;;  %v1102_v5 = vmax.f32 %v1066_v51, 0.0 }
 0x20e   :  { %v2249_v0 = vld [vmem:[#allocation2 + $0x70] sm:$0xff]  ;;  %2167 = vst.msk [vmem:[#allocation2 + $0x8] sm:$0xf] %vm2166_vm6, %v2129_v34  ;;  %v1103_v35 = vmax.f32 %v1067_v45, 0.0  ;;  %v1567_v50 = vadd.f32 %v12848_v47, %v12840_v61  ;;  %v1568_v52 = vadd.f32 %v12852_v41, %v12840_v61  ;;  %v1569_v43 = vadd.f32 %v12856_v44, %v12840_v61 }
 0x20f   :  { %v12919_v4 = vpack.c.bf16 %v2249_v0, %v2248_v55  ;;  %2170 = vst.msk [vmem:[#allocation2 + $0xc] sm:$0xf0] %vm2169_vm5, %v2129_v34  ;;  %v1104_v54 = vmax.f32 %v1068_v1, 0.0  ;;  %v1138_v24 = vmax.f32 %v637_v40, %v1102_v5  ;;  %v2068_v62 = vadd.f32 %v12860_v48, %v12840_v61  ;;  %v14856_v55 = vld [vmem:[#allocation58_spill] sm:$0xff] }
 0x210   :  { %2171 = vst.msk [vmem:[#allocation2 + $0x14] sm:$0xff] %vm2164_vm4, %v2130_v29  ;;  %v1139_v60 = vmax.f32 %v638_v13, %v1103_v35  ;;  %v1603_v46 = vmax.f32 %v1567_v50, 0.0  ;;  %v1604_v26 = vmax.f32 %v1568_v52, 0.0  ;;  %v2069_v47 = vadd.f32 %v12864_v42, %v12840_v61  ;;  %v14857_v29 = vld [vmem:[#allocation61_spill] sm:$0xff] }
 0x211   :  { %10529 = vmatprep.mubr.msk.bf16.mxu0 %vm2164_vm4, %v12919_v4  ;;  %v1140_v41 = vmax.f32 %v639_v2, %v1104_v54  ;;  %v1605_v38 = vmax.f32 %v1569_v43, 0.0  ;;  %v2070_v9 = vadd.f32 %v12868_v58, %v12840_v61  ;;  %v2104_v17 = vmax.f32 %v2068_v62, 0.0 }
 0x212   :  { %v1639_v8 = vmax.f32 %v1138_v24, %v1603_v46  ;;  %v1640_v44 = vmax.f32 %v1139_v60, %v1604_v26  ;;  %v2105_v11 = vmax.f32 %v2069_v47, 0.0  ;;  %v550_v48 = vmul.f32 %v12460_v21, %v12748_v56 }
 0x213   :  { %v1641_v49 = vmax.f32 %v1140_v41, %v1605_v38  ;;  %v2106_v15 = vmax.f32 %v2070_v9, 0.0  ;;  %v551_v53 = vmul.f32 %v12748_v56, %v12472_v27  ;;  %v552_v42 = vmul.f32 %v12748_v56, %v12480_v31 }
 0x214   :  { %v2140_v19 = vmax.f32 %v1639_v8, %v2104_v17  ;;  %v2141_v63 = vmax.f32 %v1640_v44, %v2105_v11  ;;  %v592_v36 = vadd.f32 %v12840_v61, %v550_v48  ;;  %v1021_v58 = vmul.f32 %v12462_v22, %v12748_v56  ;;  %v2238_v62 = vld [vmem:[#allocation2] sm:$0xff]  ;;  %v12989_v8 = vld [vmem:[%s14703_s5 + $0x8] sm:$0xff]  }
 0x215   :  { %v2393_v14 = vld [vmem:[#allocation2 + $0x2] sm:$0xff]  ;;  %v2142_v23 = vmax.f32 %v1641_v49, %v2106_v15  ;;  %v593_v10 = vadd.f32 %v12840_v61, %v551_v53  ;;  %v594_v21 = vadd.f32 %v12840_v61, %v552_v42  ;;  %v1022_v39 = vmul.f32 %v12474_v28, %v12748_v56 }
 0x216   :  { %2191 = vst.msk [vmem:[#allocation2 + $0x80] sm:$0xff] %vm2164_vm4, %v2140_v19  ;;  %v628_v31 = vmax.f32 %v592_v36, 0.0  ;;  %v1023_v22 = vmul.f32 %v12482_v32, %v12748_v56  ;;  %v1057_v12 = vadd.f32 %v1021_v58, %v12840_v61  ;;  %v1522_v33 = vmul.f32 %v12604_v57, %v12748_v56  ;;  %v14858_v49 = vld [vmem:[#allocation16_spill] sm:$0xff]  ;;  %v14860_v19 = vld [vmem:[#allocation26_spill] sm:$0xff]  ;;  %v14862_v58 = vld [vmem:[#allocation17_spill] sm:$0xff] }
 0x217   :  { %v2394_v27 = vld [vmem:[#allocation2 + $0x12] sm:$0xff]  ;;  %2194 = vst.msk [vmem:[#allocation2 + $0x8c] sm:$0xf0] %vm2169_vm5, %v2141_v63  ;;  %v629_v28 = vmax.f32 %v593_v10, 0.0  ;;  %v630_v20 = vmax.f32 %v594_v21, 0.0  ;;  %v1058_v18 = vadd.f32 %v1022_v39, %v12840_v61  ;;  %v1523_v16 = vmul.f32 %v12616_v7, %v12748_v56  ;;  %v14859_v53 = vld [vmem:[#allocation20_spill] sm:$0xff] }
 0x218   :  { %2192 = vst.msk [vmem:[#allocation2 + $0x88] sm:$0xf] %vm2166_vm6, %v2141_v63  ;;  %v12959_v37 = vpack.c.bf16 %v2394_v27, %v2393_v14  ;;  %v1059_v3 = vadd.f32 %v1023_v22, %v12840_v61  ;;  %v1093_v6 = vmax.f32 %v1057_v12, 0.0  ;;  %v1524_v32 = vmul.f32 %v12624_v25, %v12748_v56  ;;  %v12982_v60 = vld [vmem:[#allocation2 + $0x10] sm:$0xff]  ;;  %v14864_v21 = vld [vmem:[#allocation27_spill] sm:$0xff] }
 0x219   :  { %2195 = vst.msk [vmem:[#allocation2 + $0x94] sm:$0xff] %vm2164_vm4, %v2142_v23  ;;  %v1094_v57 = vmax.f32 %v1058_v18, 0.0  ;;  %v1558_v59 = vadd.f32 %v1522_v33, %v12840_v61  ;;  %v2023_v51 = vmul.f32 %v12606_v30, %v12748_v56  ;;  %v2024_v34 = vmul.f32 %v14856_v55, %v12748_v56  ;;  %v14861_v36 = vld [vmem:[#allocation106_spill] sm:$0xff]  ;;  %v14863_v23 = vld [vmem:[#allocation21_spill] sm:$0xff]  ;;  %v13016_v27 = vld [vmem:[%s14703_s5 + $0x20] sm:$0xff]  }
 0x21a   :  { %10729 = vmatprep.mubr.msk.bf16.mxu1 %vm2164_vm4, %v12959_v37  ;;  %v1095_v40 = vmax.f32 %v1059_v3, 0.0  ;;  %v1129_v13 = vmax.f32 %v628_v31, %v1093_v6  ;;  %v1559_v45 = vadd.f32 %v1523_v16, %v12840_v61  ;;  %v1560_v7 = vadd.f32 %v1524_v32, %v12840_v61  ;;  %v14865_v33 = vld [vmem:[#allocation66_spill] sm:$0xff] }
 0x21b   :  { %v1130_v0 = vmax.f32 %v629_v28, %v1094_v57  ;;  %v1594_v25 = vmax.f32 %v1558_v59, 0.0  ;;  %v2025_v2 = vmul.f32 %v14857_v29, %v12748_v56  ;;  %v2059_v1 = vadd.f32 %v2023_v51, %v12840_v61  ;;  %v14866_v6 = vld [vmem:[#allocation70_spill] sm:$0xff]  ;;  %v14867_v51 = vld [vmem:[#allocation76_spill] sm:$0xff] }
 0x21c   :  { %v1131_v5 = vmax.f32 %v630_v20, %v1095_v40  ;;  %v1595_v35 = vmax.f32 %v1559_v45, 0.0  ;;  %v1596_v50 = vmax.f32 %v1560_v7, 0.0  ;;  %v2060_v30 = vadd.f32 %v2024_v34, %v12840_v61 }
 0x21d   :  { %v2250_v52 = vld [vmem:[#allocation2 + $0x80] sm:$0xff]  ;;  %v1630_v54 = vmax.f32 %v1129_v13, %v1594_v25  ;;  %v2061_v24 = vadd.f32 %v2025_v2, %v12840_v61  ;;  %v2095_v43 = vmax.f32 %v2059_v1, 0.0  ;;  %v2242_v11 = vpack.c.bf16 %v12982_v60, %v2238_v62 }
 0x21e   :  { %v1631_v26 = vmax.f32 %v1130_v0, %v1595_v35  ;;  %v1632_v47 = vmax.f32 %v1131_v5, %v1596_v50  ;;  %v2096_v41 = vmax.f32 %v2060_v30, 0.0  ;;  %v565_v15 = vmul.f32 %v14858_v49, %v12748_v56  ;;  %v14868_v25 = vld [vmem:[#allocation67_spill] sm:$0xff] }
 0x21f   :  { %v2097_v9 = vmax.f32 %v2061_v24, 0.0  ;;  %v2131_v17 = vmax.f32 %v1630_v54, %v2095_v43  ;;  %v566_v42 = vmul.f32 %v14859_v53, %v12748_v56  ;;  %v567_v63 = vmul.f32 %v12748_v56, %v14860_v19  ;;  %v14869_v2 = vld [vmem:[#allocation71_spill] sm:$0xff]  ;;  %v14872_v53 = vld [vmem:[#allocation42_spill] sm:$0xff] }
 0x220   :  { %v2251_v46 = vld [vmem:[#allocation2 + $0x90] sm:$0xff]  ;;  %v2132_v44 = vmax.f32 %v1631_v26, %v2096_v41  ;;  %v1036_v14 = vmul.f32 %v14862_v58, %v12748_v56  ;;  %v1037_v10 = vmul.f32 %v14863_v23, %v12748_v56  ;;  %v1038_v39 = vmul.f32 %v14864_v21, %v12748_v56  ;;  %v2475_v19 = vld [vmem:[#allocation2 + $0x62] sm:$0xff] }
 0x221   :  { %v12984_v38 = vpack.c.bf16 %v2251_v46, %v2250_v52  ;;  %v2133_v48 = vmax.f32 %v1632_v47, %v2097_v9  ;;  %2173 = vst.msk [vmem:[#allocation2 + $0x20] sm:$0xff] %vm2164_vm4, %v2131_v17  ;;  %v607_v31 = vadd.f32 %v12840_v61, %v565_v15  ;;  %v608_v22 = vadd.f32 %v12840_v61, %v566_v42  ;;  %v14870_v41 = vld [vmem:[#allocation77_spill] sm:$0xff] }
 0x222   :  { %2174 = vst.msk [vmem:[#allocation2 + $0x28] sm:$0xf] %vm2166_vm6, %v2132_v44  ;;  %v609_v12 = vadd.f32 %v12840_v61, %v567_v63  ;;  %v1537_v28 = vmul.f32 %v14865_v33, %v12748_v56  ;;  %v1072_v20 = vadd.f32 %v1036_v14, %v12840_v61  ;;  %v1073_v18 = vadd.f32 %v1037_v10, %v12840_v61  ;;  %v13052_v63 = vld [vmem:[#allocation2 + $0x72] sm:$0xff]  ;;  %v13057_v58 = vld [vmem:[%s14703_s5 + $0x28] sm:$0xff]  }
 0x223   :  { %10530 = vmatmul.mubr.msk.bf16.vlgmr.msra.gmra.mrb[72].mxu0 %vm2164_vm4, %v12984_v38  ;;  %2176 = vst.msk [vmem:[#allocation2 + $0x2c] sm:$0xf0] %vm2169_vm5, %v2132_v44  ;;  %v1074_v3 = vadd.f32 %v1038_v39, %v12840_v61  ;;  %v1538_v16 = vmul.f32 %v14866_v6, %v12748_v56  ;;  %v643_v32 = vmax.f32 %v607_v31, 0.0  ;;  %v644_v57 = vmax.f32 %v608_v22, 0.0  ;;  %v14871_v44 = vld [vmem:[#allocation36_spill] sm:$0xff]  ;;  %v14873_v39 = vld [vmem:[#allocation46_spill] sm:$0xff] }
 0x224   :  { %10534 = vmatpush3.bf16.msra.mxu0 %v14861_v36  ;;  %10537 = vmatprep.mubr.msk.bf16.mxu0 %vm2164_vm4, %v2242_v11  ;;  %2177 = vst.msk [vmem:[#allocation2 + $0x34] sm:$0xff] %vm2164_vm4, %v2133_v48  ;;  %v645_v59 = vmax.f32 %v609_v12, 0.0  ;;  %v1539_v55 = vmul.f32 %v14867_v51, %v12748_v56  ;;  %v1108_v34 = vmax.f32 %v1072_v20, 0.0  ;;  %v1109_v40 = vmax.f32 %v1073_v18, 0.0  ;;  %v14874_v18 = vld [vmem:[#allocation37_spill] sm:$0xff] }
 0x225   :  { %10535 = vmatprep.subr.bf16.mxu0 %v12989_v8  ;;  %v1110_v13 = vmax.f32 %v1074_v3, 0.0  ;;  %v1573_v45 = vadd.f32 %v1537_v28, %v12840_v61  ;;  %v1574_v7 = vadd.f32 %v1538_v16, %v12840_v61  ;;  %v2038_v29 = vmul.f32 %v14868_v25, %v12748_v56 }
 0x226   :  { %v1575_v0 = vadd.f32 %v1539_v55, %v12840_v61  ;;  %v2039_v1 = vmul.f32 %v14869_v2, %v12748_v56  ;;  %v1144_v35 = vmax.f32 %v643_v32, %v1108_v34  ;;  %v1145_v50 = vmax.f32 %v644_v57, %v1109_v40  ;;  %v14876_v55 = vld [vmem:[#allocation47_spill] sm:$0xff] }
 0x227   :  { %v1146_v30 = vmax.f32 %v645_v59, %v1110_v13  ;;  %v1609_v52 = vmax.f32 %v1573_v45, 0.0  ;;  %v1610_v24 = vmax.f32 %v1574_v7, 0.0  ;;  %v2074_v62 = vadd.f32 %v2038_v29, %v12840_v61  ;;  %v14877_v45 = vld [vmem:[#allocation86_spill] sm:$0xff] }
 0x228   :  { %10536 = vmatpush3.bf16.msra.mxu0 %v12989_v8  ;;  %v13039_v5 = vld [vmem:[#allocation2 + $0x20] sm:$0xff]  ;;  %v1611_v43 = vmax.f32 %v1575_v0, 0.0  ;;  %v2040_v9 = vmul.f32 %v14870_v41, %v12748_v56  ;;  %v2075_v17 = vadd.f32 %v2039_v1, %v12840_v61  ;;  %v574_v11 = vmul.f32 %v14871_v44, %v12748_v56 }
 0x229   :  { %10541 = vmatprep.subr.bf16.mxu0 %v13016_v27  ;;  %v2395_v54 = vld [vmem:[#allocation2 + $0x22] sm:$0xff]  ;;  %v1645_v47 = vmax.f32 %v1144_v35, %v1609_v52  ;;  %v1646_v15 = vmax.f32 %v1145_v50, %v1610_v24  ;;  %v575_v42 = vmul.f32 %v12748_v56, %v14872_v53  ;;  %v2110_v10 = vmax.f32 %v2074_v62, 0.0  ;;  %v14881_v24 = vld [vmem:[#allocation93_spill] sm:$0xff] }
 0x22a   :  { %v1647_v14 = vmax.f32 %v1146_v30, %v1611_v43  ;;  %v2076_v23 = vadd.f32 %v2040_v9, %v12840_v61  ;;  %v2111_v21 = vmax.f32 %v2075_v17, 0.0  ;;  %v576_v31 = vmul.f32 %v12748_v56, %v14873_v39  ;;  %v14878_v0 = vld [vmem:[#allocation92_spill] sm:$0xff]  ;;  %v14880_v50 = vld [vmem:[#allocation87_spill] sm:$0xff]  ;;  %v14883_v39 = vld [vmem:[#allocation30_spill] sm:$0xff] }
 0x22b   :  { %v2396_v46 = vld [vmem:[#allocation2 + $0x32] sm:$0xff]  ;;  %v616_v22 = vadd.f32 %v12840_v61, %v574_v11  ;;  %v617_v12 = vadd.f32 %v12840_v61, %v575_v42  ;;  %v2146_v28 = vmax.f32 %v1645_v47, %v2110_v10  ;;  %v1045_v3 = vmul.f32 %v14874_v18, %v12748_v56  ;;  %v14879_v1 = vld [vmem:[#allocation96_spill] sm:$0xff] }
 0x22c   :  { %v2241_v26 = vld [vmem:[#allocation2 + $0x30] sm:$0xff]  ;;  %v13047_v48 = vpack.c.bf16 %v2396_v46, %v2395_v54  ;;  %v2112_v33 = vmax.f32 %v2076_v23, 0.0  ;;  %v2147_v20 = vmax.f32 %v1646_v15, %v2111_v21  ;;  %v13075_v6 = vpack.c.bf16 %v13052_v63, %v2475_v19  ;;  %v13119_v19 = vld [vmem:[#allocation2 + $0x82] sm:$0xff] }
 0x22d   :  { %v2243_v49 = vpack.c.bf16 %v2241_v26, %v13039_v5  ;;  %v618_v16 = vadd.f32 %v12840_v61, %v576_v31  ;;  %v652_v32 = vmax.f32 %v616_v22, 0.0  ;;  %2203 = vst.msk [vmem:[#allocation2 + $0xc0] sm:$0xff] %vm2164_vm4, %v2146_v28  ;;  %v653_v51 = vmax.f32 %v617_v12, 0.0  ;;  %v14882_v47 = vld [vmem:[#allocation97_spill] sm:$0xff]  ;;  %v13126_v22 = vld [vmem:[%s14703_s5 + $0x38] sm:$0xff]  }
 0x22e   :  { %10730 = vmatmul.mubr.msk.bf16.vlgmr.msra.gmra.mrb[72].mxu1 %vm2164_vm4, %v13047_v48  ;;  %v2148_v59 = vmax.f32 %v1647_v14, %v2112_v33  ;;  %2206 = vst.msk [vmem:[#allocation2 + $0xcc] sm:$0xf0] %vm2169_vm5, %v2147_v20  ;;  %v1047_v34 = vmul.f32 %v14876_v55, %v12748_v56  ;;  %v1546_v7 = vmul.f32 %v14877_v45, %v12748_v56  ;;  %v2478_v14 = vld [vmem:[#allocation2 + $0x92] sm:$0xff]  ;;  %v14886_v55 = vld [vmem:[#allocation31_spill] sm:$0xff] }
 0x22f   :  { %10538 = vmatmul.mubr.msk.bf16.vlgmr.msra.gmra.mrb[72].mxu0 %vm2164_vm4, %v2243_v49  ;;  %10734 = vmatpush3.bf16.msra.mxu1 %v14861_v36  ;;  %v14875_v36 = vld [vmem:[#allocation43_spill] sm:$0xff]  ;;  %2204 = vst.msk [vmem:[#allocation2 + $0xc8] sm:$0xf] %vm2166_vm6, %v2147_v20  ;;  %v654_v40 = vmax.f32 %v618_v16, 0.0  ;;  %v1547_v25 = vmul.f32 %v14878_v0, %v12748_v56  ;;  %v1548_v35 = vmul.f32 %v14879_v1, %v12748_v56  ;;  %v14884_v20 = vld [vmem:[#allocation24_spill] sm:$0xff]  ;;  %v14888_v45 = vld [vmem:[#allocation29_spill] sm:$0xff] }
 0x230   :  { %10737 = vmatprep.mubr.msk.bf16.mxu1 %vm2164_vm4, %v12919_v4  ;;  %10735 = vmatprep.subr.bf16.mxu1 %v12989_v8  ;;  %v1046_v57 = vmul.f32 %v14875_v36, %v12748_v56  ;;  %v13086_v4 = vld [vmem:[%s14703_s5 + $0x30] sm:$0xff]   ;;  %2207 = vst.msk [vmem:[#allocation2 + $0xd4] sm:$0xff] %vm2164_vm4, %v2148_v59  ;;  %v1083_v29 = vadd.f32 %v1047_v34, %v12840_v61  ;;  %v14885_v16 = vld [vmem:[#allocation28_spill] sm:$0xff] }
 0x231   :  { %10542 = vmatpush3.bf16.msra.mxu0 %v13016_v27  ;;  %10545 = vmatprep.mubr.msk.bf16.mxu0 %vm2164_vm4, %v12959_v37  ;;  %v1081_v37 = vadd.f32 %v1045_v3, %v12840_v61  ;;  %v2047_v30 = vmul.f32 %v14880_v50, %v12748_v56  ;;  %v1582_v54 = vadd.f32 %v1546_v7, %v12840_v61  ;;  %v13154_v34 = vld [vmem:[%s14703_s5 + $0x40] sm:$0xff]   ;;  %v14890_v1 = vld [vmem:[#allocation74_spill] sm:$0xff] }
 0x232   :  { %10543 = vmatprep.subr.bf16.mxu0 %v13057_v58  ;;  %v1082_v13 = vadd.f32 %v1046_v57, %v12840_v61  ;;  %v2048_v43 = vmul.f32 %v14881_v24, %v12748_v56  ;;  %v1119_v62 = vmax.f32 %v1083_v29, 0.0  ;;  %v1584_v26 = vadd.f32 %v1548_v35, %v12840_v61  ;;  %v14889_v7 = vld [vmem:[#allocation80_spill] sm:$0xff] }
 0x233   :  { %10736 = vmatpush3.bf16.msra.mxu1 %v12989_v8  ;;  %v1117_v2 = vmax.f32 %v1081_v37, 0.0  ;;  %v1583_v8 = vadd.f32 %v1547_v25, %v12840_v61  ;;  %v2049_v41 = vmul.f32 %v14882_v47, %v12748_v56  ;;  %v1618_v17 = vmax.f32 %v1582_v54, 0.0  ;;  %v2557_v47 = vld [vmem:[#allocation2 + $0x4] sm:$0xff] }
 0x234   :  { %10741 = vmatprep.subr.bf16.mxu1 %v13016_v27  ;;  %v1118_v52 = vmax.f32 %v1082_v13, 0.0  ;;  %v2083_v11 = vadd.f32 %v2047_v30, %v12840_v61  ;;  %v1155_v49 = vmax.f32 %v654_v40, %v1119_v62  ;;  %v1620_v15 = vmax.f32 %v1584_v26, 0.0  ;;  %v14887_v40 = vld [vmem:[#allocation25_spill] sm:$0xff] }
 0x235   :  { %10544 = vmatpush3.bf16.msra.mxu0 %v13057_v58  ;;  %v1153_v46 = vmax.f32 %v652_v32, %v1117_v2  ;;  %v1619_v44 = vmax.f32 %v1583_v8, 0.0  ;;  %v2084_v53 = vadd.f32 %v2048_v43, %v12840_v61  ;;  %v2085_v42 = vadd.f32 %v2049_v41, %v12840_v61  ;;  %v14892_v62 = vld [vmem:[#allocation81_spill] sm:$0xff]  ;;  %v2558_v41 = vld [vmem:[#allocation2 + $0x14] sm:$0xff] }
 0x236   :  { %10549 = vmatprep.subr.bf16.mxu0 %v13086_v4  ;;  %v1154_v9 = vmax.f32 %v653_v51, %v1118_v52  ;;  %v2119_v21 = vmax.f32 %v2083_v11, 0.0  ;;  %v568_v31 = vmul.f32 %v12748_v56, %v14883_v39  ;;  %v1656_v12 = vmax.f32 %v1155_v49, %v1620_v15  ;;  %v14891_v52 = vld [vmem:[#allocation78_spill] sm:$0xff] }
 0x237   :  { %v1654_v23 = vmax.f32 %v1153_v46, %v1618_v17  ;;  %v2120_v33 = vmax.f32 %v2084_v53, 0.0  ;;  %v2121_v28 = vmax.f32 %v2085_v42, 0.0  ;;  %v569_v18 = vmul.f32 %v14884_v20, %v12748_v56  ;;  %v14894_v53 = vld [vmem:[#allocation79_spill] sm:$0xff]  ;;  %v13191_v20 = vld [vmem:[%s14703_s5 + $0x48] sm:$0xff]  }
 0x238   :  { %v1655_v10 = vmax.f32 %v1154_v9, %v1619_v44  ;;  %v570_v32 = vmul.f32 %v14885_v16, %v12748_v56  ;;  %v610_v36 = vadd.f32 %v12840_v61, %v568_v31  ;;  %v2480_v57 = vpack.c.bf16 %v2478_v14, %v13119_v19 }
 0x239   :  { %v2155_v3 = vmax.f32 %v1654_v23, %v2119_v21  ;;  %v2157_v51 = vmax.f32 %v1656_v12, %v2121_v28  ;;  %v1040_v13 = vmul.f32 %v14887_v40, %v12748_v56  ;;  %v1540_v0 = vmul.f32 %v14889_v7, %v12748_v56 }
 0x23a   :  { %10738 = vmatmul.mubr.msk.bf16.vlgmr.msra.gmra.mrb[72].mxu1 %vm2164_vm4, %v12984_v38  ;;  %v2156_v59 = vmax.f32 %v1655_v10, %v2120_v33  ;;  %v611_v38 = vadd.f32 %v12840_v61, %v569_v18  ;;  %v646_v37 = vmax.f32 %v610_v36, 0.0  ;;  %v1541_v35 = vmul.f32 %v14890_v1, %v12748_v56 }
 0x23b   :  { %10546 = vmatmul.mubr.msk.bf16.vlgmr.msra.gmra.mrb[72].mxu0 %vm2164_vm4, %v13047_v48  ;;  %10742 = vmatpush3.bf16.msra.mxu1 %v13016_v27  ;;  %2221 = vst.msk [vmem:[#allocation2 + $0x120] sm:$0xff] %vm2164_vm4, %v2155_v3  ;;  %v612_v48 = vadd.f32 %v12840_v61, %v570_v32  ;;  %v1039_v27 = vmul.f32 %v14886_v55, %v12748_v56  ;;  %2225 = vst.msk [vmem:[#allocation2 + $0x134] sm:$0xff] %vm2164_vm4, %v2157_v51  ;;  %v14895_v32 = vld [vmem:[#allocation40_spill] sm:$0xff]  ;;  %v14897_v55 = vld [vmem:[#allocation50_spill] sm:$0xff] }
 0x23c   :  { %10745 = vmatprep.mubr.msk.bf16.mxu1 %vm2164_vm4, %v13075_v6  ;;  %10743 = vmatprep.subr.bf16.mxu1 %v13057_v58  ;;  %2224 = vst.msk [vmem:[#allocation2 + $0x12c] sm:$0xf0] %vm2169_vm5, %v2156_v59  ;;  %v647_v25 = vmax.f32 %v611_v38, 0.0  ;;  %v1076_v50 = vadd.f32 %v1040_v13, %v12840_v61  ;;  %v1542_v54 = vmul.f32 %v14891_v52, %v12748_v56  ;;  %v14896_v38 = vld [vmem:[#allocation44_spill] sm:$0xff]  ;;  %v14898_v13 = vld [vmem:[#allocation41_spill] sm:$0xff]  ;;  %v14901_v52 = vld [vmem:[#allocation90_spill] sm:$0xff] }
 0x23d   :  { %10550 = vmatpush3.bf16.msra.mxu0 %v13086_v4  ;;  %10553 = vmatprep.mubr.msk.bf16.mxu0 %vm2164_vm4, %v13075_v6  ;;  %2222 = vst.msk [vmem:[#allocation2 + $0x128] sm:$0xf] %vm2166_vm6, %v2156_v59  ;;  %v1041_v6 = vmul.f32 %v14888_v45, %v12748_v56  ;;  %v648_v29 = vmax.f32 %v612_v48, 0.0  ;;  %v1075_v2 = vadd.f32 %v1039_v27, %v12840_v61 }
 0x23e   :  { %10551 = vmatprep.subr.bf16.mxu0 %v13126_v22  ;;  %v1576_v8 = vadd.f32 %v1540_v0, %v12840_v61  ;;  %v1577_v43 = vadd.f32 %v1541_v35, %v12840_v61  ;;  %v2041_v46 = vmul.f32 %v14892_v62, %v12748_v56  ;;  %v1112_v9 = vmax.f32 %v1076_v50, 0.0 }
 0x23f   :  { %10744 = vmatpush3.bf16.msra.mxu1 %v13057_v58  ;;  %v1077_v30 = vadd.f32 %v1041_v6, %v12840_v61  ;;  %v1111_v24 = vmax.f32 %v1075_v2, 0.0  ;;  %v14893_v58 = vld [vmem:[#allocation75_spill] sm:$0xff]  ;;  %v1578_v44 = vadd.f32 %v1542_v54, %v12840_v61  ;;  %v2043_v42 = vmul.f32 %v14894_v53, %v12748_v56 }
 0x240   :  { %10749 = vmatprep.subr.bf16.mxu1 %v13086_v4  ;;  %v2042_v26 = vmul.f32 %v14893_v58, %v12748_v56  ;;  %v1612_v11 = vmax.f32 %v1576_v8, 0.0  ;;  %v1613_v15 = vmax.f32 %v1577_v43, 0.0  ;;  %v2077_v14 = vadd.f32 %v2041_v46, %v12840_v61  ;;  %v14900_v2 = vld [vmem:[#allocation51_spill] sm:$0xff]  ;;  %v14902_v8 = vld [vmem:[#allocation94_spill] sm:$0xff]  ;;  %v14903_v58 = vld [vmem:[#allocation100_spill] sm:$0xff] }
 0x241   :  { %10552 = vmatpush3.bf16.msra.mxu0 %v13126_v22  ;;  %v1113_v17 = vmax.f32 %v1077_v30, 0.0  ;;  %v1147_v49 = vmax.f32 %v646_v37, %v1111_v24  ;;  %v1148_v23 = vmax.f32 %v647_v25, %v1112_v9  ;;  %v1614_v21 = vmax.f32 %v1578_v44, 0.0  ;;  %v14899_v25 = vld [vmem:[#allocation45_spill] sm:$0xff]  ;;  %v14904_v9 = vld [vmem:[#allocation91_spill] sm:$0xff]  ;;  %v2560_v44 = vld [vmem:[#allocation2 + $0x34] sm:$0xff] }
 0x242   :  { %10557 = vmatprep.subr.bf16.mxu0 %v13154_v34  ;;  %v2078_v39 = vadd.f32 %v2042_v26, %v12840_v61  ;;  %v2561_v31 = vpack.c.bf16 %v2558_v41, %v2557_v47  ;;  %v2079_v33 = vadd.f32 %v2043_v42, %v12840_v61  ;;  %v2113_v28 = vmax.f32 %v2077_v14, 0.0  ;;  %v4483_v42 = vld [vmem:[#allocation2 + $0x64] sm:$0xff]  ;;  %v4484_v14 = vld [vmem:[#allocation2 + $0x74] sm:$0xff] }
 0x243   :  { %v1149_v10 = vmax.f32 %v648_v29, %v1113_v17  ;;  %v1648_v12 = vmax.f32 %v1147_v49, %v1612_v11  ;;  %v1649_v18 = vmax.f32 %v1148_v23, %v1613_v15  ;;  %v577_v36 = vmul.f32 %v14895_v32, %v12748_v56  ;;  %v2639_v32 = vld [vmem:[#allocation2 + $0xc0] sm:$0xff] }
 0x244   :  { %v2114_v16 = vmax.f32 %v2078_v39, 0.0  ;;  %v2115_v59 = vmax.f32 %v2079_v33, 0.0  ;;  %v578_v48 = vmul.f32 %v14896_v38, %v12748_v56  ;;  %v579_v27 = vmul.f32 %v12748_v56, %v14897_v55  ;;  %v13258_v55 = vld [vmem:[%s14703_s5 + $0x58] sm:$0xff]  }
 0x245   :  { %v1650_v3 = vmax.f32 %v1149_v10, %v1614_v21  ;;  %v2149_v51 = vmax.f32 %v1648_v12, %v2113_v28  ;;  %v619_v40 = vadd.f32 %v12840_v61, %v577_v36  ;;  %v1048_v45 = vmul.f32 %v14898_v13, %v12748_v56  ;;  %v14905_v21 = vld [vmem:[#allocation95_spill] sm:$0xff]  ;;  %v13251_v36 = vld [vmem:[#allocation2 + $0xd0] sm:$0xff] }
 0x246   :  { %10746 = vmatmul.mubr.msk.bf16.vlgmr.msra.gmra.mrb[72].mxu1 %vm2164_vm4, %v2480_v57  ;;  %v2150_v37 = vmax.f32 %v1649_v18, %v2114_v16  ;;  %v620_v6 = vadd.f32 %v12840_v61, %v578_v48  ;;  %v621_v7 = vadd.f32 %v12840_v61, %v579_v27  ;;  %v1049_v29 = vmul.f32 %v14899_v25, %v12748_v56 }
 0x247   :  { %10554 = vmatmul.mubr.msk.bf16.vlgmr.msra.gmra.mrb[72].mxu0 %vm2164_vm4, %v2480_v57  ;;  %10750 = vmatpush3.bf16.msra.mxu1 %v13086_v4  ;;  %v2151_v57 = vmax.f32 %v1650_v3, %v2115_v59  ;;  %2209 = vst.msk [vmem:[#allocation2 + $0xe0] sm:$0xff] %vm2164_vm4, %v2149_v51  ;;  %v13216_v4 = vld [vmem:[%s14703_s5 + $0x50] sm:$0xff]   ;;  %v655_v0 = vmax.f32 %v619_v40, 0.0  ;;  %v1050_v1 = vmul.f32 %v14900_v2, %v12748_v56 }
 0x248   :  { %10753 = vmatprep.mubr.msk.bf16.mxu1 %vm2164_vm4, %v2561_v31  ;;  %10751 = vmatprep.subr.bf16.mxu1 %v13126_v22  ;;  %2212 = vst.msk [vmem:[#allocation2 + $0xec] sm:$0xf0] %vm2169_vm5, %v2150_v37  ;;  %v1084_v35 = vadd.f32 %v1048_v45, %v12840_v61  ;;  %v656_v50 = vmax.f32 %v620_v6, 0.0  ;;  %v657_v30 = vmax.f32 %v621_v7, 0.0  ;;  %v1549_v54 = vmul.f32 %v14901_v52, %v12748_v56  ;;  %v14910_v52 = vld [vmem:[#allocation57_spill] sm:$0xff] }
 0x249   :  { %10558 = vmatpush3.bf16.msra.mxu0 %v13154_v34  ;;  %10561 = vmatprep.mubr.msk.bf16.mxu0 %vm2164_vm4, %v2561_v31  ;;  %2210 = vst.msk [vmem:[#allocation2 + $0xe8] sm:$0xf] %vm2166_vm6, %v2150_v37  ;;  %v1550_v24 = vmul.f32 %v14902_v8, %v12748_v56  ;;  %v1085_v43 = vadd.f32 %v1049_v29, %v12840_v61  ;;  %v14906_v31 = vld [vmem:[#allocation101_spill] sm:$0xff]  ;;  %v14907_v29 = vld [vmem:[#allocation8_spill] sm:$0xff] }
 0x24a   :  { %10559 = vmatprep.subr.bf16.mxu0 %v13191_v20  ;;  %2213 = vst.msk [vmem:[#allocation2 + $0xf4] sm:$0xff] %vm2164_vm4, %v2151_v57  ;;  %v1086_v62 = vadd.f32 %v1050_v1, %v12840_v61  ;;  %v1120_v46 = vmax.f32 %v1084_v35, 0.0  ;;  %v1551_v26 = vmul.f32 %v14903_v58, %v12748_v56  ;;  %v1585_v47 = vadd.f32 %v1549_v54, %v12840_v61  ;;  %v14908_v1 = vld [vmem:[#allocation9_spill] sm:$0xff]  ;;  %v13302_v58 = vld [vmem:[#allocation2 + $0x84] sm:$0xff] }
 0x24b   :  { %10752 = vmatpush3.bf16.msra.mxu1 %v13126_v22  ;;  %v1586_v41 = vadd.f32 %v1550_v24, %v12840_v61  ;;  %v2050_v17 = vmul.f32 %v14904_v9, %v12748_v56  ;;  %v13241_v22 = vld [vmem:[#allocation2 + $0x24] sm:$0xff]  ;;  %v1121_v11 = vmax.f32 %v1085_v43, 0.0  ;;  %v2051_v39 = vmul.f32 %v14905_v21, %v12748_v56  ;;  %v14912_v24 = vld [vmem:[#allocation15_spill] sm:$0xff]  ;;  %v14914_v9 = vld [vmem:[#allocation65_spill] sm:$0xff] }
 0x24c   :  { %10757 = vmatprep.subr.bf16.mxu1 %v13154_v34  ;;  %v1122_v49 = vmax.f32 %v1086_v62, 0.0  ;;  %v1156_v15 = vmax.f32 %v655_v0, %v1120_v46  ;;  %v1587_v53 = vadd.f32 %v1551_v26, %v12840_v61  ;;  %v1621_v23 = vmax.f32 %v1585_v47, 0.0  ;;  %v14913_v62 = vld [vmem:[#allocation64_spill] sm:$0xff]  ;;  %v4486_v26 = vld [vmem:[#allocation2 + $0x94] sm:$0xff] }
 0x24d   :  { %10560 = vmatpush3.bf16.msra.mxu0 %v13191_v20  ;;  %v1622_v10 = vmax.f32 %v1586_v41, 0.0  ;;  %v2052_v12 = vmul.f32 %v14906_v31, %v12748_v56  ;;  %v1157_v33 = vmax.f32 %v656_v50, %v1121_v11  ;;  %v2086_v3 = vadd.f32 %v2050_v17, %v12840_v61  ;;  %v14909_v50 = vld [vmem:[#allocation56_spill] sm:$0xff] }
 0x24e   :  { %10565 = vmatprep.subr.bf16.mxu0 %v13216_v4  ;;  %v1158_v28 = vmax.f32 %v657_v30, %v1122_v49  ;;  %v1623_v18 = vmax.f32 %v1587_v53, 0.0  ;;  %v2562_v16 = vpack.c.bf16 %v2560_v44, %v13241_v22  ;;  %v1657_v59 = vmax.f32 %v1156_v15, %v1621_v23  ;;  %v2721_v47 = vld [vmem:[#allocation2 + $0x120] sm:$0xff]  ;;  %v13309_v44 = vld [vmem:[#allocation2 + $0x130] sm:$0xff] }
 0x24f   :  { %v2087_v51 = vadd.f32 %v2051_v39, %v12840_v61  ;;  %v2088_v38 = vadd.f32 %v2052_v12, %v12840_v61  ;;  %v4487_v48 = vpack.c.bf16 %v4484_v14, %v4483_v42  ;;  %v1658_v27 = vmax.f32 %v1157_v33, %v1622_v10  ;;  %v13312_v11 = vld [vmem:[#allocation2 + $0xe0] sm:$0xff] }
 0x250   :  { %v1659_v37 = vmax.f32 %v1158_v28, %v1623_v18  ;;  %v2122_v40 = vmax.f32 %v2086_v3, 0.0  ;;  %v13265_v57 = vpack.c.bf16 %v13251_v36, %v2639_v32  ;;  %v13280_v25 = vpack.c.bf16 %v13039_v5, %v12982_v60  ;;  %v14911_v5 = vld [vmem:[#allocation14_spill] sm:$0xff] }
 0x251   :  { %v2123_v13 = vmax.f32 %v2087_v51, 0.0  ;;  %v2124_v45 = vmax.f32 %v2088_v38, 0.0  ;;  %v553_v2 = vmul.f32 %v14907_v29, %v12748_v56  ;;  %v1024_v35 = vmul.f32 %v14908_v1, %v12748_v56  ;;  %v13314_v49 = vld [vmem:[#allocation2 + $0xf0] sm:$0xff] }
 0x252   :  { %10754 = vmatmul.mubr.msk.bf16.vlgmr.msra.gmra.mrb[72].mxu1 %vm2164_vm4, %v2562_v16  ;;  %v2158_v6 = vmax.f32 %v1657_v59, %v2122_v40  ;;  %v1525_v30 = vmul.f32 %v14909_v50, %v12748_v56  ;;  %v2026_v54 = vmul.f32 %v14910_v52, %v12748_v56  ;;  %v562_v8 = vmul.f32 %v14911_v5, %v12748_v56  ;;  %v14915_v51 = vld [vmem:[#allocation10_spill] sm:$0xff]  ;;  %v14916_v40 = vld [vmem:[#allocation11_spill] sm:$0xff] }
 0x253   :  { %10562 = vmatmul.mubr.msk.bf16.vlgmr.msra.gmra.mrb[72].mxu0 %vm2164_vm4, %v2562_v16  ;;  %10758 = vmatpush3.bf16.msra.mxu1 %v13154_v34  ;;  %v2159_v7 = vmax.f32 %v1658_v27, %v2123_v13  ;;  %v2160_v0 = vmax.f32 %v1659_v37, %v2124_v45  ;;  %v13275_v34 = vld [vmem:[%s14703_s5 + $0x60] sm:$0xff]   ;;  %v595_v60 = vadd.f32 %v12840_v61, %v553_v2  ;;  %v13332_v16 = vld [vmem:[%s14703_s5 + $0x68] sm:$0xff]  }
 0x254   :  { %10761 = vmatprep.mubr.msk.bf16.mxu1 %vm2164_vm4, %v4487_v48  ;;  %10759 = vmatprep.subr.bf16.mxu1 %v13191_v20  ;;  %2227 = vst.msk [vmem:[#allocation2 + $0x140] sm:$0xff] %vm2164_vm4, %v2158_v6  ;;  %v1033_v43 = vmul.f32 %v14912_v24, %v12748_v56  ;;  %v1534_v46 = vmul.f32 %v14913_v62, %v12748_v56  ;;  %v14917_v45 = vld [vmem:[#allocation59_spill] sm:$0xff] }
 0x255   :  { %10566 = vmatpush3.bf16.msra.mxu0 %v13216_v4  ;;  %10569 = vmatprep.mubr.msk.bf16.mxu0 %vm2164_vm4, %v13265_v57  ;;  %2230 = vst.msk [vmem:[#allocation2 + $0x14c] sm:$0xf0] %vm2169_vm5, %v2159_v7  ;;  %v1561_v41 = vadd.f32 %v1525_v30, %v12840_v61  ;;  %v2035_v17 = vmul.f32 %v14914_v9, %v12748_v56  ;;  %v631_v15 = vmax.f32 %v595_v60, 0.0  ;;  %v2803_v5 = vld [vmem:[#allocation2 + $0xc2] sm:$0xff] }
 0x256   :  { %10567 = vmatprep.subr.bf16.mxu0 %v13258_v55  ;;  %2231 = vst.msk [vmem:[#allocation2 + $0x154] sm:$0xff] %vm2164_vm4, %v2160_v0  ;;  %v604_v53 = vadd.f32 %v12840_v61, %v562_v8  ;;  %v1069_v42 = vadd.f32 %v1033_v43, %v12840_v61  ;;  %v1570_v14 = vadd.f32 %v1534_v46, %v12840_v61  ;;  %v14918_v0 = vld [vmem:[#allocation60_spill] sm:$0xff]  ;;  %v13368_v8 = vld [vmem:[#allocation2 + $0xd2] sm:$0xff]  ;;  %v14920_v43 = vld [vmem:[#allocation19_spill] sm:$0xff] }
 0x257   :  { %2228 = vst.msk [vmem:[#allocation2 + $0x148] sm:$0xf] %vm2166_vm6, %v2159_v7  ;;  %10760 = vmatpush3.bf16.msra.mxu1 %v13191_v20  ;;  %v1060_v20 = vadd.f32 %v1024_v35, %v12840_v61  ;;  %v2062_v10 = vadd.f32 %v2026_v54, %v12840_v61  ;;  %v4488_v21 = vpack.c.bf16 %v4486_v26, %v13302_v58  ;;  %v1597_v3 = vmax.f32 %v1561_v41, 0.0  ;;  %v14919_v54 = vld [vmem:[#allocation18_spill] sm:$0xff]  ;;  %v14921_v46 = vld [vmem:[#allocation68_spill] sm:$0xff]  ;;  %v14922_v41 = vld [vmem:[#allocation69_spill] sm:$0xff] }
 0x258   :  { %10765 = vmatprep.subr.bf16.mxu1 %v13216_v4  ;;  %v640_v39 = vmax.f32 %v604_v53, 0.0  ;;  %v1105_v31 = vmax.f32 %v1069_v42, 0.0  ;;  %v2071_v12 = vadd.f32 %v2035_v17, %v12840_v61  ;;  %v13323_v33 = vpack.c.bf16 %v13309_v44, %v2721_v47 }
 0x259   :  { %10568 = vmatpush3.bf16.msra.mxu0 %v13258_v55  ;;  %v1096_v23 = vmax.f32 %v1060_v20, 0.0  ;;  %v13327_v28 = vpack.c.bf16 %v13314_v49, %v13312_v11  ;;  %v1606_v59 = vmax.f32 %v1570_v14, 0.0  ;;  %v554_v38 = vmul.f32 %v14915_v51, %v12748_v56  ;;  %v14924_v51 = vld [vmem:[#allocation35_spill] sm:$0xff] }
 0x25a   :  { %10573 = vmatprep.subr.bf16.mxu0 %v13275_v34  ;;  %v1141_v32 = vmax.f32 %v640_v39, %v1105_v31  ;;  %v13338_v48 = vpack.c.bf16 %v13119_v19, %v13052_v63  ;;  %v2098_v37 = vmax.f32 %v2062_v10, 0.0  ;;  %v1025_v13 = vmul.f32 %v14916_v40, %v12748_v56 }
 0x25b   :  { %v1132_v18 = vmax.f32 %v631_v15, %v1096_v23  ;;  %v1526_v6 = vmul.f32 %v14917_v45, %v12748_v56  ;;  %v2107_v19 = vmax.f32 %v2071_v12, 0.0  ;;  %v596_v7 = vadd.f32 %v12840_v61, %v554_v38  ;;  %v2723_v47 = vld [vmem:[#allocation2 + $0x140] sm:$0xff] }
 0x25c   :  { %v1642_v63 = vmax.f32 %v1141_v32, %v1606_v59  ;;  %v2027_v29 = vmul.f32 %v14918_v0, %v12748_v56  ;;  %v1061_v1 = vadd.f32 %v1025_v13, %v12840_v61  ;;  %v563_v60 = vmul.f32 %v12748_v56, %v14919_v54  ;;  %v14923_v32 = vld [vmem:[#allocation34_spill] sm:$0xff]  ;;  %v14926_v13 = vld [vmem:[#allocation85_spill] sm:$0xff] }
 0x25d   :  { %v1633_v27 = vmax.f32 %v1132_v18, %v1597_v3  ;;  %v1562_v35 = vadd.f32 %v1526_v6, %v12840_v61  ;;  %v632_v30 = vmax.f32 %v596_v7, 0.0  ;;  %v1034_v62 = vmul.f32 %v14920_v43, %v12748_v56  ;;  %v13381_v17 = vld [vmem:[#allocation2 + $0x150] sm:$0xff] }
 0x25e   :  { %10762 = vmatmul.mubr.msk.bf16.vlgmr.msra.gmra.mrb[72].mxu1 %vm2164_vm4, %v4488_v21  ;;  %v2143_v50 = vmax.f32 %v1642_v63, %v2107_v19  ;;  %v2063_v52 = vadd.f32 %v2027_v29, %v12840_v61  ;;  %v1097_v24 = vmax.f32 %v1061_v1, 0.0  ;;  %v1535_v26 = vmul.f32 %v14921_v46, %v12748_v56  ;;  %v14927_v7 = vld [vmem:[#allocation54_spill] sm:$0xff] }
 0x25f   :  { %10570 = vmatmul.mubr.msk.bf16.vlgmr.msra.gmra.mrb[72].mxu0 %vm2164_vm4, %v13327_v28  ;;  %10766 = vmatpush3.bf16.msra.mxu1 %v13216_v4  ;;  %v2134_v2 = vmax.f32 %v1633_v27, %v2098_v37  ;;  %v13363_v4 = vld [vmem:[%s14703_s5 + $0x70] sm:$0xff]   ;;  %v605_v20 = vadd.f32 %v12840_v61, %v563_v60  ;;  %v2036_v9 = vmul.f32 %v14922_v41, %v12748_v56  ;;  %v1598_v53 = vmax.f32 %v1562_v35, 0.0  ;;  %v14925_v27 = vld [vmem:[#allocation84_spill] sm:$0xff]  ;;  %v14928_v35 = vld [vmem:[#allocation55_spill] sm:$0xff] }
 0x260   :  { %10769 = vmatprep.mubr.msk.bf16.mxu1 %vm2164_vm4, %v13323_v33  ;;  %10767 = vmatprep.subr.bf16.mxu1 %v13258_v55  ;;  %2197 = vst.msk [vmem:[#allocation2 + $0xa0] sm:$0xff] %vm2164_vm4, %v2143_v50  ;;  %v1133_v15 = vmax.f32 %v632_v30, %v1097_v24  ;;  %v1070_v42 = vadd.f32 %v1034_v62, %v12840_v61  ;;  %v2099_v23 = vmax.f32 %v2063_v52, 0.0  ;;  %v2805_v30 = vld [vmem:[#allocation2 + $0xe2] sm:$0xff] }
 0x261   :  { %10574 = vmatpush3.bf16.msra.mxu0 %v13275_v34  ;;  %10577 = vmatprep.mubr.msk.bf16.mxu0 %vm2164_vm4, %v13323_v33  ;;  %2179 = vst.msk [vmem:[#allocation2 + $0x40] sm:$0xff] %vm2164_vm4, %v2134_v2  ;;  %v13387_v14 = vpack.c.bf16 %v13368_v8, %v2803_v5  ;;  %v641_v10 = vmax.f32 %v605_v20, 0.0  ;;  %v13392_v21 = vpack.c.bf16 %v13312_v11, %v13251_v36  ;;  %v14930_v20 = vld [vmem:[#allocation105_spill] sm:$0xff] }
 0x262   :  { %10575 = vmatprep.subr.bf16.mxu0 %v13332_v16  ;;  %v1634_v39 = vmax.f32 %v1133_v15, %v1598_v53  ;;  %v1106_v31 = vmax.f32 %v1070_v42, 0.0  ;;  %v2072_v12 = vadd.f32 %v2036_v9, %v12840_v61  ;;  %v13396_v18 = vpack.c.bf16 %v2723_v47, %v13309_v44  ;;  %v13412_v44 = vld [vmem:[%s14703_s5 + $0x78] sm:$0xff]  }
 0x263   :  { %10768 = vmatpush3.bf16.msra.mxu1 %v13258_v55  ;;  %v1571_v55 = vadd.f32 %v1535_v26, %v12840_v61  ;;  %v13399_v3 = vpack.c.bf16 %v13381_v17, %v2723_v47  ;;  %v571_v59 = vmul.f32 %v12748_v56, %v14923_v32  ;;  %v1042_v38 = vmul.f32 %v14924_v51, %v12748_v56  ;;  %v14929_v26 = vld [vmem:[#allocation104_spill] sm:$0xff]  ;;  %v14931_v42 = vld [vmem:[#allocation38_spill] sm:$0xff]  ;;  %v14932_v32 = vld [vmem:[#allocation39_spill] sm:$0xff] }
 0x264   :  { %10773 = vmatprep.subr.bf16.mxu1 %v13275_v34  ;;  %v1543_v36 = vmul.f32 %v14925_v27, %v12748_v56  ;;  %v2135_v11 = vmax.f32 %v1634_v39, %v2099_v23  ;;  %v1142_v37 = vmax.f32 %v641_v10, %v1106_v31  ;;  %v2044_v45 = vmul.f32 %v14926_v13, %v12748_v56  ;;  %v2885_v23 = vld [vmem:[#allocation2 + $0x122] sm:$0xff]  ;;  %v2886_v10 = vld [vmem:[#allocation2 + $0x132] sm:$0xff] }
 0x265   :  { %10576 = vmatpush3.bf16.msra.mxu0 %v13332_v16  ;;  %v1607_v40 = vmax.f32 %v1571_v55, 0.0  ;;  %v613_v6 = vadd.f32 %v12840_v61, %v571_v59  ;;  %v1078_v63 = vadd.f32 %v1042_v38, %v12840_v61  ;;  %v580_v0 = vmul.f32 %v12748_v56, %v14927_v7 }
 0x266   :  { %10581 = vmatprep.subr.bf16.mxu0 %v13363_v4  ;;  %v1579_v19 = vadd.f32 %v1543_v36, %v12840_v61  ;;  %2180 = vst.msk [vmem:[#allocation2 + $0x48] sm:$0xf] %vm2166_vm6, %v2135_v11  ;;  %v2108_v2 = vmax.f32 %v2072_v12, 0.0  ;;  %v2080_v1 = vadd.f32 %v2044_v45, %v12840_v61  ;;  %v1051_v50 = vmul.f32 %v14928_v35, %v12748_v56  ;;  %v13466_v36 = vld [vmem:[#allocation2 + $0xf2] sm:$0xff] }
 0x267   :  { %2182 = vst.msk [vmem:[#allocation2 + $0x4c] sm:$0xf0] %vm2169_vm5, %v2135_v11  ;;  %v1643_v29 = vmax.f32 %v1142_v37, %v1607_v40  ;;  %v649_v52 = vmax.f32 %v613_v6, 0.0  ;;  %v1114_v54 = vmax.f32 %v1078_v63, 0.0  ;;  %v622_v24 = vadd.f32 %v12840_v61, %v580_v0  ;;  %v14934_v0 = vld [vmem:[#allocation89_spill] sm:$0xff]  ;;  %v13482_v35 = vld [vmem:[#allocation2 + $0xd4] sm:$0xff] }
 0x268   :  { %v1615_v5 = vmax.f32 %v1579_v19, 0.0  ;;  %v1087_v43 = vadd.f32 %v1051_v50, %v12840_v61  ;;  %v2116_v46 = vmax.f32 %v2080_v1, 0.0  ;;  %v1552_v47 = vmul.f32 %v14929_v26, %v12748_v56  ;;  %v13487_v50 = vld [vmem:[%s14703_s5 + $0x88] sm:$0xff]  }
 0x269   :  { %v2144_v60 = vmax.f32 %v1643_v29, %v2108_v2  ;;  %v1150_v62 = vmax.f32 %v649_v52, %v1114_v54  ;;  %v2053_v41 = vmul.f32 %v14930_v20, %v12748_v56  ;;  %v658_v9 = vmax.f32 %v622_v24, 0.0  ;;  %v14935_v54 = vld [vmem:[#allocation48_spill] sm:$0xff]  ;;  %v14937_v20 = vld [vmem:[#allocation98_spill] sm:$0xff] }
 0x26a   :  { %10770 = vmatmul.mubr.msk.bf16.vlgmr.msra.gmra.mrb[72].mxu1 %vm2164_vm4, %v13399_v3  ;;  %v1123_v15 = vmax.f32 %v1087_v43, 0.0  ;;  %v13450_v53 = vpack.c.bf16 %v2805_v30, %v13368_v8  ;;  %v572_v55 = vmul.f32 %v12748_v56, %v14931_v42  ;;  %v1588_v31 = vadd.f32 %v1552_v47, %v12840_v61  ;;  %v13461_v8 = vld [vmem:[#allocation2 + $0x142] sm:$0xff] }
 0x26b   :  { %10578 = vmatmul.mubr.msk.bf16.vlgmr.msra.gmra.mrb[72].mxu0 %vm2164_vm4, %v13399_v3  ;;  %10774 = vmatpush3.bf16.msra.mxu1 %v13275_v34  ;;  %v13441_v34 = vld [vmem:[%s14703_s5 + $0x80] sm:$0xff]   ;;  %2198 = vst.msk [vmem:[#allocation2 + $0xa8] sm:$0xf] %vm2166_vm6, %v2144_v60  ;;  %v1651_v39 = vmax.f32 %v1150_v62, %v1615_v5  ;;  %v2089_v12 = vadd.f32 %v2053_v41, %v12840_v61  ;;  %v14936_v5 = vld [vmem:[#allocation49_spill] sm:$0xff]  ;;  %v13495_v62 = vld [vmem:[#allocation2 + $0x134] sm:$0xff] }
 0x26c   :  { %10777 = vmatprep.mubr.msk.bf16.mxu1 %vm2164_vm4, %v13387_v14  ;;  %10775 = vmatprep.subr.bf16.mxu1 %v13332_v16  ;;  %2200 = vst.msk [vmem:[#allocation2 + $0xac] sm:$0xf0] %vm2169_vm5, %v2144_v60  ;;  %v1043_v59 = vmul.f32 %v14932_v32, %v12748_v56  ;;  %v1159_v51 = vmax.f32 %v658_v9, %v1123_v15  ;;  %v1624_v37 = vmax.f32 %v1588_v31, 0.0  ;;  %v13493_v43 = vld [vmem:[#allocation2 + $0xe4] sm:$0xff]  ;;  %v14938_v15 = vld [vmem:[#allocation99_spill] sm:$0xff] }
 0x26d   :  { %10582 = vmatpush3.bf16.msra.mxu0 %v13363_v4  ;;  %10585 = vmatprep.mubr.msk.bf16.mxu0 %vm2164_vm4, %v13387_v14  ;;  %v614_v38 = vadd.f32 %v12840_v61, %v572_v55  ;;  %v2152_v11 = vmax.f32 %v1651_v39, %v2116_v46  ;;  %v13470_v13 = vpack.c.bf16 %v2886_v10, %v2885_v23  ;;  %v2125_v45 = vmax.f32 %v2089_v12, 0.0 }
 0x26e   :  { %10583 = vmatprep.subr.bf16.mxu0 %v13412_v44  ;;  %v1079_v40 = vadd.f32 %v1043_v59, %v12840_v61  ;;  %v1660_v19 = vmax.f32 %v1159_v51, %v1624_v37  ;;  %v2045_v29 = vmul.f32 %v14934_v0, %v12748_v56  ;;  %v13477_v2 = vpack.c.bf16 %v13461_v8, %v2886_v10  ;;  %v13532_v59 = vld [vmem:[%s14703_s5 + $0x90] sm:$0xff]  }
 0x26f   :  { %10776 = vmatpush3.bf16.msra.mxu1 %v13332_v16  ;;  %v14933_v16 = vld [vmem:[#allocation88_spill] sm:$0xff]  ;;  %v650_v6 = vmax.f32 %v614_v38, 0.0  ;;  %2215 = vst.msk [vmem:[#allocation2 + $0x100] sm:$0xff] %vm2164_vm4, %v2152_v11  ;;  %v13480_v1 = vpack.c.bf16 %v13466_v36, %v2805_v30  ;;  %v581_v60 = vmul.f32 %v14935_v54, %v12748_v56  ;;  %v1052_v24 = vmul.f32 %v14936_v5, %v12748_v56  ;;  %v14942_v11 = vld [vmem:[#allocation13_spill] sm:$0xff]  ;;  %v14945_v54 = vld [vmem:[#allocation22_spill] sm:$0xff] }
 0x270   :  { %10781 = vmatprep.subr.bf16.mxu1 %v13363_v4  ;;  %v1544_v27 = vmul.f32 %v14933_v16, %v12748_v56  ;;  %v1115_v7 = vmax.f32 %v1079_v40, 0.0  ;;  %v13497_v30 = vld [vmem:[#allocation2 + $0x144] sm:$0xff]  ;;  %v2161_v46 = vmax.f32 %v1660_v19, %v2125_v45  ;;  %v2081_v47 = vadd.f32 %v2045_v29, %v12840_v61  ;;  %v14944_v19 = vld [vmem:[#allocation63_spill] sm:$0xff]  ;;  %v13546_v0 = vld [vmem:[#allocation2 + $0x152] sm:$0xff] }
 0x271   :  { %10584 = vmatpush3.bf16.msra.mxu0 %v13412_v44  ;;  %v1553_v41 = vmul.f32 %v14937_v20, %v12748_v56  ;;  %v623_v9 = vadd.f32 %v12840_v61, %v581_v60  ;;  %v2054_v42 = vmul.f32 %v14938_v15, %v12748_v56  ;;  %v1088_v10 = vadd.f32 %v1052_v24, %v12840_v61  ;;  %v14941_v16 = vld [vmem:[#allocation12_spill] sm:$0xff] }
 0x272   :  { %10589 = vmatprep.subr.bf16.mxu0 %v13441_v34  ;;  %v1580_v63 = vadd.f32 %v1544_v27, %v12840_v61  ;;  %v1151_v26 = vmax.f32 %v650_v6, %v1115_v7  ;;  %2233 = vst.msk [vmem:[#allocation2 + $0x160] sm:$0xff] %vm2164_vm4, %v2161_v46  ;;  %v2117_v23 = vmax.f32 %v2081_v47, 0.0  ;;  %v13524_v32 = vpack.c.bf16 %v13497_v30, %v13495_v62  ;;  %v14943_v6 = vld [vmem:[#allocation62_spill] sm:$0xff]  ;;  %v2967_v20 = vld [vmem:[#allocation2 + $0xc4] sm:$0xff] }
 0x273   :  { %v1589_v39 = vadd.f32 %v1553_v41, %v12840_v61  ;;  %v659_v31 = vmax.f32 %v623_v9, 0.0  ;;  %v2090_v12 = vadd.f32 %v2054_v42, %v12840_v61  ;;  %v1124_v38 = vmax.f32 %v1088_v10, 0.0  ;;  %v14947_v42 = vld [vmem:[#allocation72_spill] sm:$0xff] }
 0x274   :  { %v1616_v52 = vmax.f32 %v1580_v63, 0.0  ;;  %14940 = vst [vmem:[#allocation61_spill] sm:$0xff] %v13524_v32  ;;  %v555_v27 = vmul.f32 %v12748_v56, %v14941_v16  ;;  %v1026_v37 = vmul.f32 %v14942_v11, %v12748_v56  ;;  %v1527_v63 = vmul.f32 %v14943_v6, %v12748_v56 }
 0x275   :  { %v1160_v40 = vmax.f32 %v659_v31, %v1124_v38  ;;  %v1625_v45 = vmax.f32 %v1589_v39, 0.0  ;;  %v2028_v7 = vmul.f32 %v14944_v19, %v12748_v56  ;;  %v2126_v29 = vmax.f32 %v2090_v12, 0.0 }
 0x276   :  { %10778 = vmatmul.mubr.msk.bf16.vlgmr.msra.gmra.mrb[72].mxu1 %vm2164_vm4, %v13480_v1  ;;  %v1652_v55 = vmax.f32 %v1151_v26, %v1616_v52  ;;  %v1062_v52 = vadd.f32 %v1026_v37, %v12840_v61  ;;  %v564_v60 = vmul.f32 %v12748_v56, %v14945_v54  ;;  %v1563_v24 = vadd.f32 %v1527_v63, %v12840_v61  ;;  %v14946_v26 = vld [vmem:[#allocation23_spill] sm:$0xff] }
 0x277   :  { %10586 = vmatmul.mubr.msk.bf16.vlgmr.msra.gmra.mrb[72].mxu0 %vm2164_vm4, %v13480_v1  ;;  %10782 = vmatpush3.bf16.msra.mxu1 %v13363_v4  ;;  %v13520_v4 = vpack.c.bf16 %v13493_v43, %v13482_v35  ;;  %v1661_v5 = vmax.f32 %v1160_v40, %v1625_v45  ;;  %v2064_v46 = vadd.f32 %v2028_v7, %v12840_v61  ;;  %v14949_v7 = vld [vmem:[#allocation32_spill] sm:$0xff] }
 0x278   :  { %10785 = vmatprep.mubr.msk.bf16.mxu1 %vm2164_vm4, %v13470_v13  ;;  %10783 = vmatprep.subr.bf16.mxu1 %v13412_v44  ;;  %v2153_v51 = vmax.f32 %v1652_v55, %v2117_v23  ;;  %v1035_v47 = vmul.f32 %v14946_v26, %v12748_v56  ;;  %v1098_v9 = vmax.f32 %v1062_v52, 0.0  ;;  %v606_v15 = vadd.f32 %v12840_v61, %v564_v60 }
 0x279   :  { %10590 = vmatpush3.bf16.msra.mxu0 %v13441_v34  ;;  %14939 = vst [vmem:[#allocation58_spill] sm:$0xff] %v13520_v4  ;;  %10593 = vmatprep.mubr.msk.bf16.mxu0 %vm2164_vm4, %v13470_v13  ;;  %v1536_v55 = vmul.f32 %v14947_v42, %v12748_v56  ;;  %v13563_v23 = vpack.c.bf16 %v13546_v0, %v13461_v8  ;;  %v1599_v39 = vmax.f32 %v1563_v24, 0.0  ;;  %v14948_v8 = vld [vmem:[#allocation73_spill] sm:$0xff]  ;;  %v2100_v37 = vmax.f32 %v2064_v46, 0.0 }
 0x27a   :  { %10591 = vmatprep.subr.bf16.mxu0 %v13487_v50  ;;  %2216 = vst.msk [vmem:[#allocation2 + $0x108] sm:$0xf] %vm2166_vm6, %v2153_v51  ;;  %v2162_v10 = vmax.f32 %v1661_v5, %v2126_v29  ;;  %v642_v12 = vmax.f32 %v606_v15, 0.0  ;;  %v13568_v16 = vpack.c.bf16 %v13482_v35, %v2967_v20  ;;  %v2037_v11 = vmul.f32 %v14948_v8, %v12748_v56  ;;  %v14951_v5 = vld [vmem:[#allocation82_spill] sm:$0xff] }
 0x27b   :  { %10784 = vmatpush3.bf16.msra.mxu1 %v13412_v44  ;;  %2218 = vst.msk [vmem:[#allocation2 + $0x10c] sm:$0xf0] %vm2169_vm5, %v2153_v51  ;;  %v597_v44 = vadd.f32 %v12840_v61, %v555_v27  ;;  %v1071_v51 = vadd.f32 %v1035_v47, %v12840_v61  ;;  %v1572_v38 = vadd.f32 %v1536_v55, %v12840_v61  ;;  %v13573_v27 = vld [vmem:[%s14703_s5 + $0x98] sm:$0xff]   ;;  %v14954_v55 = vld [vmem:[#allocation53_spill] sm:$0xff] }
 0x27c   :  { %10789 = vmatprep.subr.bf16.mxu1 %v13441_v34  ;;  %2234 = vst.msk [vmem:[#allocation2 + $0x168] sm:$0xf] %vm2166_vm6, %v2162_v10  ;;  %v2073_v45 = vadd.f32 %v2037_v11, %v12840_v61  ;;  %v573_v29 = vmul.f32 %v14949_v7, %v12748_v56  ;;  %v1545_v24 = vmul.f32 %v14951_v5, %v12748_v56  ;;  %v14952_v47 = vld [vmem:[#allocation83_spill] sm:$0xff]  ;;  %v4760_v11 = vld [vmem:[#allocation2 + $0x124] sm:$0xff] }
 0x27d   :  { %10592 = vmatpush3.bf16.msra.mxu0 %v13487_v50  ;;  %v633_v41 = vmax.f32 %v597_v44, 0.0  ;;  %2236 = vst.msk [vmem:[#allocation2 + $0x16c] sm:$0xf0] %vm2169_vm5, %v2162_v10  ;;  %v1107_v40 = vmax.f32 %v1071_v51, 0.0  ;;  %v1608_v19 = vmax.f32 %v1572_v38, 0.0  ;;  %v14950_v44 = vld [vmem:[#allocation33_spill] sm:$0xff]  ;;  %v2046_v20 = vmul.f32 %v14952_v47, %v12748_v56 }
 0x27e   :  { %10597 = vmatprep.subr.bf16.mxu0 %v13532_v59  ;;  %v1044_v52 = vmul.f32 %v14950_v44, %v12748_v56  ;;  %v2109_v60 = vmax.f32 %v2073_v45, 0.0  ;;  %v615_v46 = vadd.f32 %v12840_v61, %v573_v29  ;;  %v1581_v42 = vadd.f32 %v1545_v24, %v12840_v61  ;;  %v14955_v38 = vld [vmem:[#allocation102_spill] sm:$0xff] }
 0x27f   :  { %v1134_v31 = vmax.f32 %v633_v41, %v1098_v9  ;;  %v1143_v63 = vmax.f32 %v642_v12, %v1107_v40  ;;  %v14953_v41 = vld [vmem:[#allocation52_spill] sm:$0xff]  ;;  %v1053_v10 = vmul.f32 %v14954_v55, %v12748_v56  ;;  %v2082_v51 = vadd.f32 %v2046_v20, %v12840_v61  ;;  %v13662_v20 = vld [vmem:[#allocation2 + $0x154] sm:$0xff] }
 0x280   :  { %v1080_v26 = vadd.f32 %v1044_v52, %v12840_v61  ;;  %v582_v9 = vmul.f32 %v14953_v41, %v12748_v56  ;;  %v1554_v8 = vmul.f32 %v14955_v38, %v12748_v56  ;;  %v1617_v45 = vmax.f32 %v1581_v42, 0.0  ;;  %v13665_v41 = vld [vmem:[#allocation2 + $0x40] sm:$0xff]  ;;  %v11958_v42 = vld [vmem:[#allocation2 + $0x30] sm:$0xff] }
 0x281   :  { %v1635_v35 = vmax.f32 %v1134_v31, %v1599_v39  ;;  %v1644_v54 = vmax.f32 %v1143_v63, %v1608_v19  ;;  %v13616_v39 = vld [vmem:[#allocation2 + $0xf4] sm:$0xff]  ;;  %v651_v31 = vmax.f32 %v615_v46, 0.0  ;;  %v14956_v63 = vld [vmem:[#allocation103_spill] sm:$0xff]  ;;  %v13633_v52 = vpack.c.bf16 %v13495_v62, %v4760_v11 }
 0x282   :  { %10786 = vmatmul.mubr.msk.bf16.vlgmr.msra.gmra.mrb[72].mxu1 %vm2164_vm4, %v13563_v23  ;;  %v1116_v12 = vmax.f32 %v1080_v26, 0.0  ;;  %v2055_v19 = vmul.f32 %v14956_v63, %v12748_v56  ;;  %v13630_v7 = vpack.c.bf16 %v13616_v39, %v13493_v43  ;;  %v2118_v5 = vmax.f32 %v2082_v51, 0.0  ;;  %v13702_v51 = vld [vmem:[#allocation2 + $0x90] sm:$0xff]  ;;  %v13704_v38 = vld [vmem:[#allocation2 + $0xa0] sm:$0xff] }
 0x283   :  { %10594 = vmatmul.mubr.msk.bf16.vlgmr.msra.gmra.mrb[72].mxu0 %vm2164_vm4, %v13563_v23  ;;  %10790 = vmatpush3.bf16.msra.mxu1 %v13441_v34  ;;  %v2136_v6 = vmax.f32 %v1635_v35, %v2100_v37  ;;  %v13595_v34 = vld [vmem:[%s14703_s5 + $0xa0] sm:$0xff]   ;;  %v2145_v15 = vmax.f32 %v1644_v54, %v2109_v60  ;;  %v624_v35 = vadd.f32 %v12840_v61, %v582_v9  ;;  %v13638_v54 = vld [vmem:[%s14703_s5 + $0xa8] sm:$0xff]   ;;  %v3131_v9 = vld [vmem:[#allocation2 + $0x70] sm:$0xff] }
 0x284   :  { %10793 = vmatprep.mubr.msk.bf16.mxu1 %vm2164_vm4, %v13568_v16  ;;  %10791 = vmatprep.subr.bf16.mxu1 %v13487_v50  ;;  %v1089_v37 = vadd.f32 %v1053_v10, %v12840_v61  ;;  %v1152_v40 = vmax.f32 %v651_v31, %v1116_v12  ;;  %v2091_v24 = vadd.f32 %v2055_v19, %v12840_v61  ;;  %v11959_v10 = vld [vmem:[#allocation2 + $0x80] sm:$0xff]  ;;  %v13680_v12 = vld [vmem:[%s14703_s5 + $0xb8] sm:$0xff]  }
 0x285   :  { %10598 = vmatpush3.bf16.msra.mxu0 %v13532_v59  ;;  %10601 = vmatprep.mubr.msk.bf16.mxu0 %vm2164_vm4, %v13568_v16  ;;  %2183 = vst.msk [vmem:[#allocation2 + $0x54] sm:$0xff] %vm2164_vm4, %v2136_v6  ;;  %2201 = vst.msk [vmem:[#allocation2 + $0xb4] sm:$0xff] %vm2164_vm4, %v2145_v15  ;;  %v1590_v6 = vadd.f32 %v1554_v8, %v12840_v61  ;;  %v660_v29 = vmax.f32 %v624_v35, 0.0  ;;  %v13656_v61 = vld [vmem:[%s14703_s5 + $0xb0] sm:$0xff]   ;;  %v13670_v15 = vpack.c.bf16 %v13662_v20, %v13497_v30  ;;  %v13697_v30 = vld [vmem:[%s14703_s5 + $0xc0] sm:$0xff]  }
 0x286   :  { %10599 = vmatprep.subr.bf16.mxu0 %v13573_v27  ;;  %v1125_v44 = vmax.f32 %v1089_v37, 0.0  ;;  %v1653_v60 = vmax.f32 %v1152_v40, %v1617_v45  ;;  %v2127_v26 = vmax.f32 %v2091_v24, 0.0  ;;  %v13673_v55 = vpack.c.bf16 %v13665_v41, %v11958_v42  ;;  %v3213_v8 = vld [vmem:[#allocation2 + $0x12] sm:$0xff]  ;;  %v11960_v35 = vld [vmem:[#allocation2 + $0x22] sm:$0xff] }
 0x287   :  { %10792 = vmatpush3.bf16.msra.mxu1 %v13487_v50  ;;  %v1626_v62 = vmax.f32 %v1590_v6, 0.0  ;;  %v13675_v31 = vpack.c.bf16 %v11959_v10, %v3131_v9  ;;  %v13709_v11 = vpack.c.bf16 %v13704_v38, %v13702_v51  ;;  %v13711_v37 = vpack.c.bf16 %v11960_v35, %v3213_v8  ;;  %v13716_v40 = vld [vmem:[%s14703_s5 + $0xc8] sm:$0xff]   ;;  %v13733_v45 = vld [vmem:[%s14703_s5 + $0xd0] sm:$0xff]   ;;  %v13821_v10 = vld [vmem:[%s14703_s5 + $0xf8] sm:$0xff]  }
 0x288   :  { %10797 = vmatprep.subr.bf16.mxu1 %v13532_v59  ;;  %v2154_v56 = vmax.f32 %v1653_v60, %v2118_v5  ;;  %v1161_v43 = vmax.f32 %v660_v29, %v1125_v44  ;;  %v13738_v6 = vld [vmem:[#allocation2 + $0x32] sm:$0xff]  ;;  %v13740_v63 = vld [vmem:[#allocation2 + $0x42] sm:$0xff]  ;;  %14960 = vst [vmem:[#allocation106_spill] sm:$0xff] %v13821_v10 }
 0x289   :  { %10600 = vmatpush3.bf16.msra.mxu0 %v13573_v27  ;;  %v13745_v19 = vpack.c.bf16 %v13740_v63, %v13738_v6  ;;  %v13750_v29 = vld [vmem:[%s14703_s5 + $0xd8] sm:$0xff]   ;;  %v13767_v44 = vld [vmem:[%s14703_s5 + $0xe0] sm:$0xff]  }
 0x28a   :  { %10605 = vmatprep.subr.bf16.mxu0 %v13595_v34  ;;  %2219 = vst.msk [vmem:[#allocation2 + $0x114] sm:$0xff] %vm2164_vm4, %v2154_v56  ;;  %v1662_v46 = vmax.f32 %v1161_v43, %v1626_v62  ;;  %14957 = vst [vmem:[#allocation16_spill] sm:$0xff] %v13767_v44  ;;  %v13772_v60 = vld [vmem:[#allocation2 + $0xa2] sm:$0xff]  ;;  %v3377_v5 = vld [vmem:[#allocation2 + $0x14] sm:$0xff] }
 0x28b   :  { %v11961_v24 = vld [vmem:[#allocation2 + $0x92] sm:$0xff]  ;;  %v13779_v43 = vpack.c.bf16 %v13241_v22, %v3377_v5  ;;  %v13784_v62 = vld [vmem:[%s14703_s5 + $0xe8] sm:$0xff]   ;;  %v3462_v5 = vld [vmem:[#allocation2 + $0x100] sm:$0xff] }
 0x28c   :  { %v2163_v47 = vmax.f32 %v1662_v46, %v2127_v26  ;;  %v13776_v56 = vpack.c.bf16 %v13772_v60, %v11961_v24  ;;  %14958 = vst [vmem:[#allocation20_spill] sm:$0xff] %v13784_v62  ;;  %v13801_v22 = vld [vmem:[%s14703_s5 + $0xf0] sm:$0xff]   ;;  %v13808_v26 = vld [vmem:[#allocation2 + $0x44] sm:$0xff] }
 0x28d   :  { %14959 = vst [vmem:[#allocation26_spill] sm:$0xff] %v13801_v22  ;;  %v13806_v46 = vld [vmem:[#allocation2 + $0x34] sm:$0xff]  ;;  %v13845_v35 = vld [vmem:[#allocation2 + $0xa4] sm:$0xff] }
 0x28e   :  { %10794 = vmatmul.mubr.msk.bf16.vlgmr.msra.gmra.mrb[72].mxu1 %vm2164_vm4, %v13630_v7  ;;  %2237 = vst.msk [vmem:[#allocation2 + $0x174] sm:$0xff] %vm2164_vm4, %v2163_v47  ;;  %v5037_v47 = vld [vmem:[#allocation2 + $0x74] sm:$0xff]  ;;  %v13813_v9 = vpack.c.bf16 %v13808_v26, %v13806_v46 }
 0x28f   :  { %10602 = vmatmul.mubr.msk.bf16.vlgmr.msra.gmra.mrb[72].mxu0 %vm2164_vm4, %v13630_v7  ;;  %10798 = vmatpush3.bf16.msra.mxu1 %v13532_v59  ;;  %v13816_v42 = vpack.c.bf16 %v13302_v58, %v5037_v47  ;;  %v13838_v58 = vld [vmem:[%s14703_s5 + $0x100] sm:$0xff]   ;;  %v13843_v8 = vld [vmem:[#allocation2 + $0x94] sm:$0xff]  ;;  %v13853_v47 = vpack.c.bf16 %v3462_v5, %v13314_v49 }
 0x290   :  { %10801 = vmatprep.mubr.msk.bf16.mxu1 %vm2164_vm4, %v13633_v52  ;;  %10799 = vmatprep.subr.bf16.mxu1 %v13573_v27  ;;  %14961 = vst [vmem:[#allocation17_spill] sm:$0xff] %v13838_v58  ;;  %v13850_v24 = vpack.c.bf16 %v13845_v35, %v13843_v8  ;;  %v13875_v49 = vld [vmem:[%s14703_s5 + $0x110] sm:$0xff]   ;;  %v3544_v5 = vld [vmem:[#allocation2 + $0x160] sm:$0xff] }
 0x291   :  { %10606 = vmatpush3.bf16.msra.mxu0 %v13595_v34  ;;  %10609 = vmatprep.mubr.msk.bf16.mxu0 %vm2164_vm4, %v13280_v25  ;;  %14963 = vst [vmem:[#allocation27_spill] sm:$0xff] %v13875_v49 }
 0x292   :  { %10607 = vmatprep.subr.bf16.mxu0 %v13638_v54 }
 0x293   :  { %10800 = vmatpush3.bf16.msra.mxu1 %v13573_v27 }
 0x294   :  { %10805 = vmatprep.subr.bf16.mxu1 %v13595_v34 }
 0x295   :  { %10608 = vmatpush3.bf16.msra.mxu0 %v13638_v54 }
 0x296   :  { %10613 = vmatprep.subr.bf16.mxu0 %v13656_v61 }
 0x29a   :  { %10802 = vmatmul.mubr.msk.bf16.vlgmr.msra.gmra.mrb[72].mxu1 %vm2164_vm4, %v13670_v15 }
 0x29b   :  { %10610 = vmatmul.mubr.msk.bf16.vlgmr.msra.gmra.mrb[72].mxu0 %vm2164_vm4, %v13673_v55  ;;  %10806 = vmatpush3.bf16.msra.mxu1 %v13595_v34 }
 0x29c   :  { %10809 = vmatprep.mubr.msk.bf16.mxu1 %vm2164_vm4, %v13675_v31  ;;  %10807 = vmatprep.subr.bf16.mxu1 %v13638_v54 }
 0x29d   :  { %10614 = vmatpush3.bf16.msra.mxu0 %v13656_v61  ;;  %10617 = vmatprep.mubr.msk.bf16.mxu0 %vm2164_vm4, %v13675_v31 }
 0x29e   :  { %10615 = vmatprep.subr.bf16.mxu0 %v13680_v12 }
 0x29f   :  { %10808 = vmatpush3.bf16.msra.mxu1 %v13638_v54 }
 0x2a0   :  { %10813 = vmatprep.subr.bf16.mxu1 %v13656_v61 }
 0x2a1   :  { %10616 = vmatpush3.bf16.msra.mxu0 %v13680_v12 }
 0x2a2   :  { %10621 = vmatprep.subr.bf16.mxu0 %v13697_v30 }
 0x2a6   :  { %10810 = vmatmul.mubr.msk.bf16.vlgmr.msra.gmra.mrb[72].mxu1 %vm2164_vm4, %v13709_v11 }
 0x2a7   :  { %10618 = vmatmul.mubr.msk.bf16.vlgmr.msra.gmra.mrb[72].mxu0 %vm2164_vm4, %v13709_v11  ;;  %10814 = vmatpush3.bf16.msra.mxu1 %v13656_v61 }
 0x2a8   :  { %10817 = vmatprep.mubr.msk.bf16.mxu1 %vm2164_vm4, %v13711_v37  ;;  %10815 = vmatprep.subr.bf16.mxu1 %v13680_v12 }
 0x2a9   :  { %10622 = vmatpush3.bf16.msra.mxu0 %v13697_v30  ;;  %10625 = vmatprep.mubr.msk.bf16.mxu0 %vm2164_vm4, %v13711_v37 }
 0x2aa   :  { %10623 = vmatprep.subr.bf16.mxu0 %v13716_v40 }
 0x2ab   :  { %10816 = vmatpush3.bf16.msra.mxu1 %v13680_v12 }
 0x2ac   :  { %10821 = vmatprep.subr.bf16.mxu1 %v13697_v30 }
 0x2ad   :  { %10624 = vmatpush3.bf16.msra.mxu0 %v13716_v40 }
 0x2ae   :  { %10629 = vmatprep.subr.bf16.mxu0 %v13733_v45 }
 0x2b2   :  { %10818 = vmatmul.mubr.msk.bf16.vlgmr.msra.gmra.mrb[72].mxu1 %vm2164_vm4, %v13745_v19 }
 0x2b3   :  { %10626 = vmatmul.mubr.msk.bf16.vlgmr.msra.gmra.mrb[72].mxu0 %vm2164_vm4, %v13745_v19  ;;  %10822 = vmatpush3.bf16.msra.mxu1 %v13697_v30 }
 0x2b4   :  { %10825 = vmatprep.mubr.msk.bf16.mxu1 %vm2164_vm4, %v13338_v48  ;;  %10823 = vmatprep.subr.bf16.mxu1 %v13716_v40 }
 0x2b5   :  { %10630 = vmatpush3.bf16.msra.mxu0 %v13733_v45  ;;  %10633 = vmatprep.mubr.msk.bf16.mxu0 %vm2164_vm4, %v13338_v48 }
 0x2b6   :  { %10631 = vmatprep.subr.bf16.mxu0 %v13750_v29 }
 0x2b7   :  { %10824 = vmatpush3.bf16.msra.mxu1 %v13716_v40 }
 0x2b8   :  { %10829 = vmatprep.subr.bf16.mxu1 %v13733_v45 }
 0x2b9   :  { %10632 = vmatpush3.bf16.msra.mxu0 %v13750_v29 }
 0x2ba   :  { %10637 = vmatprep.subr.bf16.mxu0 %v13767_v44 }
 0x2be   :  { %10826 = vmatmul.mubr.msk.bf16.vlgmr.msra.gmra.mrb[72].mxu1 %vm2164_vm4, %v13776_v56 }
 0x2bf   :  { %10634 = vmatmul.mubr.msk.bf16.vlgmr.msra.gmra.mrb[72].mxu0 %vm2164_vm4, %v13776_v56  ;;  %10830 = vmatpush3.bf16.msra.mxu1 %v13733_v45 }
 0x2c0   :  { %10833 = vmatprep.mubr.msk.bf16.mxu1 %vm2164_vm4, %v13779_v43  ;;  %10831 = vmatprep.subr.bf16.mxu1 %v13750_v29 }
 0x2c1   :  { %10638 = vmatpush3.bf16.msra.mxu0 %v13767_v44  ;;  %10641 = vmatprep.mubr.msk.bf16.mxu0 %vm2164_vm4, %v13779_v43 }
 0x2c2   :  { %10639 = vmatprep.subr.bf16.mxu0 %v13784_v62 }
 0x2c3   :  { %10832 = vmatpush3.bf16.msra.mxu1 %v13750_v29 }
 0x2c4   :  { %10837 = vmatprep.subr.bf16.mxu1 %v13767_v44 }
 0x2c5   :  { %10640 = vmatpush3.bf16.msra.mxu0 %v13784_v62 }
 0x2c6   :  { %10645 = vmatprep.subr.bf16.mxu0 %v13801_v22 }
 0x2ca   :  { %10834 = vmatmul.mubr.msk.bf16.vlgmr.msra.gmra.mrb[72].mxu1 %vm2164_vm4, %v13813_v9 }
 0x2cb   :  { %10642 = vmatmul.mubr.msk.bf16.vlgmr.msra.gmra.mrb[72].mxu0 %vm2164_vm4, %v13813_v9  ;;  %10838 = vmatpush3.bf16.msra.mxu1 %v13767_v44  ;;  %v13887_v44 = vld [vmem:[%s14703_s5 + $0x118] sm:$0xff]  }
 0x2cc   :  { %10841 = vmatprep.mubr.msk.bf16.mxu1 %vm2164_vm4, %v13816_v42  ;;  %10839 = vmatprep.subr.bf16.mxu1 %v13784_v62  ;;  %14964 = vst [vmem:[#allocation66_spill] sm:$0xff] %v13887_v44 }
 0x2cd   :  { %10646 = vmatpush3.bf16.msra.mxu0 %v13801_v22  ;;  %10649 = vmatprep.mubr.msk.bf16.mxu0 %vm2164_vm4, %v13392_v21 }
 0x2ce   :  { %10647 = vmatprep.subr.bf16.mxu0 %v13821_v10 }
 0x2cf   :  { %10840 = vmatpush3.bf16.msra.mxu1 %v13784_v62  ;;  %v13858_v62 = vld [vmem:[%s14703_s5 + $0x108] sm:$0xff]  }
 0x2d0   :  { %10845 = vmatprep.subr.bf16.mxu1 %v13801_v22  ;;  %14962 = vst [vmem:[#allocation21_spill] sm:$0xff] %v13858_v62 }
 0x2d1   :  { %10648 = vmatpush3.bf16.msra.mxu0 %v13821_v10 }
 0x2d2   :  { %10653 = vmatprep.subr.bf16.mxu0 %v13838_v58 }
 0x2d6   :  { %10842 = vmatmul.mubr.msk.bf16.vlgmr.msra.gmra.mrb[72].mxu1 %vm2164_vm4, %v13850_v24 }
 0x2d7   :  { %10650 = vmatmul.mubr.msk.bf16.vlgmr.msra.gmra.mrb[72].mxu0 %vm2164_vm4, %v13853_v47  ;;  %10846 = vmatpush3.bf16.msra.mxu1 %v13801_v22  ;;  %v13882_v22 = vpack.c.bf16 %v3544_v5, %v13381_v17  ;;  %v13904_v17 = vld [vmem:[%s14703_s5 + $0x120] sm:$0xff]  }
 0x2d8   :  { %10849 = vmatprep.mubr.msk.bf16.mxu1 %vm2164_vm4, %v13396_v18  ;;  %10847 = vmatprep.subr.bf16.mxu1 %v13821_v10  ;;  %14965 = vst [vmem:[#allocation70_spill] sm:$0xff] %v13904_v17  ;;  %v3626_v5 = vld [vmem:[#allocation2 + $0x102] sm:$0xff] }
 0x2d9   :  { %10654 = vmatpush3.bf16.msra.mxu0 %v13838_v58  ;;  %10657 = vmatprep.mubr.msk.bf16.mxu0 %vm2164_vm4, %v13396_v18 }
 0x2da   :  { %10655 = vmatprep.subr.bf16.mxu0 %v13858_v62 }
 0x2db   :  { %10848 = vmatpush3.bf16.msra.mxu1 %v13821_v10  ;;  %v13916_v10 = vld [vmem:[%s14703_s5 + $0x128] sm:$0xff]  }
 0x2dc   :  { %10853 = vmatprep.subr.bf16.mxu1 %v13838_v58  ;;  %14966 = vst [vmem:[#allocation76_spill] sm:$0xff] %v13916_v10 }
 0x2dd   :  { %10656 = vmatpush3.bf16.msra.mxu0 %v13858_v62 }
 0x2de   :  { %10661 = vmatprep.subr.bf16.mxu0 %v13875_v49 }
 0x2e2   :  { %10850 = vmatmul.mubr.msk.bf16.vlgmr.msra.gmra.mrb[72].mxu1 %vm2164_vm4, %v13882_v22 }
 0x2e3   :  { %10658 = vmatmul.mubr.msk.bf16.vlgmr.msra.gmra.mrb[72].mxu0 %vm2164_vm4, %v13882_v22  ;;  %10854 = vmatpush3.bf16.msra.mxu1 %v13838_v58  ;;  %v13911_v58 = vpack.c.bf16 %v3626_v5, %v13466_v36  ;;  %v13933_v36 = vld [vmem:[%s14703_s5 + $0x130] sm:$0xff]   ;;  %v3708_v5 = vld [vmem:[#allocation2 + $0x162] sm:$0xff] }
 0x2e4   :  { %10857 = vmatprep.mubr.msk.bf16.mxu1 %vm2164_vm4, %v13450_v53  ;;  %10855 = vmatprep.subr.bf16.mxu1 %v13858_v62  ;;  %14967 = vst [vmem:[#allocation67_spill] sm:$0xff] %v13933_v36 }
 0x2e5   :  { %10662 = vmatpush3.bf16.msra.mxu0 %v13875_v49  ;;  %10665 = vmatprep.mubr.msk.bf16.mxu0 %vm2164_vm4, %v13450_v53 }
 0x2e6   :  { %10663 = vmatprep.subr.bf16.mxu0 %v13887_v44 }
 0x2e7   :  { %10856 = vmatpush3.bf16.msra.mxu1 %v13858_v62  ;;  %v13945_v62 = vld [vmem:[%s14703_s5 + $0x138] sm:$0xff]  }
 0x2e8   :  { %10861 = vmatprep.subr.bf16.mxu1 %v13875_v49  ;;  %14969 = vst [vmem:[#allocation77_spill] sm:$0xff] %v13945_v62 }
 0x2e9   :  { %10664 = vmatpush3.bf16.msra.mxu0 %v13887_v44 }
 0x2ea   :  { %10669 = vmatprep.subr.bf16.mxu0 %v13904_v17 }
 0x2ee   :  { %10858 = vmatmul.mubr.msk.bf16.vlgmr.msra.gmra.mrb[72].mxu1 %vm2164_vm4, %v13911_v58 }
 0x2ef   :  { %10666 = vmatmul.mubr.msk.bf16.vlgmr.msra.gmra.mrb[72].mxu0 %vm2164_vm4, %v13911_v58  ;;  %10862 = vmatpush3.bf16.msra.mxu1 %v13875_v49  ;;  %v13940_v49 = vpack.c.bf16 %v3708_v5, %v13546_v0  ;;  %v13962_v0 = vld [vmem:[%s14703_s5 + $0x140] sm:$0xff]  }
 0x2f0   :  { %10865 = vmatprep.mubr.msk.bf16.mxu1 %vm2164_vm4, %v13477_v2  ;;  %10863 = vmatprep.subr.bf16.mxu1 %v13887_v44  ;;  %14970 = vst [vmem:[#allocation36_spill] sm:$0xff] %v13962_v0  ;;  %v3790_v5 = vld [vmem:[#allocation2 + $0x104] sm:$0xff] }
 0x2f1   :  { %10670 = vmatpush3.bf16.msra.mxu0 %v13904_v17  ;;  %10673 = vmatprep.mubr.msk.bf16.mxu0 %vm2164_vm4, %v13477_v2  ;;  %14968 = vst [vmem:[#allocation71_spill] sm:$0xff] %v13940_v49 }
 0x2f2   :  { %10671 = vmatprep.subr.bf16.mxu0 %v13916_v10 }
 0x2f3   :  { %10864 = vmatpush3.bf16.msra.mxu1 %v13887_v44  ;;  %v3869_v44 = vld [vmem:[#allocation2 + $0x20] sm:$0xff] }
 0x2f4   :  { %10869 = vmatprep.subr.bf16.mxu1 %v13904_v17 }
 0x2f5   :  { %10672 = vmatpush3.bf16.msra.mxu0 %v13916_v10 }
 0x2f6   :  { %10677 = vmatprep.subr.bf16.mxu0 %v13933_v36 }
 0x2fa   :  { %10866 = vmatmul.mubr.msk.bf16.vlgmr.msra.gmra.mrb[72].mxu1 %vm2164_vm4, %v13940_v49 }
 0x2fb   :  { %10674 = vmatmul.mubr.msk.bf16.vlgmr.msra.gmra.mrb[72].mxu0 %vm2164_vm4, %v13940_v49  ;;  %10870 = vmatpush3.bf16.msra.mxu1 %v13904_v17  ;;  %v13969_v17 = vpack.c.bf16 %v3790_v5, %v13616_v39  ;;  %v13974_v49 = vld [vmem:[%s14703_s5 + $0x148] sm:$0xff]   ;;  %v13993_v5 = vld [vmem:[%s14703_s5 + $0x150] sm:$0xff]  }
 0x2fc   :  { %10873 = vmatprep.mubr.msk.bf16.mxu1 %vm2164_vm4, %v13520_v4  ;;  %10871 = vmatprep.subr.bf16.mxu1 %v13916_v10  ;;  %14971 = vst [vmem:[#allocation42_spill] sm:$0xff] %v13974_v49  ;;  %14973 = vst [vmem:[#allocation37_spill] sm:$0xff] %v13993_v5 }
 0x2fd   :  { %10678 = vmatpush3.bf16.msra.mxu0 %v13933_v36  ;;  %10681 = vmatprep.mubr.msk.bf16.mxu0 %vm2164_vm4, %v13520_v4  ;;  %v3870_v4 = vld [vmem:[#allocation2 + $0x30] sm:$0xff] }
 0x2fe   :  { %10679 = vmatprep.subr.bf16.mxu0 %v13945_v62  ;;  %v13983_v39 = vpack.c.bf16 %v3870_v4, %v3869_v44  ;;  %v5317_v4 = vld [vmem:[#allocation2 + $0x164] sm:$0xff]  ;;  %v3872_v44 = vld [vmem:[#allocation2 + $0x50] sm:$0xff] }
 0x2ff   :  { %10872 = vmatpush3.bf16.msra.mxu1 %v13916_v10  ;;  %v14000_v10 = vpack.c.bf16 %v5317_v4, %v13662_v20  ;;  %v14028_v20 = vld [vmem:[%s14703_s5 + $0x160] sm:$0xff]  }
 0x300   :  { %10877 = vmatprep.subr.bf16.mxu1 %v13933_v36  ;;  %14972 = vst [vmem:[#allocation46_spill] sm:$0xff] %v13983_v39  ;;  %14975 = vst [vmem:[#allocation47_spill] sm:$0xff] %v14028_v20 }
 0x301   :  { %10680 = vmatpush3.bf16.msra.mxu0 %v13945_v62 }
 0x302   :  { %10685 = vmatprep.subr.bf16.mxu0 %v13962_v0 }
 0x306   :  { %10874 = vmatmul.mubr.msk.bf16.vlgmr.msra.gmra.mrb[72].mxu1 %vm2164_vm4, %v13969_v17 }
 0x307   :  { %10682 = vmatmul.mubr.msk.bf16.vlgmr.msra.gmra.mrb[72].mxu0 %vm2164_vm4, %v13969_v17  ;;  %10878 = vmatpush3.bf16.msra.mxu1 %v13933_v36  ;;  %v3951_v36 = vld [vmem:[#allocation2 + $0x80] sm:$0xff] }
 0x308   :  { %10881 = vmatprep.mubr.msk.bf16.mxu1 %vm2164_vm4, %v13524_v32  ;;  %10879 = vmatprep.subr.bf16.mxu1 %v13945_v62  ;;  %v14006_v32 = vpack.c.bf16 %v13702_v51, %v3951_v36  ;;  %v4033_v51 = vld [vmem:[#allocation2 + $0x22] sm:$0xff] }
 0x309   :  { %10686 = vmatpush3.bf16.msra.mxu0 %v13962_v0  ;;  %10689 = vmatprep.mubr.msk.bf16.mxu0 %vm2164_vm4, %v13983_v39  ;;  %v14003_v39 = vpack.c.bf16 %v3872_v44, %v13665_v41  ;;  %v3954_v41 = vld [vmem:[#allocation2 + $0xb0] sm:$0xff]  ;;  %v14038_v4 = vpack.c.bf16 %v13738_v6, %v4033_v51  ;;  %v14043_v44 = vld [vmem:[%s14703_s5 + $0x168] sm:$0xff]  }
 0x30a   :  { %10687 = vmatprep.subr.bf16.mxu0 %v13974_v49  ;;  %v14035_v36 = vpack.c.bf16 %v3954_v41, %v13704_v38  ;;  %v14060_v38 = vld [vmem:[%s14703_s5 + $0x170] sm:$0xff]   ;;  %v4115_v41 = vld [vmem:[#allocation2 + $0x82] sm:$0xff] }
 0x30b   :  { %10880 = vmatpush3.bf16.msra.mxu1 %v13945_v62  ;;  %v14011_v62 = vld [vmem:[%s14703_s5 + $0x158] sm:$0xff]   ;;  %14976 = vst [vmem:[#allocation86_spill] sm:$0xff] %v14060_v38 }
 0x30c   :  { %10885 = vmatprep.subr.bf16.mxu1 %v13962_v0  ;;  %14974 = vst [vmem:[#allocation43_spill] sm:$0xff] %v14011_v62  ;;  %v4036_v6 = vld [vmem:[#allocation2 + $0x52] sm:$0xff] }
 0x30d   :  { %10688 = vmatpush3.bf16.msra.mxu0 %v13974_v49  ;;  %v4116_v51 = vld [vmem:[#allocation2 + $0x92] sm:$0xff] }
 0x30e   :  { %10693 = vmatprep.subr.bf16.mxu0 %v13993_v5 }
 0x312   :  { %10882 = vmatmul.mubr.msk.bf16.vlgmr.msra.gmra.mrb[72].mxu1 %vm2164_vm4, %v14000_v10 }
 0x313   :  { %10690 = vmatmul.mubr.msk.bf16.vlgmr.msra.gmra.mrb[72].mxu0 %vm2164_vm4, %v14003_v39  ;;  %10886 = vmatpush3.bf16.msra.mxu1 %v13962_v0  ;;  %v14074_v0 = vld [vmem:[%s14703_s5 + $0x178] sm:$0xff]  }
 0x314   :  { %10889 = vmatprep.mubr.msk.bf16.mxu1 %vm2164_vm4, %v14006_v32  ;;  %10887 = vmatprep.subr.bf16.mxu1 %v13974_v49 }
 0x315   :  { %10694 = vmatpush3.bf16.msra.mxu0 %v13993_v5  ;;  %10697 = vmatprep.mubr.msk.bf16.mxu0 %vm2164_vm4, %v14006_v32 }
 0x316   :  { %10695 = vmatprep.subr.bf16.mxu0 %v14011_v62 }
 0x317   :  { %10888 = vmatpush3.bf16.msra.mxu1 %v13974_v49  ;;  %v14069_v49 = vpack.c.bf16 %v4116_v51, %v4115_v41  ;;  %v4197_v41 = vld [vmem:[#allocation2 + $0x24] sm:$0xff] }
 0x318   :  { %10893 = vmatprep.subr.bf16.mxu1 %v13993_v5 }
 0x319   :  { %10696 = vmatpush3.bf16.msra.mxu0 %v14011_v62 }
 0x31a   :  { %10701 = vmatprep.subr.bf16.mxu0 %v14028_v20 }
 0x31e   :  { %10890 = vmatmul.mubr.msk.bf16.vlgmr.msra.gmra.mrb[72].mxu1 %vm2164_vm4, %v14035_v36 }
 0x31f   :  { %10698 = vmatmul.mubr.msk.bf16.vlgmr.msra.gmra.mrb[72].mxu0 %vm2164_vm4, %v14035_v36  ;;  %10894 = vmatpush3.bf16.msra.mxu1 %v13993_v5  ;;  %v14067_v5 = vpack.c.bf16 %v4036_v6, %v13740_v63  ;;  %v14091_v63 = vld [vmem:[%s14703_s5 + $0x180] sm:$0xff]   ;;  %v4118_v6 = vld [vmem:[#allocation2 + $0xb2] sm:$0xff] }
 0x320   :  { %10897 = vmatprep.mubr.msk.bf16.mxu1 %vm2164_vm4, %v14038_v4  ;;  %10895 = vmatprep.subr.bf16.mxu1 %v14011_v62  ;;  %v14098_v51 = vpack.c.bf16 %v4118_v6, %v13772_v60  ;;  %v4200_v60 = vld [vmem:[#allocation2 + $0x54] sm:$0xff]  ;;  %v5591_v6 = vld [vmem:[#allocation2 + $0x84] sm:$0xff] }
 0x321   :  { %10702 = vmatpush3.bf16.msra.mxu0 %v14028_v20  ;;  %10705 = vmatprep.mubr.msk.bf16.mxu0 %vm2164_vm4, %v14038_v4 }
 0x322   :  { %10703 = vmatprep.subr.bf16.mxu0 %v14043_v44 }
 0x323   :  { %10896 = vmatpush3.bf16.msra.mxu1 %v14011_v62  ;;  %v14106_v62 = vld [vmem:[%s14703_s5 + $0x188] sm:$0xff]  }
 0x324   :  { %10901 = vmatprep.subr.bf16.mxu1 %v14028_v20  ;;  %14977 = vst [vmem:[#allocation92_spill] sm:$0xff] %v14106_v62 }
 0x325   :  { %10704 = vmatpush3.bf16.msra.mxu0 %v14043_v44 }
 0x326   :  { %10709 = vmatprep.subr.bf16.mxu0 %v14060_v38 }
 0x32a   :  { %10898 = vmatmul.mubr.msk.bf16.vlgmr.msra.gmra.mrb[72].mxu1 %vm2164_vm4, %v14067_v5 }
 0x32b   :  { %10706 = vmatmul.mubr.msk.bf16.vlgmr.msra.gmra.mrb[72].mxu0 %vm2164_vm4, %v14067_v5  ;;  %10902 = vmatpush3.bf16.msra.mxu1 %v14028_v20  ;;  %v14101_v20 = vpack.c.bf16 %v13806_v46, %v4197_v41  ;;  %v11962_v46 = vld [vmem:[%s14703_s5 + $0x10] sm:$0xff]   ;;  %v14127_v41 = vpack.c.bf16 %v4200_v60, %v13808_v26  ;;  %v11963_v26 = vld [vmem:[%s14703_s5 + $0x18] sm:$0xff]   ;;  %v11964_v60 = vld [vmem:[%s14703_s5] sm:$0xff]  }
 0x32c   :  { %10905 = vmatprep.mubr.msk.bf16.mxu1 %vm2164_vm4, %v14069_v49  ;;  %10903 = vmatprep.subr.bf16.mxu1 %v14043_v44 }
 0x32d   :  { %10710 = vmatpush3.bf16.msra.mxu0 %v14060_v38  ;;  %10713 = vmatprep.mubr.msk.bf16.mxu0 %vm2164_vm4, %v14069_v49 }
 0x32e   :  { %10711 = vmatprep.subr.bf16.mxu0 %v14074_v0 }
 0x32f   :  { %10904 = vmatpush3.bf16.msra.mxu1 %v14043_v44 }
 0x330   :  { %10909 = vmatprep.subr.bf16.mxu1 %v14060_v38 }
 0x331   :  { %10712 = vmatpush3.bf16.msra.mxu0 %v14074_v0 }
 0x332   :  { %10717 = vmatprep.subr.bf16.mxu0 %v14091_v63 }
 0x336   :  { %10906 = vmatmul.mubr.msk.bf16.vlgmr.msra.gmra.mrb[72].mxu1 %vm2164_vm4, %v14098_v51 }
 0x337   :  { %10714 = vmatmul.mubr.msk.bf16.vlgmr.msra.gmra.mrb[72].mxu0 %vm2164_vm4, %v14098_v51  ;;  %10910 = vmatpush3.bf16.msra.mxu1 %v14060_v38  ;;  %v14130_v38 = vpack.c.bf16 %v13843_v8, %v5591_v6  ;;  %v5594_v8 = vld [vmem:[#allocation2 + $0xb4] sm:$0xff] }
 0x338   :  { %10913 = vmatprep.mubr.msk.bf16.mxu1 %vm2164_vm4, %v14101_v20  ;;  %10911 = vmatprep.subr.bf16.mxu1 %v14074_v0  ;;  %v14152_v6 = vpack.c.bf16 %v5594_v8, %v13845_v35  ;;  %v11966_v35 = vld [vmem:[%s14703_s5 + $0x20] sm:$0xff]   ;;  %v6839_v8 = vld [vmem:[#allocation2 + $0xf2] sm:$0xff] }
 0x339   :  { %10718 = vmatpush3.bf16.msra.mxu0 %v14091_v63  ;;  %10721 = vmatprep.mubr.msk.bf16.mxu0 %vm2164_vm4, %v14101_v20 }
 0x33a   :  { %10719 = vmatprep.subr.bf16.mxu0 %v14106_v62 }
 0x33b   :  { %10912 = vmatpush3.bf16.msra.mxu1 %v14074_v0 }
 0x33c   :  { %10917 = vmatprep.subr.bf16.mxu1 %v14091_v63 }
 0x33d   :  { %10720 = vmatpush3.bf16.msra.mxu0 %v14106_v62 }
 0x33e   :  { %10925 = vmatprep.subr.bf16.mxu0 %v11962_v46 }
 0x342   :  { %10914 = vmatmul.mubr.msk.bf16.vlgmr.msra.gmra.mrb[72].mxu1 %vm2164_vm4, %v14127_v41 }
 0x343   :  { %10722 = vmatmul.mubr.msk.bf16.vlgmr.msra.gmra.mrb[72].mxu0 %vm2164_vm4, %v14127_v41  ;;  %10918 = vmatpush3.bf16.msra.mxu1 %v14091_v63 }
 0x344   :  { %10921 = vmatprep.mubr.msk.bf16.mxu1 %vm2164_vm4, %v14130_v38  ;;  %10919 = vmatprep.subr.bf16.mxu1 %v14106_v62 }
 0x345   :  { %10926 = vmatpush3.bf16.msra.mxu0 %v11962_v46  ;;  %10929 = vmatprep.mubr.msk.bf16.mxu0 %vm2164_vm4, %v13323_v33 }
 0x346   :  { %10927 = vmatprep.subr.bf16.mxu0 %v11963_v26 }
 0x347   :  { %10920 = vmatpush3.bf16.msra.mxu1 %v14106_v62  ;;  %v11965_v62 = vld [vmem:[%s14703_s5 + $0x8] sm:$0xff]  }
 0x348   :  { %11125 = vmatprep.subr.bf16.mxu1 %v11962_v46 }
 0x349   :  { %10928 = vmatpush3.bf16.msra.mxu0 %v11963_v26 }
 0x34a   :  { %10933 = vmatprep.subr.bf16.mxu0 %v11964_v60 }
 0x34c   :  { %10930 = vmatmul.mubr.msk.bf16.vlgmr.msra.gmra.mrb[76].mxu0 %vm2164_vm4, %v13399_v3 }
 0x34d   :  { %10934 = vmatpush3.bf16.msra.mxu0 %v11964_v60  ;;  %10937 = vmatprep.mubr.msk.bf16.mxu0 %vm2164_vm4, %v13265_v57  ;;  %v11967_v57 = vld [vmem:[%s14703_s5 + $0x28] sm:$0xff]  }
 0x34e   :  { %10935 = vmatprep.subr.bf16.mxu0 %v11965_v62  ;;  %10922 = vmatmul.mubr.msk.bf16.vlgmr.msra.gmra.mrb[72].mxu1 %vm2164_vm4, %v14152_v6 }
 0x34f   :  { %11126 = vmatpush3.bf16.msra.mxu1 %v11962_v46  ;;  %11129 = vmatprep.mubr.msk.bf16.mxu1 %vm2164_vm4, %v13387_v14  ;;  %v6775_v46 = vld [vmem:[#allocation2 + $0x160] sm:$0xff] }
 0x350   :  { %11127 = vmatprep.subr.bf16.mxu1 %v11963_v26 }
 0x351   :  { %10936 = vmatpush3.bf16.msra.mxu0 %v11965_v62 }
 0x352   :  { %10941 = vmatprep.subr.bf16.mxu0 %v11966_v35 }
 0x353   :  { %11128 = vmatpush3.bf16.msra.mxu1 %v11963_v26  ;;  %v6838_v26 = vld [vmem:[#allocation2 + $0xe2] sm:$0xff] }
 0x354   :  { %11133 = vmatprep.subr.bf16.mxu1 %v11964_v60 }
 0x356   :  { %11130 = vmatmul.mubr.msk.bf16.vlgmr.msra.gmra.mrb[76].mxu1 %vm2164_vm4, %v13480_v1 }
 0x357   :  { %11134 = vmatpush3.bf16.msra.mxu1 %v11964_v60  ;;  %11137 = vmatprep.mubr.msk.bf16.mxu1 %vm2164_vm4, %v13323_v33  ;;  %v11968_v33 = vld [vmem:[%s14703_s5 + $0x30] sm:$0xff]   ;;  %v14998_v60 = vld [vmem:[#allocation47_spill] sm:$0xff] }
 0x358   :  { %11135 = vmatprep.subr.bf16.mxu1 %v11965_v62  ;;  %10938 = vmatmul.mubr.msk.bf16.vlgmr.msra.gmra.mrb[76].mxu0 %vm2164_vm4, %v13327_v28  ;;  %v11969_v28 = vld [vmem:[%s14703_s5 + $0x38] sm:$0xff]  }
 0x359   :  { %10942 = vmatpush3.bf16.msra.mxu0 %v11966_v35  ;;  %10945 = vmatprep.mubr.msk.bf16.mxu0 %vm2164_vm4, %v13387_v14  ;;  %v11970_v14 = vld [vmem:[%s14703_s5 + $0x40] sm:$0xff]  }
 0x35a   :  { %10943 = vmatprep.subr.bf16.mxu0 %v11967_v57 }
 0x35b   :  { %11136 = vmatpush3.bf16.msra.mxu1 %v11965_v62 }
 0x35c   :  { %11141 = vmatprep.subr.bf16.mxu1 %v11966_v35 }
 0x35d   :  { %10944 = vmatpush3.bf16.msra.mxu0 %v11967_v57 }
 0x35e   :  { %10949 = vmatprep.subr.bf16.mxu0 %v11968_v33 }
 0x362   :  { %11138 = vmatmul.mubr.msk.bf16.vlgmr.msra.gmra.mrb[76].mxu1 %vm2164_vm4, %v13399_v3  ;;  %v11971_v3 = vld [vmem:[%s14703_s5 + $0x48] sm:$0xff]  }
 0x363   :  { %11142 = vmatpush3.bf16.msra.mxu1 %v11966_v35  ;;  %11145 = vmatprep.mubr.msk.bf16.mxu1 %vm2164_vm4, %v13470_v13  ;;  %v6842_v35 = vpack.c.bf16 %v6839_v8, %v6838_v26  ;;  %v11939_v8 = vld [vmem:[%s14705_s7 + $0x18] sm:$0xff]  }
 0x364   :  { %11143 = vmatprep.subr.bf16.mxu1 %v11967_v57  ;;  %10946 = vmatmul.mubr.msk.bf16.vlgmr.msra.gmra.mrb[76].mxu0 %vm2164_vm4, %v13480_v1  ;;  %v11973_v1 = vld [vmem:[%s14703_s5 + $0x58] sm:$0xff]  }
 0x365   :  { %10950 = vmatpush3.bf16.msra.mxu0 %v11968_v33  ;;  %10953 = vmatprep.mubr.msk.bf16.mxu0 %vm2164_vm4, %v13470_v13  ;;  %v11972_v13 = vld [vmem:[%s14703_s5 + $0x50] sm:$0xff]  }
 0x366   :  { %10951 = vmatprep.subr.bf16.mxu0 %v11969_v28 }
 0x367   :  { %11144 = vmatpush3.bf16.msra.mxu1 %v11967_v57  ;;  %v6840_v57 = vld [vmem:[#allocation2 + $0x102] sm:$0xff] }
 0x368   :  { %11149 = vmatprep.subr.bf16.mxu1 %v11968_v33 }
 0x369   :  { %10952 = vmatpush3.bf16.msra.mxu0 %v11969_v28 }
 0x36a   :  { %10957 = vmatprep.subr.bf16.mxu0 %v11970_v14 }
 0x36e   :  { %11146 = vmatmul.mubr.msk.bf16.vlgmr.msra.gmra.mrb[76].mxu1 %vm2164_vm4, %v13563_v23 }
 0x36f   :  { %11150 = vmatpush3.bf16.msra.mxu1 %v11968_v33  ;;  %11153 = vmatprep.mubr.msk.bf16.mxu1 %vm2164_vm4, %v13568_v16  ;;  %v6841_v33 = vld [vmem:[#allocation2 + $0x112] sm:$0xff] }
 0x370   :  { %11151 = vmatprep.subr.bf16.mxu1 %v11969_v28  ;;  %10954 = vmatmul.mubr.msk.bf16.vlgmr.msra.gmra.mrb[76].mxu0 %vm2164_vm4, %v13563_v23  ;;  %v11974_v23 = vld [vmem:[%s14703_s5 + $0x60] sm:$0xff]  }
 0x371   :  { %10958 = vmatpush3.bf16.msra.mxu0 %v11970_v14  ;;  %10961 = vmatprep.mubr.msk.bf16.mxu0 %vm2164_vm4, %v13568_v16  ;;  %v11976_v16 = vld [vmem:[%s14703_s5 + $0x70] sm:$0xff]  }
 0x372   :  { %10959 = vmatprep.subr.bf16.mxu0 %v11971_v3 }
 0x373   :  { %11152 = vmatpush3.bf16.msra.mxu1 %v11969_v28  ;;  %v6903_v28 = vld [vmem:[#allocation2 + $0x142] sm:$0xff] }
 0x374   :  { %11157 = vmatprep.subr.bf16.mxu1 %v11970_v14 }
 0x375   :  { %10960 = vmatpush3.bf16.msra.mxu0 %v11971_v3 }
 0x376   :  { %10965 = vmatprep.subr.bf16.mxu0 %v11972_v13 }
 0x37a   :  { %11154 = vmatmul.mubr.msk.bf16.vlgmr.msra.gmra.mrb[76].mxu1 %vm2164_vm4, %v13630_v7 }
 0x37b   :  { %11158 = vmatpush3.bf16.msra.mxu1 %v11970_v14  ;;  %11161 = vmatprep.mubr.msk.bf16.mxu1 %vm2164_vm4, %v13633_v52  ;;  %v11978_v52 = vld [vmem:[%s14703_s5 + $0x80] sm:$0xff]   ;;  %v6904_v14 = vld [vmem:[#allocation2 + $0x152] sm:$0xff] }
 0x37c   :  { %11159 = vmatprep.subr.bf16.mxu1 %v11971_v3  ;;  %10962 = vmatmul.mubr.msk.bf16.vlgmr.msra.gmra.mrb[76].mxu0 %vm2164_vm4, %v13630_v7  ;;  %v11977_v7 = vld [vmem:[%s14703_s5 + $0x78] sm:$0xff]  }
 0x37d   :  { %10966 = vmatpush3.bf16.msra.mxu0 %v11972_v13  ;;  %10969 = vmatprep.mubr.msk.bf16.mxu0 %vm2164_vm4, %v13280_v25  ;;  %v11975_v25 = vld [vmem:[%s14703_s5 + $0x68] sm:$0xff]  }
 0x37e   :  { %10967 = vmatprep.subr.bf16.mxu0 %v11973_v1 }
 0x37f   :  { %11160 = vmatpush3.bf16.msra.mxu1 %v11971_v3  ;;  %v14999_v3 = vld [vmem:[#allocation86_spill] sm:$0xff] }
 0x380   :  { %11165 = vmatprep.subr.bf16.mxu1 %v11972_v13 }
 0x381   :  { %10968 = vmatpush3.bf16.msra.mxu0 %v11973_v1 }
 0x382   :  { %10973 = vmatprep.subr.bf16.mxu0 %v11974_v23 }
 0x386   :  { %11162 = vmatmul.mubr.msk.bf16.vlgmr.msra.gmra.mrb[76].mxu1 %vm2164_vm4, %v13670_v15  ;;  %v11979_v15 = vld [vmem:[%s14703_s5 + $0x88] sm:$0xff]  }
 0x387   :  { %11166 = vmatpush3.bf16.msra.mxu1 %v11972_v13  ;;  %11169 = vmatprep.mubr.msk.bf16.mxu1 %vm2164_vm4, %v13675_v31  ;;  %v6843_v13 = vpack.c.bf16 %v6841_v33, %v6840_v57  ;;  %v11941_v57 = vld [vmem:[%s14705_s7 + $0x28] sm:$0xff]  }
 0x388   :  { %11167 = vmatprep.subr.bf16.mxu1 %v11973_v1  ;;  %10970 = vmatmul.mubr.msk.bf16.vlgmr.msra.gmra.mrb[76].mxu0 %vm2164_vm4, %v13673_v55  ;;  %v14990_v55 = vld [vmem:[#allocation70_spill] sm:$0xff] }
 0x389   :  { %10974 = vmatpush3.bf16.msra.mxu0 %v11974_v23  ;;  %10977 = vmatprep.mubr.msk.bf16.mxu0 %vm2164_vm4, %v13675_v31 }
 0x38a   :  { %10975 = vmatprep.subr.bf16.mxu0 %v11975_v25 }
 0x38b   :  { %11168 = vmatpush3.bf16.msra.mxu1 %v11973_v1  ;;  %v6907_v1 = vpack.c.bf16 %v6904_v14, %v6903_v28  ;;  %v11940_v28 = vld [vmem:[%s14705_s7 + $0x20] sm:$0xff]  }
 0x38c   :  { %11173 = vmatprep.subr.bf16.mxu1 %v11974_v23 }
 0x38d   :  { %10976 = vmatpush3.bf16.msra.mxu0 %v11975_v25 }
 0x38e   :  { %10981 = vmatprep.subr.bf16.mxu0 %v11976_v16 }
 0x392   :  { %11170 = vmatmul.mubr.msk.bf16.vlgmr.msra.gmra.mrb[76].mxu1 %vm2164_vm4, %v13709_v11 }
 0x393   :  { %11174 = vmatpush3.bf16.msra.mxu1 %v11974_v23  ;;  %11177 = vmatprep.mubr.msk.bf16.mxu1 %vm2164_vm4, %v13711_v37  ;;  %v6905_v23 = vld [vmem:[#allocation2 + $0x162] sm:$0xff] }
 0x394   :  { %11175 = vmatprep.subr.bf16.mxu1 %v11975_v25  ;;  %10978 = vmatmul.mubr.msk.bf16.vlgmr.msra.gmra.mrb[76].mxu0 %vm2164_vm4, %v13709_v11 }
 0x395   :  { %10982 = vmatpush3.bf16.msra.mxu0 %v11976_v16  ;;  %10985 = vmatprep.mubr.msk.bf16.mxu0 %vm2164_vm4, %v13711_v37  ;;  %v14991_v37 = vld [vmem:[#allocation76_spill] sm:$0xff] }
 0x396   :  { %10983 = vmatprep.subr.bf16.mxu0 %v11977_v7 }
 0x397   :  { %11176 = vmatpush3.bf16.msra.mxu1 %v11975_v25  ;;  %v6906_v25 = vld [vmem:[#allocation2 + $0x172] sm:$0xff] }
 0x398   :  { %11181 = vmatprep.subr.bf16.mxu1 %v11976_v16 }
 0x399   :  { %10984 = vmatpush3.bf16.msra.mxu0 %v11977_v7 }
 0x39a   :  { %10989 = vmatprep.subr.bf16.mxu0 %v11978_v52 }
 0x39e   :  { %11178 = vmatmul.mubr.msk.bf16.vlgmr.msra.gmra.mrb[76].mxu1 %vm2164_vm4, %v13745_v19 }
 0x39f   :  { %11182 = vmatpush3.bf16.msra.mxu1 %v11976_v16  ;;  %11185 = vmatprep.mubr.msk.bf16.mxu1 %vm2164_vm4, %v13338_v48  ;;  %v6968_v16 = vld [vmem:[#allocation2 + $0xe4] sm:$0xff] }
 0x3a0   :  { %11183 = vmatprep.subr.bf16.mxu1 %v11977_v7  ;;  %10986 = vmatmul.mubr.msk.bf16.vlgmr.msra.gmra.mrb[76].mxu0 %vm2164_vm4, %v13745_v19 }
 0x3a1   :  { %10990 = vmatpush3.bf16.msra.mxu0 %v11978_v52  ;;  %10993 = vmatprep.mubr.msk.bf16.mxu0 %vm2164_vm4, %v13338_v48  ;;  %v14978_v48 = vld [vmem:[#allocation16_spill] sm:$0xff] }
 0x3a2   :  { %10991 = vmatprep.subr.bf16.mxu0 %v13487_v50 }
 0x3a3   :  { %11184 = vmatpush3.bf16.msra.mxu1 %v11977_v7  ;;  %v6969_v7 = vld [vmem:[#allocation2 + $0xf4] sm:$0xff] }
 0x3a4   :  { %11189 = vmatprep.subr.bf16.mxu1 %v11978_v52 }
 0x3a5   :  { %10992 = vmatpush3.bf16.msra.mxu0 %v13487_v50  ;;  %v14983_v50 = vld [vmem:[#allocation61_spill] sm:$0xff] }
 0x3a6   :  { %10997 = vmatprep.subr.bf16.mxu0 %v13532_v59 }
 0x3aa   :  { %11186 = vmatmul.mubr.msk.bf16.vlgmr.msra.gmra.mrb[76].mxu1 %vm2164_vm4, %v13776_v56 }
 0x3ab   :  { %11190 = vmatpush3.bf16.msra.mxu1 %v11978_v52  ;;  %11193 = vmatprep.mubr.msk.bf16.mxu1 %vm2164_vm4, %v13779_v43  ;;  %v6908_v52 = vpack.c.bf16 %v6906_v25, %v6905_v23  ;;  %v11945_v25 = vld [vmem:[%s14705_s7 + $0x48] sm:$0xff]  }
 0x3ac   :  { %11191 = vmatprep.subr.bf16.mxu1 %v11979_v15  ;;  %10994 = vmatmul.mubr.msk.bf16.vlgmr.msra.gmra.mrb[76].mxu0 %vm2164_vm4, %v13776_v56 }
 0x3ad   :  { %10998 = vmatpush3.bf16.msra.mxu0 %v13532_v59  ;;  %11001 = vmatprep.mubr.msk.bf16.mxu0 %vm2164_vm4, %v13779_v43 }
 0x3ae   :  { %10999 = vmatprep.subr.bf16.mxu0 %v13573_v27 }
 0x3af   :  { %11192 = vmatpush3.bf16.msra.mxu1 %v11979_v15  ;;  %v6972_v15 = vpack.c.bf16 %v6969_v7, %v6968_v16  ;;  %v11944_v7 = vld [vmem:[%s14705_s7 + $0x40] sm:$0xff]  }
 0x3b0   :  { %11197 = vmatprep.subr.bf16.mxu1 %v13532_v59 }
 0x3b1   :  { %11000 = vmatpush3.bf16.msra.mxu0 %v13573_v27 }
 0x3b2   :  { %11005 = vmatprep.subr.bf16.mxu0 %v13595_v34 }
 0x3b6   :  { %11194 = vmatmul.mubr.msk.bf16.vlgmr.msra.gmra.mrb[76].mxu1 %vm2164_vm4, %v13813_v9 }
 0x3b7   :  { %11198 = vmatpush3.bf16.msra.mxu1 %v13532_v59  ;;  %11201 = vmatprep.mubr.msk.bf16.mxu1 %vm2164_vm4, %v13816_v42  ;;  %v14984_v59 = vld [vmem:[#allocation46_spill] sm:$0xff]  ;;  %v14993_v42 = vld [vmem:[#allocation77_spill] sm:$0xff] }
 0x3b8   :  { %11199 = vmatprep.subr.bf16.mxu1 %v13573_v27  ;;  %11002 = vmatmul.mubr.msk.bf16.vlgmr.msra.gmra.mrb[76].mxu0 %vm2164_vm4, %v13813_v9 }
 0x3b9   :  { %11006 = vmatpush3.bf16.msra.mxu0 %v13595_v34  ;;  %11009 = vmatprep.mubr.msk.bf16.mxu0 %vm2164_vm4, %v13392_v21  ;;  %v14979_v21 = vld [vmem:[#allocation71_spill] sm:$0xff] }
 0x3ba   :  { %11007 = vmatprep.subr.bf16.mxu0 %v13638_v54 }
 0x3bb   :  { %11200 = vmatpush3.bf16.msra.mxu1 %v13573_v27  ;;  %v14985_v27 = vld [vmem:[#allocation106_spill] sm:$0xff] }
 0x3bc   :  { %11205 = vmatprep.subr.bf16.mxu1 %v13595_v34 }
 0x3bd   :  { %11008 = vmatpush3.bf16.msra.mxu0 %v13638_v54 }
 0x3be   :  { %11013 = vmatprep.subr.bf16.mxu0 %v13656_v61 }
 0x3c2   :  { %11202 = vmatmul.mubr.msk.bf16.vlgmr.msra.gmra.mrb[76].mxu1 %vm2164_vm4, %v13850_v24  ;;  %v6709_v24 = vld [vmem:[#allocation2 + $0xf0] sm:$0xff] }
 0x3c3   :  { %11206 = vmatpush3.bf16.msra.mxu1 %v13595_v34  ;;  %11209 = vmatprep.mubr.msk.bf16.mxu1 %vm2164_vm4, %v13396_v18  ;;  %v14986_v34 = vld [vmem:[#allocation17_spill] sm:$0xff] }
 0x3c4   :  { %11207 = vmatprep.subr.bf16.mxu1 %v13638_v54  ;;  %11010 = vmatmul.mubr.msk.bf16.vlgmr.msra.gmra.mrb[76].mxu0 %vm2164_vm4, %v13853_v47 }
 0x3c5   :  { %11014 = vmatpush3.bf16.msra.mxu0 %v13656_v61  ;;  %11017 = vmatprep.mubr.msk.bf16.mxu0 %vm2164_vm4, %v13396_v18  ;;  %v14980_v18 = vld [vmem:[#allocation58_spill] sm:$0xff] }
 0x3c6   :  { %11015 = vmatprep.subr.bf16.mxu0 %v13680_v12 }
 0x3c7   :  { %11208 = vmatpush3.bf16.msra.mxu1 %v13638_v54  ;;  %v14987_v54 = vld [vmem:[#allocation21_spill] sm:$0xff] }
 0x3c8   :  { %11213 = vmatprep.subr.bf16.mxu1 %v13656_v61 }
 0x3c9   :  { %11016 = vmatpush3.bf16.msra.mxu0 %v13680_v12 }
 0x3ca   :  { %11021 = vmatprep.subr.bf16.mxu0 %v13697_v30 }
 0x3ce   :  { %11210 = vmatmul.mubr.msk.bf16.vlgmr.msra.gmra.mrb[76].mxu1 %vm2164_vm4, %v13882_v22 }
 0x3cf   :  { %11214 = vmatpush3.bf16.msra.mxu1 %v13656_v61  ;;  %11217 = vmatprep.mubr.msk.bf16.mxu1 %vm2164_vm4, %v13450_v53  ;;  %v14988_v61 = vld [vmem:[#allocation27_spill] sm:$0xff] }
 0x3d0   :  { %11215 = vmatprep.subr.bf16.mxu1 %v13680_v12  ;;  %11018 = vmatmul.mubr.msk.bf16.vlgmr.msra.gmra.mrb[76].mxu0 %vm2164_vm4, %v13882_v22 }
 0x3d1   :  { %11022 = vmatpush3.bf16.msra.mxu0 %v13697_v30  ;;  %11025 = vmatprep.mubr.msk.bf16.mxu0 %vm2164_vm4, %v13450_v53  ;;  %v14981_v53 = vld [vmem:[#allocation20_spill] sm:$0xff] }
 0x3d2   :  { %11023 = vmatprep.subr.bf16.mxu0 %v13716_v40 }
 0x3d3   :  { %11216 = vmatpush3.bf16.msra.mxu1 %v13680_v12 }
 0x3d4   :  { %11221 = vmatprep.subr.bf16.mxu1 %v13697_v30 }
 0x3d5   :  { %11024 = vmatpush3.bf16.msra.mxu0 %v13716_v40 }
 0x3d6   :  { %11029 = vmatprep.subr.bf16.mxu0 %v13733_v45 }
 0x3da   :  { %11218 = vmatmul.mubr.msk.bf16.vlgmr.msra.gmra.mrb[76].mxu1 %vm2164_vm4, %v13911_v58 }
 0x3db   :  { %11222 = vmatpush3.bf16.msra.mxu1 %v13697_v30  ;;  %11225 = vmatprep.mubr.msk.bf16.mxu1 %vm2164_vm4, %v13477_v2 }
 0x3dc   :  { %11223 = vmatprep.subr.bf16.mxu1 %v13716_v40  ;;  %11026 = vmatmul.mubr.msk.bf16.vlgmr.msra.gmra.mrb[76].mxu0 %vm2164_vm4, %v13911_v58  ;;  %v6708_v58 = vld [vmem:[#allocation2 + $0xe0] sm:$0xff] }
 0x3dd   :  { %11030 = vmatpush3.bf16.msra.mxu0 %v13733_v45  ;;  %11033 = vmatprep.mubr.msk.bf16.mxu0 %vm2164_vm4, %v13477_v2  ;;  %v14982_v2 = vld [vmem:[#allocation26_spill] sm:$0xff]  ;;  %v6712_v47 = vpack.c.bf16 %v6709_v24, %v6708_v58  ;;  %v9789_v58 = vld [vmem:[%s14704_s6] ss:$0 sm:$0xff] }
 0x3de   :  { %11031 = vmatprep.subr.bf16.mxu0 %v13750_v29 }
 0x3df   :  { %11224 = vmatpush3.bf16.msra.mxu1 %v13716_v40  ;;  %v14992_v40 = vld [vmem:[#allocation67_spill] sm:$0xff] }
 0x3e0   :  { %11229 = vmatprep.subr.bf16.mxu1 %v13733_v45 }
 0x3e1   :  { %11032 = vmatpush3.bf16.msra.mxu0 %v13750_v29 }
 0x3e2   :  { %11037 = vmatprep.subr.bf16.mxu0 %v14978_v48 }
 0x3e6   :  { %11226 = vmatmul.mubr.msk.bf16.vlgmr.msra.gmra.mrb[76].mxu1 %vm2164_vm4, %v14979_v21 }
 0x3e7   :  { %11230 = vmatpush3.bf16.msra.mxu1 %v13733_v45  ;;  %11233 = vmatprep.mubr.msk.bf16.mxu1 %vm2164_vm4, %v14980_v18 }
 0x3e8   :  { %11231 = vmatprep.subr.bf16.mxu1 %v13750_v29  ;;  %11034 = vmatmul.mubr.msk.bf16.vlgmr.msra.gmra.mrb[76].mxu0 %vm2164_vm4, %v14979_v21  ;;  %v6971_v21 = vld [vmem:[#allocation2 + $0x114] sm:$0xff] }
 0x3e9   :  { %11038 = vmatpush3.bf16.msra.mxu0 %v14978_v48  ;;  %11041 = vmatprep.mubr.msk.bf16.mxu0 %vm2164_vm4, %v14980_v18  ;;  %v8297_v18 = vld [vmem:[#allocation2 + $0x144] sm:$0xff] }
 0x3ea   :  { %11039 = vmatprep.subr.bf16.mxu0 %v14981_v53 }
 0x3eb   :  { %11232 = vmatpush3.bf16.msra.mxu1 %v13750_v29 }
 0x3ec   :  { %11237 = vmatprep.subr.bf16.mxu1 %v14978_v48 }
 0x3ed   :  { %11040 = vmatpush3.bf16.msra.mxu0 %v14981_v53 }
 0x3ee   :  { %11045 = vmatprep.subr.bf16.mxu0 %v14982_v2 }
 0x3f2   :  { %11234 = vmatmul.mubr.msk.bf16.vlgmr.msra.gmra.mrb[76].mxu1 %vm2164_vm4, %v13969_v17 }
 0x3f3   :  { %11238 = vmatpush3.bf16.msra.mxu1 %v14978_v48  ;;  %11241 = vmatprep.mubr.msk.bf16.mxu1 %vm2164_vm4, %v14983_v50  ;;  %v6970_v48 = vld [vmem:[#allocation2 + $0x104] sm:$0xff] }
 0x3f4   :  { %11239 = vmatprep.subr.bf16.mxu1 %v14981_v53  ;;  %11042 = vmatmul.mubr.msk.bf16.vlgmr.msra.gmra.mrb[76].mxu0 %vm2164_vm4, %v13969_v17  ;;  %v6773_v17 = vld [vmem:[#allocation2 + $0x140] sm:$0xff] }
 0x3f5   :  { %11046 = vmatpush3.bf16.msra.mxu0 %v14982_v2  ;;  %11049 = vmatprep.mubr.msk.bf16.mxu0 %vm2164_vm4, %v14984_v59  ;;  %v8300_v59 = vld [vmem:[#allocation2 + $0x174] sm:$0xff] }
 0x3f6   :  { %11047 = vmatprep.subr.bf16.mxu0 %v14985_v27 }
 0x3f7   :  { %11240 = vmatpush3.bf16.msra.mxu1 %v14981_v53  ;;  %v8298_v53 = vld [vmem:[#allocation2 + $0x154] sm:$0xff] }
 0x3f8   :  { %11245 = vmatprep.subr.bf16.mxu1 %v14982_v2  ;;  %v8301_v50 = vpack.c.bf16 %v8298_v53, %v8297_v18  ;;  %v11948_v53 = vld [vmem:[%s14705_s7 + $0x60] sm:$0xff]  }
 0x3f9   :  { %11048 = vmatpush3.bf16.msra.mxu0 %v14985_v27 }
 0x3fa   :  { %11053 = vmatprep.subr.bf16.mxu0 %v14986_v34 }
 0x3fe   :  { %11242 = vmatmul.mubr.msk.bf16.vlgmr.msra.gmra.mrb[76].mxu1 %vm2164_vm4, %v14000_v10  ;;  %v14994_v10 = vld [vmem:[#allocation36_spill] sm:$0xff] }
 0x3ff   :  { %11246 = vmatpush3.bf16.msra.mxu1 %v14982_v2  ;;  %11249 = vmatprep.mubr.msk.bf16.mxu1 %vm2164_vm4, %v14006_v32  ;;  %v6973_v2 = vpack.c.bf16 %v6971_v21, %v6970_v48  ;;  %v11946_v48 = vld [vmem:[%s14705_s7 + $0x50] sm:$0xff]   ;;  %v11949_v21 = vld [vmem:[%s14705_s7 + $0x68] sm:$0xff]  }
 0x400   :  { %11247 = vmatprep.subr.bf16.mxu1 %v14985_v27  ;;  %11050 = vmatmul.mubr.msk.bf16.vlgmr.msra.gmra.mrb[76].mxu0 %vm2164_vm4, %v14003_v39  ;;  %v6774_v39 = vld [vmem:[#allocation2 + $0x150] sm:$0xff] }
 0x401   :  { %11054 = vmatpush3.bf16.msra.mxu0 %v14986_v34  ;;  %11057 = vmatprep.mubr.msk.bf16.mxu0 %vm2164_vm4, %v14006_v32  ;;  %v14989_v32 = vld [vmem:[#allocation66_spill] sm:$0xff] }
 0x402   :  { %11055 = vmatprep.subr.bf16.mxu0 %v14987_v54 }
 0x403   :  { %11248 = vmatpush3.bf16.msra.mxu1 %v14985_v27 }
 0x404   :  { %11253 = vmatprep.subr.bf16.mxu1 %v14986_v34 }
 0x405   :  { %11056 = vmatpush3.bf16.msra.mxu0 %v14987_v54 }
 0x406   :  { %11061 = vmatprep.subr.bf16.mxu0 %v14988_v61 }
 0x40a   :  { %11250 = vmatmul.mubr.msk.bf16.vlgmr.msra.gmra.mrb[76].mxu1 %vm2164_vm4, %v14035_v36 }
 0x40b   :  { %11254 = vmatpush3.bf16.msra.mxu1 %v14986_v34  ;;  %11257 = vmatprep.mubr.msk.bf16.mxu1 %vm2164_vm4, %v14038_v4  ;;  %v11936_v34 = vld [vmem:[%s14705_s7 + $0x8] sm:$0xff]  }
 0x40c   :  { %11255 = vmatprep.subr.bf16.mxu1 %v14987_v54  ;;  %11058 = vmatmul.mubr.msk.bf16.vlgmr.msra.gmra.mrb[76].mxu0 %vm2164_vm4, %v14035_v36  ;;  %v6711_v36 = vld [vmem:[#allocation2 + $0x110] sm:$0xff] }
 0x40d   :  { %11062 = vmatpush3.bf16.msra.mxu0 %v14988_v61  ;;  %11065 = vmatprep.mubr.msk.bf16.mxu0 %vm2164_vm4, %v14038_v4  ;;  %v6777_v4 = vpack.c.bf16 %v6774_v39, %v6773_v17 }
 0x40e   :  { %11063 = vmatprep.subr.bf16.mxu0 %v14989_v32 }
 0x40f   :  { %11256 = vmatpush3.bf16.msra.mxu1 %v14987_v54  ;;  %v12006_v54 = vmov 0.0  }
 0x410   :  { %11261 = vmatprep.subr.bf16.mxu1 %v14988_v61 }
 0x411   :  { %11064 = vmatpush3.bf16.msra.mxu0 %v14989_v32 }
 0x412   :  { %11069 = vmatprep.subr.bf16.mxu0 %v14990_v55 }
 0x416   :  { %v14405_v31 = vpop.f32.mrb[72].mxu0  ;;  %11258 = vmatmul.mubr.msk.bf16.vlgmr.msra.gmra.mrb[76].mxu1 %vm2164_vm4, %v14067_v5 }
 0x417   :  { %v14409_v12 = vpop.f32.mrb[73].mxu0  ;;  %11262 = vmatpush3.bf16.msra.mxu1 %v14988_v61  ;;  %11265 = vmatprep.mubr.msk.bf16.mxu1 %vm2164_vm4, %v14069_v49 }
 0x418   :  { %v14414_v30 = vpop.f32.mrb[74].mxu0  ;;  %11263 = vmatprep.subr.bf16.mxu1 %v14989_v32  ;;  %11066 = vmatmul.mubr.msk.bf16.vlgmr.msra.gmra.mrb[76].mxu0 %vm2164_vm4, %v14067_v5  ;;  %v14996_v5 = vld [vmem:[#allocation37_spill] sm:$0xff] }
 0x419   :  { %v14419_v11 = vpop.f32.mrb[75].mxu0  ;;  %11070 = vmatpush3.bf16.msra.mxu0 %v14990_v55  ;;  %11073 = vmatprep.mubr.msk.bf16.mxu0 %vm2164_vm4, %v14069_v49  ;;  %v14995_v49 = vld [vmem:[#allocation42_spill] sm:$0xff] }
 0x41a   :  { %11071 = vmatprep.subr.bf16.mxu0 %v14991_v37 }
 0x41b   :  { %11264 = vmatpush3.bf16.msra.mxu1 %v14989_v32 }
 0x41c   :  { %11269 = vmatprep.subr.bf16.mxu1 %v14990_v55 }
 0x41d   :  { %11072 = vmatpush3.bf16.msra.mxu0 %v14991_v37 }
 0x41e   :  { %11077 = vmatprep.subr.bf16.mxu0 %v14992_v40 }
 0x421   :  { %v14429_v45 = vpop.f32.mrb[72].mxu1 }
 0x422   :  { %v8364_v19 = vmax.f32 %v14405_v31, %v14429_v45  ;;  %v14433_v29 = vpop.f32.mrb[73].mxu1  ;;  %11266 = vmatmul.mubr.msk.bf16.vlgmr.msra.gmra.mrb[76].mxu1 %vm2164_vm4, %v14098_v51  ;;  %v8391_v45 = vld [vmem:[%s14708_s11 + $0x10] sm:$0xff] }
 0x423   :  { %v8362_v56 = vmax.f32 %v14409_v12, %v14433_v29  ;;  %11270 = vmatpush3.bf16.msra.mxu1 %v14990_v55  ;;  %v14440_v43 = vpop.f32.mrb[74].mxu1  ;;  %11273 = vmatprep.mubr.msk.bf16.mxu1 %vm2164_vm4, %v14101_v20  ;;  %v8392_v12 = vld [vmem:[%s14708_s11 + $0x18] sm:$0xff] }
 0x424   :  { %v8365_v62 = vmax.f32 %v14414_v30, %v14440_v43  ;;  %v14446_v22 = vpop.f32.mrb[75].mxu1  ;;  %11271 = vmatprep.subr.bf16.mxu1 %v14991_v37  ;;  %11074 = vmatmul.mubr.msk.bf16.vlgmr.msra.gmra.mrb[76].mxu0 %vm2164_vm4, %v14098_v51  ;;  %v14997_v51 = vld [vmem:[#allocation43_spill] sm:$0xff] }
 0x425   :  { %v8363_v9 = vmax.f32 %v14419_v11, %v14446_v22  ;;  %11078 = vmatpush3.bf16.msra.mxu0 %v14992_v40  ;;  %11081 = vmatprep.mubr.msk.bf16.mxu0 %vm2164_vm4, %v14101_v20  ;;  %v6710_v20 = vld [vmem:[#allocation2 + $0x100] sm:$0xff]  ;;  %v8390_v11 = vld [vmem:[%s14708_s11 + $0x8] sm:$0xff] }
 0x426   :  { %11079 = vmatprep.subr.bf16.mxu0 %v14993_v42  ;;  %v8389_v30 = vld [vmem:[%s14708_s11] sm:$0xff] }
 0x427   :  { %11272 = vmatpush3.bf16.msra.mxu1 %v14991_v37 }
 0x428   :  { %11277 = vmatprep.subr.bf16.mxu1 %v14992_v40 }
 0x429   :  { %11080 = vmatpush3.bf16.msra.mxu0 %v14993_v42 }
 0x42a   :  { %11085 = vmatprep.subr.bf16.mxu0 %v14994_v10 }
 0x42e   :  { %11274 = vmatmul.mubr.msk.bf16.vlgmr.msra.gmra.mrb[76].mxu1 %vm2164_vm4, %v14127_v41 }
 0x42f   :  { %11278 = vmatpush3.bf16.msra.mxu1 %v14992_v40  ;;  %11281 = vmatprep.mubr.msk.bf16.mxu1 %vm2164_vm4, %v14130_v38  ;;  %v6713_v38 = vpack.c.bf16 %v6711_v36, %v6710_v20 }
 0x430   :  { %11279 = vmatprep.subr.bf16.mxu1 %v14993_v42  ;;  %11082 = vmatmul.mubr.msk.bf16.vlgmr.msra.gmra.mrb[76].mxu0 %vm2164_vm4, %v14127_v41  ;;  %v6776_v41 = vld [vmem:[#allocation2 + $0x170] sm:$0xff] }
 0x431   :  { %11086 = vmatpush3.bf16.msra.mxu0 %v14994_v10  ;;  %11089 = vmatprep.mubr.msk.bf16.mxu0 %vm2164_vm4, %v6712_v47 }
 0x432   :  { %11087 = vmatprep.subr.bf16.mxu0 %v14995_v49 }
 0x433   :  { %11280 = vmatpush3.bf16.msra.mxu1 %v14993_v42 }
 0x434   :  { %11285 = vmatprep.subr.bf16.mxu1 %v14994_v10 }
 0x435   :  { %11088 = vmatpush3.bf16.msra.mxu0 %v14995_v49 }
 0x436   :  { %11093 = vmatprep.subr.bf16.mxu0 %v14996_v5 }
 0x43a   :  { %11282 = vmatmul.mubr.msk.bf16.vlgmr.msra.gmra.mrb[76].mxu1 %vm2164_vm4, %v14152_v6  ;;  %v6778_v6 = vpack.c.bf16 %v6776_v41, %v6775_v46 }
 0x43b   :  { %11286 = vmatpush3.bf16.msra.mxu1 %v14994_v10  ;;  %11289 = vmatprep.mubr.msk.bf16.mxu1 %vm2164_vm4, %v6777_v4 }
 0x43c   :  { %11287 = vmatprep.subr.bf16.mxu1 %v14995_v49  ;;  %11090 = vmatmul.mubr.msk.bf16.vlgmr.msra.gmra.mrb[76].mxu0 %vm2164_vm4, %v6713_v38 }
 0x43d   :  { %11094 = vmatpush3.bf16.msra.mxu0 %v14996_v5  ;;  %11097 = vmatprep.mubr.msk.bf16.mxu0 %vm2164_vm4, %v6777_v4 }
 0x43e   :  { %11095 = vmatprep.subr.bf16.mxu0 %v14997_v51 }
 0x43f   :  { %11288 = vmatpush3.bf16.msra.mxu1 %v14995_v49 }
 0x440   :  { %11293 = vmatprep.subr.bf16.mxu1 %v14996_v5 }
 0x441   :  { %11096 = vmatpush3.bf16.msra.mxu0 %v14997_v51 }
 0x442   :  { %11101 = vmatprep.subr.bf16.mxu0 %v14998_v60 }
 0x446   :  { %11290 = vmatmul.mubr.msk.bf16.vlgmr.msra.gmra.mrb[76].mxu1 %vm2164_vm4, %v6778_v6 }
 0x447   :  { %11294 = vmatpush3.bf16.msra.mxu1 %v14996_v5  ;;  %11297 = vmatprep.mubr.msk.bf16.mxu1 %vm2164_vm4, %v6842_v35 }
 0x448   :  { %11295 = vmatprep.subr.bf16.mxu1 %v14997_v51  ;;  %11098 = vmatmul.mubr.msk.bf16.vlgmr.msra.gmra.mrb[76].mxu0 %vm2164_vm4, %v6778_v6  ;;  %v11938_v6 = vld [vmem:[%s14705_s7 + $0x10] sm:$0xff]  }
 0x449   :  { %11102 = vmatpush3.bf16.msra.mxu0 %v14998_v60  ;;  %11105 = vmatprep.mubr.msk.bf16.mxu0 %vm2164_vm4, %v6842_v35 }
 0x44a   :  { %11103 = vmatprep.subr.bf16.mxu0 %v14043_v44 }
 0x44b   :  { %11296 = vmatpush3.bf16.msra.mxu1 %v14997_v51 }
 0x44c   :  { %11301 = vmatprep.subr.bf16.mxu1 %v14998_v60 }
 0x44d   :  { %11104 = vmatpush3.bf16.msra.mxu0 %v14043_v44 }
 0x44e   :  { %11109 = vmatprep.subr.bf16.mxu0 %v14999_v3 }
 0x452   :  { %11298 = vmatmul.mubr.msk.bf16.vlgmr.msra.gmra.mrb[76].mxu1 %vm2164_vm4, %v6843_v13 }
 0x453   :  { %11302 = vmatpush3.bf16.msra.mxu1 %v14998_v60  ;;  %11305 = vmatprep.mubr.msk.bf16.mxu1 %vm2164_vm4, %v6907_v1 }
 0x454   :  { %11303 = vmatprep.subr.bf16.mxu1 %v14043_v44  ;;  %11106 = vmatmul.mubr.msk.bf16.vlgmr.msra.gmra.mrb[76].mxu0 %vm2164_vm4, %v6843_v13 }
 0x455   :  { %11110 = vmatpush3.bf16.msra.mxu0 %v14999_v3  ;;  %11113 = vmatprep.mubr.msk.bf16.mxu0 %vm2164_vm4, %v6907_v1  ;;  %v11942_v1 = vld [vmem:[%s14705_s7 + $0x30] sm:$0xff]  }
 0x456   :  { %11111 = vmatprep.subr.bf16.mxu0 %v14074_v0 }
 0x457   :  { %11304 = vmatpush3.bf16.msra.mxu1 %v14043_v44  ;;  %v15000_v44 = vld [vmem:[#allocation92_spill] sm:$0xff] }
 0x458   :  { %11309 = vmatprep.subr.bf16.mxu1 %v14999_v3 }
 0x459   :  { %11112 = vmatpush3.bf16.msra.mxu0 %v14074_v0 }
 0x45a   :  { %11117 = vmatprep.subr.bf16.mxu0 %v14091_v63 }
 0x45e   :  { %11306 = vmatmul.mubr.msk.bf16.vlgmr.msra.gmra.mrb[76].mxu1 %vm2164_vm4, %v6908_v52 }
 0x45f   :  { %11310 = vmatpush3.bf16.msra.mxu1 %v14999_v3  ;;  %11313 = vmatprep.mubr.msk.bf16.mxu1 %vm2164_vm4, %v6972_v15  ;;  %v11943_v3 = vld [vmem:[%s14705_s7 + $0x38] sm:$0xff]  }
 0x460   :  { %11311 = vmatprep.subr.bf16.mxu1 %v14074_v0  ;;  %11114 = vmatmul.mubr.msk.bf16.vlgmr.msra.gmra.mrb[76].mxu0 %vm2164_vm4, %v6908_v52 }
 0x461   :  { %11118 = vmatpush3.bf16.msra.mxu0 %v14091_v63  ;;  %11121 = vmatprep.mubr.msk.bf16.mxu0 %vm2164_vm4, %v6972_v15  ;;  %v11947_v15 = vld [vmem:[%s14705_s7 + $0x58] sm:$0xff]  }
 0x462   :  { %11119 = vmatprep.subr.bf16.mxu0 %v15000_v44 }
 0x463   :  { %11312 = vmatpush3.bf16.msra.mxu1 %v14074_v0  ;;  %v8299_v0 = vld [vmem:[#allocation2 + $0x164] sm:$0xff] }
 0x464   :  { %11317 = vmatprep.subr.bf16.mxu1 %v14091_v63  ;;  %v8302_v27 = vpack.c.bf16 %v8300_v59, %v8299_v0  ;;  %v11950_v59 = vld [vmem:[%s14705_s7 + $0x70] sm:$0xff]  }
 0x465   :  { %11120 = vmatpush3.bf16.msra.mxu0 %v15000_v44 }
 0x466   :  { %11325 = vmatprep.subr.bf16.mxu0 %v12006_v54 }
 0x46a   :  { %11314 = vmatmul.mubr.msk.bf16.vlgmr.msra.gmra.mrb[76].mxu1 %vm2164_vm4, %v6973_v2 }
 0x46b   :  { %11318 = vmatpush3.bf16.msra.mxu1 %v14091_v63  ;;  %11321 = vmatprep.mubr.msk.bf16.mxu1 %vm2164_vm4, %v8301_v50  ;;  %v11937_v63 = vld [vmem:[%s14705_s7] sm:$0xff]   ;;  %v11951_v50 = vld [vmem:[%s14705_s7 + $0x78] sm:$0xff]  }
 0x46c   :  { %11319 = vmatprep.subr.bf16.mxu1 %v15000_v44  ;;  %11122 = vmatmul.mubr.msk.bf16.vlgmr.msra.gmra.mrb[76].mxu0 %vm2164_vm4, %v6973_v2 }
 0x46d   :  { %11326 = vmatpush3.bf16.msra.mxu0 %v11936_v34  ;;  %11327 = vmatprep.mubr.msk.bf16.mxu0 %vm12007_vm7, %v12006_v54 }
 0x46e   :  { %11337 = vmatprep.subr.bf16.mxu0 %v12006_v54 }
 0x46f   :  { %11320 = vmatpush3.bf16.msra.mxu1 %v15000_v44 }
 0x470   :  { %11331 = vmatprep.subr.bf16.mxu1 %v12006_v54 }
 0x476   :  { %11322 = vmatmul.mubr.msk.bf16.vlgmr.msra.gmra.mrb[76].mxu1 %vm2164_vm4, %v8302_v27 }
 0x477   :  { %11332 = vmatpush3.bf16.msra.mxu1 %v11937_v63  ;;  %11333 = vmatprep.mubr.msk.bf16.mxu1 %vm12007_vm7, %v12006_v54 }
 0x478   :  { %11343 = vmatprep.subr.bf16.mxu1 %v12006_v54 }
 0x53f   :  { %v11123_v61 = vpop.f32.mrb[76].mxu0 }
 0x540   :  { %v7014_v32 = vpop.f32.mrb[77].mxu0 }
 0x541   :  { %v11124_v55 = vpop.f32.mrb[78].mxu0 }
 0x542   :  { %v7017_v37 = vpop.f32.mrb[79].mxu0 }
 0x549   :  { %v11323_v40 = vpop.f32.mrb[76].mxu1 }
 0x54a   :  { %v8368_v42 = vmax.f32 %v11123_v61, %v11323_v40  ;;  %v8343_v10 = vpop.f32.mrb[77].mxu1 }
 0x54b   :  { %v8366_v24 = vmax.f32 %v7014_v32, %v8343_v10  ;;  %v11324_v47 = vpop.f32.mrb[78].mxu1 }
 0x54c   :  { %v8372_v49 = vmax.f32 %v8364_v19, %v8368_v42  ;;  %v8369_v17 = vmax.f32 %v11124_v55, %v11324_v47  ;;  %v8346_v39 = vpop.f32.mrb[79].mxu1 }
 0x54d   :  { %v8370_v5 = vmax.f32 %v8362_v56, %v8366_v24  ;;  %v8367_v20 = vmax.f32 %v7017_v37, %v8346_v39 }
 0x54e   :  { %v8383_v36 = vadd.f32 %v9789_v58, %v8372_v49  ;;  %v8373_v4 = vmax.f32 %v8365_v62, %v8369_v17 }
 0x54f   :  { %v8381_v38 = vadd.f32 %v9789_v58, %v8370_v5  ;;  %v8371_v51 = vmax.f32 %v8363_v9, %v8367_v20 }
 0x550   :  { %v8387_v46 = vmax.f32 %v8383_v36, 0.0  ;;  %v8384_v31 = vadd.f32 %v9789_v58, %v8373_v4 }
 0x551   :  { %v8385_v19 = vmax.f32 %v8381_v38, 0.0  ;;  %v8382_v29 = vadd.f32 %v9789_v58, %v8371_v51 }
 0x552   :  { %v8388_v56 = vmax.f32 %v8384_v31, 0.0  ;;  %v8395_v62 = vmul.f32 %v8391_v45, %v8387_v46 }
 0x553   :  { %v8386_v43 = vmax.f32 %v8382_v29, 0.0  ;;  %v8393_v9 = vmul.f32 %v8389_v30, %v8385_v19 }
 0x554   :  { %v8396_v22 = vmul.f32 %v8392_v12, %v8388_v56 }
 0x555   :  { %v8394_v41 = vmul.f32 %v8390_v11, %v8386_v43 }
 0x556   :  { %v14572_v26 = vpack.c.bf16 %v8396_v22, %v8395_v62 }
 0x557   :  { %v8397_v60 = vpack.c.bf16 %v8394_v41, %v8393_v9 }
 0x558   :  { %v8886_v44 = vrot.slane %v14572_v26, 1  ;;  %v8994_v18 = vrot.slane %v14572_v26, 3  ;;  %v8940_v2 = vrot.slane %v14572_v26, 2  ;;  %v9102_v0 = vrot.slane %v14572_v26, 5 }
 0x559   :  { %11334 = vmatmul.mubr.msk.bf16.vlgmr.msra.gmra.mrb[80].mxu1 %vm8412_vm8, %v8397_v60  ;;  %v8405_v35 = vrot.slane %v8397_v60, 1  ;;  %v8562_v33 = vrot.slane %v8397_v60, 3  ;;  %v8508_v14 = vrot.slane %v8397_v60, 2  ;;  %v8670_v13 = vrot.slane %v8397_v60, 5 }
 0x55a   :  { %11344 = vmatpush3.bf16.msra.mxu1 %v11939_v8  ;;  %11345 = vmatprep.mubr.msk.bf16.mxu1 %vm12007_vm7, %v12006_v54  ;;  %v8616_v23 = vrot.slane %v8397_v60, 4  ;;  %v8778_v16 = vrot.slane %v8397_v60, 7  ;;  %v8724_v52 = vrot.slane %v8397_v60, 6  ;;  %v9048_v27 = vrot.slane %v14572_v26, 4 }
 0x55b   :  { %11328 = vmatmul.mubr.msk.bf16.vlgmr.msra.gmra.mrb[80].mxu0 %vm8412_vm8, %v8405_v35  ;;  %11355 = vmatprep.subr.bf16.mxu1 %v12006_v54  ;;  %v9210_v34 = vrot.slane %v14572_v26, 7  ;;  %v9156_v63 = vrot.slane %v14572_v26, 6 }
 0x55c   :  { %11338 = vmatpush3.bf16.msra.mxu0 %v11938_v6  ;;  %11339 = vmatprep.mubr.msk.bf16.mxu0 %vm12007_vm7, %v12006_v54 }
 0x55d   :  { %11349 = vmatprep.subr.bf16.mxu0 %v12006_v54 }
 0x561   :  { %11346 = vmatmul.mubr.msk.bf16.vlgmr.msra.gmra.mrb[84].mxu1 %vm8412_vm8, %v8562_v33 }
 0x562   :  { %11356 = vmatpush3.bf16.msra.mxu1 %v11941_v57  ;;  %11357 = vmatprep.mubr.msk.bf16.mxu1 %vm12007_vm7, %v12006_v54 }
 0x563   :  { %11340 = vmatmul.mubr.msk.bf16.vlgmr.msra.gmra.mrb[84].mxu0 %vm8412_vm8, %v8508_v14  ;;  %11367 = vmatprep.subr.bf16.mxu1 %v12006_v54 }
 0x564   :  { %11350 = vmatpush3.bf16.msra.mxu0 %v11940_v28  ;;  %11351 = vmatprep.mubr.msk.bf16.mxu0 %vm12007_vm7, %v12006_v54 }
 0x565   :  { %11361 = vmatprep.subr.bf16.mxu0 %v12006_v54 }
 0x569   :  { %11358 = vmatmul.mubr.msk.bf16.vlgmr.msra.gmra.mrb[88].mxu1 %vm8412_vm8, %v8670_v13 }
 0x56a   :  { %11368 = vmatpush3.bf16.msra.mxu1 %v11943_v3  ;;  %11369 = vmatprep.mubr.msk.bf16.mxu1 %vm12007_vm7, %v12006_v54 }
 0x56b   :  { %11352 = vmatmul.mubr.msk.bf16.vlgmr.msra.gmra.mrb[88].mxu0 %vm8412_vm8, %v8616_v23  ;;  %11379 = vmatprep.subr.bf16.mxu1 %v12006_v54 }
 0x56c   :  { %11362 = vmatpush3.bf16.msra.mxu0 %v11942_v1  ;;  %11363 = vmatprep.mubr.msk.bf16.mxu0 %vm12007_vm7, %v12006_v54 }
 0x56d   :  { %11373 = vmatprep.subr.bf16.mxu0 %v12006_v54 }
 0x571   :  { %11370 = vmatmul.mubr.msk.bf16.vlgmr.msra.gmra.mrb[92].mxu1 %vm8412_vm8, %v8778_v16 }
 0x572   :  { %11380 = vmatpush3.bf16.msra.mxu1 %v11945_v25  ;;  %11381 = vmatprep.mubr.msk.bf16.mxu1 %vm12007_vm7, %v12006_v54 }
 0x573   :  { %11364 = vmatmul.mubr.msk.bf16.vlgmr.msra.gmra.mrb[92].mxu0 %vm8412_vm8, %v8724_v52  ;;  %11391 = vmatprep.subr.bf16.mxu1 %v12006_v54 }
 0x574   :  { %11374 = vmatpush3.bf16.msra.mxu0 %v11944_v7  ;;  %11375 = vmatprep.mubr.msk.bf16.mxu0 %vm12007_vm7, %v12006_v54 }
 0x575   :  { %11385 = vmatprep.subr.bf16.mxu0 %v12006_v54 }
 0x579   :  { %11382 = vmatmul.mubr.msk.bf16.vlgmr.msra.gmra.mrb[96].mxu1 %vm8412_vm8, %v8886_v44 }
 0x57a   :  { %11392 = vmatpush3.bf16.msra.mxu1 %v11947_v15  ;;  %11393 = vmatprep.mubr.msk.bf16.mxu1 %vm12007_vm7, %v12006_v54 }
 0x57b   :  { %11376 = vmatmul.mubr.msk.bf16.vlgmr.msra.gmra.mrb[96].mxu0 %vm8412_vm8, %v14572_v26  ;;  %11403 = vmatprep.subr.bf16.mxu1 %v12006_v54 }
 0x57c   :  { %11386 = vmatpush3.bf16.msra.mxu0 %v11946_v48  ;;  %11387 = vmatprep.mubr.msk.bf16.mxu0 %vm12007_vm7, %v12006_v54 }
 0x57d   :  { %11397 = vmatprep.subr.bf16.mxu0 %v12006_v54 }
 0x581   :  { %11394 = vmatmul.mubr.msk.bf16.vlgmr.msra.gmra.mrb[100].mxu1 %vm8412_vm8, %v8994_v18 }
 0x582   :  { %11404 = vmatpush3.bf16.msra.mxu1 %v11949_v21  ;;  %11405 = vmatprep.mubr.msk.bf16.mxu1 %vm12007_vm7, %v12006_v54 }
 0x583   :  { %11388 = vmatmul.mubr.msk.bf16.vlgmr.msra.gmra.mrb[100].mxu0 %vm8412_vm8, %v8940_v2  ;;  %11415 = vmatprep.subr.bf16.mxu1 %v12006_v54 }
 0x584   :  { %11398 = vmatpush3.bf16.msra.mxu0 %v11948_v53  ;;  %11399 = vmatprep.mubr.msk.bf16.mxu0 %vm12007_vm7, %v12006_v54 }
 0x585   :  { %11409 = vmatprep.subr.bf16.mxu0 %v12006_v54 }
 0x589   :  { %11406 = vmatmul.mubr.msk.bf16.vlgmr.msra.gmra.mrb[104].mxu1 %vm8412_vm8, %v9102_v0 }
 0x58a   :  { %11416 = vmatpush3.bf16.msra.mxu1 %v11951_v50  ;;  %11417 = vmatprep.mubr.msk.bf16.mxu1 %vm12007_vm7, %v12006_v54 }
 0x58b   :  { %11400 = vmatmul.mubr.msk.bf16.vlgmr.msra.gmra.mrb[104].mxu0 %vm8412_vm8, %v9048_v27 }
 0x58c   :  { %11410 = vmatpush3.bf16.msra.mxu0 %v11950_v59  ;;  %11411 = vmatprep.mubr.msk.bf16.mxu0 %vm12007_vm7, %v12006_v54 }
 0x591   :  { %11418 = vmatmul.mubr.msk.bf16.vlgmr.msra.gmra.mrb[108].mxu1 %vm8412_vm8, %v9210_v34 }
 0x593   :  { %11412 = vmatmul.mubr.msk.bf16.vlgmr.msra.gmra.mrb[108].mxu0 %vm8412_vm8, %v9156_v63 }
 0x62c   :  { %v8499_v61 = vpop.f32.mrb[80].mxu1 }
 0x62d   :  { %v11335_v32 = vpop.f32.mrb[81].mxu1 }
 0x62e   :  { %v8450_v55 = vpop.f32.mrb[80].mxu0  ;;  %v8502_v37 = vpop.f32.mrb[82].mxu1 }
 0x62f   :  { %v8500_v40 = vadd.f32 %v8499_v61, %v8450_v55  ;;  %v11329_v42 = vpop.f32.mrb[81].mxu0  ;;  %v11336_v10 = vpop.f32.mrb[83].mxu1 }
 0x630   :  { %v8453_v58 = vpop.f32.mrb[82].mxu0 }
 0x631   :  { %v11330_v24 = vpop.f32.mrb[83].mxu0 }
 0x634   :  { %v8606_v47 = vpop.f32.mrb[84].mxu1 }
 0x635   :  { %v11347_v49 = vpop.f32.mrb[85].mxu1 }
 0x636   :  { %v8552_v54 = vpop.f32.mrb[84].mxu0  ;;  %v8609_v17 = vpop.f32.mrb[86].mxu1 }
 0x637   :  { %v8558_v39 = vadd.f32 %v8552_v54, %v8500_v40  ;;  %v11341_v5 = vpop.f32.mrb[85].mxu0  ;;  %v11348_v20 = vpop.f32.mrb[87].mxu1 }
 0x638   :  { %v8555_v36 = vpop.f32.mrb[86].mxu0 }
 0x639   :  { %v11342_v4 = vpop.f32.mrb[87].mxu0  ;;  %v8612_v38 = vadd.f32 %v8606_v47, %v8558_v39  ;;  %v9852_v39 = vld [vmem:[%s14706_s8] ss:$0 sm:$0xff]  ;;  %s9289_s8 = sshll.u32 %s12008_s15, 4  ;;  %s9290_s8 = int_to_ptr.vmem [resolvable:$true] %s9289_s8 }
 0x63a   :  { %s11980_s16 = scalar_lea.vmem %s9290_s8, 32  ;;  %p11985_p1 = scmp.lt.s32.totalorder %s9290_s8, %s9290_s8 }
 0x63b   :  { %p11981_p0 = scmp.ne.s32.totalorder %s9290_s8, %s11980_s16  ;;  %p11986_p2 = scmp.lt.s32.totalorder %s11980_s16, %s11980_s16 }
 0x63c   :  { %v8714_v51 = vpop.f32.mrb[88].mxu1 }
 0x63d   :  { %v11359_v46 = vpop.f32.mrb[89].mxu1  ;;  %p11987_p3 = por %p11986_p2, %p11985_p1 }
 0x63e   :  { %v8660_v31 = vpop.f32.mrb[88].mxu0  ;;  %v8717_v45 = vpop.f32.mrb[90].mxu1 }
 0x63f   :  { %v8666_v19 = vadd.f32 %v8660_v31, %v8612_v38  ;;  %v11353_v12 = vpop.f32.mrb[89].mxu0  ;;  %v11360_v29 = vpop.f32.mrb[91].mxu1  ;;  %p11988_p4 = pnand %p11987_p3, %p11981_p0 }
 0x640   :  { %v8663_v30 = vpop.f32.mrb[90].mxu0 }
 0x641   :  { %v11354_v56 = vpop.f32.mrb[91].mxu0  ;;  %v8720_v11 = vadd.f32 %v8714_v51, %v8666_v19 }
 0x644   :  { %v8822_v43 = vpop.f32.mrb[92].mxu1 }
 0x645   :  { %v11371_v62 = vpop.f32.mrb[93].mxu1 }
 0x646   :  { %v8768_v22 = vpop.f32.mrb[92].mxu0  ;;  %v8825_v9 = vpop.f32.mrb[94].mxu1 }
 0x647   :  { %v8774_v41 = vadd.f32 %v8768_v22, %v8720_v11  ;;  %v11365_v26 = vpop.f32.mrb[93].mxu0  ;;  %v11372_v8 = vpop.f32.mrb[95].mxu1 }
 0x648   :  { %v8771_v60 = vpop.f32.mrb[94].mxu0 }
 0x649   :  { %v11366_v6 = vpop.f32.mrb[95].mxu0  ;;  %v8828_v35 = vadd.f32 %v8822_v43, %v8774_v41 }
 0x64c   :  { %v8930_v57 = vpop.f32.mrb[96].mxu1 }
 0x64d   :  { %v11383_v33 = vpop.f32.mrb[97].mxu1 }
 0x64e   :  { %v8875_v28 = vpop.f32.mrb[96].mxu0  ;;  %v8933_v14 = vpop.f32.mrb[98].mxu1 }
 0x64f   :  { %v8881_v3 = vadd.f32 %v8875_v28, %v8828_v35  ;;  %v11377_v13 = vpop.f32.mrb[97].mxu0  ;;  %v11384_v1 = vpop.f32.mrb[99].mxu1 }
 0x650   :  { %v8878_v23 = vpop.f32.mrb[98].mxu0 }
 0x651   :  { %v11378_v25 = vpop.f32.mrb[99].mxu0  ;;  %v8936_v16 = vadd.f32 %v8930_v57, %v8881_v3 }
 0x654   :  { %v9038_v7 = vpop.f32.mrb[100].mxu1 }
 0x655   :  { %v11395_v52 = vpop.f32.mrb[101].mxu1 }
 0x656   :  { %v8984_v15 = vpop.f32.mrb[100].mxu0  ;;  %v9041_v44 = vpop.f32.mrb[102].mxu1 }
 0x657   :  { %v8990_v48 = vadd.f32 %v8984_v15, %v8936_v16  ;;  %v11389_v21 = vpop.f32.mrb[101].mxu0  ;;  %v11396_v18 = vpop.f32.mrb[103].mxu1 }
 0x658   :  { %v8987_v53 = vpop.f32.mrb[102].mxu0 }
 0x659   :  { %v11390_v2 = vpop.f32.mrb[103].mxu0  ;;  %v9044_v50 = vadd.f32 %v9038_v7, %v8990_v48 }
 0x65c   :  { %v9146_v0 = vpop.f32.mrb[104].mxu1 }
 0x65d   :  { %v11407_v59 = vpop.f32.mrb[105].mxu1 }
 0x65e   :  { %v9092_v27 = vpop.f32.mrb[104].mxu0  ;;  %v9149_v34 = vpop.f32.mrb[106].mxu1 }
 0x65f   :  { %v9098_v63 = vadd.f32 %v9092_v27, %v9044_v50  ;;  %v11401_v61 = vpop.f32.mrb[105].mxu0  ;;  %v11408_v32 = vpop.f32.mrb[107].mxu1 }
 0x660   :  { %v9095_v55 = vpop.f32.mrb[106].mxu0 }
 0x661   :  { %v11402_v37 = vpop.f32.mrb[107].mxu0  ;;  %v9152_v40 = vadd.f32 %v9146_v0, %v9098_v63 }
 0x664   :  { %v9254_v42 = vpop.f32.mrb[108].mxu1 }
 0x665   :  { %v11419_v10 = vpop.f32.mrb[109].mxu1 }
 0x666   :  { %v9200_v58 = vpop.f32.mrb[108].mxu0  ;;  %v9257_v24 = vpop.f32.mrb[110].mxu1 }
 0x667   :  { %v9206_v47 = vadd.f32 %v9200_v58, %v9152_v40  ;;  %v11413_v49 = vpop.f32.mrb[109].mxu0  ;;  %v11420_v54 = vpop.f32.mrb[111].mxu1 }
 0x668   :  { %v9203_v17 = vpop.f32.mrb[110].mxu0 }
 0x669   :  { %v9260_v5 = vadd.f32 %v9254_v42, %v9206_v47  ;;  %v11414_v20 = vpop.f32.mrb[111].mxu0 }
 0x66b   :  { %v9268_v36 = vadd.f32 %v9852_v39, %v9260_v5 }
 0x66d   :  { %v9270_v4 = vsel %vm9269_vm9, %v9268_v36, -inf }
 0x66e   :  { %9271 = vmax.xlane.f32.xlu1 %v9270_v4 }
 0x6fb   :  { %v9272_v38 = vpop.xlane.xlu1 %9271 }
 0x6fc   :  { %v9273_v51 = vsub.f32 %v9268_v36, %v9272_v38 }
 0x6fe   :  { %v9274_v46 = vmul.f32 1.442695, %v9273_v51 }
 0x700   :  { %11954 = vpow2.f32 %v9274_v46 }
 0x70a   :  { %v11955_v31 = vpop.eup %11954 }
 0x70b   :  { %v9276_v45 = vsel %vm9269_vm9, %v11955_v31, 0.0 }
 0x70c   :  { %9277 = vadd.xlane.f32.xlu0 %v9276_v45 }
 0x799   :  { %v9278_v19 = vpop.xlane.xlu0 %9277 }
 0x79a   :  { %11956 = vlog2.f32 %v9278_v19 }
 0x7a4   :  { %v11957_v12 = vpop.eup %11956 }
 0x7a5   :  { %v9280_v29 = vmul.f32 0.6931472, %v11957_v12 }
 0x7a7   :  { %v9281_v30 = vsub.f32 %v9273_v51, %v9280_v29 }
 0x7a9   :  { %9282 = vst.msk [vmem:[#allocation5] sm:$0x3] %vm9269_vm9, %v9281_v30 }
 0x7aa   :  { %11991 = shalt.err (!%p11988_p4)
}
 0x7ab   :  { %s11992_s18 = scalar_lea.hbm %s14709_s12, 32 }
 0x7ac   :  { %p11993_p5 = scmp.ne.s32.totalorder %s14709_s12, %s11992_s18  ;;  %p11996_p6 = scmp.lt.u32.totalorder %s11992_s18, %s14709_s12 }
 0x7ae   :  { %p11998_p7 = pnand %p11996_p6, %p11993_p5 }
 0x7b0   :  { %12001 = shalt.err (!%p11998_p7)
}
 0x7b1   :  { %9292 = dma.vmem_to_hbm [thread:$0]  %s9290_s8, 32, %s14709_s12, [#allocation6]  }
 0x7b2   :  { %12002 = dma.done.wait [#allocation6], 32  }
 0x7b3   :  { %12003 = vsyncadd [#allocation6], 4294967264 }
 0x7b4   :  { %9296 = vsyncpa [#allocation6], 1 }

</bundles_post_ra>
